<compile_context>
chip_gen: v7x
topology: tpu7x:2x2x1
jax: 0.10.0
libtpu: 0.0.40
codegen_flags: <defaults>
</compile_context>

<pallas_src>
import functools

import jax
import jax.numpy as jnp
from jax.experimental import pallas as pl
from jax.experimental.pallas import tpu as pltpu


_VMEM_LIMIT = 48 * 1024 * 1024


def _round_up(x, m):
    return (x + m - 1) // m * m


def _pick_channel_tile(C, align=1):
    """Channel tile that divides C, is a multiple of `align`, and is ==C or a
    multiple of 128 (lane constraint)."""
    if C <= 512:
        return C
    for ct in (512, 256, 128):
        if C % ct == 0 and ct % align == 0:
            return ct
    return C


# ----------------------------------------------------------------------------
# Kernel 1: fused GroupNorm + SiLU, emitting the conv-ready padded bf16 layout.
# One grid step = (sample, channel-group tile).  Stats are computed in f32
# from the (upcast) input; per-group means come from a tiny block-diagonal
# aggregation matmul.  The pad region (rows 0,1,H+2,H+3 and cols >= W) is
# written as zeros so the conv kernel's shifted-slice taps see correct
# zero-padding.
# ----------------------------------------------------------------------------
def _gn_silu_pad_kernel(x_ref, agg_ref, gamma_ref, beta_ref, o_ref, *, H, W, eps):
    y = x_ref[0].astype(jnp.float32).reshape(H * W, -1)            # (HW, CT) f32
    s1 = jnp.sum(y, axis=0, keepdims=True)                         # per-channel sum
    mean = jnp.dot(s1, agg_ref[...], preferred_element_type=jnp.float32)
    d = y - mean                                                   # centered (numerics)
    s2 = jnp.sum(d * d, axis=0, keepdims=True)
    var = jnp.dot(s2, agg_ref[...], preferred_element_type=jnp.float32)
    scale = jax.lax.rsqrt(var + eps) * gamma_ref[...]
    z = d * scale + beta_ref[...]
    a = z * jax.nn.sigmoid(z)                                      # SiLU
    o_ref[...] = jnp.zeros_like(o_ref)                             # zero the pad region
    o_ref[0, 2:H + 2, :W, :] = a.reshape(H, W, -1).astype(o_ref.dtype)


def groupnorm_silu_pad(x, gamma, beta, *, groups=32, eps=1e-5):
    """x: (N, H, W, C) float.  Returns padded (N, H+4, Wq, C) bf16."""
    N, H, W, C = x.shape
    assert C % groups == 0, "GroupNorm(32, C) requires C % 32 == 0"
    assert W % 8 == 0, "W must be a multiple of 8 (sublane tiling)"
    gs = C // groups
    Wq = _round_up(W + 1, 8)
    CT = _pick_channel_tile(C, align=gs)           # whole groups per channel tile

    gidx = jnp.arange(CT) // gs                    # same agg block for every tile
    agg = (gidx[:, None] == gidx[None, :]).astype(jnp.float32) / float(gs * H * W)
    gamma2 = gamma.astype(jnp.float32).reshape(1, C)
    beta2 = beta.astype(jnp.float32).reshape(1, C)

    kernel = functools.partial(_gn_silu_pad_kernel, H=H, W=W, eps=eps)
    return pl.pallas_call(
        kernel,
        out_shape=jax.ShapeDtypeStruct((N, H + 4, Wq, C), jnp.bfloat16),
        grid_spec=pltpu.PrefetchScalarGridSpec(
            num_scalar_prefetch=0,
            grid=(N, C // CT),
            in_specs=[
                pl.BlockSpec((1, H, W, CT), lambda n, c: (n, 0, 0, c)),
                pl.BlockSpec((CT, CT), lambda n, c: (0, 0)),
                pl.BlockSpec((1, CT), lambda n, c: (0, c)),
                pl.BlockSpec((1, CT), lambda n, c: (0, c)),
            ],
            out_specs=pl.BlockSpec((1, H + 4, Wq, CT), lambda n, c: (n, 0, 0, c)),
        ),
        compiler_params=pltpu.CompilerParams(
            dimension_semantics=("parallel", "parallel"),
            vmem_limit_bytes=_VMEM_LIMIT),
    )(x, agg, gamma2, beta2)


# ----------------------------------------------------------------------------
# Kernel 2: 3x3 / stride-1 / pad-1 conv on the padded layout, as 9 shifted-slice
# MXU matmuls with f32 accumulation, fused bias and (optionally) the fused
# residual path (identity skip or 1x1-projection).  One grid step =
# (sample, C_out tile).
# ----------------------------------------------------------------------------
def _conv3x3_kernel(xp_ref, w_ref, b_ref, *rest, H, W, Wq, res_mode):
    if res_mode == "proj":
        xres_ref, upw_ref, upb_ref, o_ref = rest
    elif res_mode == "identity":
        xres_ref, o_ref = rest
    else:
        (o_ref,) = rest

    cin = xp_ref.shape[-1]
    flat = xp_ref[0].reshape((H + 4) * Wq, cin)                    # bf16, padded image
    acc = None
    for dy in range(3):
        for dx in range(3):
            # Tap (dy, dx): value at output (h, w) is flat[(h+dy+1)*Wq + (w+dx-1)];
            # out-of-range taps hit the zero pad rows / columns by construction.
            start = (dy + 1) * Wq + (dx - 1)
            a = flat[start:start + H * Wq, :]
            c = jnp.dot(a, w_ref[dy * 3 + dx],
                        preferred_element_type=jnp.float32)        # MXU, f32 acc
            acc = c if acc is None else acc + c

    out = acc.reshape(H, Wq, -1)[:, :W, :] + b_ref[...]            # drop pad cols + bias

    if res_mode == "identity":
        out = out + xres_ref[0].astype(jnp.float32)
    elif res_mode == "proj":
        xr = xres_ref[0].astype(jnp.bfloat16).reshape(H * W, -1)
        r = jnp.dot(xr, upw_ref[...], preferred_element_type=jnp.float32)
        out = out + r.reshape(H, W, -1) + upb_ref[...]

    o_ref[0] = out.astype(o_ref.dtype)


def conv3x3(xp, w9, bias, *, H, W, out_dtype, residual=None, res_proj=None):
    """xp: (N, H+4, Wq, C_in) bf16 padded activations (from groupnorm_silu_pad).
    w9: (9, C_in, C_out) tap-major weights.  bias: (C_out,).
    residual: optional (N, H, W, C_res) added to the output (identity skip if
    res_proj is None, else 1x1-projected with res_proj=(up_w (C_res,C_out), up_b))."""
    N, Hp, Wq, C_in = xp.shape
    assert Hp == H + 4
    C_out = w9.shape[-1]
    TC = _pick_channel_tile(C_out)
    bias2 = bias.astype(jnp.float32).reshape(1, C_out)

    inputs = [xp, w9.astype(jnp.bfloat16), bias2]
    in_specs = [
        pl.BlockSpec((1, Hp, Wq, C_in), lambda n, j: (n, 0, 0, 0)),
        pl.BlockSpec((9, C_in, TC), lambda n, j: (0, 0, j)),
        pl.BlockSpec((1, TC), lambda n, j: (0, j)),
    ]
    if residual is not None and res_proj is not None:
        res_mode = "proj"
        upw, upb = res_proj
        c_res = residual.shape[-1]
        inputs += [residual, upw.astype(jnp.bfloat16),
                   upb.astype(jnp.float32).reshape(1, C_out)]
        in_specs += [
            pl.BlockSpec((1, H, W, c_res), lambda n, j: (n, 0, 0, 0)),
            pl.BlockSpec((c_res, TC), lambda n, j: (0, j)),
            pl.BlockSpec((1, TC), lambda n, j: (0, j)),
        ]
    elif residual is not None:
        res_mode = "identity"
        inputs += [residual]
        in_specs += [pl.BlockSpec((1, H, W, TC), lambda n, j: (n, 0, 0, j))]
    else:
        res_mode = "none"

    kernel = functools.partial(_conv3x3_kernel, H=H, W=W, Wq=Wq, res_mode=res_mode)
    return pl.pallas_call(
        kernel,
        out_shape=jax.ShapeDtypeStruct((N, H, W, C_out), out_dtype),
        grid_spec=pltpu.PrefetchScalarGridSpec(
            num_scalar_prefetch=0,
            grid=(N, C_out // TC),
            in_specs=in_specs,
            out_specs=pl.BlockSpec((1, H, W, TC), lambda n, j: (n, 0, 0, j)),
        ),
        compiler_params=pltpu.CompilerParams(
            dimension_semantics=("parallel", "parallel"),
            vmem_limit_bytes=_VMEM_LIMIT),
    )(*inputs)


# ----------------------------------------------------------------------------
# ResidualBlock parameters + forward
# ----------------------------------------------------------------------------
def init_residual_block_params(key, in_ch, out_ch):
    ks = jax.random.split(key, 10)

    def convw(k, co, ci, ksz):
        fan_in = ci * ksz * ksz
        return jax.random.normal(k, (co, ci, ksz, ksz),
                                 jnp.float32) / jnp.sqrt(float(fan_in))

    p = dict(
        gn1_w=1.0 + 0.1 * jax.random.normal(ks[0], (in_ch,), jnp.float32),
        gn1_b=0.1 * jax.random.normal(ks[1], (in_ch,), jnp.float32),
        conv1_w=convw(ks[2], out_ch, in_ch, 3),
        conv1_b=0.1 * jax.random.normal(ks[3], (out_ch,), jnp.float32),
        gn2_w=1.0 + 0.1 * jax.random.normal(ks[4], (out_ch,), jnp.float32),
        gn2_b=0.1 * jax.random.normal(ks[5], (out_ch,), jnp.float32),
        conv2_w=convw(ks[6], out_ch, out_ch, 3),
        conv2_b=0.1 * jax.random.normal(ks[7], (out_ch,), jnp.float32),
    )
    if in_ch != out_ch:
        p['up_w'] = convw(ks[8], out_ch, in_ch, 1)
        p['up_b'] = 0.1 * jax.random.normal(ks[9], (out_ch,), jnp.float32)
    return p


def residual_block_forward(params, x_nchw):
    """NCHW in / NCHW out (PyTorch convention); NHWC internally."""
    N, C_in, H, W = x_nchw.shape
    C_out = params['conv1_w'].shape[0]
    x = jnp.transpose(x_nchw, (0, 2, 3, 1))                       # (N,H,W,C_in)

    # GN1 + SiLU (emits the padded bf16 layout conv1 consumes directly).
    h = groupnorm_silu_pad(x, params['gn1_w'], params['gn1_b'])
    w1 = jnp.transpose(params['conv1_w'], (2, 3, 1, 0)).reshape(9, C_in, C_out)
    h = conv3x3(h, w1, params['conv1_b'], H=H, W=W, out_dtype=jnp.bfloat16)

    # GN2 + SiLU + conv2 with the residual path fused into the conv2 kernel.
    h = groupnorm_silu_pad(h, params['gn2_w'], params['gn2_b'])
    w2 = jnp.transpose(params['conv2_w'], (2, 3, 1, 0)).reshape(9, C_out, C_out)
    if 'up_w' in params:
        res_proj = (params['up_w'][:, :, 0, 0].T, params['up_b'])
        out = conv3x3(h, w2, params['conv2_b'], H=H, W=W, out_dtype=jnp.float32,
                      residual=x, res_proj=res_proj)
    else:
        out = conv3x3(h, w2, params['conv2_b'], H=H, W=W, out_dtype=jnp.float32,
                      residual=x)
    return jnp.transpose(out, (0, 3, 1, 2))


# ----------------------------------------------------------------------------
# Pure-JAX f32 reference (correctness check only)
# ----------------------------------------------------------------------------
def residual_block_ref(params, x):
    eps = 1e-5

    def gn(y, w, b, groups=32):
        Nn, C, Hh, Ww = y.shape
        yg = y.reshape(Nn, groups, C // groups, Hh, Ww)
        mean = jnp.mean(yg, axis=(2, 3, 4), keepdims=True)
        var = jnp.var(yg, axis=(2, 3, 4), keepdims=True)
        yg = (yg - mean) * jax.lax.rsqrt(var + eps)
        y = yg.reshape(Nn, C, Hh, Ww)
        return y * w[None, :, None, None] + b[None, :, None, None]

    def silu(y):
        return y * jax.nn.sigmoid(y)

    def conv(y, w, b, pad):
        out = jax.lax.conv_general_dilated(
            y, w, window_strides=(1, 1), padding=((pad, pad), (pad, pad)),
            dimension_numbers=('NCHW', 'OIHW', 'NCHW'))
        return out + b[None, :, None, None]

    h = conv(silu(gn(x, params['gn1_w'], params['gn1_b'])),
             params['conv1_w'], params['conv1_b'], 1)
    h = conv(silu(gn(h, params['gn2_w'], params['gn2_b'])),
             params['conv2_w'], params['conv2_b'], 1)
    res = conv(x, params['up_w'], params['up_b'], 0) if 'up_w' in params else x
    return res + h


if __name__ == "__main__":
    key = jax.random.PRNGKey(0)
    k1, k2, kx = jax.random.split(key, 3)

    # GroupNorm(32, ch) requires ch % 32 == 0 -> use 32 -> 64 channels.
    N, H, W = 2, 16, 16
    x = jax.random.normal(kx, (N, 32, H, W), jnp.float32)

    fwd = jax.jit(residual_block_forward)

    # Case A: in_ch != out_ch (exercises the fused channel_up 1x1 conv).
    params_a = init_residual_block_params(k1, in_ch=32, out_ch=64)
    out_a = jax.block_until_ready(fwd(params_a, x))
    assert out_a.shape == (N, 64, H, W), out_a.shape
    ref_a = jax.block_until_ready(residual_block_ref(params_a, x))
    assert jnp.allclose(out_a, ref_a, atol=5e-2, rtol=5e-2), \
        float(jnp.max(jnp.abs(out_a - ref_a)))

    # Case B: in_ch == out_ch (identity residual, fused).
    params_b = init_residual_block_params(k2, in_ch=32, out_ch=32)
    out_b = jax.block_until_ready(fwd(params_b, x))
    assert out_b.shape == (N, 32, H, W), out_b.shape
    ref_b = jax.block_until_ready(residual_block_ref(params_b, x))
    assert jnp.allclose(out_b, ref_b, atol=5e-2, rtol=5e-2), \
        float(jnp.max(jnp.abs(out_b - ref_b)))

    print("KERNEL_OK")
</pallas_src>

<mosaic_0001>
module attributes {stable_mosaic.version = 11 : i64} {
  func.func @_gn_silu_pad_kernel(%arg0: i32, %arg1: i32, %arg2: memref<1x16x16x32xf32, #tpu.memory_space<vmem>>, %arg3: memref<32x32xf32, #tpu.memory_space<vmem>>, %arg4: memref<1x32xf32, #tpu.memory_space<vmem>>, %arg5: memref<1x32xf32, #tpu.memory_space<vmem>>, %arg6: memref<1x20x24x32xbf16, #tpu.memory_space<vmem>>) attributes {dimension_semantics = [#tpu.dimension_semantics<parallel>, #tpu.dimension_semantics<parallel>], iteration_bounds = array<i64: 2, 1>, scalar_prefetch = 0 : i64, scratch_operands = 0 : i64, tpu.core_type = #tpu.core_type<tc>, window_params = [{transform_indices = @transform_0, window_bounds = array<i64: 1, 16, 16, 32>}, {pipeline_mode = #tpu.pipeline_mode<synchronous>, transform_indices = @transform_1, window_bounds = array<i64: 32, 32>}, {transform_indices = @transform_2, window_bounds = array<i64: 1, 32>}, {transform_indices = @transform_3, window_bounds = array<i64: 1, 32>}, {transform_indices = @transform_4, window_bounds = array<i64: 1, 20, 24, 32>}]} {
    %c0 = arith.constant 0 : index
    %c0_0 = arith.constant 0 : index
    %c0_1 = arith.constant 0 : index
    %c0_2 = arith.constant 0 : index
    %0 = vector.load %arg2[%c0, %c0_0, %c0_1, %c0_2] : memref<1x16x16x32xf32, #tpu.memory_space<vmem>>, vector<1x16x16x32xf32>
    %1 = vector.shape_cast %0 : vector<1x16x16x32xf32> to vector<16x16x32xf32>
    %2 = vector.shape_cast %1 : vector<16x16x32xf32> to vector<256x32xf32>
    %cst = arith.constant dense<0.000000e+00> : vector<32xf32>
    %3 = vector.multi_reduction <add>, %2, %cst [0] : vector<256x32xf32> to vector<32xf32>
    %4 = vector.shape_cast %3 : vector<32xf32> to vector<1x32xf32>
    %c0_3 = arith.constant 0 : index
    %c0_4 = arith.constant 0 : index
    %5 = vector.load %arg3[%c0_3, %c0_4] : memref<32x32xf32, #tpu.memory_space<vmem>>, vector<32x32xf32>
    %cst_5 = arith.constant dense<0.000000e+00> : vector<1x32xf32>
    %6 = tpu.matmul %4, %5, %cst_5 {dimension_numbers = #tpu.dot_dimension_numbers<[1], [0], [0], [1], [0, 0, 1, 1], [], []>} : vector<1x32xf32>, vector<32x32xf32>, vector<1x32xf32> -> vector<1x32xf32>
    %7 = vector.broadcast %6 : vector<1x32xf32> to vector<256x32xf32>
    %8 = arith.subf %2, %7 : vector<256x32xf32>
    %9 = arith.mulf %8, %8 : vector<256x32xf32>
    %cst_6 = arith.constant dense<0.000000e+00> : vector<32xf32>
    %10 = vector.multi_reduction <add>, %9, %cst_6 [0] : vector<256x32xf32> to vector<32xf32>
    %11 = vector.shape_cast %10 : vector<32xf32> to vector<1x32xf32>
    %c0_7 = arith.constant 0 : index
    %c0_8 = arith.constant 0 : index
    %12 = vector.load %arg3[%c0_7, %c0_8] : memref<32x32xf32, #tpu.memory_space<vmem>>, vector<32x32xf32>
    %cst_9 = arith.constant dense<0.000000e+00> : vector<1x32xf32>
    %13 = tpu.matmul %11, %12, %cst_9 {dimension_numbers = #tpu.dot_dimension_numbers<[1], [0], [0], [1], [0, 0, 1, 1], [], []>} : vector<1x32xf32>, vector<32x32xf32>, vector<1x32xf32> -> vector<1x32xf32>
    %cst_10 = arith.constant 9.99999974E-6 : f32
    %14 = vector.broadcast %cst_10 : f32 to vector<1x32xf32>
    %15 = arith.addf %13, %14 : vector<1x32xf32>
    %16 = math.rsqrt %15 : vector<1x32xf32>
    %c0_11 = arith.constant 0 : index
    %c0_12 = arith.constant 0 : index
    %17 = vector.load %arg4[%c0_11, %c0_12] : memref<1x32xf32, #tpu.memory_space<vmem>>, vector<1x32xf32>
    %18 = arith.mulf %16, %17 : vector<1x32xf32>
    %19 = vector.broadcast %18 : vector<1x32xf32> to vector<256x32xf32>
    %20 = arith.mulf %8, %19 : vector<256x32xf32>
    %c0_13 = arith.constant 0 : index
    %c0_14 = arith.constant 0 : index
    %21 = vector.load %arg5[%c0_13, %c0_14] : memref<1x32xf32, #tpu.memory_space<vmem>>, vector<1x32xf32>
    %22 = vector.broadcast %21 : vector<1x32xf32> to vector<256x32xf32>
    %23 = arith.addf %20, %22 : vector<256x32xf32>
    %24 = arith.negf %23 : vector<256x32xf32>
    %25 = math.exp %24 : vector<256x32xf32>
    %cst_15 = arith.constant 1.000000e+00 : f32
    %26 = vector.broadcast %cst_15 : f32 to vector<256x32xf32>
    %27 = arith.addf %26, %25 : vector<256x32xf32>
    %28 = arith.divf %26, %27 : vector<256x32xf32>
    %29 = arith.mulf %23, %28 : vector<256x32xf32>
    %cst_16 = arith.constant 0.000000e+00 : bf16
    %30 = vector.broadcast %cst_16 : bf16 to vector<1x20x24x32xbf16>
    %c0_17 = arith.constant 0 : index
    %c0_18 = arith.constant 0 : index
    %c0_19 = arith.constant 0 : index
    %c0_20 = arith.constant 0 : index
    %31 = vector.load %arg6[%c0_17, %c0_18, %c0_19, %c0_20] : memref<1x20x24x32xbf16, #tpu.memory_space<vmem>>, vector<1x20x24x32xbf16>
    tpu.vector_store %arg6[%c0_17, %c0_18, %c0_19, %c0_20], %30 {strides = array<i32>} : memref<1x20x24x32xbf16, #tpu.memory_space<vmem>>, vector<1x20x24x32xbf16>,
    %32 = vector.shape_cast %29 : vector<256x32xf32> to vector<16x16x32xf32>
    %33 = arith.truncf %32 : vector<16x16x32xf32> to vector<16x16x32xbf16>
    %c0_21 = arith.constant 0 : index
    %c2 = arith.constant 2 : index
    %c0_22 = arith.constant 0 : index
    %c0_23 = arith.constant 0 : index
    %34 = vector.load %arg6[%c0_21, %c2, %c0_22, %c0_23] : memref<1x20x24x32xbf16, #tpu.memory_space<vmem>>, vector<1x16x16x32xbf16>
    %35 = vector.shape_cast %34 : vector<1x16x16x32xbf16> to vector<16x16x32xbf16>
    %36 = vector.shape_cast %33 : vector<16x16x32xbf16> to vector<1x16x16x32xbf16>
    tpu.vector_store %arg6[%c0_21, %c2, %c0_22, %c0_23], %36 {strides = array<i32>} : memref<1x20x24x32xbf16, #tpu.memory_space<vmem>>, vector<1x16x16x32xbf16>,
    return
  }
  func.func @transform_0(%arg0: i32, %arg1: i32) -> (i32, i32, i32, i32) {
    %c0_i32 = arith.constant 0 : i32
    %c0_i32_0 = arith.constant 0 : i32
    %c0_i32_1 = arith.constant 0 : i32
    return %arg0, %c0_i32, %c0_i32_0, %arg1 : i32, i32, i32, i32
  }
  func.func @transform_1(%arg0: i32, %arg1: i32) -> (i32, i32) {
    %c0_i32 = arith.constant 0 : i32
    %c0_i32_0 = arith.constant 0 : i32
    %c0_i32_1 = arith.constant 0 : i32
    return %c0_i32, %c0_i32_0 : i32, i32
  }
  func.func @transform_2(%arg0: i32, %arg1: i32) -> (i32, i32) {
    %c0_i32 = arith.constant 0 : i32
    %c0_i32_0 = arith.constant 0 : i32
    return %c0_i32, %arg1 : i32, i32
  }
  func.func @transform_3(%arg0: i32, %arg1: i32) -> (i32, i32) {
    %c0_i32 = arith.constant 0 : i32
    %c0_i32_0 = arith.constant 0 : i32
    return %c0_i32, %arg1 : i32, i32
  }
  func.func @transform_4(%arg0: i32, %arg1: i32) -> (i32, i32, i32, i32) {
    %c0_i32 = arith.constant 0 : i32
    %c0_i32_0 = arith.constant 0 : i32
    %c0_i32_1 = arith.constant 0 : i32
    return %arg0, %c0_i32, %c0_i32_0, %arg1 : i32, i32, i32, i32
  }
}

module attributes {stable_mosaic.version = 11 : i64} {
  func.func @_gn_silu_pad_kernel(%arg0: i32, %arg1: i32, %arg2: memref<1x16x16x64xbf16, #tpu.memory_space<vmem>>, %arg3: memref<64x64xf32, #tpu.memory_space<vmem>>, %arg4: memref<1x64xf32, #tpu.memory_space<vmem>>, %arg5: memref<1x64xf32, #tpu.memory_space<vmem>>, %arg6: memref<1x20x24x64xbf16, #tpu.memory_space<vmem>>) attributes {dimension_semantics = [#tpu.dimension_semantics<parallel>, #tpu.dimension_semantics<parallel>], iteration_bounds = array<i64: 2, 1>, scalar_prefetch = 0 : i64, scratch_operands = 0 : i64, tpu.core_type = #tpu.core_type<tc>, window_params = [{transform_indices = @transform_0, window_bounds = array<i64: 1, 16, 16, 64>}, {pipeline_mode = #tpu.pipeline_mode<synchronous>, transform_indices = @transform_1, window_bounds = array<i64: 64, 64>}, {transform_indices = @transform_2, window_bounds = array<i64: 1, 64>}, {transform_indices = @transform_3, window_bounds = array<i64: 1, 64>}, {transform_indices = @transform_4, window_bounds = array<i64: 1, 20, 24, 64>}]} {
    %c0 = arith.constant 0 : index
    %c0_0 = arith.constant 0 : index
    %c0_1 = arith.constant 0 : index
    %c0_2 = arith.constant 0 : index
    %0 = vector.load %arg2[%c0, %c0_0, %c0_1, %c0_2] : memref<1x16x16x64xbf16, #tpu.memory_space<vmem>>, vector<1x16x16x64xbf16>
    %1 = vector.shape_cast %0 : vector<1x16x16x64xbf16> to vector<16x16x64xbf16>
    %2 = arith.extf %1 : vector<16x16x64xbf16> to vector<16x16x64xf32>
    %3 = vector.shape_cast %2 : vector<16x16x64xf32> to vector<256x64xf32>
    %cst = arith.constant dense<0.000000e+00> : vector<64xf32>
    %4 = vector.multi_reduction <add>, %3, %cst [0] : vector<256x64xf32> to vector<64xf32>
    %5 = vector.shape_cast %4 : vector<64xf32> to vector<1x64xf32>
    %c0_3 = arith.constant 0 : index
    %c0_4 = arith.constant 0 : index
    %6 = vector.load %arg3[%c0_3, %c0_4] : memref<64x64xf32, #tpu.memory_space<vmem>>, vector<64x64xf32>
    %cst_5 = arith.constant dense<0.000000e+00> : vector<1x64xf32>
    %7 = tpu.matmul %5, %6, %cst_5 {dimension_numbers = #tpu.dot_dimension_numbers<[1], [0], [0], [1], [0, 0, 1, 1], [], []>} : vector<1x64xf32>, vector<64x64xf32>, vector<1x64xf32> -> vector<1x64xf32>
    %8 = vector.broadcast %7 : vector<1x64xf32> to vector<256x64xf32>
    %9 = arith.subf %3, %8 : vector<256x64xf32>
    %10 = arith.mulf %9, %9 : vector<256x64xf32>
    %cst_6 = arith.constant dense<0.000000e+00> : vector<64xf32>
    %11 = vector.multi_reduction <add>, %10, %cst_6 [0] : vector<256x64xf32> to vector<64xf32>
    %12 = vector.shape_cast %11 : vector<64xf32> to vector<1x64xf32>
    %c0_7 = arith.constant 0 : index
    %c0_8 = arith.constant 0 : index
    %13 = vector.load %arg3[%c0_7, %c0_8] : memref<64x64xf32, #tpu.memory_space<vmem>>, vector<64x64xf32>
    %cst_9 = arith.constant dense<0.000000e+00> : vector<1x64xf32>
    %14 = tpu.matmul %12, %13, %cst_9 {dimension_numbers = #tpu.dot_dimension_numbers<[1], [0], [0], [1], [0, 0, 1, 1], [], []>} : vector<1x64xf32>, vector<64x64xf32>, vector<1x64xf32> -> vector<1x64xf32>
    %cst_10 = arith.constant 9.99999974E-6 : f32
    %15 = vector.broadcast %cst_10 : f32 to vector<1x64xf32>
    %16 = arith.addf %14, %15 : vector<1x64xf32>
    %17 = math.rsqrt %16 : vector<1x64xf32>
    %c0_11 = arith.constant 0 : index
    %c0_12 = arith.constant 0 : index
    %18 = vector.load %arg4[%c0_11, %c0_12] : memref<1x64xf32, #tpu.memory_space<vmem>>, vector<1x64xf32>
    %19 = arith.mulf %17, %18 : vector<1x64xf32>
    %20 = vector.broadcast %19 : vector<1x64xf32> to vector<256x64xf32>
    %21 = arith.mulf %9, %20 : vector<256x64xf32>
    %c0_13 = arith.constant 0 : index
    %c0_14 = arith.constant 0 : index
    %22 = vector.load %arg5[%c0_13, %c0_14] : memref<1x64xf32, #tpu.memory_space<vmem>>, vector<1x64xf32>
    %23 = vector.broadcast %22 : vector<1x64xf32> to vector<256x64xf32>
    %24 = arith.addf %21, %23 : vector<256x64xf32>
    %25 = arith.negf %24 : vector<256x64xf32>
    %26 = math.exp %25 : vector<256x64xf32>
    %cst_15 = arith.constant 1.000000e+00 : f32
    %27 = vector.broadcast %cst_15 : f32 to vector<256x64xf32>
    %28 = arith.addf %27, %26 : vector<256x64xf32>
    %29 = arith.divf %27, %28 : vector<256x64xf32>
    %30 = arith.mulf %24, %29 : vector<256x64xf32>
    %cst_16 = arith.constant 0.000000e+00 : bf16
    %31 = vector.broadcast %cst_16 : bf16 to vector<1x20x24x64xbf16>
    %c0_17 = arith.constant 0 : index
    %c0_18 = arith.constant 0 : index
    %c0_19 = arith.constant 0 : index
    %c0_20 = arith.constant 0 : index
    %32 = vector.load %arg6[%c0_17, %c0_18, %c0_19, %c0_20] : memref<1x20x24x64xbf16, #tpu.memory_space<vmem>>, vector<1x20x24x64xbf16>
    tpu.vector_store %arg6[%c0_17, %c0_18, %c0_19, %c0_20], %31 {strides = array<i32>} : memref<1x20x24x64xbf16, #tpu.memory_space<vmem>>, vector<1x20x24x64xbf16>,
    %33 = vector.shape_cast %30 : vector<256x64xf32> to vector<16x16x64xf32>
    %34 = arith.truncf %33 : vector<16x16x64xf32> to vector<16x16x64xbf16>
    %c0_21 = arith.constant 0 : index
    %c2 = arith.constant 2 : index
    %c0_22 = arith.constant 0 : index
    %c0_23 = arith.constant 0 : index
    %35 = vector.load %arg6[%c0_21, %c2, %c0_22, %c0_23] : memref<1x20x24x64xbf16, #tpu.memory_space<vmem>>, vector<1x16x16x64xbf16>
    %36 = vector.shape_cast %35 : vector<1x16x16x64xbf16> to vector<16x16x64xbf16>
    %37 = vector.shape_cast %34 : vector<16x16x64xbf16> to vector<1x16x16x64xbf16>
    tpu.vector_store %arg6[%c0_21, %c2, %c0_22, %c0_23], %37 {strides = array<i32>} : memref<1x20x24x64xbf16, #tpu.memory_space<vmem>>, vector<1x16x16x64xbf16>,
    return
  }
  func.func @transform_0(%arg0: i32, %arg1: i32) -> (i32, i32, i32, i32) {
    %c0_i32 = arith.constant 0 : i32
    %c0_i32_0 = arith.constant 0 : i32
    %c0_i32_1 = arith.constant 0 : i32
    return %arg0, %c0_i32, %c0_i32_0, %arg1 : i32, i32, i32, i32
  }
  func.func @transform_1(%arg0: i32, %arg1: i32) -> (i32, i32) {
    %c0_i32 = arith.constant 0 : i32
    %c0_i32_0 = arith.constant 0 : i32
    %c0_i32_1 = arith.constant 0 : i32
    return %c0_i32, %c0_i32_0 : i32, i32
  }
  func.func @transform_2(%arg0: i32, %arg1: i32) -> (i32, i32) {
    %c0_i32 = arith.constant 0 : i32
    %c0_i32_0 = arith.constant 0 : i32
    return %c0_i32, %arg1 : i32, i32
  }
  func.func @transform_3(%arg0: i32, %arg1: i32) -> (i32, i32) {
    %c0_i32 = arith.constant 0 : i32
    %c0_i32_0 = arith.constant 0 : i32
    return %c0_i32, %arg1 : i32, i32
  }
  func.func @transform_4(%arg0: i32, %arg1: i32) -> (i32, i32, i32, i32) {
    %c0_i32 = arith.constant 0 : i32
    %c0_i32_0 = arith.constant 0 : i32
    %c0_i32_1 = arith.constant 0 : i32
    return %arg0, %c0_i32, %c0_i32_0, %arg1 : i32, i32, i32, i32
  }
}

module attributes {stable_mosaic.version = 11 : i64} {
  func.func @_conv3x3_kernel(%arg0: i32, %arg1: i32, %arg2: memref<1x20x24x32xbf16, #tpu.memory_space<vmem>>, %arg3: memref<9x32x64xbf16, #tpu.memory_space<vmem>>, %arg4: memref<1x64xf32, #tpu.memory_space<vmem>>, %arg5: memref<1x16x16x64xbf16, #tpu.memory_space<vmem>>) attributes {dimension_semantics = [#tpu.dimension_semantics<parallel>, #tpu.dimension_semantics<parallel>], iteration_bounds = array<i64: 2, 1>, scalar_prefetch = 0 : i64, scratch_operands = 0 : i64, tpu.core_type = #tpu.core_type<tc>, window_params = [{transform_indices = @transform_0, window_bounds = array<i64: 1, 20, 24, 32>}, {transform_indices = @transform_1, window_bounds = array<i64: 9, 32, 64>}, {transform_indices = @transform_2, window_bounds = array<i64: 1, 64>}, {transform_indices = @transform_3, window_bounds = array<i64: 1, 16, 16, 64>}]} {
    %c0 = arith.constant 0 : index
    %c0_0 = arith.constant 0 : index
    %c0_1 = arith.constant 0 : index
    %c0_2 = arith.constant 0 : index
    %0 = vector.load %arg2[%c0, %c0_0, %c0_1, %c0_2] : memref<1x20x24x32xbf16, #tpu.memory_space<vmem>>, vector<1x20x24x32xbf16>
    %1 = vector.shape_cast %0 : vector<1x20x24x32xbf16> to vector<20x24x32xbf16>
    %2 = vector.shape_cast %1 : vector<20x24x32xbf16> to vector<480x32xbf16>
    %3 = vector.extract_strided_slice %2 {offsets = [23, 0], sizes = [384, 32], strides = [1, 1]} : vector<480x32xbf16> to vector<384x32xbf16>
    %c0_3 = arith.constant 0 : index
    %c0_4 = arith.constant 0 : index
    %c0_5 = arith.constant 0 : index
    %4 = vector.load %arg3[%c0_3, %c0_4, %c0_5] : memref<9x32x64xbf16, #tpu.memory_space<vmem>>, vector<1x32x64xbf16>
    %5 = vector.shape_cast %4 : vector<1x32x64xbf16> to vector<32x64xbf16>
    %cst = arith.constant dense<0.000000e+00> : vector<384x64xf32>
    %6 = tpu.matmul %3, %5, %cst {dimension_numbers = #tpu.dot_dimension_numbers<[1], [0], [0], [1], [0, 0, 1, 1], [], []>} : vector<384x32xbf16>, vector<32x64xbf16>, vector<384x64xf32> -> vector<384x64xf32>
    %7 = vector.extract_strided_slice %2 {offsets = [24, 0], sizes = [384, 32], strides = [1, 1]} : vector<480x32xbf16> to vector<384x32xbf16>
    %c1 = arith.constant 1 : index
    %c0_6 = arith.constant 0 : index
    %c0_7 = arith.constant 0 : index
    %8 = vector.load %arg3[%c1, %c0_6, %c0_7] : memref<9x32x64xbf16, #tpu.memory_space<vmem>>, vector<1x32x64xbf16>
    %9 = vector.shape_cast %8 : vector<1x32x64xbf16> to vector<32x64xbf16>
    %cst_8 = arith.constant dense<0.000000e+00> : vector<384x64xf32>
    %10 = tpu.matmul %7, %9, %cst_8 {dimension_numbers = #tpu.dot_dimension_numbers<[1], [0], [0], [1], [0, 0, 1, 1], [], []>} : vector<384x32xbf16>, vector<32x64xbf16>, vector<384x64xf32> -> vector<384x64xf32>
    %11 = arith.addf %6, %10 : vector<384x64xf32>
    %12 = vector.extract_strided_slice %2 {offsets = [25, 0], sizes = [384, 32], strides = [1, 1]} : vector<480x32xbf16> to vector<384x32xbf16>
    %c2 = arith.constant 2 : index
    %c0_9 = arith.constant 0 : index
    %c0_10 = arith.constant 0 : index
    %13 = vector.load %arg3[%c2, %c0_9, %c0_10] : memref<9x32x64xbf16, #tpu.memory_space<vmem>>, vector<1x32x64xbf16>
    %14 = vector.shape_cast %13 : vector<1x32x64xbf16> to vector<32x64xbf16>
    %cst_11 = arith.constant dense<0.000000e+00> : vector<384x64xf32>
    %15 = tpu.matmul %12, %14, %cst_11 {dimension_numbers = #tpu.dot_dimension_numbers<[1], [0], [0], [1], [0, 0, 1, 1], [], []>} : vector<384x32xbf16>, vector<32x64xbf16>, vector<384x64xf32> -> vector<384x64xf32>
    %16 = arith.addf %11, %15 : vector<384x64xf32>
    %17 = vector.extract_strided_slice %2 {offsets = [47, 0], sizes = [384, 32], strides = [1, 1]} : vector<480x32xbf16> to vector<384x32xbf16>
    %c3 = arith.constant 3 : index
    %c0_12 = arith.constant 0 : index
    %c0_13 = arith.constant 0 : index
    %18 = vector.load %arg3[%c3, %c0_12, %c0_13] : memref<9x32x64xbf16, #tpu.memory_space<vmem>>, vector<1x32x64xbf16>
    %19 = vector.shape_cast %18 : vector<1x32x64xbf16> to vector<32x64xbf16>
    %cst_14 = arith.constant dense<0.000000e+00> : vector<384x64xf32>
    %20 = tpu.matmul %17, %19, %cst_14 {dimension_numbers = #tpu.dot_dimension_numbers<[1], [0], [0], [1], [0, 0, 1, 1], [], []>} : vector<384x32xbf16>, vector<32x64xbf16>, vector<384x64xf32> -> vector<384x64xf32>
    %21 = arith.addf %16, %20 : vector<384x64xf32>
    %22 = vector.extract_strided_slice %2 {offsets = [48, 0], sizes = [384, 32], strides = [1, 1]} : vector<480x32xbf16> to vector<384x32xbf16>
    %c4 = arith.constant 4 : index
    %c0_15 = arith.constant 0 : index
    %c0_16 = arith.constant 0 : index
    %23 = vector.load %arg3[%c4, %c0_15, %c0_16] : memref<9x32x64xbf16, #tpu.memory_space<vmem>>, vector<1x32x64xbf16>
    %24 = vector.shape_cast %23 : vector<1x32x64xbf16> to vector<32x64xbf16>
    %cst_17 = arith.constant dense<0.000000e+00> : vector<384x64xf32>
    %25 = tpu.matmul %22, %24, %cst_17 {dimension_numbers = #tpu.dot_dimension_numbers<[1], [0], [0], [1], [0, 0, 1, 1], [], []>} : vector<384x32xbf16>, vector<32x64xbf16>, vector<384x64xf32> -> vector<384x64xf32>
    %26 = arith.addf %21, %25 : vector<384x64xf32>
    %27 = vector.extract_strided_slice %2 {offsets = [49, 0], sizes = [384, 32], strides = [1, 1]} : vector<480x32xbf16> to vector<384x32xbf16>
    %c5 = arith.constant 5 : index
    %c0_18 = arith.constant 0 : index
    %c0_19 = arith.constant 0 : index
    %28 = vector.load %arg3[%c5, %c0_18, %c0_19] : memref<9x32x64xbf16, #tpu.memory_space<vmem>>, vector<1x32x64xbf16>
    %29 = vector.shape_cast %28 : vector<1x32x64xbf16> to vector<32x64xbf16>
    %cst_20 = arith.constant dense<0.000000e+00> : vector<384x64xf32>
    %30 = tpu.matmul %27, %29, %cst_20 {dimension_numbers = #tpu.dot_dimension_numbers<[1], [0], [0], [1], [0, 0, 1, 1], [], []>} : vector<384x32xbf16>, vector<32x64xbf16>, vector<384x64xf32> -> vector<384x64xf32>
    %31 = arith.addf %26, %30 : vector<384x64xf32>
    %32 = vector.extract_strided_slice %2 {offsets = [71, 0], sizes = [384, 32], strides = [1, 1]} : vector<480x32xbf16> to vector<384x32xbf16>
    %c6 = arith.constant 6 : index
    %c0_21 = arith.constant 0 : index
    %c0_22 = arith.constant 0 : index
    %33 = vector.load %arg3[%c6, %c0_21, %c0_22] : memref<9x32x64xbf16, #tpu.memory_space<vmem>>, vector<1x32x64xbf16>
    %34 = vector.shape_cast %33 : vector<1x32x64xbf16> to vector<32x64xbf16>
    %cst_23 = arith.constant dense<0.000000e+00> : vector<384x64xf32>
    %35 = tpu.matmul %32, %34, %cst_23 {dimension_numbers = #tpu.dot_dimension_numbers<[1], [0], [0], [1], [0, 0, 1, 1], [], []>} : vector<384x32xbf16>, vector<32x64xbf16>, vector<384x64xf32> -> vector<384x64xf32>
    %36 = arith.addf %31, %35 : vector<384x64xf32>
    %37 = vector.extract_strided_slice %2 {offsets = [72, 0], sizes = [384, 32], strides = [1, 1]} : vector<480x32xbf16> to vector<384x32xbf16>
    %c7 = arith.constant 7 : index
    %c0_24 = arith.constant 0 : index
    %c0_25 = arith.constant 0 : index
    %38 = vector.load %arg3[%c7, %c0_24, %c0_25] : memref<9x32x64xbf16, #tpu.memory_space<vmem>>, vector<1x32x64xbf16>
    %39 = vector.shape_cast %38 : vector<1x32x64xbf16> to vector<32x64xbf16>
    %cst_26 = arith.constant dense<0.000000e+00> : vector<384x64xf32>
    %40 = tpu.matmul %37, %39, %cst_26 {dimension_numbers = #tpu.dot_dimension_numbers<[1], [0], [0], [1], [0, 0, 1, 1], [], []>} : vector<384x32xbf16>, vector<32x64xbf16>, vector<384x64xf32> -> vector<384x64xf32>
    %41 = arith.addf %36, %40 : vector<384x64xf32>
    %42 = vector.extract_strided_slice %2 {offsets = [73, 0], sizes = [384, 32], strides = [1, 1]} : vector<480x32xbf16> to vector<384x32xbf16>
    %c8 = arith.constant 8 : index
    %c0_27 = arith.constant 0 : index
    %c0_28 = arith.constant 0 : index
    %43 = vector.load %arg3[%c8, %c0_27, %c0_28] : memref<9x32x64xbf16, #tpu.memory_space<vmem>>, vector<1x32x64xbf16>
    %44 = vector.shape_cast %43 : vector<1x32x64xbf16> to vector<32x64xbf16>
    %cst_29 = arith.constant dense<0.000000e+00> : vector<384x64xf32>
    %45 = tpu.matmul %42, %44, %cst_29 {dimension_numbers = #tpu.dot_dimension_numbers<[1], [0], [0], [1], [0, 0, 1, 1], [], []>} : vector<384x32xbf16>, vector<32x64xbf16>, vector<384x64xf32> -> vector<384x64xf32>
    %46 = arith.addf %41, %45 : vector<384x64xf32>
    %47 = vector.shape_cast %46 : vector<384x64xf32> to vector<16x24x64xf32>
    %48 = vector.extract_strided_slice %47 {offsets = [0, 0, 0], sizes = [16, 16, 64], strides = [1, 1, 1]} : vector<16x24x64xf32> to vector<16x16x64xf32>
    %c0_30 = arith.constant 0 : index
    %c0_31 = arith.constant 0 : index
    %49 = vector.load %arg4[%c0_30, %c0_31] : memref<1x64xf32, #tpu.memory_space<vmem>>, vector<1x64xf32>
    %50 = vector.shape_cast %49 : vector<1x64xf32> to vector<1x1x64xf32>
    %51 = vector.broadcast %50 : vector<1x1x64xf32> to vector<16x16x64xf32>
    %52 = arith.addf %48, %51 : vector<16x16x64xf32>
    %53 = arith.truncf %52 : vector<16x16x64xf32> to vector<16x16x64xbf16>
    %c0_32 = arith.constant 0 : index
    %c0_33 = arith.constant 0 : index
    %c0_34 = arith.constant 0 : index
    %c0_35 = arith.constant 0 : index
    %54 = vector.load %arg5[%c0_32, %c0_33, %c0_34, %c0_35] : memref<1x16x16x64xbf16, #tpu.memory_space<vmem>>, vector<1x16x16x64xbf16>
    %55 = vector.shape_cast %54 : vector<1x16x16x64xbf16> to vector<16x16x64xbf16>
    %56 = vector.shape_cast %53 : vector<16x16x64xbf16> to vector<1x16x16x64xbf16>
    tpu.vector_store %arg5[%c0_32, %c0_33, %c0_34, %c0_35], %56 {strides = array<i32>} : memref<1x16x16x64xbf16, #tpu.memory_space<vmem>>, vector<1x16x16x64xbf16>,
    return
  }
  func.func @transform_0(%arg0: i32, %arg1: i32) -> (i32, i32, i32, i32) {
    %c0_i32 = arith.constant 0 : i32
    %c0_i32_0 = arith.constant 0 : i32
    %c0_i32_1 = arith.constant 0 : i32
    %c0_i32_2 = arith.constant 0 : i32
    return %arg0, %c0_i32, %c0_i32_0, %c0_i32_1 : i32, i32, i32, i32
  }
  func.func @transform_1(%arg0: i32, %arg1: i32) -> (i32, i32, i32) {
    %c0_i32 = arith.constant 0 : i32
    %c0_i32_0 = arith.constant 0 : i32
    %c0_i32_1 = arith.constant 0 : i32
    return %c0_i32, %c0_i32_0, %arg1 : i32, i32, i32
  }
  func.func @transform_2(%arg0: i32, %arg1: i32) -> (i32, i32) {
    %c0_i32 = arith.constant 0 : i32
    %c0_i32_0 = arith.constant 0 : i32
    return %c0_i32, %arg1 : i32, i32
  }
  func.func @transform_3(%arg0: i32, %arg1: i32) -> (i32, i32, i32, i32) {
    %c0_i32 = arith.constant 0 : i32
    %c0_i32_0 = arith.constant 0 : i32
    %c0_i32_1 = arith.constant 0 : i32
    return %arg0, %c0_i32, %c0_i32_0, %arg1 : i32, i32, i32, i32
  }
}

module attributes {stable_mosaic.version = 11 : i64} {
  func.func @_conv3x3_kernel(%arg0: i32, %arg1: i32, %arg2: memref<1x20x24x64xbf16, #tpu.memory_space<vmem>>, %arg3: memref<9x64x64xbf16, #tpu.memory_space<vmem>>, %arg4: memref<1x64xf32, #tpu.memory_space<vmem>>, %arg5: memref<1x16x16x32xf32, #tpu.memory_space<vmem>>, %arg6: memref<32x64xbf16, #tpu.memory_space<vmem>>, %arg7: memref<1x64xf32, #tpu.memory_space<vmem>>, %arg8: memref<1x16x16x64xf32, #tpu.memory_space<vmem>>) attributes {dimension_semantics = [#tpu.dimension_semantics<parallel>, #tpu.dimension_semantics<parallel>], iteration_bounds = array<i64: 2, 1>, scalar_prefetch = 0 : i64, scratch_operands = 0 : i64, tpu.core_type = #tpu.core_type<tc>, window_params = [{transform_indices = @transform_0, window_bounds = array<i64: 1, 20, 24, 64>}, {transform_indices = @transform_1, window_bounds = array<i64: 9, 64, 64>}, {transform_indices = @transform_2, window_bounds = array<i64: 1, 64>}, {transform_indices = @transform_3, window_bounds = array<i64: 1, 16, 16, 32>}, {transform_indices = @transform_4, window_bounds = array<i64: 32, 64>}, {transform_indices = @transform_5, window_bounds = array<i64: 1, 64>}, {transform_indices = @transform_6, window_bounds = array<i64: 1, 16, 16, 64>}]} {
    %c0 = arith.constant 0 : index
    %c0_0 = arith.constant 0 : index
    %c0_1 = arith.constant 0 : index
    %c0_2 = arith.constant 0 : index
    %0 = vector.load %arg2[%c0, %c0_0, %c0_1, %c0_2] : memref<1x20x24x64xbf16, #tpu.memory_space<vmem>>, vector<1x20x24x64xbf16>
    %1 = vector.shape_cast %0 : vector<1x20x24x64xbf16> to vector<20x24x64xbf16>
    %2 = vector.shape_cast %1 : vector<20x24x64xbf16> to vector<480x64xbf16>
    %3 = vector.extract_strided_slice %2 {offsets = [23, 0], sizes = [384, 64], strides = [1, 1]} : vector<480x64xbf16> to vector<384x64xbf16>
    %c0_3 = arith.constant 0 : index
    %c0_4 = arith.constant 0 : index
    %c0_5 = arith.constant 0 : index
    %4 = vector.load %arg3[%c0_3, %c0_4, %c0_5] : memref<9x64x64xbf16, #tpu.memory_space<vmem>>, vector<1x64x64xbf16>
    %5 = vector.shape_cast %4 : vector<1x64x64xbf16> to vector<64x64xbf16>
    %cst = arith.constant dense<0.000000e+00> : vector<384x64xf32>
    %6 = tpu.matmul %3, %5, %cst {dimension_numbers = #tpu.dot_dimension_numbers<[1], [0], [0], [1], [0, 0, 1, 1], [], []>} : vector<384x64xbf16>, vector<64x64xbf16>, vector<384x64xf32> -> vector<384x64xf32>
    %7 = vector.extract_strided_slice %2 {offsets = [24, 0], sizes = [384, 64], strides = [1, 1]} : vector<480x64xbf16> to vector<384x64xbf16>
    %c1 = arith.constant 1 : index
    %c0_6 = arith.constant 0 : index
    %c0_7 = arith.constant 0 : index
    %8 = vector.load %arg3[%c1, %c0_6, %c0_7] : memref<9x64x64xbf16, #tpu.memory_space<vmem>>, vector<1x64x64xbf16>
    %9 = vector.shape_cast %8 : vector<1x64x64xbf16> to vector<64x64xbf16>
    %cst_8 = arith.constant dense<0.000000e+00> : vector<384x64xf32>
    %10 = tpu.matmul %7, %9, %cst_8 {dimension_numbers = #tpu.dot_dimension_numbers<[1], [0], [0], [1], [0, 0, 1, 1], [], []>} : vector<384x64xbf16>, vector<64x64xbf16>, vector<384x64xf32> -> vector<384x64xf32>
    %11 = arith.addf %6, %10 : vector<384x64xf32>
    %12 = vector.extract_strided_slice %2 {offsets = [25, 0], sizes = [384, 64], strides = [1, 1]} : vector<480x64xbf16> to vector<384x64xbf16>
    %c2 = arith.constant 2 : index
    %c0_9 = arith.constant 0 : index
    %c0_10 = arith.constant 0 : index
    %13 = vector.load %arg3[%c2, %c0_9, %c0_10] : memref<9x64x64xbf16, #tpu.memory_space<vmem>>, vector<1x64x64xbf16>
    %14 = vector.shape_cast %13 : vector<1x64x64xbf16> to vector<64x64xbf16>
    %cst_11 = arith.constant dense<0.000000e+00> : vector<384x64xf32>
    %15 = tpu.matmul %12, %14, %cst_11 {dimension_numbers = #tpu.dot_dimension_numbers<[1], [0], [0], [1], [0, 0, 1, 1], [], []>} : vector<384x64xbf16>, vector<64x64xbf16>, vector<384x64xf32> -> vector<384x64xf32>
    %16 = arith.addf %11, %15 : vector<384x64xf32>
    %17 = vector.extract_strided_slice %2 {offsets = [47, 0], sizes = [384, 64], strides = [1, 1]} : vector<480x64xbf16> to vector<384x64xbf16>
    %c3 = arith.constant 3 : index
    %c0_12 = arith.constant 0 : index
    %c0_13 = arith.constant 0 : index
    %18 = vector.load %arg3[%c3, %c0_12, %c0_13] : memref<9x64x64xbf16, #tpu.memory_space<vmem>>, vector<1x64x64xbf16>
    %19 = vector.shape_cast %18 : vector<1x64x64xbf16> to vector<64x64xbf16>
    %cst_14 = arith.constant dense<0.000000e+00> : vector<384x64xf32>
    %20 = tpu.matmul %17, %19, %cst_14 {dimension_numbers = #tpu.dot_dimension_numbers<[1], [0], [0], [1], [0, 0, 1, 1], [], []>} : vector<384x64xbf16>, vector<64x64xbf16>, vector<384x64xf32> -> vector<384x64xf32>
    %21 = arith.addf %16, %20 : vector<384x64xf32>
    %22 = vector.extract_strided_slice %2 {offsets = [48, 0], sizes = [384, 64], strides = [1, 1]} : vector<480x64xbf16> to vector<384x64xbf16>
    %c4 = arith.constant 4 : index
    %c0_15 = arith.constant 0 : index
    %c0_16 = arith.constant 0 : index
    %23 = vector.load %arg3[%c4, %c0_15, %c0_16] : memref<9x64x64xbf16, #tpu.memory_space<vmem>>, vector<1x64x64xbf16>
    %24 = vector.shape_cast %23 : vector<1x64x64xbf16> to vector<64x64xbf16>
    %cst_17 = arith.constant dense<0.000000e+00> : vector<384x64xf32>
    %25 = tpu.matmul %22, %24, %cst_17 {dimension_numbers = #tpu.dot_dimension_numbers<[1], [0], [0], [1], [0, 0, 1, 1], [], []>} : vector<384x64xbf16>, vector<64x64xbf16>, vector<384x64xf32> -> vector<384x64xf32>
    %26 = arith.addf %21, %25 : vector<384x64xf32>
    %27 = vector.extract_strided_slice %2 {offsets = [49, 0], sizes = [384, 64], strides = [1, 1]} : vector<480x64xbf16> to vector<384x64xbf16>
    %c5 = arith.constant 5 : index
    %c0_18 = arith.constant 0 : index
    %c0_19 = arith.constant 0 : index
    %28 = vector.load %arg3[%c5, %c0_18, %c0_19] : memref<9x64x64xbf16, #tpu.memory_space<vmem>>, vector<1x64x64xbf16>
    %29 = vector.shape_cast %28 : vector<1x64x64xbf16> to vector<64x64xbf16>
    %cst_20 = arith.constant dense<0.000000e+00> : vector<384x64xf32>
    %30 = tpu.matmul %27, %29, %cst_20 {dimension_numbers = #tpu.dot_dimension_numbers<[1], [0], [0], [1], [0, 0, 1, 1], [], []>} : vector<384x64xbf16>, vector<64x64xbf16>, vector<384x64xf32> -> vector<384x64xf32>
    %31 = arith.addf %26, %30 : vector<384x64xf32>
    %32 = vector.extract_strided_slice %2 {offsets = [71, 0], sizes = [384, 64], strides = [1, 1]} : vector<480x64xbf16> to vector<384x64xbf16>
    %c6 = arith.constant 6 : index
    %c0_21 = arith.constant 0 : index
    %c0_22 = arith.constant 0 : index
    %33 = vector.load %arg3[%c6, %c0_21, %c0_22] : memref<9x64x64xbf16, #tpu.memory_space<vmem>>, vector<1x64x64xbf16>
    %34 = vector.shape_cast %33 : vector<1x64x64xbf16> to vector<64x64xbf16>
    %cst_23 = arith.constant dense<0.000000e+00> : vector<384x64xf32>
    %35 = tpu.matmul %32, %34, %cst_23 {dimension_numbers = #tpu.dot_dimension_numbers<[1], [0], [0], [1], [0, 0, 1, 1], [], []>} : vector<384x64xbf16>, vector<64x64xbf16>, vector<384x64xf32> -> vector<384x64xf32>
    %36 = arith.addf %31, %35 : vector<384x64xf32>
    %37 = vector.extract_strided_slice %2 {offsets = [72, 0], sizes = [384, 64], strides = [1, 1]} : vector<480x64xbf16> to vector<384x64xbf16>
    %c7 = arith.constant 7 : index
    %c0_24 = arith.constant 0 : index
    %c0_25 = arith.constant 0 : index
    %38 = vector.load %arg3[%c7, %c0_24, %c0_25] : memref<9x64x64xbf16, #tpu.memory_space<vmem>>, vector<1x64x64xbf16>
    %39 = vector.shape_cast %38 : vector<1x64x64xbf16> to vector<64x64xbf16>
    %cst_26 = arith.constant dense<0.000000e+00> : vector<384x64xf32>
    %40 = tpu.matmul %37, %39, %cst_26 {dimension_numbers = #tpu.dot_dimension_numbers<[1], [0], [0], [1], [0, 0, 1, 1], [], []>} : vector<384x64xbf16>, vector<64x64xbf16>, vector<384x64xf32> -> vector<384x64xf32>
    %41 = arith.addf %36, %40 : vector<384x64xf32>
    %42 = vector.extract_strided_slice %2 {offsets = [73, 0], sizes = [384, 64], strides = [1, 1]} : vector<480x64xbf16> to vector<384x64xbf16>
    %c8 = arith.constant 8 : index
    %c0_27 = arith.constant 0 : index
    %c0_28 = arith.constant 0 : index
    %43 = vector.load %arg3[%c8, %c0_27, %c0_28] : memref<9x64x64xbf16, #tpu.memory_space<vmem>>, vector<1x64x64xbf16>
    %44 = vector.shape_cast %43 : vector<1x64x64xbf16> to vector<64x64xbf16>
    %cst_29 = arith.constant dense<0.000000e+00> : vector<384x64xf32>
    %45 = tpu.matmul %42, %44, %cst_29 {dimension_numbers = #tpu.dot_dimension_numbers<[1], [0], [0], [1], [0, 0, 1, 1], [], []>} : vector<384x64xbf16>, vector<64x64xbf16>, vector<384x64xf32> -> vector<384x64xf32>
    %46 = arith.addf %41, %45 : vector<384x64xf32>
    %47 = vector.shape_cast %46 : vector<384x64xf32> to vector<16x24x64xf32>
    %48 = vector.extract_strided_slice %47 {offsets = [0, 0, 0], sizes = [16, 16, 64], strides = [1, 1, 1]} : vector<16x24x64xf32> to vector<16x16x64xf32>
    %c0_30 = arith.constant 0 : index
    %c0_31 = arith.constant 0 : index
    %49 = vector.load %arg4[%c0_30, %c0_31] : memref<1x64xf32, #tpu.memory_space<vmem>>, vector<1x64xf32>
    %50 = vector.shape_cast %49 : vector<1x64xf32> to vector<1x1x64xf32>
    %51 = vector.broadcast %50 : vector<1x1x64xf32> to vector<16x16x64xf32>
    %52 = arith.addf %48, %51 : vector<16x16x64xf32>
    %c0_32 = arith.constant 0 : index
    %c0_33 = arith.constant 0 : index
    %c0_34 = arith.constant 0 : index
    %c0_35 = arith.constant 0 : index
    %53 = vector.load %arg5[%c0_32, %c0_33, %c0_34, %c0_35] : memref<1x16x16x32xf32, #tpu.memory_space<vmem>>, vector<1x16x16x32xf32>
    %54 = vector.shape_cast %53 : vector<1x16x16x32xf32> to vector<16x16x32xf32>
    %55 = arith.truncf %54 : vector<16x16x32xf32> to vector<16x16x32xbf16>
    %56 = vector.shape_cast %55 : vector<16x16x32xbf16> to vector<256x32xbf16>
    %c0_36 = arith.constant 0 : index
    %c0_37 = arith.constant 0 : index
    %57 = vector.load %arg6[%c0_36, %c0_37] : memref<32x64xbf16, #tpu.memory_space<vmem>>, vector<32x64xbf16>
    %cst_38 = arith.constant dense<0.000000e+00> : vector<256x64xf32>
    %58 = tpu.matmul %56, %57, %cst_38 {dimension_numbers = #tpu.dot_dimension_numbers<[1], [0], [0], [1], [0, 0, 1, 1], [], []>} : vector<256x32xbf16>, vector<32x64xbf16>, vector<256x64xf32> -> vector<256x64xf32>
    %59 = vector.shape_cast %58 : vector<256x64xf32> to vector<16x16x64xf32>
    %60 = arith.addf %52, %59 : vector<16x16x64xf32>
    %c0_39 = arith.constant 0 : index
    %c0_40 = arith.constant 0 : index
    %61 = vector.load %arg7[%c0_39, %c0_40] : memref<1x64xf32, #tpu.memory_space<vmem>>, vector<1x64xf32>
    %62 = vector.shape_cast %61 : vector<1x64xf32> to vector<1x1x64xf32>
    %63 = vector.broadcast %62 : vector<1x1x64xf32> to vector<16x16x64xf32>
    %64 = arith.addf %60, %63 : vector<16x16x64xf32>
    %c0_41 = arith.constant 0 : index
    %c0_42 = arith.constant 0 : index
    %c0_43 = arith.constant 0 : index
    %c0_44 = arith.constant 0 : index
    %65 = vector.load %arg8[%c0_41, %c0_42, %c0_43, %c0_44] : memref<1x16x16x64xf32, #tpu.memory_space<vmem>>, vector<1x16x16x64xf32>
    %66 = vector.shape_cast %65 : vector<1x16x16x64xf32> to vector<16x16x64xf32>
    %67 = vector.shape_cast %64 : vector<16x16x64xf32> to vector<1x16x16x64xf32>
    tpu.vector_store %arg8[%c0_41, %c0_42, %c0_43, %c0_44], %67 {strides = array<i32>} : memref<1x16x16x64xf32, #tpu.memory_space<vmem>>, vector<1x16x16x64xf32>,
    return
  }
  func.func @transform_0(%arg0: i32, %arg1: i32) -> (i32, i32, i32, i32) {
    %c0_i32 = arith.constant 0 : i32
    %c0_i32_0 = arith.constant 0 : i32
    %c0_i32_1 = arith.constant 0 : i32
    %c0_i32_2 = arith.constant 0 : i32
    return %arg0, %c0_i32, %c0_i32_0, %c0_i32_1 : i32, i32, i32, i32
  }
  func.func @transform_1(%arg0: i32, %arg1: i32) -> (i32, i32, i32) {
    %c0_i32 = arith.constant 0 : i32
    %c0_i32_0 = arith.constant 0 : i32
    %c0_i32_1 = arith.constant 0 : i32
    return %c0_i32, %c0_i32_0, %arg1 : i32, i32, i32
  }
  func.func @transform_2(%arg0: i32, %arg1: i32) -> (i32, i32) {
    %c0_i32 = arith.constant 0 : i32
    %c0_i32_0 = arith.constant 0 : i32
    return %c0_i32, %arg1 : i32, i32
  }
  func.func @transform_3(%arg0: i32, %arg1: i32) -> (i32, i32, i32, i32) {
    %c0_i32 = arith.constant 0 : i32
    %c0_i32_0 = arith.constant 0 : i32
    %c0_i32_1 = arith.constant 0 : i32
    %c0_i32_2 = arith.constant 0 : i32
    return %arg0, %c0_i32, %c0_i32_0, %c0_i32_1 : i32, i32, i32, i32
  }
  func.func @transform_4(%arg0: i32, %arg1: i32) -> (i32, i32) {
    %c0_i32 = arith.constant 0 : i32
    %c0_i32_0 = arith.constant 0 : i32
    return %c0_i32, %arg1 : i32, i32
  }
  func.func @transform_5(%arg0: i32, %arg1: i32) -> (i32, i32) {
    %c0_i32 = arith.constant 0 : i32
    %c0_i32_0 = arith.constant 0 : i32
    return %c0_i32, %arg1 : i32, i32
  }
  func.func @transform_6(%arg0: i32, %arg1: i32) -> (i32, i32, i32, i32) {
    %c0_i32 = arith.constant 0 : i32
    %c0_i32_0 = arith.constant 0 : i32
    %c0_i32_1 = arith.constant 0 : i32
    return %arg0, %c0_i32, %c0_i32_0, %arg1 : i32, i32, i32, i32
  }
}

</mosaic_0001>

<bundles_post_ra>
// kernel: residual_block_forward.4
= control target key start
LH: loop header
LB: loop body
LE: loop exit
PB: predicated region body
PF: predicated region fallthrough
CT: control target
= control target key end

     0   :  { %s1679_s15 = smov 0   ;;  %s1681_s16 = smov 0   ;;  %s2610_s0 = inlined_call_operand.vmem [shape: f32[2,16,16,32], index: 0, kind: input, shape index: {}]   ;;  %s2611_s1 = inlined_call_operand.vmem [shape: f32[32,32], index: 1, kind: input, shape index: {}]   ;;  %s2612_s2 = inlined_call_operand.vmem [shape: f32[1,32], index: 2, kind: input, shape index: {}]   ;;  %s2613_s3 = inlined_call_operand.vmem [shape: f32[1,32], index: 3, kind: input, shape index: {}]   ;;  %s2614_s4 = inlined_call_operand.vmem [shape: bf16[2,20,24,32], index: 4, kind: output, shape index: {}]  }
   0x1   :  { %s1683_s17 = smov 0  }
   0x2 LB: > { %s26_s18 = sadd.s32 1, %s1644_s16  ;;  %p1285_p0 = scmp.ge.s32.totalorder %s1648_s17, 1  ;;  %s1648_s17 = sphi %s1683_s17, %s14_s17   ;;  %s1644_s16 = sphi %s1681_s16, %s2625_s16   ;;  %s1640_s15 = sphi %s1679_s15, %s2624_s15  }
   0x3   : > { %p28_p1 = scmp.ge.s32.totalorder %s26_s18, 2  ;;  %p197_p2 = scmp.lt.s32.totalorder %s1648_s17, 3 }
   0x5   : > { %s2627_s18 = smov (%p28_p1, %s26_s18), 0  ;;  %p198_p3 = pnand %p1285_p0, %p197_p2 }
   0x7   : > { %201 = sbr.rel (%p198_p3) target bundleno = 703 (0x2bf), region = 36 }
   0xe   : > { %v360_v0 = vld [vmem:[%s2611_s1] sm:$0xff]  ;;  %v361_v1 = vld [vmem:[%s2611_s1 + $0x8] sm:$0xff]  ;;  %v362_v2 = vld [vmem:[%s2611_s1 + $0x10] sm:$0xff]  ;;  %v1650_v3 = vmov 0.0|0.0   ;;  %vm1651_vm0 = vmmov 0   ;;  %v1652_v6 = vmov 0.0  }
   0xf   : > { %1455 = vmatprep.subr.bf16.mxu0 %v1650_v3  ;;  %v1456_v4 = vpack.c.bf16 %v361_v1, %v360_v0  ;;  %v363_v5 = vld [vmem:[%s2611_s1 + $0x18] sm:$0xff]  ;;  %1441 = vmatprep.mubr.msk.f32.mxu0 %vm1651_vm0, %v1652_v6  ;;  %p235_p4 = scmp.lt.s32.totalorder %s1640_s15, 1  ;;  %vm290_vm1 = vcmask 261120   ;;  %vm949_vm2 = vcmask 257024   ;;  %v1653_v15 = vmov 0  }
  0x10   : > { %1461 = vmatprep.subr.bf16.mxu1 %v1650_v3  ;;  %1452 = vmatprep.mubr.msk.f32.mxu1 %vm1651_vm0, %v1652_v6  ;;  %v1459_v7 = vpack.c.bf16 %v363_v5, %v362_v2 }
  0x11   : > { %1457 = vmatpush3.bf16.msra.mxu0 %v1456_v4  ;;  %s2629_s15 = smov (!%p235_p4, %s1640_s15), 1  ;;  %1463 = vmatpush3.bf16.msra.mxu1 %v1456_v4 }
  0x12   : > { %1458 = vmatprep.subr.bf16.mxu0 %v1650_v3  ;;  %1464 = vmatprep.subr.bf16.mxu1 %v1650_v3  ;;  %s1390_s27 = sshll.u32 %s2629_s15, 8  ;;  %s1467_s28 = smul.u32 240, %s2629_s15 }
  0x13   : > { %s1712_s5 = scalar_lea.vmem %s2610_s0, %s1390_s27 }
  0x14   : > { %s1717_s8 = scalar_lea.vmem %s2614_s4, %s1467_s28  ;;  %v1720_v8 = vld [vmem:[%s1712_s5] sm:$0xff]  ;;  %v1723_v9 = vld [vmem:[%s1712_s5 + $0x8] sm:$0xff]  ;;  %v1726_v10 = vld [vmem:[%s1712_s5 + $0x10] sm:$0xff] }
  0x15   : > { %1460 = vmatpush3.bf16.msra.mxu0 %v1459_v7  ;;  %1466 = vmatpush3.bf16.msra.mxu1 %v1459_v7  ;;  %v1729_v11 = vld [vmem:[%s1712_s5 + $0x18] sm:$0xff]  ;;  %v1733_v12 = vsel %vm290_vm1, %v1720_v8, 0.0  ;;  %v1737_v13 = vsel %vm290_vm1, %v1723_v9, 0.0  ;;  %v1741_v14 = vsel %vm290_vm1, %v1726_v10, 0.0  ;;  %950 = vst.msk [vmem:[%s1717_s8] sm:$0xf] %vm949_vm2, %v1653_v15 }
  0x16   : > { %951 = vst.msk [vmem:[%s1717_s8 + $0x4] sm:$0xf] %vm949_vm2, %v1653_v15  ;;  %952 = vst.msk [vmem:[%s1717_s8 + $0x8] sm:$0xf] %vm949_vm2, %v1653_v15  ;;  %v1864_v16 = vld [vmem:[%s1712_s5 + $0x20] sm:$0xff]  ;;  %v293_v17 = vadd.f32 %v1737_v13, %v1733_v12  ;;  %v296_v18 = vsel %vm290_vm1, %v1729_v11, 0.0 }
  0x17   : > { %953 = vst.msk [vmem:[%s1717_s8 + $0xc] sm:$0xf] %vm949_vm2, %v1653_v15  ;;  %954 = vst.msk [vmem:[%s1717_s8 + $0x10] sm:$0xf] %vm949_vm2, %v1653_v15  ;;  %v1871_v19 = vld [vmem:[%s1712_s5 + $0x28] sm:$0xff]  ;;  %v298_v21 = vsel %vm290_vm1, %v1864_v16, 0.0 }
  0x18   : > { %955 = vst.msk [vmem:[%s1717_s8 + $0x14] sm:$0xf] %vm949_vm2, %v1653_v15  ;;  %958 = vst.msk [vmem:[%s1717_s8 + $0x20] sm:$0xf] %vm949_vm2, %v1653_v15  ;;  %v295_v20 = vadd.f32 %v1741_v14, %v293_v17  ;;  %v1877_v22 = vld [vmem:[%s1712_s5 + $0x30] sm:$0xff]  ;;  %v300_v24 = vsel %vm290_vm1, %v1871_v19, 0.0 }
  0x19   : > { %961 = vst.msk [vmem:[%s1717_s8 + $0x2c] sm:$0xf] %vm949_vm2, %v1653_v15  ;;  %964 = vst.msk [vmem:[%s1717_s8 + $0x38] sm:$0xf] %vm949_vm2, %v1653_v15  ;;  %v1882_v25 = vld [vmem:[%s1712_s5 + $0x38] sm:$0xff]  ;;  %v302_v27 = vsel %vm290_vm1, %v1877_v22, 0.0 }
  0x1a   : > { %967 = vst.msk [vmem:[%s1717_s8 + $0x44] sm:$0xf] %vm949_vm2, %v1653_v15  ;;  %970 = vst.msk [vmem:[%s1717_s8 + $0x50] sm:$0xf] %vm949_vm2, %v1653_v15  ;;  %v297_v23 = vadd.f32 %v296_v18, %v295_v20  ;;  %v1887_v28 = vld [vmem:[%s1712_s5 + $0x40] sm:$0xff]  ;;  %v304_v30 = vsel %vm290_vm1, %v1882_v25, 0.0 }
  0x1b   : > { %973 = vst.msk [vmem:[%s1717_s8 + $0x5c] sm:$0xf] %vm949_vm2, %v1653_v15  ;;  %976 = vst.msk [vmem:[%s1717_s8 + $0x68] sm:$0xf] %vm949_vm2, %v1653_v15  ;;  %v1892_v31 = vld [vmem:[%s1712_s5 + $0x48] sm:$0xff]  ;;  %v306_v33 = vsel %vm290_vm1, %v1887_v28, 0.0 }
  0x1c   : > { %979 = vst.msk [vmem:[%s1717_s8 + $0x74] sm:$0xf] %vm949_vm2, %v1653_v15  ;;  %982 = vst.msk [vmem:[%s1717_s8 + $0x80] sm:$0xf] %vm949_vm2, %v1653_v15  ;;  %v299_v26 = vadd.f32 %v298_v21, %v297_v23  ;;  %v1897_v34 = vld [vmem:[%s1712_s5 + $0x50] sm:$0xff]  ;;  %v308_v36 = vsel %vm290_vm1, %v1892_v31, 0.0 }
  0x1d   : > { %985 = vst.msk [vmem:[%s1717_s8 + $0x8c] sm:$0xf] %vm949_vm2, %v1653_v15  ;;  %988 = vst.msk [vmem:[%s1717_s8 + $0x98] sm:$0xf] %vm949_vm2, %v1653_v15  ;;  %v1902_v37 = vld [vmem:[%s1712_s5 + $0x58] sm:$0xff]  ;;  %v310_v39 = vsel %vm290_vm1, %v1897_v34, 0.0 }
  0x1e   : > { %991 = vst.msk [vmem:[%s1717_s8 + $0xa4] sm:$0xf] %vm949_vm2, %v1653_v15  ;;  %994 = vst.msk [vmem:[%s1717_s8 + $0xb0] sm:$0xf] %vm949_vm2, %v1653_v15  ;;  %v301_v29 = vadd.f32 %v300_v24, %v299_v26  ;;  %v1907_v40 = vld [vmem:[%s1712_s5 + $0x60] sm:$0xff]  ;;  %v312_v42 = vsel %vm290_vm1, %v1902_v37, 0.0 }
  0x1f   : > { %997 = vst.msk [vmem:[%s1717_s8 + $0xbc] sm:$0xf] %vm949_vm2, %v1653_v15  ;;  %1000 = vst.msk [vmem:[%s1717_s8 + $0xc8] sm:$0xf] %vm949_vm2, %v1653_v15  ;;  %v1912_v43 = vld [vmem:[%s1712_s5 + $0x68] sm:$0xff]  ;;  %v314_v45 = vsel %vm290_vm1, %v1907_v40, 0.0 }
  0x20   : > { %1003 = vst.msk [vmem:[%s1717_s8 + $0xd4] sm:$0xf] %vm949_vm2, %v1653_v15  ;;  %1004 = vst.msk [vmem:[%s1717_s8 + $0xd8] sm:$0xf] %vm949_vm2, %v1653_v15  ;;  %v303_v32 = vadd.f32 %v302_v27, %v301_v29  ;;  %v1917_v46 = vld [vmem:[%s1712_s5 + $0x70] sm:$0xff]  ;;  %v316_v48 = vsel %vm290_vm1, %v1912_v43, 0.0 }
  0x21   : > { %1005 = vst.msk [vmem:[%s1717_s8 + $0xdc] sm:$0xf] %vm949_vm2, %v1653_v15  ;;  %1006 = vst.msk [vmem:[%s1717_s8 + $0xe0] sm:$0xf] %vm949_vm2, %v1653_v15  ;;  %v1922_v49 = vld [vmem:[%s1712_s5 + $0x78] sm:$0xff]  ;;  %v318_v51 = vsel %vm290_vm1, %v1917_v46, 0.0 }
  0x22   : > { %1007 = vst.msk [vmem:[%s1717_s8 + $0xe4] sm:$0xf] %vm949_vm2, %v1653_v15  ;;  %1008 = vst.msk [vmem:[%s1717_s8 + $0xe8] sm:$0xf] %vm949_vm2, %v1653_v15  ;;  %v305_v35 = vadd.f32 %v304_v30, %v303_v32  ;;  %v1927_v52 = vld [vmem:[%s1712_s5 + $0x80] sm:$0xff]  ;;  %v320_v54 = vsel %vm290_vm1, %v1922_v49, 0.0 }
  0x23   : > { %1009 = vst.msk [vmem:[%s1717_s8 + $0xec] sm:$0xf] %vm949_vm2, %v1653_v15  ;;  %956 = vst.msk [vmem:[%s1717_s8 + $0x18] sm:$0xf] %vm949_vm2, %v1653_v15  ;;  %v1932_v55 = vld [vmem:[%s1712_s5 + $0x88] sm:$0xff]  ;;  %v322_v57 = vsel %vm290_vm1, %v1927_v52, 0.0 }
  0x24   : > { %957 = vst.msk [vmem:[%s1717_s8 + $0x1c] sm:$0xf] %vm949_vm2, %v1653_v15  ;;  %959 = vst.msk [vmem:[%s1717_s8 + $0x24] sm:$0xf] %vm949_vm2, %v1653_v15  ;;  %v307_v38 = vadd.f32 %v306_v33, %v305_v35  ;;  %v1937_v58 = vld [vmem:[%s1712_s5 + $0x90] sm:$0xff]  ;;  %v324_v60 = vsel %vm290_vm1, %v1932_v55, 0.0 }
  0x25   : > { %960 = vst.msk [vmem:[%s1717_s8 + $0x28] sm:$0xf] %vm949_vm2, %v1653_v15  ;;  %962 = vst.msk [vmem:[%s1717_s8 + $0x30] sm:$0xf] %vm949_vm2, %v1653_v15  ;;  %v1942_v61 = vld [vmem:[%s1712_s5 + $0x98] sm:$0xff]  ;;  %v326_v63 = vsel %vm290_vm1, %v1937_v58, 0.0 }
  0x26   : > { %963 = vst.msk [vmem:[%s1717_s8 + $0x34] sm:$0xf] %vm949_vm2, %v1653_v15  ;;  %965 = vst.msk [vmem:[%s1717_s8 + $0x3c] sm:$0xf] %vm949_vm2, %v1653_v15  ;;  %v309_v41 = vadd.f32 %v308_v36, %v307_v38  ;;  %v1947_v0 = vld [vmem:[%s1712_s5 + $0xa0] sm:$0xff]  ;;  %v328_v2 = vsel %vm290_vm1, %v1942_v61, 0.0 }
  0x27   : > { %966 = vst.msk [vmem:[%s1717_s8 + $0x40] sm:$0xf] %vm949_vm2, %v1653_v15  ;;  %968 = vst.msk [vmem:[%s1717_s8 + $0x48] sm:$0xf] %vm949_vm2, %v1653_v15  ;;  %v1952_v3 = vld [vmem:[%s1712_s5 + $0xa8] sm:$0xff]  ;;  %v330_v5 = vsel %vm290_vm1, %v1947_v0, 0.0 }
  0x28   : > { %969 = vst.msk [vmem:[%s1717_s8 + $0x4c] sm:$0xf] %vm949_vm2, %v1653_v15  ;;  %971 = vst.msk [vmem:[%s1717_s8 + $0x54] sm:$0xf] %vm949_vm2, %v1653_v15  ;;  %v311_v44 = vadd.f32 %v310_v39, %v309_v41  ;;  %v1957_v6 = vld [vmem:[%s1712_s5 + $0xb0] sm:$0xff]  ;;  %v332_v12 = vsel %vm290_vm1, %v1952_v3, 0.0 }
  0x29   : > { %972 = vst.msk [vmem:[%s1717_s8 + $0x58] sm:$0xf] %vm949_vm2, %v1653_v15  ;;  %974 = vst.msk [vmem:[%s1717_s8 + $0x60] sm:$0xf] %vm949_vm2, %v1653_v15  ;;  %v1962_v13 = vld [vmem:[%s1712_s5 + $0xb8] sm:$0xff]  ;;  %v1967_v17 = vld [vmem:[%s1712_s5 + $0xc0] sm:$0xff] }
  0x2a   : > { %975 = vst.msk [vmem:[%s1717_s8 + $0x64] sm:$0xf] %vm949_vm2, %v1653_v15  ;;  %977 = vst.msk [vmem:[%s1717_s8 + $0x6c] sm:$0xf] %vm949_vm2, %v1653_v15  ;;  %v313_v47 = vadd.f32 %v312_v42, %v311_v44  ;;  %v336_v20 = vsel %vm290_vm1, %v1962_v13, 0.0  ;;  %v1972_v21 = vld [vmem:[%s1712_s5 + $0xc8] sm:$0xff] }
  0x2b   : > { %978 = vst.msk [vmem:[%s1717_s8 + $0x70] sm:$0xf] %vm949_vm2, %v1653_v15  ;;  %980 = vst.msk [vmem:[%s1717_s8 + $0x78] sm:$0xf] %vm949_vm2, %v1653_v15  ;;  %v338_v24 = vsel %vm290_vm1, %v1967_v17, 0.0  ;;  %v1977_v26 = vld [vmem:[%s1712_s5 + $0xd0] sm:$0xff] }
  0x2c   : > { %981 = vst.msk [vmem:[%s1717_s8 + $0x7c] sm:$0xf] %vm949_vm2, %v1653_v15  ;;  %983 = vst.msk [vmem:[%s1717_s8 + $0x84] sm:$0xf] %vm949_vm2, %v1653_v15  ;;  %v315_v50 = vadd.f32 %v314_v45, %v313_v47  ;;  %v340_v29 = vsel %vm290_vm1, %v1972_v21, 0.0  ;;  %v1982_v30 = vld [vmem:[%s1712_s5 + $0xd8] sm:$0xff] }
  0x2d   : > { %984 = vst.msk [vmem:[%s1717_s8 + $0x88] sm:$0xf] %vm949_vm2, %v1653_v15  ;;  %986 = vst.msk [vmem:[%s1717_s8 + $0x90] sm:$0xf] %vm949_vm2, %v1653_v15  ;;  %v342_v33 = vsel %vm290_vm1, %v1977_v26, 0.0  ;;  %v1987_v35 = vld [vmem:[%s1712_s5 + $0xe0] sm:$0xff] }
  0x2e   : > { %987 = vst.msk [vmem:[%s1717_s8 + $0x94] sm:$0xf] %vm949_vm2, %v1653_v15  ;;  %989 = vst.msk [vmem:[%s1717_s8 + $0x9c] sm:$0xf] %vm949_vm2, %v1653_v15  ;;  %v317_v53 = vadd.f32 %v316_v48, %v315_v50  ;;  %v344_v38 = vsel %vm290_vm1, %v1982_v30, 0.0  ;;  %v1992_v39 = vld [vmem:[%s1712_s5 + $0xe8] sm:$0xff] }
  0x2f   : > { %990 = vst.msk [vmem:[%s1717_s8 + $0xa0] sm:$0xf] %vm949_vm2, %v1653_v15  ;;  %992 = vst.msk [vmem:[%s1717_s8 + $0xa8] sm:$0xf] %vm949_vm2, %v1653_v15  ;;  %v346_v42 = vsel %vm290_vm1, %v1987_v35, 0.0  ;;  %v1997_v44 = vld [vmem:[%s1712_s5 + $0xf0] sm:$0xff] }
  0x30   : > { %993 = vst.msk [vmem:[%s1717_s8 + $0xac] sm:$0xf] %vm949_vm2, %v1653_v15  ;;  %995 = vst.msk [vmem:[%s1717_s8 + $0xb4] sm:$0xf] %vm949_vm2, %v1653_v15  ;;  %v319_v56 = vadd.f32 %v318_v51, %v317_v53  ;;  %v348_v47 = vsel %vm290_vm1, %v1992_v39, 0.0  ;;  %v2002_v48 = vld [vmem:[%s1712_s5 + $0xf8] sm:$0xff] }
  0x31   : > { %996 = vst.msk [vmem:[%s1717_s8 + $0xb8] sm:$0xf] %vm949_vm2, %v1653_v15  ;;  %998 = vst.msk [vmem:[%s1717_s8 + $0xc0] sm:$0xf] %vm949_vm2, %v1653_v15  ;;  %v350_v51 = vsel %vm290_vm1, %v1997_v44, 0.0 }
  0x32   : > { %999 = vst.msk [vmem:[%s1717_s8 + $0xc4] sm:$0xf] %vm949_vm2, %v1653_v15  ;;  %1001 = vst.msk [vmem:[%s1717_s8 + $0xcc] sm:$0xf] %vm949_vm2, %v1653_v15  ;;  %v321_v59 = vadd.f32 %v320_v54, %v319_v56  ;;  %v352_v54 = vsel %vm290_vm1, %v2002_v48, 0.0 }
  0x33   : > { %1002 = vst.msk [vmem:[%s1717_s8 + $0xd0] sm:$0xf] %vm949_vm2, %v1653_v15  ;;  %v334_v15 = vsel %vm290_vm1, %v1957_v6, 0.0 }
  0x34   : > { %v323_v62 = vadd.f32 %v322_v57, %v321_v59 }
  0x36   : > { %v325_v1 = vadd.f32 %v324_v60, %v323_v62 }
  0x38   : > { %v327_v4 = vadd.f32 %v326_v63, %v325_v1 }
  0x3a   : > { %v329_v7 = vadd.f32 %v328_v2, %v327_v4  ;;  %v437_v4 = vlaneseq }
  0x3c   : > { %v331_v14 = vadd.f32 %v330_v5, %v329_v7  ;;  %v2009_v5 = vshrl.u32 %v437_v4, 7 }
  0x3e   : > { %v333_v18 = vadd.f32 %v332_v12, %v331_v14  ;;  %v439_v14 = vsub.s32 0, %v2009_v5 }
  0x40   : > { %v335_v23 = vadd.f32 %v334_v15, %v333_v18 }
  0x42   : > { %v337_v27 = vadd.f32 %v336_v20, %v335_v23 }
  0x44   : > { %v339_v32 = vadd.f32 %v338_v24, %v337_v27 }
  0x46   : > { %v341_v36 = vadd.f32 %v340_v29, %v339_v32 }
  0x48   : > { %v343_v41 = vadd.f32 %v342_v33, %v341_v36 }
  0x4a   : > { %v345_v45 = vadd.f32 %v344_v38, %v343_v41 }
  0x4c   : > { %v347_v50 = vadd.f32 %v346_v42, %v345_v45 }
  0x4e   : > { %v349_v53 = vadd.f32 %v348_v47, %v347_v50 }
  0x50   : > { %v351_v56 = vadd.f32 %v350_v51, %v349_v53 }
  0x52   : > { %v353_v57 = vadd.f32 %v352_v54, %v351_v56 }
  0x54   : > { %v354_v59 = vrot.slane %v353_v57, 4 }
  0x56   : > { %v355_v60 = vadd.f32 %v354_v59, %v353_v57 }
  0x58   : > { %v356_v62 = vrot.slane %v355_v60, 2 }
  0x5a   : > { %v357_v63 = vadd.f32 %v356_v62, %v355_v60 }
  0x5c   : > { %v358_v1 = vrot.slane %v357_v63, 1 }
  0x5e   : > { %v359_v2 = vadd.f32 %v358_v1, %v357_v63 }
  0x60   : > { %1442 = vmatmul.mubr.msk.f32.vlgmr.msra.gmra.mrb[0].mxu0 %vm290_vm1, %v359_v2 }
 0x133   : > { %v433_v7 = vpop.f32.mrb[0].mxu0 }
 0x134   : > { %v1443_v12 = vpop.f32.mrb[1].mxu0  ;;  %v2014_v15 = vrot.slane %v433_v7, %v439_v14 }
 0x136   : > { %v2018_v18 = vsub.f32 %v1720_v8, %v2014_v15  ;;  %v2022_v20 = vsub.f32 %v1723_v9, %v2014_v15  ;;  %v2026_v23 = vsub.f32 %v1726_v10, %v2014_v15  ;;  %v2030_v24 = vsub.f32 %v1729_v11, %v2014_v15 }
 0x137   : > { %v2038_v8 = vsub.f32 %v1864_v16, %v2014_v15  ;;  %v2044_v10 = vsub.f32 %v1871_v19, %v2014_v15  ;;  %v2052_v38 = vsub.f32 %v1877_v22, %v2014_v15  ;;  %v2059_v19 = vsub.f32 %v1882_v25, %v2014_v15 }
 0x138   : > { %v473_v27 = vmul.f32 %v2018_v18, %v2018_v18  ;;  %v474_v29 = vmul.f32 %v2022_v20, %v2022_v20  ;;  %v475_v9 = vmul.f32 %v2026_v23, %v2026_v23  ;;  %v476_v11 = vmul.f32 %v2030_v24, %v2030_v24 }
 0x139   : > { %v477_v16 = vmul.f32 %v2038_v8, %v2038_v8  ;;  %v478_v45 = vmul.f32 %v2044_v10, %v2044_v10  ;;  %v2066_v22 = vsub.f32 %v1887_v28, %v2014_v15  ;;  %v479_v51 = vmul.f32 %v2052_v38, %v2052_v38 }
 0x13a   : > { %v505_v32 = vsel %vm290_vm1, %v473_v27, 0.0  ;;  %v506_v33 = vsel %vm290_vm1, %v474_v29, 0.0  ;;  %v508_v41 = vsel %vm290_vm1, %v475_v9, 0.0  ;;  %v510_v47 = vsel %vm290_vm1, %v476_v11, 0.0 }
 0x13b   : > { %v507_v36 = vadd.f32 %v506_v33, %v505_v32  ;;  %v512_v53 = vsel %vm290_vm1, %v477_v16, 0.0  ;;  %v2073_v25 = vsub.f32 %v1892_v31, %v2014_v15  ;;  %v480_v56 = vmul.f32 %v2059_v19, %v2059_v19 }
 0x13c   : > { %v514_v57 = vsel %vm290_vm1, %v478_v45, 0.0  ;;  %v2080_v28 = vsub.f32 %v1897_v34, %v2014_v15  ;;  %v481_v60 = vmul.f32 %v2066_v22, %v2066_v22  ;;  %v516_v62 = vsel %vm290_vm1, %v479_v51, 0.0 }
 0x13d   : > { %v509_v42 = vadd.f32 %v508_v41, %v507_v36  ;;  %v2087_v31 = vsub.f32 %v1902_v37, %v2014_v15  ;;  %v482_v1 = vmul.f32 %v2073_v25, %v2073_v25  ;;  %v518_v2 = vsel %vm290_vm1, %v480_v56, 0.0 }
 0x13e   : > { %v2094_v34 = vsub.f32 %v1907_v40, %v2014_v15  ;;  %v483_v7 = vmul.f32 %v2080_v28, %v2080_v28  ;;  %v520_v12 = vsel %vm290_vm1, %v481_v60, 0.0  ;;  %v2101_v37 = vsub.f32 %v1912_v43, %v2014_v15 }
 0x13f   : > { %v511_v50 = vadd.f32 %v510_v47, %v509_v42  ;;  %v484_v29 = vmul.f32 %v2087_v31, %v2087_v31  ;;  %v522_v9 = vsel %vm290_vm1, %v482_v1, 0.0  ;;  %v2108_v40 = vsub.f32 %v1917_v46, %v2014_v15 }
 0x140   : > { %v485_v32 = vmul.f32 %v2094_v34, %v2094_v34  ;;  %v524_v33 = vsel %vm290_vm1, %v483_v7, 0.0  ;;  %v2115_v43 = vsub.f32 %v1922_v49, %v2014_v15  ;;  %v486_v16 = vmul.f32 %v2101_v37, %v2101_v37 }
 0x141   : > { %v513_v54 = vadd.f32 %v512_v53, %v511_v50  ;;  %v526_v41 = vsel %vm290_vm1, %v484_v29, 0.0  ;;  %v2122_v46 = vsub.f32 %v1927_v52, %v2014_v15  ;;  %v487_v45 = vmul.f32 %v2108_v40, %v2108_v40 }
 0x142   : > { %v528_v47 = vsel %vm290_vm1, %v485_v32, 0.0  ;;  %v2129_v49 = vsub.f32 %v1932_v55, %v2014_v15  ;;  %v488_v51 = vmul.f32 %v2115_v43, %v2115_v43  ;;  %v530_v53 = vsel %vm290_vm1, %v486_v16, 0.0 }
 0x143   : > { %v515_v59 = vadd.f32 %v514_v57, %v513_v54  ;;  %v2136_v52 = vsub.f32 %v1937_v58, %v2014_v15  ;;  %v489_v56 = vmul.f32 %v2122_v46, %v2122_v46  ;;  %v532_v57 = vsel %vm290_vm1, %v487_v45, 0.0 }
 0x144   : > { %v2143_v55 = vsub.f32 %v1942_v61, %v2014_v15  ;;  %v490_v60 = vmul.f32 %v2129_v49, %v2129_v49  ;;  %v2150_v58 = vsub.f32 %v1947_v0, %v2014_v15  ;;  %v2157_v61 = vsub.f32 %v1952_v3, %v2014_v15 }
 0x145   : > { %v517_v63 = vadd.f32 %v516_v62, %v515_v59  ;;  %v534_v62 = vsel %vm290_vm1, %v488_v51, 0.0  ;;  %v491_v1 = vmul.f32 %v2136_v52, %v2136_v52  ;;  %v2164_v0 = vsub.f32 %v1957_v6, %v2014_v15 }
 0x146   : > { %v492_v7 = vmul.f32 %v2143_v55, %v2143_v55  ;;  %v493_v29 = vmul.f32 %v2150_v58, %v2150_v58  ;;  %v2171_v3 = vsub.f32 %v1962_v13, %v2014_v15  ;;  %v494_v32 = vmul.f32 %v2157_v61, %v2157_v61 }
 0x147   : > { %v519_v4 = vadd.f32 %v518_v2, %v517_v63  ;;  %v536_v2 = vsel %vm290_vm1, %v489_v56, 0.0  ;;  %v2178_v6 = vsub.f32 %v1967_v17, %v2014_v15  ;;  %v495_v16 = vmul.f32 %v2164_v0, %v2164_v0 }
 0x148   : > { %v2185_v13 = vsub.f32 %v1972_v21, %v2014_v15  ;;  %v496_v45 = vmul.f32 %v2171_v3, %v2171_v3  ;;  %v2192_v17 = vsub.f32 %v1977_v26, %v2014_v15  ;;  %v2199_v21 = vsub.f32 %v1982_v30, %v2014_v15 }
 0x149   : > { %v521_v27 = vadd.f32 %v520_v12, %v519_v4  ;;  %v538_v12 = vsel %vm290_vm1, %v490_v60, 0.0  ;;  %v497_v51 = vmul.f32 %v2178_v6, %v2178_v6  ;;  %v2206_v26 = vsub.f32 %v1987_v35, %v2014_v15 }
 0x14a   : > { %v498_v56 = vmul.f32 %v2185_v13, %v2185_v13  ;;  %v499_v60 = vmul.f32 %v2192_v17, %v2192_v17  ;;  %v2213_v30 = vsub.f32 %v1992_v39, %v2014_v15  ;;  %v2220_v35 = vsub.f32 %v1997_v44, %v2014_v15 }
 0x14b   : > { %v523_v11 = vadd.f32 %v522_v9, %v521_v27  ;;  %v540_v9 = vsel %vm290_vm1, %v491_v1, 0.0  ;;  %v500_v1 = vmul.f32 %v2199_v21, %v2199_v21  ;;  %v2227_v39 = vsub.f32 %v2002_v48, %v2014_v15 }
 0x14c   : > { %v503_v44 = vmul.f32 %v2220_v35, %v2220_v35 }
 0x14d   : > { %v525_v36 = vadd.f32 %v524_v33, %v523_v11  ;;  %v542_v33 = vsel %vm290_vm1, %v492_v7, 0.0  ;;  %v501_v7 = vmul.f32 %v2206_v26, %v2206_v26 }
 0x14e   : > { %v564_v48 = vsel %vm290_vm1, %v503_v44, 0.0 }
 0x14f   : > { %v527_v42 = vadd.f32 %v526_v41, %v525_v36  ;;  %v544_v41 = vsel %vm290_vm1, %v493_v29, 0.0  ;;  %v502_v29 = vmul.f32 %v2213_v30, %v2213_v30 }
 0x151   : > { %v529_v50 = vadd.f32 %v528_v47, %v527_v42  ;;  %v546_v47 = vsel %vm290_vm1, %v494_v32, 0.0  ;;  %v560_v32 = vsel %vm290_vm1, %v501_v7, 0.0 }
 0x153   : > { %v531_v54 = vadd.f32 %v530_v53, %v529_v50  ;;  %v548_v53 = vsel %vm290_vm1, %v495_v16, 0.0  ;;  %v562_v16 = vsel %vm290_vm1, %v502_v29, 0.0  ;;  %v2259_v29 = vld [vmem:[%s2613_s3] ss:$0 sm:$0xff] }
 0x155   : > { %v533_v59 = vadd.f32 %v532_v57, %v531_v54  ;;  %v550_v57 = vsel %vm290_vm1, %v496_v45, 0.0 }
 0x157   : > { %v535_v63 = vadd.f32 %v534_v62, %v533_v59  ;;  %v552_v62 = vsel %vm290_vm1, %v497_v51, 0.0 }
 0x159   : > { %v537_v4 = vadd.f32 %v536_v2, %v535_v63  ;;  %v554_v2 = vsel %vm290_vm1, %v498_v56, 0.0 }
 0x15b   : > { %v539_v27 = vadd.f32 %v538_v12, %v537_v4  ;;  %v556_v12 = vsel %vm290_vm1, %v499_v60, 0.0 }
 0x15d   : > { %v541_v11 = vadd.f32 %v540_v9, %v539_v27  ;;  %v558_v9 = vsel %vm290_vm1, %v500_v1, 0.0 }
 0x15f   : > { %v543_v36 = vadd.f32 %v542_v33, %v541_v11 }
 0x161   : > { %v545_v42 = vadd.f32 %v544_v41, %v543_v36  ;;  %v504_v36 = vmul.f32 %v2227_v39, %v2227_v39 }
 0x163   : > { %v547_v50 = vadd.f32 %v546_v47, %v545_v42  ;;  %v566_v42 = vsel %vm290_vm1, %v504_v36, 0.0 }
 0x165   : > { %v549_v54 = vadd.f32 %v548_v53, %v547_v50 }
 0x167   : > { %v551_v59 = vadd.f32 %v550_v57, %v549_v54 }
 0x169   : > { %v553_v63 = vadd.f32 %v552_v62, %v551_v59 }
 0x16b   : > { %v555_v4 = vadd.f32 %v554_v2, %v553_v63  ;;  %v648_v63 = vld [vmem:[%s2612_s2] sm:$0x1] }
 0x16d   : > { %v557_v27 = vadd.f32 %v556_v12, %v555_v4 }
 0x16f   : > { %v559_v11 = vadd.f32 %v558_v9, %v557_v27 }
 0x171   : > { %v561_v33 = vadd.f32 %v560_v32, %v559_v11 }
 0x173   : > { %v563_v41 = vadd.f32 %v562_v16, %v561_v33 }
 0x175   : > { %v565_v15 = vadd.f32 %v564_v48, %v563_v41 }
 0x177   : > { %v567_v45 = vadd.f32 %v566_v42, %v565_v15 }
 0x179   : > { %v568_v47 = vrot.slane %v567_v45, 4 }
 0x17b   : > { %v569_v50 = vadd.f32 %v568_v47, %v567_v45 }
 0x17d   : > { %v570_v51 = vrot.slane %v569_v50, 2 }
 0x17f   : > { %v571_v53 = vadd.f32 %v570_v51, %v569_v50 }
 0x181   : > { %v572_v54 = vrot.slane %v571_v53, 1 }
 0x183   : > { %v573_v56 = vadd.f32 %v572_v54, %v571_v53 }
 0x185   : > { %1453 = vmatmul.mubr.msk.f32.vlgmr.msra.gmra.mrb[0].mxu1 %vm290_vm1, %v573_v56 }
 0x258   : > { %v643_v57 = vpop.f32.mrb[0].mxu1 }
 0x259   : > { %v644_v59 = vadd.f32 1e-05, %v643_v57  ;;  %v1454_v60 = vpop.f32.mrb[1].mxu1 }
 0x25b   : > { %1496 = vrsqrt.f32 %v644_v59 }
 0x265   : > { %v1497_v62 = vpop.eup %1496 }
 0x266   : > { %v649_v1 = vmul.f32 %v1497_v62, %v648_v63 }
 0x268   : > { %v2246_v2 = vrot.slane %v649_v1, %v439_v14 }
 0x26a   : > { %v654_v4 = vmul.f32 %v2246_v2, %v2018_v18  ;;  %v655_v7 = vmul.f32 %v2246_v2, %v2022_v20  ;;  %v656_v12 = vmul.f32 %v2246_v2, %v2026_v23  ;;  %v657_v27 = vmul.f32 %v2246_v2, %v2030_v24 }
 0x26b   : > { %v658_v5 = vmul.f32 %v2246_v2, %v2038_v8  ;;  %v659_v14 = vmul.f32 %v2246_v2, %v2044_v10  ;;  %v660_v18 = vmul.f32 %v2246_v2, %v2052_v38  ;;  %v661_v9 = vmul.f32 %v2246_v2, %v2059_v19 }
 0x26c   : > { %v2268_v20 = vadd.f32 %v2259_v29, %v654_v4  ;;  %v2271_v23 = vadd.f32 %v2259_v29, %v655_v7  ;;  %v2274_v24 = vadd.f32 %v2259_v29, %v656_v12  ;;  %v2279_v8 = vadd.f32 %v2259_v29, %v657_v27 }
 0x26d   : > { %v662_v10 = vmul.f32 %v2246_v2, %v2066_v22  ;;  %v2284_v38 = vadd.f32 %v2259_v29, %v658_v5  ;;  %v663_v11 = vmul.f32 %v2246_v2, %v2073_v25  ;;  %v664_v44 = vmul.f32 %v2246_v2, %v2080_v28 }
 0x26e   : > { %v2291_v32 = vadd.f32 %v2259_v29, %v659_v14  ;;  %v2294_v19 = vadd.f32 %v2259_v29, %v660_v18  ;;  %v1292_v33 = vmul.f32 -1.442695, %v2268_v20  ;;  %v1293_v36 = vmul.f32 -1.442695, %v2271_v23 }
 0x26f   : > { %v1294_v22 = vmul.f32 -1.442695, %v2274_v24  ;;  %v665_v16 = vmul.f32 %v2246_v2, %v2087_v31  ;;  %v2302_v25 = vadd.f32 %v2259_v29, %v661_v9  ;;  %v1295_v28 = vmul.f32 -1.442695, %v2279_v8 }
 0x270   : > { %v666_v41 = vmul.f32 %v2246_v2, %v2094_v34  ;;  %v2308_v48 = vadd.f32 %v2259_v29, %v662_v10  ;;  %1498 = vpow2.f32 %v1292_v33  ;;  %v1296_v15 = vmul.f32 -1.442695, %v2284_v38 }
 0x271   : > { %v667_v42 = vmul.f32 %v2246_v2, %v2101_v37  ;;  %v2314_v45 = vadd.f32 %v2259_v29, %v663_v11  ;;  %1500 = vpow2.f32 %v1293_v36  ;;  %v1297_v31 = vmul.f32 -1.442695, %v2291_v32 }
 0x272   : > { %v668_v47 = vmul.f32 %v2246_v2, %v2108_v40  ;;  %v2320_v34 = vadd.f32 %v2259_v29, %v664_v44  ;;  %1502 = vpow2.f32 %v1294_v22  ;;  %v1298_v50 = vmul.f32 -1.442695, %v2294_v19 }
 0x273   : > { %v669_v51 = vmul.f32 %v2246_v2, %v2115_v43  ;;  %v2326_v37 = vadd.f32 %v2259_v29, %v665_v16  ;;  %1504 = vpow2.f32 %v1295_v28  ;;  %v1299_v53 = vmul.f32 -1.442695, %v2302_v25 }
 0x274   : > { %v670_v54 = vmul.f32 %v2246_v2, %v2122_v46  ;;  %v2332_v40 = vadd.f32 %v2259_v29, %v666_v41  ;;  %1506 = vpow2.f32 %v1296_v15  ;;  %v1300_v56 = vmul.f32 -1.442695, %v2308_v48 }
 0x275   : > { %v671_v57 = vmul.f32 %v2246_v2, %v2129_v49  ;;  %v2338_v43 = vadd.f32 %v2259_v29, %v667_v42  ;;  %1508 = vpow2.f32 %v1297_v31  ;;  %v1301_v59 = vmul.f32 -1.442695, %v2314_v45 }
 0x276   : > { %v672_v60 = vmul.f32 %v2246_v2, %v2136_v52  ;;  %v2344_v46 = vadd.f32 %v2259_v29, %v668_v47  ;;  %1510 = vpow2.f32 %v1298_v50  ;;  %v1302_v62 = vmul.f32 -1.442695, %v2320_v34 }
 0x277   : > { %v673_v63 = vmul.f32 %v2246_v2, %v2143_v55  ;;  %v2350_v49 = vadd.f32 %v2259_v29, %v669_v51  ;;  %1512 = vpow2.f32 %v1299_v53  ;;  %v1303_v1 = vmul.f32 -1.442695, %v2326_v37 }
 0x278   : > { %v674_v4 = vmul.f32 %v2246_v2, %v2150_v58  ;;  %v2356_v52 = vadd.f32 %v2259_v29, %v670_v54  ;;  %1514 = vpow2.f32 %v1300_v56  ;;  %v1304_v7 = vmul.f32 -1.442695, %v2332_v40 }
 0x279   : > { %v675_v12 = vmul.f32 %v2246_v2, %v2157_v61  ;;  %v2362_v55 = vadd.f32 %v2259_v29, %v671_v57  ;;  %1516 = vpow2.f32 %v1301_v59  ;;  %v1305_v27 = vmul.f32 -1.442695, %v2338_v43 }
 0x27a   : > { %v2365_v5 = vpop.eup %1498  ;;  %v676_v58 = vmul.f32 %v2246_v2, %v2164_v0  ;;  %v2370_v14 = vadd.f32 %v2259_v29, %v672_v60  ;;  %1518 = vpow2.f32 %v1302_v62  ;;  %v1306_v18 = vmul.f32 -1.442695, %v2344_v46 }
 0x27b   : > { %v2373_v9 = vpop.eup %1500  ;;  %v677_v61 = vmul.f32 %v2246_v2, %v2171_v3  ;;  %v2378_v10 = vadd.f32 %v2259_v29, %v673_v63  ;;  %1520 = vpow2.f32 %v1303_v1  ;;  %v1307_v11 = vmul.f32 -1.442695, %v2350_v49 }
 0x27c   : > { %v2381_v44 = vpop.eup %1502  ;;  %v678_v0 = vmul.f32 %v2246_v2, %v2178_v6  ;;  %v2386_v33 = vadd.f32 %v2259_v29, %v674_v4  ;;  %1522 = vpow2.f32 %v1304_v7  ;;  %v1308_v36 = vmul.f32 -1.442695, %v2356_v52 }
 0x27d   : > { %v2389_v22 = vpop.eup %1504  ;;  %v679_v3 = vmul.f32 %v2246_v2, %v2185_v13  ;;  %v2394_v16 = vadd.f32 %v2259_v29, %v675_v12  ;;  %1524 = vpow2.f32 %v1305_v27  ;;  %v1309_v28 = vmul.f32 -1.442695, %v2362_v55 }
 0x27e   : > { %v2397_v41 = vpop.eup %1506  ;;  %v680_v6 = vmul.f32 %v2246_v2, %v2192_v17  ;;  %v2402_v15 = vadd.f32 %v2259_v29, %v676_v58  ;;  %1526 = vpow2.f32 %v1306_v18  ;;  %v1310_v42 = vmul.f32 -1.442695, %v2370_v14 }
 0x27f   : > { %v2405_v31 = vpop.eup %1508  ;;  %v681_v13 = vmul.f32 %v2246_v2, %v2199_v21  ;;  %v2410_v47 = vadd.f32 %v2259_v29, %v677_v61  ;;  %1528 = vpow2.f32 %v1307_v11  ;;  %v1311_v50 = vmul.f32 -1.442695, %v2378_v10 }
 0x280   : > { %v2413_v51 = vpop.eup %1510  ;;  %v682_v17 = vmul.f32 %v2246_v2, %v2206_v26  ;;  %v2418_v53 = vadd.f32 %v2259_v29, %v678_v0  ;;  %1530 = vpow2.f32 %v1308_v36  ;;  %v1312_v54 = vmul.f32 -1.442695, %v2386_v33 }
 0x281   : > { %v2421_v56 = vpop.eup %1512  ;;  %v683_v21 = vmul.f32 %v2246_v2, %v2213_v30  ;;  %v2426_v57 = vadd.f32 %v2259_v29, %v679_v3  ;;  %1532 = vpow2.f32 %v1309_v28  ;;  %v1313_v59 = vmul.f32 -1.442695, %v2394_v16 }
 0x282   : > { %v1515_v60 = vpop.eup %1514  ;;  %v684_v26 = vmul.f32 %v2246_v2, %v2220_v35  ;;  %v2432_v62 = vadd.f32 %v2259_v29, %v680_v6  ;;  %1534 = vpow2.f32 %v1310_v42  ;;  %v1314_v63 = vmul.f32 -1.442695, %v2402_v15 }
 0x283   : > { %v1517_v1 = vpop.eup %1516  ;;  %v685_v30 = vmul.f32 %v2246_v2, %v2227_v39  ;;  %v2438_v4 = vadd.f32 %v2259_v29, %v681_v13  ;;  %1536 = vpow2.f32 %v1311_v50  ;;  %v1315_v7 = vmul.f32 -1.442695, %v2410_v47 }
 0x284   : > { %v1519_v12 = vpop.eup %1518  ;;  %v2442_v27 = vadd.f32 %v2259_v29, %v682_v17  ;;  %1538 = vpow2.f32 %v1312_v54  ;;  %v1316_v35 = vmul.f32 -1.442695, %v2418_v53  ;;  %v2446_v18 = vadd.f32 %v2259_v29, %v683_v21 }
 0x285   : > { %v1521_v58 = vpop.eup %1520  ;;  %1540 = vpow2.f32 %v1313_v59  ;;  %v1317_v39 = vmul.f32 -1.442695, %v2426_v57  ;;  %v2450_v61 = vadd.f32 %v2259_v29, %v684_v26  ;;  %v1318_v11 = vmul.f32 -1.442695, %v2432_v62 }
 0x286   : > { %2618 = vst [vmem:[#allocation2_spill] sm:$0xff] %v2446_v18  ;;  %v1523_v2 = vpop.eup %1522  ;;  %1542 = vpow2.f32 %v1314_v63  ;;  %v2454_v36 = vadd.f32 %v2259_v29, %v685_v30  ;;  %v1319_v3 = vmul.f32 -1.442695, %v2438_v4  ;;  %v1320_v6 = vmul.f32 -1.442695, %v2442_v27 }
 0x287   : > { %2619 = vst [vmem:[#allocation3_spill] sm:$0xff] %v2450_v61  ;;  %v1525_v0 = vpop.eup %1524  ;;  %1544 = vpow2.f32 %v1315_v7  ;;  %v1321_v13 = vmul.f32 -1.442695, %v2446_v18  ;;  %v1322_v17 = vmul.f32 -1.442695, %v2450_v61  ;;  %v821_v59 = vadd.f32 1.0, %v2365_v5 }
 0x288   : > { %2620 = vst [vmem:[#allocation4_spill] sm:$0xff] %v2454_v36  ;;  %v1527_v28 = vpop.eup %1526  ;;  %1546 = vpow2.f32 %v1316_v35  ;;  %v1323_v29 = vmul.f32 -1.442695, %v2454_v36  ;;  %v822_v63 = vadd.f32 1.0, %v2373_v9  ;;  %v823_v7 = vadd.f32 1.0, %v2381_v44 }
 0x289   : > { %v1529_v42 = vpop.eup %1528  ;;  %1548 = vpow2.f32 %v1317_v39  ;;  %v824_v39 = vadd.f32 1.0, %v2389_v22  ;;  %v835_v61 = vadd.f32 1.0, %v1527_v28 }
 0x28a   : > { %v1531_v50 = vpop.eup %1530  ;;  %1550 = vpow2.f32 %v1318_v11 }
 0x28b   : > { %v1533_v54 = vpop.eup %1532  ;;  %1552 = vpow2.f32 %v1319_v3  ;;  %v825_v3 = vadd.f32 1.0, %v2397_v41  ;;  %v837_v18 = vadd.f32 1.0, %v1531_v50 }
 0x28c   : > { %v1535_v21 = vpop.eup %1534  ;;  %1554 = vpow2.f32 %v1320_v6  ;;  %v826_v6 = vadd.f32 1.0, %v2405_v31 }
 0x28d   : > { %v1537_v26 = vpop.eup %1536  ;;  %1556 = vpow2.f32 %v1321_v13  ;;  %v827_v13 = vadd.f32 1.0, %v2413_v51  ;;  %v832_v51 = vadd.f32 1.0, %v1521_v58  ;;  %v839_v28 = vadd.f32 1.0, %v1535_v21 }
 0x28e   : > { %v2463_v30 = vpop.eup %1538  ;;  %1558 = vpow2.f32 %v1322_v17  ;;  %v828_v17 = vadd.f32 1.0, %v2421_v56  ;;  %v833_v56 = vadd.f32 1.0, %v1523_v2 }
 0x28f   : > { %v2466_v35 = vpop.eup %1540  ;;  %1560 = vpow2.f32 %v1323_v29  ;;  %v829_v29 = vadd.f32 1.0, %v1515_v60  ;;  %v834_v60 = vadd.f32 1.0, %v1525_v0 }
 0x290   : > { %v2469_v11 = vpop.eup %1542  ;;  %1562 = vrcp.f32 %v821_v59  ;;  %v830_v59 = vadd.f32 1.0, %v1517_v1 }
 0x291   : > { %v2472_v5 = vpop.eup %1544  ;;  %1564 = vrcp.f32 %v822_v63  ;;  %v831_v63 = vadd.f32 1.0, %v1519_v12 }
 0x292   : > { %v2475_v9 = vpop.eup %1546  ;;  %1566 = vrcp.f32 %v823_v7 }
 0x293   : > { %v2478_v44 = vpop.eup %1548  ;;  %1568 = vrcp.f32 %v824_v39 }
 0x294   : > { %v2481_v22 = vpop.eup %1550  ;;  %1570 = vrcp.f32 %v825_v3 }
 0x295   : > { %v2483_v41 = vpop.eup %1552  ;;  %1572 = vrcp.f32 %v826_v6  ;;  %v836_v6 = vadd.f32 1.0, %v1529_v42 }
 0x296   : > { %v2485_v31 = vpop.eup %1554  ;;  %1574 = vrcp.f32 %v827_v13 }
 0x297   : > { %v2487_v36 = vpop.eup %1556  ;;  %1576 = vrcp.f32 %v828_v17  ;;  %v838_v17 = vadd.f32 1.0, %v1533_v54 }
 0x298   : > { %v2489_v7 = vpop.eup %1558  ;;  %1578 = vrcp.f32 %v829_v29 }
 0x299   : > { %v2491_v39 = vpop.eup %1560  ;;  %1580 = vrcp.f32 %v830_v59 }
 0x29a   : > { %v1563_v3 = vpop.eup %1562  ;;  %1582 = vrcp.f32 %v831_v63 }
 0x29b   : > { %v1565_v1 = vpop.eup %1564  ;;  %1584 = vrcp.f32 %v832_v51  ;;  %v917_v12 = vmul.f32 %v1563_v3, %v2268_v20  ;;  %v840_v51 = vadd.f32 1.0, %v1537_v26  ;;  %v842_v26 = vadd.f32 1.0, %v2466_v35 }
 0x29c   : > { %v1567_v13 = vpop.eup %1566  ;;  %1586 = vrcp.f32 %v833_v56  ;;  %v918_v58 = vmul.f32 %v1565_v1, %v2271_v23  ;;  %v844_v35 = vadd.f32 1.0, %v2472_v5  ;;  %v846_v5 = vadd.f32 1.0, %v2478_v44 }
 0x29d   : > { %v1569_v2 = vpop.eup %1568  ;;  %1588 = vrcp.f32 %v834_v60  ;;  %v919_v0 = vmul.f32 %v1567_v13, %v2274_v24  ;;  %v1391_v29 = vpack.c.bf16 %v917_v12, %v917_v12  ;;  %v841_v24 = vadd.f32 1.0, %v2463_v30 }
 0x29e   : > { %v1571_v59 = vpop.eup %1570  ;;  %1590 = vrcp.f32 %v835_v61  ;;  %v920_v42 = vmul.f32 %v1569_v2, %v2279_v8  ;;  %v1392_v63 = vpack.c.bf16 %v918_v58, %v918_v58  ;;  %v843_v30 = vadd.f32 1.0, %v2469_v11 }
 0x29f   : > { %v1573_v20 = vpop.eup %1572  ;;  %1592 = vrcp.f32 %v836_v6  ;;  %v921_v23 = vmul.f32 %v1571_v59, %v2284_v38  ;;  %v1393_v50 = vpack.c.bf16 %v919_v0, %v919_v0  ;;  %1356 = vst.msk [vmem:[%s1717_s8 + $0x18] sm:$0xf] %vm949_vm2, %v1391_v29  ;;  %v845_v11 = vadd.f32 1.0, %v2475_v9 }
 0x2a0   : > { %v1575_v54 = vpop.eup %1574  ;;  %1594 = vrcp.f32 %v837_v18  ;;  %v922_v21 = vmul.f32 %v1573_v20, %v2291_v32  ;;  %v1394_v61 = vpack.c.bf16 %v920_v42, %v920_v42  ;;  %1357 = vst.msk [vmem:[%s1717_s8 + $0x1c] sm:$0xf] %vm949_vm2, %v1392_v63  ;;  %v847_v9 = vadd.f32 1.0, %v2481_v22 }
 0x2a1   : > { %v1577_v8 = vpop.eup %1576  ;;  %1596 = vrcp.f32 %v838_v17  ;;  %v923_v38 = vmul.f32 %v1575_v54, %v2294_v19  ;;  %v1395_v56 = vpack.c.bf16 %v921_v23, %v921_v23  ;;  %1358 = vst.msk [vmem:[%s1717_s8 + $0x24] sm:$0xf] %vm949_vm2, %v1393_v50  ;;  %v848_v44 = vadd.f32 1.0, %v2483_v41 }
 0x2a2   : > { %v1579_v60 = vpop.eup %1578  ;;  %1598 = vrcp.f32 %v839_v28  ;;  %v924_v32 = vmul.f32 %v1577_v8, %v2302_v25  ;;  %v1396_v18 = vpack.c.bf16 %v922_v21, %v922_v21  ;;  %1359 = vst.msk [vmem:[%s1717_s8 + $0x28] sm:$0xf] %vm949_vm2, %v1394_v61  ;;  %v849_v22 = vadd.f32 1.0, %v2485_v31 }
 0x2a3   : > { %v1581_v3 = vpop.eup %1580  ;;  %1600 = vrcp.f32 %v840_v51  ;;  %v925_v19 = vmul.f32 %v1579_v60, %v2308_v48  ;;  %v1397_v1 = vpack.c.bf16 %v923_v38, %v923_v38  ;;  %1360 = vst.msk [vmem:[%s1717_s8 + $0x30] sm:$0xf] %vm949_vm2, %v1395_v56  ;;  %v850_v41 = vadd.f32 1.0, %v2487_v36 }
 0x2a4   : > { %v1583_v6 = vpop.eup %1582  ;;  %1602 = vrcp.f32 %v841_v24  ;;  %v926_v25 = vmul.f32 %v1581_v3, %v2314_v45  ;;  %v1398_v12 = vpack.c.bf16 %v924_v32, %v924_v32  ;;  %1361 = vst.msk [vmem:[%s1717_s8 + $0x34] sm:$0xf] %vm949_vm2, %v1396_v18  ;;  %v851_v31 = vadd.f32 1.0, %v2489_v7 }
 0x2a5   : > { %v1585_v13 = vpop.eup %1584  ;;  %1604 = vrcp.f32 %v842_v26  ;;  %v927_v48 = vmul.f32 %v1583_v6, %v2320_v34  ;;  %v1399_v58 = vpack.c.bf16 %v925_v19, %v925_v19  ;;  %1362 = vst.msk [vmem:[%s1717_s8 + $0x3c] sm:$0xf] %vm949_vm2, %v1397_v1  ;;  %v852_v36 = vadd.f32 1.0, %v2491_v39 }
 0x2a6   : > { %v1587_v2 = vpop.eup %1586  ;;  %1606 = vrcp.f32 %v843_v30  ;;  %v928_v45 = vmul.f32 %v1585_v13, %v2326_v37  ;;  %v1400_v17 = vpack.c.bf16 %v926_v25, %v926_v25  ;;  %1363 = vst.msk [vmem:[%s1717_s8 + $0x40] sm:$0xf] %vm949_vm2, %v1398_v12 }
 0x2a7   : > { %v1589_v0 = vpop.eup %1588  ;;  %1608 = vrcp.f32 %v844_v35  ;;  %v929_v34 = vmul.f32 %v1587_v2, %v2332_v40  ;;  %v1401_v29 = vpack.c.bf16 %v927_v48, %v927_v48  ;;  %1364 = vst.msk [vmem:[%s1717_s8 + $0x48] sm:$0xf] %vm949_vm2, %v1399_v58  ;;  %v2621_v58 = vld [vmem:[#allocation2_spill] sm:$0xff] }
 0x2a8   : > { %v1591_v59 = vpop.eup %1590  ;;  %1610 = vrcp.f32 %v845_v11  ;;  %v930_v37 = vmul.f32 %v1589_v0, %v2338_v43  ;;  %v1402_v28 = vpack.c.bf16 %v928_v45, %v928_v45  ;;  %1365 = vst.msk [vmem:[%s1717_s8 + $0x4c] sm:$0xf] %vm949_vm2, %v1400_v17  ;;  %v2622_v45 = vld [vmem:[#allocation3_spill] sm:$0xff] }
 0x2a9   : > { %v1593_v42 = vpop.eup %1592  ;;  %1612 = vrcp.f32 %v846_v5  ;;  %v931_v40 = vmul.f32 %v1591_v59, %v2344_v46  ;;  %v1403_v63 = vpack.c.bf16 %v929_v34, %v929_v34  ;;  %1366 = vst.msk [vmem:[%s1717_s8 + $0x54] sm:$0xf] %vm949_vm2, %v1401_v29 }
 0x2aa   : > { %v1595_v20 = vpop.eup %1594  ;;  %1614 = vrcp.f32 %v847_v9  ;;  %v932_v43 = vmul.f32 %v1593_v42, %v2350_v49  ;;  %v1404_v51 = vpack.c.bf16 %v930_v37, %v930_v37  ;;  %1367 = vst.msk [vmem:[%s1717_s8 + $0x58] sm:$0xf] %vm949_vm2, %v1402_v28 }
 0x2ab   : > { %v1597_v23 = vpop.eup %1596  ;;  %1616 = vrcp.f32 %v848_v44  ;;  %v933_v46 = vmul.f32 %v1595_v20, %v2356_v52  ;;  %v1405_v50 = vpack.c.bf16 %v931_v40, %v931_v40  ;;  %1368 = vst.msk [vmem:[%s1717_s8 + $0x60] sm:$0xf] %vm949_vm2, %v1403_v63  ;;  %v2623_v44 = vld [vmem:[#allocation4_spill] sm:$0xff] }
 0x2ac   : > { %v1599_v54 = vpop.eup %1598  ;;  %1618 = vrcp.f32 %v849_v22  ;;  %v934_v7 = vmul.f32 %v1597_v23, %v2362_v55  ;;  %v1406_v24 = vpack.c.bf16 %v932_v43, %v932_v43  ;;  %1369 = vst.msk [vmem:[%s1717_s8 + $0x64] sm:$0xf] %vm949_vm2, %v1404_v51 }
 0x2ad   : > { %v1601_v49 = vpop.eup %1600  ;;  %1620 = vrcp.f32 %v850_v41  ;;  %v935_v21 = vmul.f32 %v1599_v54, %v2370_v14  ;;  %v1407_v39 = vpack.c.bf16 %v933_v46, %v933_v46  ;;  %1370 = vst.msk [vmem:[%s1717_s8 + $0x6c] sm:$0xf] %vm949_vm2, %v1405_v50 }
 0x2ae   : > { %v1603_v52 = vpop.eup %1602  ;;  %1622 = vrcp.f32 %v851_v31  ;;  %v936_v61 = vmul.f32 %v1601_v49, %v2378_v10  ;;  %v1408_v8 = vpack.c.bf16 %v934_v7, %v934_v7  ;;  %1371 = vst.msk [vmem:[%s1717_s8 + $0x70] sm:$0xf] %vm949_vm2, %v1406_v24 }
 0x2af   : > { %v1605_v55 = vpop.eup %1604  ;;  %1624 = vrcp.f32 %v852_v36  ;;  %v937_v26 = vmul.f32 %v1603_v52, %v2386_v33  ;;  %v1409_v38 = vpack.c.bf16 %v935_v21, %v935_v21  ;;  %1372 = vst.msk [vmem:[%s1717_s8 + $0x78] sm:$0xf] %vm949_vm2, %v1407_v39 }
 0x2b0   : > { %v1607_v14 = vpop.eup %1606  ;;  %v938_v56 = vmul.f32 %v1605_v55, %v2394_v16  ;;  %v1410_v60 = vpack.c.bf16 %v936_v61, %v936_v61  ;;  %1373 = vst.msk [vmem:[%s1717_s8 + $0x7c] sm:$0xf] %vm949_vm2, %v1408_v8 }
 0x2b1   : > { %v1609_v10 = vpop.eup %1608  ;;  %v939_v30 = vmul.f32 %v1607_v14, %v2402_v15  ;;  %v1411_v32 = vpack.c.bf16 %v937_v26, %v937_v26  ;;  %1374 = vst.msk [vmem:[%s1717_s8 + $0x84] sm:$0xf] %vm949_vm2, %v1409_v38 }
 0x2b2   : > { %v1611_v18 = vpop.eup %1610  ;;  %v940_v33 = vmul.f32 %v1609_v10, %v2410_v47  ;;  %v1412_v3 = vpack.c.bf16 %v938_v56, %v938_v56  ;;  %1375 = vst.msk [vmem:[%s1717_s8 + $0x88] sm:$0xf] %vm949_vm2, %v1410_v60 }
 0x2b3   : > { %v1613_v35 = vpop.eup %1612  ;;  %v941_v16 = vmul.f32 %v1611_v18, %v2418_v53  ;;  %v1413_v19 = vpack.c.bf16 %v939_v30, %v939_v30  ;;  %1376 = vst.msk [vmem:[%s1717_s8 + $0x90] sm:$0xf] %vm949_vm2, %v1411_v32 }
 0x2b4   : > { %v1615_v1 = vpop.eup %1614  ;;  %v942_v15 = vmul.f32 %v1613_v35, %v2426_v57  ;;  %v1414_v6 = vpack.c.bf16 %v940_v33, %v940_v33  ;;  %1377 = vst.msk [vmem:[%s1717_s8 + $0x94] sm:$0xf] %vm949_vm2, %v1412_v3 }
 0x2b5   : > { %v1617_v11 = vpop.eup %1616  ;;  %v943_v47 = vmul.f32 %v1615_v1, %v2432_v62  ;;  %v1415_v25 = vpack.c.bf16 %v941_v16, %v941_v16  ;;  %1378 = vst.msk [vmem:[%s1717_s8 + $0x9c] sm:$0xf] %vm949_vm2, %v1413_v19 }
 0x2b6   : > { %v1619_v12 = vpop.eup %1618  ;;  %v944_v53 = vmul.f32 %v1617_v11, %v2438_v4  ;;  %v1416_v13 = vpack.c.bf16 %v942_v15, %v942_v15  ;;  %1379 = vst.msk [vmem:[%s1717_s8 + $0xa0] sm:$0xf] %vm949_vm2, %v1414_v6 }
 0x2b7   : > { %v1621_v5 = vpop.eup %1620  ;;  %v945_v57 = vmul.f32 %v1619_v12, %v2442_v27  ;;  %v1417_v48 = vpack.c.bf16 %v943_v47, %v943_v47  ;;  %1380 = vst.msk [vmem:[%s1717_s8 + $0xa8] sm:$0xf] %vm949_vm2, %v1415_v25 }
 0x2b8   : > { %v1623_v62 = vpop.eup %1622  ;;  %v946_v2 = vmul.f32 %v1621_v5, %v2621_v58  ;;  %v1418_v9 = vpack.c.bf16 %v944_v53, %v944_v53  ;;  %1381 = vst.msk [vmem:[%s1717_s8 + $0xac] sm:$0xf] %vm949_vm2, %v1416_v13 }
 0x2b9   : > { %v1625_v4 = vpop.eup %1624  ;;  %v947_v17 = vmul.f32 %v1623_v62, %v2622_v45  ;;  %v1419_v0 = vpack.c.bf16 %v945_v57, %v945_v57  ;;  %1382 = vst.msk [vmem:[%s1717_s8 + $0xb4] sm:$0xf] %vm949_vm2, %v1417_v48 }
 0x2ba   : > { %v948_v27 = vmul.f32 %v1625_v4, %v2623_v44  ;;  %v1420_v34 = vpack.c.bf16 %v946_v2, %v946_v2  ;;  %1383 = vst.msk [vmem:[%s1717_s8 + $0xb8] sm:$0xf] %vm949_vm2, %v1418_v9 }
 0x2bb   : > { %v1421_v29 = vpack.c.bf16 %v947_v17, %v947_v17  ;;  %1384 = vst.msk [vmem:[%s1717_s8 + $0xc0] sm:$0xf] %vm949_vm2, %v1419_v0 }
 0x2bc   : > { %v1422_v59 = vpack.c.bf16 %v948_v27, %v948_v27  ;;  %1385 = vst.msk [vmem:[%s1717_s8 + $0xc4] sm:$0xf] %vm949_vm2, %v1420_v34 }
 0x2bd   : > { %1386 = vst.msk [vmem:[%s1717_s8 + $0xcc] sm:$0xf] %vm949_vm2, %v1421_v29 }
 0x2be   : > { %1387 = vst.msk [vmem:[%s1717_s8 + $0xd0] sm:$0xf] %vm949_vm2, %v1422_v59 }
 0x2bf PF: > { %s14_s17 = sadd.s32 1, %s1648_s17   ;;  %s2624_s15 = smov %s1644_s16 }
 0x2c0   : > { %p11_p5 = scmp.ge.s32.totalorder %s14_s17, 4   ;;  %s2625_s16 = smov %s2627_s18 }
 0x2c2   :  { %13 = sbr.rel (!%p11_p5) target bundleno = 2 (0x2), region = 73 }

// kernel: residual_block_forward.6
= control target key start
LH: loop header
LB: loop body
LE: loop exit
PB: predicated region body
PF: predicated region fallthrough
CT: control target
= control target key end

     0   :  { %s1830_s15 = smov 0   ;;  %s1832_s16 = smov 0   ;;  %s2830_s0 = inlined_call_operand.vmem [shape: bf16[2,16,16,64], index: 0, kind: input, shape index: {}]   ;;  %s2831_s1 = inlined_call_operand.vmem [shape: f32[64,64], index: 1, kind: input, shape index: {}]   ;;  %s2832_s2 = inlined_call_operand.vmem [shape: f32[1,64], index: 2, kind: input, shape index: {}]   ;;  %s2833_s3 = inlined_call_operand.vmem [shape: f32[1,64], index: 3, kind: input, shape index: {}]   ;;  %s2834_s4 = inlined_call_operand.vmem [shape: bf16[2,20,24,64], index: 4, kind: output, shape index: {}]  }
   0x1   :  { %s1834_s17 = smov 0  }
   0x2 LB: > { %s26_s18 = sadd.s32 1, %s1795_s16  ;;  %p1321_p0 = scmp.ge.s32.totalorder %s1799_s17, 1  ;;  %s1799_s17 = sphi %s1834_s17, %s14_s17   ;;  %s1795_s16 = sphi %s1832_s16, %s2847_s16   ;;  %s1791_s15 = sphi %s1830_s15, %s2846_s15  }
   0x3   : > { %p28_p1 = scmp.ge.s32.totalorder %s26_s18, 2  ;;  %p197_p2 = scmp.lt.s32.totalorder %s1799_s17, 3 }
   0x5   : > { %s2849_s18 = smov (%p28_p1, %s26_s18), 0  ;;  %p198_p3 = pnand %p1321_p0, %p197_p2 }
   0x7   : > { %201 = sbr.rel (%p198_p3) target bundleno = 705 (0x2c1), region = 36 }
   0xe   : > { %v392_v0 = vld [vmem:[%s2831_s1] sm:$0xff]  ;;  %v393_v1 = vld [vmem:[%s2831_s1 + $0x8] sm:$0xff]  ;;  %v394_v2 = vld [vmem:[%s2831_s1 + $0x10] sm:$0xff]  ;;  %v1801_v3 = vmov 0.0|0.0   ;;  %vm1802_vm0 = vmmov 0   ;;  %v1803_v6 = vmov 0.0  }
   0xf   : > { %1594 = vmatprep.subr.bf16.mxu0 %v1801_v3  ;;  %v1595_v4 = vpack.c.bf16 %v393_v1, %v392_v0  ;;  %v395_v5 = vld [vmem:[%s2831_s1 + $0x18] sm:$0xff]  ;;  %1572 = vmatprep.mubr.msk.f32.mxu0 %vm1802_vm0, %v1803_v6  ;;  %p235_p4 = scmp.lt.s32.totalorder %s1791_s15, 1  ;;  %v396_v8 = vld [vmem:[%s2831_s1 + $0x20] sm:$0xff]  ;;  %v397_v9 = vld [vmem:[%s2831_s1 + $0x28] sm:$0xff]  ;;  %vm985_vm1 = vcmask 519168   ;;  %v1804_v13 = vmov 0  }
  0x10   : > { %1606 = vmatprep.subr.bf16.mxu1 %v1801_v3  ;;  %1591 = vmatprep.mubr.msk.f32.mxu1 %vm1802_vm0, %v1803_v6  ;;  %v1598_v7 = vpack.c.bf16 %v395_v5, %v394_v2  ;;  %v1875_v10 = vpack.c.bf16 %v397_v9, %v396_v8  ;;  %v1886_v11 = vld [vmem:[%s2831_s1 + $0x30] sm:$0xff]  ;;  %v1891_v12 = vld [vmem:[%s2831_s1 + $0x38] sm:$0xff]  ;;  %vm322_vm2 = vcmask 523264  }
  0x11   : > { %1596 = vmatpush3.bf16.msra.mxu0 %v1595_v4  ;;  %s2851_s15 = smov (!%p235_p4, %s1791_s15), 1  ;;  %1608 = vmatpush3.bf16.msra.mxu1 %v1595_v4  ;;  %v1604_v16 = vpack.c.bf16 %v1891_v12, %v1886_v11 }
  0x12   : > { %1597 = vmatprep.subr.bf16.mxu0 %v1801_v3  ;;  %1609 = vmatprep.subr.bf16.mxu1 %v1801_v3  ;;  %s1426_s5 = sshll.u32 %s2851_s15, 7  ;;  %s1618_s6 = smul.u32 240, %s2851_s15 }
  0x13   : > { %s1873_s9 = scalar_lea.vmem %s2830_s0, %s1426_s5 }
  0x14   : > { %s1880_s12 = scalar_lea.vmem %s2834_s4, %s1618_s6  ;;  %v2015_v14 = vld [vmem:[%s1873_s9] sm:$0xff]   ;;  %v2018_v15 = vld [vmem:[%s1873_s9 + $0x8] sm:$0xff]   ;;  %v2030_v20 = vld [vmem:[%s1873_s9 + $0x10] sm:$0xff]  }
  0x15   : > { %1599 = vmatpush3.bf16.msra.mxu0 %v1598_v7  ;;  %1611 = vmatpush3.bf16.msra.mxu1 %v1598_v7  ;;  %986 = vst.msk [vmem:[%s1880_s12] sm:$0xf] %vm985_vm1, %v1804_v13  ;;  %987 = vst.msk [vmem:[%s1880_s12 + $0x4] sm:$0xf] %vm985_vm1, %v1804_v13  ;;  %v1461_v17 = vunpack.c.l.bf16 %v2015_v14  ;;  %v1462_v18 = vunpack.c.h.bf16 %v2015_v14  ;;  %v1465_v19 = vunpack.c.l.bf16 %v2018_v15  ;;  %v1466_v21 = vunpack.c.h.bf16 %v2018_v15  ;;  %v2044_v26 = vld [vmem:[%s1873_s9 + $0x18] sm:$0xff]   ;;  %v2055_v33 = vld [vmem:[%s1873_s9 + $0x20] sm:$0xff]  }
  0x16   : > { %1600 = vmatprep.subr.bf16.mxu0 %v1801_v3  ;;  %988 = vst.msk [vmem:[%s1880_s12 + $0x8] sm:$0xf] %vm985_vm1, %v1804_v13  ;;  %989 = vst.msk [vmem:[%s1880_s12 + $0xc] sm:$0xf] %vm985_vm1, %v1804_v13  ;;  %1612 = vmatprep.subr.bf16.mxu1 %v1801_v3  ;;  %v1469_v22 = vunpack.c.l.bf16 %v2030_v20  ;;  %v1470_v28 = vunpack.c.h.bf16 %v2030_v20  ;;  %v1473_v31 = vunpack.c.l.bf16 %v2044_v26  ;;  %v1474_v35 = vunpack.c.h.bf16 %v2044_v26  ;;  %v2066_v40 = vld [vmem:[%s1873_s9 + $0x28] sm:$0xff]   ;;  %v2077_v47 = vld [vmem:[%s1873_s9 + $0x30] sm:$0xff]  }
  0x17   : > { %990 = vst.msk [vmem:[%s1880_s12 + $0x10] sm:$0xf] %vm985_vm1, %v1804_v13  ;;  %991 = vst.msk [vmem:[%s1880_s12 + $0x14] sm:$0xf] %vm985_vm1, %v1804_v13  ;;  %v323_v23 = vsel %vm322_vm2, %v1461_v17, 0.0  ;;  %v324_v24 = vsel %vm322_vm2, %v1462_v18, 0.0  ;;  %v1477_v38 = vunpack.c.l.bf16 %v2055_v33  ;;  %v1478_v42 = vunpack.c.h.bf16 %v2055_v33 }
  0x18   : > { %994 = vst.msk [vmem:[%s1880_s12 + $0x20] sm:$0xf] %vm985_vm1, %v1804_v13  ;;  %997 = vst.msk [vmem:[%s1880_s12 + $0x2c] sm:$0xf] %vm985_vm1, %v1804_v13  ;;  %v326_v25 = vsel %vm322_vm2, %v1465_v19, 0.0  ;;  %v325_v27 = vadd.f32 %v324_v24, %v323_v23  ;;  %v328_v29 = vsel %vm322_vm2, %v1466_v21, 0.0  ;;  %v1481_v45 = vunpack.c.l.bf16 %v2066_v40 }
  0x19   : > { %1000 = vst.msk [vmem:[%s1880_s12 + $0x38] sm:$0xf] %vm985_vm1, %v1804_v13  ;;  %1003 = vst.msk [vmem:[%s1880_s12 + $0x44] sm:$0xf] %vm985_vm1, %v1804_v13  ;;  %1602 = vmatpush3.bf16.msra.mxu0 %v1875_v10  ;;  %1614 = vmatpush3.bf16.msra.mxu1 %v1875_v10  ;;  %v330_v32 = vsel %vm322_vm2, %v1469_v22, 0.0  ;;  %v332_v36 = vsel %vm322_vm2, %v1470_v28, 0.0  ;;  %v1482_v49 = vunpack.c.h.bf16 %v2066_v40  ;;  %v1485_v52 = vunpack.c.l.bf16 %v2077_v47 }
  0x1a   : > { %1006 = vst.msk [vmem:[%s1880_s12 + $0x50] sm:$0xf] %vm985_vm1, %v1804_v13  ;;  %1009 = vst.msk [vmem:[%s1880_s12 + $0x5c] sm:$0xf] %vm985_vm1, %v1804_v13  ;;  %1603 = vmatprep.subr.bf16.mxu0 %v1801_v3  ;;  %1615 = vmatprep.subr.bf16.mxu1 %v1801_v3  ;;  %v327_v30 = vadd.f32 %v326_v25, %v325_v27  ;;  %v334_v39 = vsel %vm322_vm2, %v1473_v31, 0.0  ;;  %v336_v43 = vsel %vm322_vm2, %v1474_v35, 0.0  ;;  %v1486_v56 = vunpack.c.h.bf16 %v2077_v47 }
  0x1b   : > { %1012 = vst.msk [vmem:[%s1880_s12 + $0x68] sm:$0xf] %vm985_vm1, %v1804_v13  ;;  %1015 = vst.msk [vmem:[%s1880_s12 + $0x74] sm:$0xf] %vm985_vm1, %v1804_v13  ;;  %v338_v46 = vsel %vm322_vm2, %v1477_v38, 0.0  ;;  %v340_v50 = vsel %vm322_vm2, %v1478_v42, 0.0 }
  0x1c   : > { %1018 = vst.msk [vmem:[%s1880_s12 + $0x80] sm:$0xf] %vm985_vm1, %v1804_v13  ;;  %1021 = vst.msk [vmem:[%s1880_s12 + $0x8c] sm:$0xf] %vm985_vm1, %v1804_v13  ;;  %v329_v34 = vadd.f32 %v328_v29, %v327_v30  ;;  %v342_v53 = vsel %vm322_vm2, %v1481_v45, 0.0  ;;  %v2088_v54 = vld [vmem:[%s1873_s9 + $0x38] sm:$0xff]  }
  0x1d   : > { %1024 = vst.msk [vmem:[%s1880_s12 + $0x98] sm:$0xf] %vm985_vm1, %v1804_v13  ;;  %1027 = vst.msk [vmem:[%s1880_s12 + $0xa4] sm:$0xf] %vm985_vm1, %v1804_v13  ;;  %1605 = vmatpush3.bf16.msra.mxu0 %v1604_v16  ;;  %1617 = vmatpush3.bf16.msra.mxu1 %v1604_v16  ;;  %v344_v57 = vsel %vm322_vm2, %v1482_v49, 0.0  ;;  %v1489_v59 = vunpack.c.l.bf16 %v2088_v54  ;;  %v346_v60 = vsel %vm322_vm2, %v1485_v52, 0.0  ;;  %v1490_v63 = vunpack.c.h.bf16 %v2088_v54 }
  0x1e   : > { %1030 = vst.msk [vmem:[%s1880_s12 + $0xb0] sm:$0xf] %vm985_vm1, %v1804_v13  ;;  %1033 = vst.msk [vmem:[%s1880_s12 + $0xbc] sm:$0xf] %vm985_vm1, %v1804_v13  ;;  %v331_v37 = vadd.f32 %v330_v32, %v329_v34  ;;  %v2099_v61 = vld [vmem:[%s1873_s9 + $0x40] sm:$0xff]   ;;  %v348_v0 = vsel %vm322_vm2, %v1486_v56, 0.0 }
  0x1f   : > { %1036 = vst.msk [vmem:[%s1880_s12 + $0xc8] sm:$0xf] %vm985_vm1, %v1804_v13  ;;  %1039 = vst.msk [vmem:[%s1880_s12 + $0xd4] sm:$0xf] %vm985_vm1, %v1804_v13  ;;  %v1493_v2 = vunpack.c.l.bf16 %v2099_v61  ;;  %v350_v3 = vsel %vm322_vm2, %v1489_v59, 0.0  ;;  %v2110_v4 = vld [vmem:[%s1873_s9 + $0x48] sm:$0xff]   ;;  %v1494_v6 = vunpack.c.h.bf16 %v2099_v61 }
  0x20   : > { %1040 = vst.msk [vmem:[%s1880_s12 + $0xd8] sm:$0xf] %vm985_vm1, %v1804_v13  ;;  %1041 = vst.msk [vmem:[%s1880_s12 + $0xdc] sm:$0xf] %vm985_vm1, %v1804_v13  ;;  %v333_v41 = vadd.f32 %v332_v36, %v331_v37  ;;  %v352_v7 = vsel %vm322_vm2, %v1490_v63, 0.0  ;;  %v1497_v9 = vunpack.c.l.bf16 %v2110_v4  ;;  %v2121_v11 = vld [vmem:[%s1873_s9 + $0x50] sm:$0xff]  }
  0x21   : > { %1042 = vst.msk [vmem:[%s1880_s12 + $0xe0] sm:$0xf] %vm985_vm1, %v1804_v13  ;;  %1043 = vst.msk [vmem:[%s1880_s12 + $0xe4] sm:$0xf] %vm985_vm1, %v1804_v13  ;;  %v354_v10 = vsel %vm322_vm2, %v1493_v2, 0.0  ;;  %v356_v16 = vsel %vm322_vm2, %v1494_v6, 0.0  ;;  %v1501_v24 = vunpack.c.l.bf16 %v2121_v11  ;;  %v1502_v30 = vunpack.c.h.bf16 %v2121_v11 }
  0x22   : > { %1044 = vst.msk [vmem:[%s1880_s12 + $0xe8] sm:$0xf] %vm985_vm1, %v1804_v13  ;;  %1045 = vst.msk [vmem:[%s1880_s12 + $0xec] sm:$0xf] %vm985_vm1, %v1804_v13  ;;  %v335_v44 = vadd.f32 %v334_v39, %v333_v41  ;;  %v358_v25 = vsel %vm322_vm2, %v1497_v9, 0.0  ;;  %v2132_v27 = vld [vmem:[%s1873_s9 + $0x58] sm:$0xff]  }
  0x23   : > { %992 = vst.msk [vmem:[%s1880_s12 + $0x18] sm:$0xf] %vm985_vm1, %v1804_v13  ;;  %993 = vst.msk [vmem:[%s1880_s12 + $0x1c] sm:$0xf] %vm985_vm1, %v1804_v13  ;;  %v1505_v36 = vunpack.c.l.bf16 %v2132_v27  ;;  %v362_v37 = vsel %vm322_vm2, %v1501_v24, 0.0  ;;  %v2143_v39 = vld [vmem:[%s1873_s9 + $0x60] sm:$0xff]  }
  0x24   : > { %995 = vst.msk [vmem:[%s1880_s12 + $0x24] sm:$0xf] %vm985_vm1, %v1804_v13  ;;  %996 = vst.msk [vmem:[%s1880_s12 + $0x28] sm:$0xf] %vm985_vm1, %v1804_v13  ;;  %v337_v48 = vadd.f32 %v336_v43, %v335_v44  ;;  %v1506_v43 = vunpack.c.h.bf16 %v2132_v27  ;;  %v364_v44 = vsel %vm322_vm2, %v1502_v30, 0.0 }
  0x25   : > { %998 = vst.msk [vmem:[%s1880_s12 + $0x30] sm:$0xf] %vm985_vm1, %v1804_v13  ;;  %999 = vst.msk [vmem:[%s1880_s12 + $0x34] sm:$0xf] %vm985_vm1, %v1804_v13 }
  0x26   : > { %1001 = vst.msk [vmem:[%s1880_s12 + $0x3c] sm:$0xf] %vm985_vm1, %v1804_v13  ;;  %1002 = vst.msk [vmem:[%s1880_s12 + $0x40] sm:$0xf] %vm985_vm1, %v1804_v13  ;;  %v339_v51 = vadd.f32 %v338_v46, %v337_v48  ;;  %v1509_v48 = vunpack.c.l.bf16 %v2143_v39 }
  0x27   : > { %1004 = vst.msk [vmem:[%s1880_s12 + $0x48] sm:$0xf] %vm985_vm1, %v1804_v13  ;;  %1005 = vst.msk [vmem:[%s1880_s12 + $0x4c] sm:$0xf] %vm985_vm1, %v1804_v13 }
  0x28   : > { %1007 = vst.msk [vmem:[%s1880_s12 + $0x54] sm:$0xf] %vm985_vm1, %v1804_v13  ;;  %1008 = vst.msk [vmem:[%s1880_s12 + $0x58] sm:$0xf] %vm985_vm1, %v1804_v13  ;;  %v341_v55 = vadd.f32 %v340_v50, %v339_v51  ;;  %v366_v50 = vsel %vm322_vm2, %v1505_v36, 0.0  ;;  %v2154_v51 = vld [vmem:[%s1873_s9 + $0x68] sm:$0xff]  }
  0x29   : > { %1010 = vst.msk [vmem:[%s1880_s12 + $0x60] sm:$0xf] %vm985_vm1, %v1804_v13  ;;  %1011 = vst.msk [vmem:[%s1880_s12 + $0x64] sm:$0xf] %vm985_vm1, %v1804_v13 }
  0x2a   : > { %1013 = vst.msk [vmem:[%s1880_s12 + $0x6c] sm:$0xf] %vm985_vm1, %v1804_v13  ;;  %1014 = vst.msk [vmem:[%s1880_s12 + $0x70] sm:$0xf] %vm985_vm1, %v1804_v13  ;;  %v343_v58 = vadd.f32 %v342_v53, %v341_v55  ;;  %v1510_v55 = vunpack.c.h.bf16 %v2143_v39 }
  0x2b   : > { %1016 = vst.msk [vmem:[%s1880_s12 + $0x78] sm:$0xf] %vm985_vm1, %v1804_v13  ;;  %1017 = vst.msk [vmem:[%s1880_s12 + $0x7c] sm:$0xf] %vm985_vm1, %v1804_v13 }
  0x2c   : > { %1019 = vst.msk [vmem:[%s1880_s12 + $0x84] sm:$0xf] %vm985_vm1, %v1804_v13  ;;  %1020 = vst.msk [vmem:[%s1880_s12 + $0x88] sm:$0xf] %vm985_vm1, %v1804_v13  ;;  %v345_v62 = vadd.f32 %v344_v57, %v343_v58  ;;  %v368_v57 = vsel %vm322_vm2, %v1506_v43, 0.0 }
  0x2d   : > { %1022 = vst.msk [vmem:[%s1880_s12 + $0x90] sm:$0xf] %vm985_vm1, %v1804_v13  ;;  %1023 = vst.msk [vmem:[%s1880_s12 + $0x94] sm:$0xf] %vm985_vm1, %v1804_v13 }
  0x2e   : > { %1025 = vst.msk [vmem:[%s1880_s12 + $0x9c] sm:$0xf] %vm985_vm1, %v1804_v13  ;;  %1026 = vst.msk [vmem:[%s1880_s12 + $0xa0] sm:$0xf] %vm985_vm1, %v1804_v13  ;;  %v347_v1 = vadd.f32 %v346_v60, %v345_v62  ;;  %v1513_v60 = vunpack.c.l.bf16 %v2154_v51  ;;  %v370_v62 = vsel %vm322_vm2, %v1509_v48, 0.0 }
  0x2f   : > { %1028 = vst.msk [vmem:[%s1880_s12 + $0xa8] sm:$0xf] %vm985_vm1, %v1804_v13  ;;  %1029 = vst.msk [vmem:[%s1880_s12 + $0xac] sm:$0xf] %vm985_vm1, %v1804_v13 }
  0x30   : > { %1031 = vst.msk [vmem:[%s1880_s12 + $0xb4] sm:$0xf] %vm985_vm1, %v1804_v13  ;;  %1032 = vst.msk [vmem:[%s1880_s12 + $0xb8] sm:$0xf] %vm985_vm1, %v1804_v13  ;;  %v349_v5 = vadd.f32 %v348_v0, %v347_v1  ;;  %v2165_v0 = vld [vmem:[%s1873_s9 + $0x70] sm:$0xff]  }
  0x31   : > { %1034 = vst.msk [vmem:[%s1880_s12 + $0xc0] sm:$0xf] %vm985_vm1, %v1804_v13  ;;  %1035 = vst.msk [vmem:[%s1880_s12 + $0xc4] sm:$0xf] %vm985_vm1, %v1804_v13 }
  0x32   : > { %1037 = vst.msk [vmem:[%s1880_s12 + $0xcc] sm:$0xf] %vm985_vm1, %v1804_v13  ;;  %1038 = vst.msk [vmem:[%s1880_s12 + $0xd0] sm:$0xf] %vm985_vm1, %v1804_v13  ;;  %v351_v8 = vadd.f32 %v350_v3, %v349_v5  ;;  %v1498_v13 = vunpack.c.h.bf16 %v2110_v4  ;;  %v1514_v3 = vunpack.c.h.bf16 %v2154_v51  ;;  %v372_v5 = vsel %vm322_vm2, %v1510_v55, 0.0 }
  0x34   : > { %v353_v12 = vadd.f32 %v352_v7, %v351_v8  ;;  %v360_v32 = vsel %vm322_vm2, %v1498_v13, 0.0  ;;  %v1517_v8 = vunpack.c.l.bf16 %v2165_v0 }
  0x36   : > { %v355_v23 = vadd.f32 %v354_v10, %v353_v12  ;;  %v374_v10 = vsel %vm322_vm2, %v1513_v60, 0.0  ;;  %v2176_v12 = vld [vmem:[%s1873_s9 + $0x78] sm:$0xff]  }
  0x38   : > { %v357_v29 = vadd.f32 %v356_v16, %v355_v23  ;;  %v1518_v23 = vunpack.c.h.bf16 %v2165_v0 }
  0x3a   : > { %v359_v34 = vadd.f32 %v358_v25, %v357_v29  ;;  %v376_v25 = vsel %vm322_vm2, %v1514_v3, 0.0 }
  0x3c   : > { %v361_v41 = vadd.f32 %v360_v32, %v359_v34  ;;  %v2835_v32 = vunpack.c.l.bf16 %v2176_v12  ;;  %v378_v34 = vsel %vm322_vm2, %v1517_v8, 0.0 }
  0x3e   : > { %v363_v46 = vadd.f32 %v362_v37, %v361_v41  ;;  %v1522_v41 = vunpack.c.h.bf16 %v2176_v12 }
  0x40   : > { %v365_v53 = vadd.f32 %v364_v44, %v363_v46  ;;  %v380_v44 = vsel %vm322_vm2, %v1518_v23, 0.0 }
  0x42   : > { %v367_v58 = vadd.f32 %v366_v50, %v365_v53  ;;  %v382_v50 = vsel %vm322_vm2, %v2835_v32, 0.0 }
  0x44   : > { %v369_v1 = vadd.f32 %v368_v57, %v367_v58  ;;  %v384_v57 = vsel %vm322_vm2, %v1522_v41, 0.0 }
  0x46   : > { %v371_v7 = vadd.f32 %v370_v62, %v369_v1 }
  0x48   : > { %v373_v16 = vadd.f32 %v372_v5, %v371_v7 }
  0x4a   : > { %v375_v29 = vadd.f32 %v374_v10, %v373_v16 }
  0x4c   : > { %v377_v37 = vadd.f32 %v376_v25, %v375_v29  ;;  %v473_v29 = vlaneseq }
  0x4e   : > { %v379_v46 = vadd.f32 %v378_v34, %v377_v37  ;;  %v2197_v34 = vshrl.u32 %v473_v29, 7 }
  0x50   : > { %v381_v53 = vadd.f32 %v380_v44, %v379_v46  ;;  %v475_v44 = vsub.s32 0, %v2197_v34 }
  0x52   : > { %v383_v58 = vadd.f32 %v382_v50, %v381_v53 }
  0x54   : > { %v385_v62 = vadd.f32 %v384_v57, %v383_v58 }
  0x56   : > { %v386_v1 = vrot.slane %v385_v62, 4 }
  0x58   : > { %v387_v5 = vadd.f32 %v386_v1, %v385_v62 }
  0x5a   : > { %v388_v7 = vrot.slane %v387_v5, 2 }
  0x5c   : > { %v389_v10 = vadd.f32 %v388_v7, %v387_v5 }
  0x5e   : > { %v390_v16 = vrot.slane %v389_v10, 1 }
  0x60   : > { %v391_v25 = vadd.f32 %v390_v16, %v389_v10 }
  0x62   : > { %1573 = vmatmul.mubr.msk.f32.vlgmr.msra.gmra.mrb[0].mxu0 %vm322_vm2, %v391_v25 }
 0x135   : > { %v469_v37 = vpop.f32.mrb[0].mxu0 }
 0x136   : > { %v1574_v32 = vpop.f32.mrb[1].mxu0  ;;  %v2202_v46 = vrot.slane %v469_v37, %v475_v44 }
 0x138   : > { %v2207_v50 = vsub.f32 %v1461_v17, %v2202_v46  ;;  %v2212_v53 = vsub.f32 %v1462_v18, %v2202_v46  ;;  %v2217_v32 = vsub.f32 %v1465_v19, %v2202_v46  ;;  %v2222_v57 = vsub.f32 %v1466_v21, %v2202_v46 }
 0x139   : > { %v2231_v14 = vsub.f32 %v1469_v22, %v2202_v46  ;;  %v2238_v15 = vsub.f32 %v1470_v28, %v2202_v46  ;;  %v2247_v22 = vsub.f32 %v1473_v31, %v2202_v46  ;;  %v2255_v7 = vsub.f32 %v1474_v35, %v2202_v46 }
 0x13a   : > { %v509_v58 = vmul.f32 %v2207_v50, %v2207_v50  ;;  %v510_v17 = vmul.f32 %v2212_v53, %v2212_v53  ;;  %v511_v18 = vmul.f32 %v2217_v32, %v2217_v32  ;;  %v512_v19 = vmul.f32 %v2222_v57, %v2222_v57 }
 0x13b   : > { %v513_v5 = vmul.f32 %v2231_v14, %v2231_v14  ;;  %v514_v10 = vmul.f32 %v2238_v15, %v2238_v15  ;;  %v2263_v31 = vsub.f32 %v1477_v38, %v2202_v46  ;;  %v515_v29 = vmul.f32 %v2247_v22, %v2247_v22 }
 0x13c   : > { %v541_v21 = vsel %vm322_vm2, %v509_v58, 0.0  ;;  %v542_v62 = vsel %vm322_vm2, %v510_v17, 0.0  ;;  %v544_v20 = vsel %vm322_vm2, %v511_v18, 0.0  ;;  %v546_v16 = vsel %vm322_vm2, %v512_v19, 0.0 }
 0x13d   : > { %v543_v1 = vadd.f32 %v542_v62, %v541_v21  ;;  %v548_v37 = vsel %vm322_vm2, %v513_v5, 0.0  ;;  %v2271_v26 = vsub.f32 %v1478_v42, %v2202_v46  ;;  %v516_v35 = vmul.f32 %v2255_v7, %v2255_v7 }
 0x13e   : > { %v550_v17 = vsel %vm322_vm2, %v514_v10, 0.0  ;;  %v2279_v38 = vsub.f32 %v1481_v45, %v2202_v46  ;;  %v517_v19 = vmul.f32 %v2263_v31, %v2263_v31  ;;  %v552_v21 = vsel %vm322_vm2, %v515_v29, 0.0 }
 0x13f   : > { %v545_v28 = vadd.f32 %v544_v20, %v543_v1  ;;  %v2287_v33 = vsub.f32 %v1482_v49, %v2202_v46  ;;  %v518_v42 = vmul.f32 %v2271_v26, %v2271_v26  ;;  %v554_v1 = vsel %vm322_vm2, %v516_v35, 0.0 }
 0x140   : > { %v2295_v45 = vsub.f32 %v1485_v52, %v2202_v46  ;;  %v519_v20 = vmul.f32 %v2279_v38, %v2279_v38  ;;  %v2303_v40 = vsub.f32 %v1486_v56, %v2202_v46  ;;  %v2311_v52 = vsub.f32 %v1489_v59, %v2202_v46 }
 0x141   : > { %v547_v25 = vadd.f32 %v546_v16, %v545_v28  ;;  %v556_v28 = vsel %vm322_vm2, %v517_v19, 0.0  ;;  %v520_v49 = vmul.f32 %v2287_v33, %v2287_v33  ;;  %v558_v16 = vsel %vm322_vm2, %v518_v42, 0.0 }
 0x142   : > { %v521_v29 = vmul.f32 %v2295_v45, %v2295_v45  ;;  %v2319_v47 = vsub.f32 %v1490_v63, %v2202_v46  ;;  %v522_v56 = vmul.f32 %v2303_v40, %v2303_v40  ;;  %v2327_v59 = vsub.f32 %v1493_v2, %v2202_v46 }
 0x143   : > { %v549_v58 = vadd.f32 %v548_v37, %v547_v25  ;;  %v560_v37 = vsel %vm322_vm2, %v519_v20, 0.0  ;;  %v562_v35 = vsel %vm322_vm2, %v520_v49, 0.0  ;;  %v2335_v54 = vsub.f32 %v1494_v6, %v2202_v46 }
 0x144   : > { %v564_v19 = vsel %vm322_vm2, %v521_v29, 0.0  ;;  %v524_v63 = vmul.f32 %v2319_v47, %v2319_v47  ;;  %v2343_v2 = vsub.f32 %v1497_v9, %v2202_v46  ;;  %v2351_v61 = vsub.f32 %v1498_v13, %v2202_v46 }
 0x145   : > { %v551_v18 = vadd.f32 %v550_v17, %v549_v58  ;;  %v526_v6 = vmul.f32 %v2335_v54, %v2335_v54  ;;  %v2359_v9 = vsub.f32 %v1501_v24, %v2202_v46  ;;  %v2367_v4 = vsub.f32 %v1502_v30, %v2202_v46 }
 0x146   : > { %v527_v49 = vmul.f32 %v2343_v2, %v2343_v2  ;;  %v528_v13 = vmul.f32 %v2351_v61, %v2351_v61  ;;  %v2375_v24 = vsub.f32 %v1505_v36, %v2202_v46  ;;  %v2383_v11 = vsub.f32 %v1506_v43, %v2202_v46 }
 0x147   : > { %v553_v62 = vadd.f32 %v552_v21, %v551_v18  ;;  %v523_v18 = vmul.f32 %v2311_v52, %v2311_v52  ;;  %v574_v29 = vsel %vm322_vm2, %v526_v6, 0.0  ;;  %v530_v30 = vmul.f32 %v2367_v4, %v2367_v4 }
 0x148   : > { %v2391_v36 = vsub.f32 %v1509_v48, %v2202_v46  ;;  %v2399_v27 = vsub.f32 %v1510_v55, %v2202_v46  ;;  %v532_v43 = vmul.f32 %v2383_v11, %v2383_v11  ;;  %v2407_v48 = vsub.f32 %v1513_v60, %v2202_v46 }
 0x149   : > { %v555_v5 = vadd.f32 %v554_v1, %v553_v62  ;;  %v566_v62 = vsel %vm322_vm2, %v522_v56, 0.0  ;;  %v525_v1 = vmul.f32 %v2327_v59, %v2327_v59  ;;  %v576_v56 = vsel %vm322_vm2, %v527_v49, 0.0 }
 0x14a   : > { %v2415_v39 = vsub.f32 %v1514_v3, %v2202_v46  ;;  %v534_v55 = vmul.f32 %v2399_v27, %v2399_v27  ;;  %v586_v6 = vsel %vm322_vm2, %v532_v43, 0.0  ;;  %v2423_v60 = vsub.f32 %v1517_v8, %v2202_v46 }
 0x14b   : > { %v557_v10 = vadd.f32 %v556_v28, %v555_v5  ;;  %v568_v5 = vsel %vm322_vm2, %v523_v18, 0.0  ;;  %v570_v28 = vsel %vm322_vm2, %v524_v63, 0.0  ;;  %v2431_v51 = vsub.f32 %v1518_v23, %v2202_v46 }
 0x14c   : > { %v536_v3 = vmul.f32 %v2415_v39, %v2415_v39  ;;  %v2839_v8 = vunpack.c.l.bf16 %v2176_v12  ;;  %v2447_v0 = vsub.f32 %v1522_v41, %v2202_v46 }
 0x14d   : > { %v559_v25 = vadd.f32 %v558_v16, %v557_v10  ;;  %v572_v16 = vsel %vm322_vm2, %v525_v1, 0.0  ;;  %v533_v1 = vmul.f32 %v2391_v36, %v2391_v36  ;;  %v538_v23 = vmul.f32 %v2431_v51, %v2431_v51 }
 0x14f   : > { %v561_v58 = vadd.f32 %v560_v37, %v559_v25  ;;  %v588_v49 = vsel %vm322_vm2, %v533_v1, 0.0 }
 0x151   : > { %v563_v17 = vadd.f32 %v562_v35, %v561_v58  ;;  %v529_v58 = vmul.f32 %v2359_v9, %v2359_v9 }
 0x153   : > { %v565_v21 = vadd.f32 %v564_v19, %v563_v17  ;;  %v578_v17 = vsel %vm322_vm2, %v528_v13, 0.0  ;;  %v531_v19 = vmul.f32 %v2375_v24, %v2375_v24 }
 0x155   : > { %v567_v42 = vadd.f32 %v566_v62, %v565_v21  ;;  %v580_v21 = vsel %vm322_vm2, %v529_v58, 0.0  ;;  %v582_v62 = vsel %vm322_vm2, %v530_v30, 0.0 }
 0x157   : > { %v569_v20 = vadd.f32 %v568_v5, %v567_v42  ;;  %v584_v5 = vsel %vm322_vm2, %v531_v19, 0.0 }
 0x159   : > { %v571_v10 = vadd.f32 %v570_v28, %v569_v20 }
 0x15b   : > { %v573_v25 = vadd.f32 %v572_v16, %v571_v10  ;;  %v535_v10 = vmul.f32 %v2407_v48, %v2407_v48 }
 0x15d   : > { %v575_v37 = vadd.f32 %v574_v29, %v573_v25  ;;  %v590_v25 = vsel %vm322_vm2, %v534_v55, 0.0  ;;  %v2439_v29 = vsub.f32 %v2839_v8, %v2202_v46  ;;  %v592_v58 = vsel %vm322_vm2, %v535_v10, 0.0 }
 0x15f   : > { %v577_v35 = vadd.f32 %v576_v56, %v575_v37  ;;  %v537_v37 = vmul.f32 %v2423_v60, %v2423_v60 }
 0x161   : > { %v579_v18 = vadd.f32 %v578_v17, %v577_v35  ;;  %v594_v35 = vsel %vm322_vm2, %v536_v3, 0.0  ;;  %v539_v17 = vmul.f32 %v2439_v29, %v2439_v29  ;;  %v684_v3 = vld [vmem:[%s2832_s2] sm:$0x1] }
 0x163   : > { %v581_v63 = vadd.f32 %v580_v21, %v579_v18  ;;  %v596_v18 = vsel %vm322_vm2, %v537_v37, 0.0  ;;  %v540_v21 = vmul.f32 %v2447_v0, %v2447_v0  ;;  %v600_v41 = vsel %vm322_vm2, %v539_v17, 0.0 }
 0x165   : > { %v583_v42 = vadd.f32 %v582_v62, %v581_v63  ;;  %v598_v63 = vsel %vm322_vm2, %v538_v23, 0.0  ;;  %v602_v43 = vsel %vm322_vm2, %v540_v21, 0.0  ;;  %v2479_v23 = vld [vmem:[%s2833_s3] ss:$0 sm:$0xff] }
 0x167   : > { %v585_v20 = vadd.f32 %v584_v5, %v583_v42 }
 0x169   : > { %v587_v28 = vadd.f32 %v586_v6, %v585_v20 }
 0x16b   : > { %v589_v16 = vadd.f32 %v588_v49, %v587_v28 }
 0x16d   : > { %v591_v13 = vadd.f32 %v590_v25, %v589_v16 }
 0x16f   : > { %v593_v56 = vadd.f32 %v592_v58, %v591_v13 }
 0x171   : > { %v595_v30 = vadd.f32 %v594_v35, %v593_v56 }
 0x173   : > { %v597_v19 = vadd.f32 %v596_v18, %v595_v30 }
 0x175   : > { %v599_v12 = vadd.f32 %v598_v63, %v597_v19 }
 0x177   : > { %v601_v46 = vadd.f32 %v600_v41, %v599_v12 }
 0x179   : > { %v603_v62 = vadd.f32 %v602_v43, %v601_v46 }
 0x17b   : > { %v604_v42 = vrot.slane %v603_v62, 4 }
 0x17d   : > { %v605_v1 = vadd.f32 %v604_v42, %v603_v62 }
 0x17f   : > { %v606_v5 = vrot.slane %v605_v1, 2 }
 0x181   : > { %v607_v20 = vadd.f32 %v606_v5, %v605_v1 }
 0x183   : > { %v608_v55 = vrot.slane %v607_v20, 1 }
 0x185   : > { %v609_v6 = vadd.f32 %v608_v55, %v607_v20 }
 0x187   : > { %1592 = vmatmul.mubr.msk.f32.vlgmr.msra.gmra.mrb[0].mxu1 %vm322_vm2, %v609_v6 }
 0x25a   : > { %v679_v28 = vpop.f32.mrb[0].mxu1 }
 0x25b   : > { %v680_v10 = vadd.f32 1e-05, %v679_v28  ;;  %v1593_v49 = vpop.f32.mrb[1].mxu1 }
 0x25d   : > { %1647 = vrsqrt.f32 %v680_v10 }
 0x267   : > { %v1648_v16 = vpop.eup %1647 }
 0x268   : > { %v685_v25 = vmul.f32 %v1648_v16, %v684_v3 }
 0x26a   : > { %v2466_v13 = vrot.slane %v685_v25, %v475_v44 }
 0x26c   : > { %v690_v8 = vmul.f32 %v2466_v13, %v2207_v50  ;;  %v691_v37 = vmul.f32 %v2466_v13, %v2212_v53  ;;  %v692_v58 = vmul.f32 %v2466_v13, %v2217_v32  ;;  %v693_v56 = vmul.f32 %v2466_v13, %v2222_v57 }
 0x26d   : > { %v694_v34 = vmul.f32 %v2466_v13, %v2231_v14  ;;  %v695_v44 = vmul.f32 %v2466_v13, %v2238_v15  ;;  %v696_v50 = vmul.f32 %v2466_v13, %v2247_v22  ;;  %v697_v35 = vmul.f32 %v2466_v13, %v2255_v7 }
 0x26e   : > { %v2488_v53 = vadd.f32 %v2479_v23, %v690_v8  ;;  %v2491_v32 = vadd.f32 %v2479_v23, %v691_v37  ;;  %v2494_v57 = vadd.f32 %v2479_v23, %v692_v58  ;;  %v2499_v14 = vadd.f32 %v2479_v23, %v693_v56 }
 0x26f   : > { %v698_v15 = vmul.f32 %v2466_v13, %v2263_v31  ;;  %v2504_v22 = vadd.f32 %v2479_v23, %v694_v34  ;;  %v699_v30 = vmul.f32 %v2466_v13, %v2271_v26  ;;  %v700_v17 = vmul.f32 %v2466_v13, %v2279_v38 }
 0x270   : > { %v2511_v18 = vadd.f32 %v2479_v23, %v695_v44  ;;  %v2514_v7 = vadd.f32 %v2479_v23, %v696_v50  ;;  %v1328_v19 = vmul.f32 -1.442695, %v2488_v53  ;;  %v1329_v21 = vmul.f32 -1.442695, %v2491_v32 }
 0x271   : > { %v1330_v31 = vmul.f32 -1.442695, %v2494_v57  ;;  %v701_v63 = vmul.f32 %v2466_v13, %v2287_v33  ;;  %v2522_v26 = vadd.f32 %v2479_v23, %v697_v35  ;;  %v1331_v38 = vmul.f32 -1.442695, %v2499_v14 }
 0x272   : > { %v702_v12 = vmul.f32 %v2466_v13, %v2295_v45  ;;  %v2528_v41 = vadd.f32 %v2479_v23, %v698_v15  ;;  %1649 = vpow2.f32 %v1328_v19  ;;  %v1332_v46 = vmul.f32 -1.442695, %v2504_v22 }
 0x273   : > { %v703_v43 = vmul.f32 %v2466_v13, %v2303_v40  ;;  %v2534_v62 = vadd.f32 %v2479_v23, %v699_v30  ;;  %1651 = vpow2.f32 %v1329_v21  ;;  %v1333_v33 = vmul.f32 -1.442695, %v2511_v18 }
 0x274   : > { %v704_v42 = vmul.f32 %v2466_v13, %v2311_v52  ;;  %v2540_v45 = vadd.f32 %v2479_v23, %v700_v17  ;;  %1653 = vpow2.f32 %v1330_v31  ;;  %v1334_v1 = vmul.f32 -1.442695, %v2514_v7 }
 0x275   : > { %v705_v5 = vmul.f32 %v2466_v13, %v2319_v47  ;;  %v2546_v40 = vadd.f32 %v2479_v23, %v701_v63  ;;  %1655 = vpow2.f32 %v1331_v38  ;;  %v1335_v20 = vmul.f32 -1.442695, %v2522_v26 }
 0x276   : > { %v706_v55 = vmul.f32 %v2466_v13, %v2327_v59  ;;  %v2552_v52 = vadd.f32 %v2479_v23, %v702_v12  ;;  %1657 = vpow2.f32 %v1332_v46  ;;  %v1336_v6 = vmul.f32 -1.442695, %v2528_v41 }
 0x277   : > { %v707_v28 = vmul.f32 %v2466_v13, %v2335_v54  ;;  %v2558_v47 = vadd.f32 %v2479_v23, %v703_v43  ;;  %1659 = vpow2.f32 %v1333_v33  ;;  %v1337_v10 = vmul.f32 -1.442695, %v2534_v62 }
 0x278   : > { %v708_v49 = vmul.f32 %v2466_v13, %v2343_v2  ;;  %v2564_v59 = vadd.f32 %v2479_v23, %v704_v42  ;;  %1661 = vpow2.f32 %v1334_v1  ;;  %v1338_v16 = vmul.f32 -1.442695, %v2540_v45 }
 0x279   : > { %v709_v3 = vmul.f32 %v2466_v13, %v2351_v61  ;;  %v2570_v54 = vadd.f32 %v2479_v23, %v705_v5  ;;  %1663 = vpow2.f32 %v1335_v20  ;;  %v1339_v25 = vmul.f32 -1.442695, %v2546_v40 }
 0x27a   : > { %v710_v8 = vmul.f32 %v2466_v13, %v2359_v9  ;;  %v2576_v2 = vadd.f32 %v2479_v23, %v706_v55  ;;  %1665 = vpow2.f32 %v1336_v6  ;;  %v1340_v37 = vmul.f32 -1.442695, %v2552_v52 }
 0x27b   : > { %v711_v58 = vmul.f32 %v2466_v13, %v2367_v4  ;;  %v2582_v61 = vadd.f32 %v2479_v23, %v707_v28  ;;  %1667 = vpow2.f32 %v1337_v10  ;;  %v1341_v56 = vmul.f32 -1.442695, %v2558_v47 }
 0x27c   : > { %v2585_v34 = vpop.eup %1649  ;;  %v712_v9 = vmul.f32 %v2466_v13, %v2375_v24  ;;  %v2590_v44 = vadd.f32 %v2479_v23, %v708_v49  ;;  %1669 = vpow2.f32 %v1338_v16  ;;  %v1342_v50 = vmul.f32 -1.442695, %v2564_v59 }
 0x27d   : > { %v2593_v35 = vpop.eup %1651  ;;  %v713_v4 = vmul.f32 %v2466_v13, %v2383_v11  ;;  %v2598_v15 = vadd.f32 %v2479_v23, %v709_v3  ;;  %1671 = vpow2.f32 %v1339_v25  ;;  %v1343_v30 = vmul.f32 -1.442695, %v2570_v54 }
 0x27e   : > { %v2601_v17 = vpop.eup %1653  ;;  %v714_v24 = vmul.f32 %v2466_v13, %v2391_v36  ;;  %v2606_v19 = vadd.f32 %v2479_v23, %v710_v8  ;;  %1673 = vpow2.f32 %v1340_v37  ;;  %v1344_v21 = vmul.f32 -1.442695, %v2576_v2 }
 0x27f   : > { %v2609_v31 = vpop.eup %1655  ;;  %v715_v11 = vmul.f32 %v2466_v13, %v2399_v27  ;;  %v2614_v63 = vadd.f32 %v2479_v23, %v711_v58  ;;  %1675 = vpow2.f32 %v1341_v56  ;;  %v1345_v38 = vmul.f32 -1.442695, %v2582_v61 }
 0x280   : > { %v2617_v12 = vpop.eup %1657  ;;  %v716_v36 = vmul.f32 %v2466_v13, %v2407_v48  ;;  %v2622_v46 = vadd.f32 %v2479_v23, %v712_v9  ;;  %1677 = vpow2.f32 %v1342_v50  ;;  %v1346_v43 = vmul.f32 -1.442695, %v2590_v44 }
 0x281   : > { %v2625_v33 = vpop.eup %1659  ;;  %v717_v27 = vmul.f32 %v2466_v13, %v2415_v39  ;;  %v2630_v42 = vadd.f32 %v2479_v23, %v713_v4  ;;  %1679 = vpow2.f32 %v1343_v30  ;;  %v1347_v1 = vmul.f32 -1.442695, %v2598_v15 }
 0x282   : > { %v2633_v5 = vpop.eup %1661  ;;  %v718_v48 = vmul.f32 %v2466_v13, %v2423_v60  ;;  %v2638_v20 = vadd.f32 %v2479_v23, %v714_v24  ;;  %1681 = vpow2.f32 %v1344_v21  ;;  %v1348_v55 = vmul.f32 -1.442695, %v2606_v19 }
 0x283   : > { %v2641_v6 = vpop.eup %1663  ;;  %v719_v39 = vmul.f32 %v2466_v13, %v2431_v51  ;;  %v2646_v28 = vadd.f32 %v2479_v23, %v715_v11  ;;  %1683 = vpow2.f32 %v1345_v38  ;;  %v1349_v10 = vmul.f32 -1.442695, %v2614_v63 }
 0x284   : > { %v1666_v49 = vpop.eup %1665  ;;  %v720_v60 = vmul.f32 %v2466_v13, %v2439_v29  ;;  %v2652_v16 = vadd.f32 %v2479_v23, %v716_v36  ;;  %1685 = vpow2.f32 %v1346_v43  ;;  %v1350_v3 = vmul.f32 -1.442695, %v2622_v46 }
 0x285   : > { %v1668_v25 = vpop.eup %1667  ;;  %v721_v51 = vmul.f32 %v2466_v13, %v2447_v0  ;;  %v2658_v8 = vadd.f32 %v2479_v23, %v717_v27  ;;  %1687 = vpow2.f32 %v1347_v1  ;;  %v1351_v37 = vmul.f32 -1.442695, %v2630_v42 }
 0x286   : > { %v1670_v58 = vpop.eup %1669  ;;  %v2662_v56 = vadd.f32 %v2479_v23, %v718_v48  ;;  %1689 = vpow2.f32 %v1348_v55  ;;  %v1352_v29 = vmul.f32 -1.442695, %v2638_v20  ;;  %v2666_v50 = vadd.f32 %v2479_v23, %v719_v39 }
 0x287   : > { %v1672_v9 = vpop.eup %1671  ;;  %1691 = vpow2.f32 %v1349_v10  ;;  %v1353_v0 = vmul.f32 -1.442695, %v2646_v28  ;;  %v2670_v4 = vadd.f32 %v2479_v23, %v720_v60  ;;  %v1354_v30 = vmul.f32 -1.442695, %v2652_v16 }
 0x288   : > { %2840 = vst [vmem:[#allocation2_spill] sm:$0xff] %v2666_v50  ;;  %v1674_v13 = vpop.eup %1673  ;;  %1693 = vpow2.f32 %v1350_v3  ;;  %v2674_v21 = vadd.f32 %v2479_v23, %v721_v51  ;;  %v1355_v11 = vmul.f32 -1.442695, %v2658_v8  ;;  %v1356_v36 = vmul.f32 -1.442695, %v2662_v56 }
 0x289   : > { %2841 = vst [vmem:[#allocation3_spill] sm:$0xff] %v2670_v4  ;;  %v1676_v24 = vpop.eup %1675  ;;  %1695 = vpow2.f32 %v1351_v37  ;;  %v1357_v27 = vmul.f32 -1.442695, %v2666_v50  ;;  %v1358_v48 = vmul.f32 -1.442695, %v2670_v4  ;;  %v857_v10 = vadd.f32 1.0, %v2585_v34 }
 0x28a   : > { %2842 = vst [vmem:[#allocation4_spill] sm:$0xff] %v2674_v21  ;;  %v1678_v38 = vpop.eup %1677  ;;  %1697 = vpow2.f32 %v1352_v29  ;;  %v1359_v23 = vmul.f32 -1.442695, %v2674_v21  ;;  %v858_v3 = vadd.f32 1.0, %v2593_v35  ;;  %v859_v37 = vadd.f32 1.0, %v2601_v17 }
 0x28b   : > { %v1680_v43 = vpop.eup %1679  ;;  %1699 = vpow2.f32 %v1353_v0  ;;  %v860_v0 = vadd.f32 1.0, %v2609_v31  ;;  %v871_v4 = vadd.f32 1.0, %v1678_v38 }
 0x28c   : > { %v1682_v1 = vpop.eup %1681  ;;  %1701 = vpow2.f32 %v1354_v30 }
 0x28d   : > { %v1684_v55 = vpop.eup %1683  ;;  %1703 = vpow2.f32 %v1355_v11  ;;  %v861_v11 = vadd.f32 1.0, %v2617_v12  ;;  %v873_v50 = vadd.f32 1.0, %v1682_v1 }
 0x28e   : > { %v1686_v39 = vpop.eup %1685  ;;  %1705 = vpow2.f32 %v1356_v36  ;;  %v862_v36 = vadd.f32 1.0, %v2625_v33 }
 0x28f   : > { %v1688_v60 = vpop.eup %1687  ;;  %1707 = vpow2.f32 %v1357_v27  ;;  %v863_v27 = vadd.f32 1.0, %v2633_v5  ;;  %v868_v5 = vadd.f32 1.0, %v1672_v9  ;;  %v875_v38 = vadd.f32 1.0, %v1686_v39 }
 0x290   : > { %v2683_v51 = vpop.eup %1689  ;;  %1709 = vpow2.f32 %v1358_v48  ;;  %v864_v48 = vadd.f32 1.0, %v2641_v6  ;;  %v869_v6 = vadd.f32 1.0, %v1674_v13 }
 0x291   : > { %v2686_v29 = vpop.eup %1691  ;;  %1711 = vpow2.f32 %v1359_v23  ;;  %v865_v23 = vadd.f32 1.0, %v1666_v49  ;;  %v870_v49 = vadd.f32 1.0, %v1676_v24 }
 0x292   : > { %v2689_v30 = vpop.eup %1693  ;;  %1713 = vrcp.f32 %v857_v10  ;;  %v866_v10 = vadd.f32 1.0, %v1668_v25 }
 0x293   : > { %v2692_v34 = vpop.eup %1695  ;;  %1715 = vrcp.f32 %v858_v3  ;;  %v867_v3 = vadd.f32 1.0, %v1670_v58 }
 0x294   : > { %v2695_v35 = vpop.eup %1697  ;;  %1717 = vrcp.f32 %v859_v37 }
 0x295   : > { %v2698_v17 = vpop.eup %1699  ;;  %1719 = vrcp.f32 %v860_v0 }
 0x296   : > { %v2701_v31 = vpop.eup %1701  ;;  %1721 = vrcp.f32 %v861_v11 }
 0x297   : > { %v2703_v12 = vpop.eup %1703  ;;  %1723 = vrcp.f32 %v862_v36  ;;  %v872_v36 = vadd.f32 1.0, %v1680_v43 }
 0x298   : > { %v2705_v33 = vpop.eup %1705  ;;  %1725 = vrcp.f32 %v863_v27 }
 0x299   : > { %v2707_v21 = vpop.eup %1707  ;;  %1727 = vrcp.f32 %v864_v48  ;;  %v874_v48 = vadd.f32 1.0, %v1684_v55 }
 0x29a   : > { %v2709_v37 = vpop.eup %1709  ;;  %1729 = vrcp.f32 %v865_v23 }
 0x29b   : > { %v2711_v0 = vpop.eup %1711  ;;  %1731 = vrcp.f32 %v866_v10 }
 0x29c   : > { %v1714_v11 = vpop.eup %1713  ;;  %1733 = vrcp.f32 %v867_v3 }
 0x29d   : > { %v1716_v25 = vpop.eup %1715  ;;  %1735 = vrcp.f32 %v868_v5  ;;  %v953_v58 = vmul.f32 %v1714_v11, %v2488_v53  ;;  %v876_v5 = vadd.f32 1.0, %v1688_v60  ;;  %v878_v60 = vadd.f32 1.0, %v2686_v29 }
 0x29e   : > { %v1718_v27 = vpop.eup %1717  ;;  %1737 = vrcp.f32 %v869_v6  ;;  %v954_v9 = vmul.f32 %v1716_v25, %v2491_v32  ;;  %v880_v29 = vadd.f32 1.0, %v2692_v34  ;;  %v882_v34 = vadd.f32 1.0, %v2698_v17 }
 0x29f   : > { %v1720_v13 = vpop.eup %1719  ;;  %1739 = vrcp.f32 %v870_v49  ;;  %v955_v24 = vmul.f32 %v1718_v27, %v2494_v57  ;;  %v1427_v23 = vpack.c.bf16 %v953_v58, %v953_v58  ;;  %v877_v57 = vadd.f32 1.0, %v2683_v51 }
 0x2a0   : > { %v1722_v10 = vpop.eup %1721  ;;  %1741 = vrcp.f32 %v871_v4  ;;  %v956_v43 = vmul.f32 %v1720_v13, %v2499_v14  ;;  %v1428_v3 = vpack.c.bf16 %v954_v9, %v954_v9  ;;  %v879_v51 = vadd.f32 1.0, %v2689_v30 }
 0x2a1   : > { %v1724_v53 = vpop.eup %1723  ;;  %1743 = vrcp.f32 %v872_v36  ;;  %v957_v32 = vmul.f32 %v1722_v10, %v2504_v22  ;;  %v1429_v1 = vpack.c.bf16 %v955_v24, %v955_v24  ;;  %1392 = vst.msk [vmem:[%s1880_s12 + $0x18] sm:$0xf] %vm985_vm1, %v1427_v23  ;;  %v881_v30 = vadd.f32 1.0, %v2695_v35 }
 0x2a2   : > { %v1726_v55 = vpop.eup %1725  ;;  %1745 = vrcp.f32 %v873_v50  ;;  %v958_v39 = vmul.f32 %v1724_v53, %v2511_v18  ;;  %v1430_v4 = vpack.c.bf16 %v956_v43, %v956_v43  ;;  %1393 = vst.msk [vmem:[%s1880_s12 + $0x1c] sm:$0xf] %vm985_vm1, %v1428_v3  ;;  %v883_v35 = vadd.f32 1.0, %v2701_v31 }
 0x2a3   : > { %v1728_v14 = vpop.eup %1727  ;;  %1747 = vrcp.f32 %v874_v48  ;;  %v959_v22 = vmul.f32 %v1726_v55, %v2514_v7  ;;  %v1431_v6 = vpack.c.bf16 %v957_v32, %v957_v32  ;;  %1394 = vst.msk [vmem:[%s1880_s12 + $0x24] sm:$0xf] %vm985_vm1, %v1429_v1  ;;  %v884_v17 = vadd.f32 1.0, %v2703_v12 }
 0x2a4   : > { %v1730_v49 = vpop.eup %1729  ;;  %1749 = vrcp.f32 %v875_v38  ;;  %v960_v18 = vmul.f32 %v1728_v14, %v2522_v26  ;;  %v1432_v50 = vpack.c.bf16 %v958_v39, %v958_v39  ;;  %1395 = vst.msk [vmem:[%s1880_s12 + $0x28] sm:$0xf] %vm985_vm1, %v1430_v4  ;;  %v885_v31 = vadd.f32 1.0, %v2705_v33 }
 0x2a5   : > { %v1732_v11 = vpop.eup %1731  ;;  %1751 = vrcp.f32 %v876_v5  ;;  %v961_v7 = vmul.f32 %v1730_v49, %v2528_v41  ;;  %v1433_v25 = vpack.c.bf16 %v959_v22, %v959_v22  ;;  %1396 = vst.msk [vmem:[%s1880_s12 + $0x30] sm:$0xf] %vm985_vm1, %v1431_v6  ;;  %v886_v12 = vadd.f32 1.0, %v2707_v21 }
 0x2a6   : > { %v1734_v36 = vpop.eup %1733  ;;  %1753 = vrcp.f32 %v877_v57  ;;  %v962_v26 = vmul.f32 %v1732_v11, %v2534_v62  ;;  %v1434_v58 = vpack.c.bf16 %v960_v18, %v960_v18  ;;  %1397 = vst.msk [vmem:[%s1880_s12 + $0x34] sm:$0xf] %vm985_vm1, %v1432_v50  ;;  %v887_v33 = vadd.f32 1.0, %v2709_v37 }
 0x2a7   : > { %v1736_v27 = vpop.eup %1735  ;;  %1755 = vrcp.f32 %v878_v60  ;;  %v963_v41 = vmul.f32 %v1734_v36, %v2540_v45  ;;  %v1435_v9 = vpack.c.bf16 %v961_v7, %v961_v7  ;;  %1398 = vst.msk [vmem:[%s1880_s12 + $0x3c] sm:$0xf] %vm985_vm1, %v1433_v25  ;;  %v888_v21 = vadd.f32 1.0, %v2711_v0 }
 0x2a8   : > { %v1738_v13 = vpop.eup %1737  ;;  %1757 = vrcp.f32 %v879_v51  ;;  %v964_v62 = vmul.f32 %v1736_v27, %v2546_v40  ;;  %v1436_v48 = vpack.c.bf16 %v962_v26, %v962_v26  ;;  %1399 = vst.msk [vmem:[%s1880_s12 + $0x40] sm:$0xf] %vm985_vm1, %v1434_v58 }
 0x2a9   : > { %v1740_v24 = vpop.eup %1739  ;;  %1759 = vrcp.f32 %v880_v29  ;;  %v965_v45 = vmul.f32 %v1738_v13, %v2552_v52  ;;  %v1437_v23 = vpack.c.bf16 %v963_v41, %v963_v41  ;;  %1400 = vst.msk [vmem:[%s1880_s12 + $0x48] sm:$0xf] %vm985_vm1, %v1435_v9  ;;  %v2843_v9 = vld [vmem:[#allocation2_spill] sm:$0xff] }
 0x2aa   : > { %v1742_v10 = vpop.eup %1741  ;;  %1761 = vrcp.f32 %v881_v30  ;;  %v966_v40 = vmul.f32 %v1740_v24, %v2558_v47  ;;  %v1438_v38 = vpack.c.bf16 %v964_v62, %v964_v62  ;;  %1401 = vst.msk [vmem:[%s1880_s12 + $0x4c] sm:$0xf] %vm985_vm1, %v1436_v48  ;;  %v2844_v62 = vld [vmem:[#allocation3_spill] sm:$0xff] }
 0x2ab   : > { %v1744_v43 = vpop.eup %1743  ;;  %1763 = vrcp.f32 %v882_v34  ;;  %v967_v52 = vmul.f32 %v1742_v10, %v2564_v59  ;;  %v1439_v3 = vpack.c.bf16 %v965_v45, %v965_v45  ;;  %1402 = vst.msk [vmem:[%s1880_s12 + $0x54] sm:$0xf] %vm985_vm1, %v1437_v23 }
 0x2ac   : > { %v1746_v53 = vpop.eup %1745  ;;  %1765 = vrcp.f32 %v883_v35  ;;  %v968_v47 = vmul.f32 %v1744_v43, %v2570_v54  ;;  %v1440_v5 = vpack.c.bf16 %v966_v40, %v966_v40  ;;  %1403 = vst.msk [vmem:[%s1880_s12 + $0x58] sm:$0xf] %vm985_vm1, %v1438_v38 }
 0x2ad   : > { %v1748_v32 = vpop.eup %1747  ;;  %1767 = vrcp.f32 %v884_v17  ;;  %v969_v59 = vmul.f32 %v1746_v53, %v2576_v2  ;;  %v1441_v1 = vpack.c.bf16 %v967_v52, %v967_v52  ;;  %1404 = vst.msk [vmem:[%s1880_s12 + $0x60] sm:$0xf] %vm985_vm1, %v1439_v3  ;;  %v2845_v17 = vld [vmem:[#allocation4_spill] sm:$0xff] }
 0x2ae   : > { %v1750_v55 = vpop.eup %1749  ;;  %1769 = vrcp.f32 %v885_v31  ;;  %v970_v37 = vmul.f32 %v1748_v32, %v2582_v61  ;;  %v1442_v57 = vpack.c.bf16 %v968_v47, %v968_v47  ;;  %1405 = vst.msk [vmem:[%s1880_s12 + $0x64] sm:$0xf] %vm985_vm1, %v1440_v5 }
 0x2af   : > { %v1752_v54 = vpop.eup %1751  ;;  %1771 = vrcp.f32 %v886_v12  ;;  %v971_v39 = vmul.f32 %v1750_v55, %v2590_v44  ;;  %v1443_v0 = vpack.c.bf16 %v969_v59, %v969_v59  ;;  %1406 = vst.msk [vmem:[%s1880_s12 + $0x6c] sm:$0xf] %vm985_vm1, %v1441_v1 }
 0x2b0   : > { %v1754_v2 = vpop.eup %1753  ;;  %1773 = vrcp.f32 %v887_v33  ;;  %v972_v4 = vmul.f32 %v1752_v54, %v2598_v15  ;;  %v1444_v14 = vpack.c.bf16 %v970_v37, %v970_v37  ;;  %1407 = vst.msk [vmem:[%s1880_s12 + $0x70] sm:$0xf] %vm985_vm1, %v1442_v57 }
 0x2b1   : > { %v1756_v61 = vpop.eup %1755  ;;  %1775 = vrcp.f32 %v888_v21  ;;  %v973_v60 = vmul.f32 %v1754_v2, %v2606_v19  ;;  %v1445_v22 = vpack.c.bf16 %v971_v39, %v971_v39  ;;  %1408 = vst.msk [vmem:[%s1880_s12 + $0x78] sm:$0xf] %vm985_vm1, %v1443_v0 }
 0x2b2   : > { %v1758_v44 = vpop.eup %1757  ;;  %v974_v6 = vmul.f32 %v1756_v61, %v2614_v63  ;;  %v1446_v49 = vpack.c.bf16 %v972_v4, %v972_v4  ;;  %1409 = vst.msk [vmem:[%s1880_s12 + $0x7c] sm:$0xf] %vm985_vm1, %v1444_v14 }
 0x2b3   : > { %v1760_v15 = vpop.eup %1759  ;;  %v975_v51 = vmul.f32 %v1758_v44, %v2622_v46  ;;  %v1447_v18 = vpack.c.bf16 %v973_v60, %v973_v60  ;;  %1410 = vst.msk [vmem:[%s1880_s12 + $0x84] sm:$0xf] %vm985_vm1, %v1445_v22 }
 0x2b4   : > { %v1762_v50 = vpop.eup %1761  ;;  %v976_v19 = vmul.f32 %v1760_v15, %v2630_v42  ;;  %v1448_v11 = vpack.c.bf16 %v974_v6, %v974_v6  ;;  %1411 = vst.msk [vmem:[%s1880_s12 + $0x88] sm:$0xf] %vm985_vm1, %v1446_v49 }
 0x2b5   : > { %v1764_v29 = vpop.eup %1763  ;;  %v977_v63 = vmul.f32 %v1762_v50, %v2638_v20  ;;  %v1449_v7 = vpack.c.bf16 %v975_v51, %v975_v51  ;;  %1412 = vst.msk [vmem:[%s1880_s12 + $0x90] sm:$0xf] %vm985_vm1, %v1447_v18 }
 0x2b6   : > { %v1766_v25 = vpop.eup %1765  ;;  %v978_v46 = vmul.f32 %v1764_v29, %v2646_v28  ;;  %v1450_v36 = vpack.c.bf16 %v976_v19, %v976_v19  ;;  %1413 = vst.msk [vmem:[%s1880_s12 + $0x94] sm:$0xf] %vm985_vm1, %v1448_v11 }
 0x2b7   : > { %v1768_v30 = vpop.eup %1767  ;;  %v979_v42 = vmul.f32 %v1766_v25, %v2652_v16  ;;  %v1451_v26 = vpack.c.bf16 %v977_v63, %v977_v63  ;;  %1414 = vst.msk [vmem:[%s1880_s12 + $0x9c] sm:$0xf] %vm985_vm1, %v1449_v7 }
 0x2b8   : > { %v1770_v58 = vpop.eup %1769  ;;  %v980_v20 = vmul.f32 %v1768_v30, %v2658_v8  ;;  %v1452_v27 = vpack.c.bf16 %v978_v46, %v978_v46  ;;  %1415 = vst.msk [vmem:[%s1880_s12 + $0xa0] sm:$0xf] %vm985_vm1, %v1450_v36 }
 0x2b9   : > { %v1772_v34 = vpop.eup %1771  ;;  %v981_v28 = vmul.f32 %v1770_v58, %v2662_v56  ;;  %v1453_v41 = vpack.c.bf16 %v979_v42, %v979_v42  ;;  %1416 = vst.msk [vmem:[%s1880_s12 + $0xa8] sm:$0xf] %vm985_vm1, %v1451_v26 }
 0x2ba   : > { %v1774_v16 = vpop.eup %1773  ;;  %v982_v13 = vmul.f32 %v1772_v34, %v2843_v9  ;;  %v1454_v35 = vpack.c.bf16 %v980_v20, %v980_v20  ;;  %1417 = vst.msk [vmem:[%s1880_s12 + $0xac] sm:$0xf] %vm985_vm1, %v1452_v27 }
 0x2bb   : > { %v1776_v8 = vpop.eup %1775  ;;  %v983_v48 = vmul.f32 %v1774_v16, %v2844_v62  ;;  %v1455_v24 = vpack.c.bf16 %v981_v28, %v981_v28  ;;  %1418 = vst.msk [vmem:[%s1880_s12 + $0xb4] sm:$0xf] %vm985_vm1, %v1453_v41 }
 0x2bc   : > { %v984_v56 = vmul.f32 %v1776_v8, %v2845_v17  ;;  %v1456_v45 = vpack.c.bf16 %v982_v13, %v982_v13  ;;  %1419 = vst.msk [vmem:[%s1880_s12 + $0xb8] sm:$0xf] %vm985_vm1, %v1454_v35 }
 0x2bd   : > { %v1457_v23 = vpack.c.bf16 %v983_v48, %v983_v48  ;;  %1420 = vst.msk [vmem:[%s1880_s12 + $0xc0] sm:$0xf] %vm985_vm1, %v1455_v24 }
 0x2be   : > { %v1458_v10 = vpack.c.bf16 %v984_v56, %v984_v56  ;;  %1421 = vst.msk [vmem:[%s1880_s12 + $0xc4] sm:$0xf] %vm985_vm1, %v1456_v45 }
 0x2bf   : > { %1422 = vst.msk [vmem:[%s1880_s12 + $0xcc] sm:$0xf] %vm985_vm1, %v1457_v23 }
 0x2c0   : > { %1423 = vst.msk [vmem:[%s1880_s12 + $0xd0] sm:$0xf] %vm985_vm1, %v1458_v10 }
 0x2c1 PF: > { %s14_s17 = sadd.s32 1, %s1799_s17   ;;  %s2846_s15 = smov %s1795_s16 }
 0x2c2   : > { %p11_p5 = scmp.ge.s32.totalorder %s14_s17, 4   ;;  %s2847_s16 = smov %s2849_s18 }
 0x2c4   :  { %13 = sbr.rel (!%p11_p5) target bundleno = 2 (0x2), region = 73 }

// kernel: residual_block_forward.5
= control target key start
LH: loop header
LB: loop body
LE: loop exit
PB: predicated region body
PF: predicated region fallthrough
CT: control target
= control target key end

     0   :  { %s5353_s12 = smov 0   ;;  %s5355_s13 = smov 0   ;;  %s7349_s0 = inlined_call_operand.vmem [shape: bf16[2,20,24,32], index: 0, kind: input, shape index: {}]   ;;  %s7350_s1 = inlined_call_operand.vmem [shape: bf16[9,32,64], index: 1, kind: input, shape index: {}]   ;;  %s7351_s2 = inlined_call_operand.vmem [shape: f32[1,64], index: 2, kind: input, shape index: {}]   ;;  %s7352_s3 = inlined_call_operand.vmem [shape: bf16[2,16,16,64], index: 3, kind: output, shape index: {}]  }
   0x1   :  { %s5357_s14 = smov 0  }
   0x2 LB: > { %s25_s15 = sadd.s32 1, %s5327_s13  ;;  %p4101_p0 = scmp.ge.s32.totalorder %s5331_s14, 1  ;;  %s5331_s14 = sphi %s5357_s14, %s13_s14   ;;  %s5327_s13 = sphi %s5355_s13, %s7816_s13   ;;  %s5323_s12 = sphi %s5353_s12, %s7815_s12  }
   0x3   : > { %p27_p1 = scmp.ge.s32.totalorder %s25_s15, 2  ;;  %p168_p2 = scmp.lt.s32.totalorder %s5331_s14, 3 }
   0x5   : > { %s7818_s15 = smov (%p27_p1, %s25_s15), 0  ;;  %p169_p3 = pnand %p4101_p0, %p168_p2 }
   0x7   : > { %172 = sbr.rel (%p169_p3) target bundleno = 675 (0x2a3), region = 32 }
   0xe   : > { %v5230_v0 = vld [vmem:[%s7350_s1 + $0x10] sm:$0xff]   ;;  %p202_p4 = scmp.lt.s32.totalorder %s5323_s12, 1  ;;  %v5231_v1 = vld [vmem:[%s7350_s1 + $0x18] sm:$0xff]   ;;  %v5239_v2 = vld [vmem:[%s7350_s1] sm:$0xff]   ;;  %vm420_vm0 = vcmask 261120   ;;  %vm3957_vm3 = vcmask 519168  }
   0xf   : > { %4733 = vmatprep.subr.bf16.mxu0 %v5230_v0  ;;  %5201 = vmatprep.subr.bf16.mxu1 %v5230_v0  ;;  %v5240_v3 = vld [vmem:[%s7350_s1 + $0x20] sm:$0xff]   ;;  %v5265_v19 = vld [vmem:[%s7350_s1 + $0x8] sm:$0xff]   ;;  %v5473_v32 = vld [vmem:[%s7350_s1 + $0x30] sm:$0xff]   ;;  %vm729_vm1 = vsmask.f32 4352 }
  0x10   : > { %s7820_s12 = smov (!%p202_p4, %s5323_s12), 1  ;;  %4734 = vmatpush3.bf16.msra.mxu0 %v5230_v0  ;;  %5203 = vmatpush3.bf16.msra.mxu1 %v5230_v0  ;;  %v5266_v24 = vld [vmem:[%s7350_s1 + $0x28] sm:$0xff]   ;;  %v5484_v36 = vld [vmem:[%s7350_s1 + $0x40] sm:$0xff]   ;;  %vm1255_vm2 = vsmask.f32 7424 }
  0x11   : > { %4735 = vmatprep.subr.bf16.mxu0 %v5231_v1  ;;  %5202 = vmatprep.subr.bf16.mxu1 %v5231_v1  ;;  %s5205_s22 = smul.u32 240, %s7820_s12  ;;  %s4466_s8 = sshll.u32 %s7820_s12, 7 }
  0x12   : > { %s7214_s11 = scalar_lea.vmem %s7352_s3, %s4466_s8 }
  0x13   : > { %s5389_s27 = scalar_lea.vmem %s7349_s0, %s5205_s22 }
  0x14   : > { %4736 = vmatpush3.bf16.msra.mxu0 %v5231_v1  ;;  %5204 = vmatpush3.bf16.msra.mxu1 %v5231_v1  ;;  %v5392_v4 = vld [vmem:[%s5389_s27 + $0xc] sm:$0xf]  ;;  %v5395_v5 = vld [vmem:[%s5389_s27 + $0x10] sm:$0xf]  ;;  %v5398_v6 = vld [vmem:[%s5389_s27 + $0x14] sm:$0xf] }
  0x15   : > { %v5402_v7 = vcombine.low %v5392_v4, %v5395_v5  ;;  %v5405_v8 = vld [vmem:[%s5389_s27 + $0x6c] sm:$0xf]  ;;  %v249_v9 = vld [vmem:[%s5389_s27 + $0x70] sm:$0xf]  ;;  %4785 = vmatprep.subr.bf16.mxu1 %v5239_v2  ;;  %4837 = vmatprep.subr.bf16.mxu0 %v5240_v3  ;;  %v5412_v11 = vld [vmem:[%s5389_s27 + $0x18] sm:$0xf] }
  0x16   : > { %v5409_v10 = vcombine.low %v5405_v8, %v249_v9  ;;  %v250_v12 = vld [vmem:[%s5389_s27 + $0x74] sm:$0xf]  ;;  %v251_v13 = vld [vmem:[%s5389_s27 + $0x78] sm:$0xf]  ;;  %v5419_v14 = vld [vmem:[%s5389_s27 + $0x1c] sm:$0xf]  ;;  %v5425_v15 = vcombine.low %v5398_v6, %v5412_v11 }
  0x17   : > { %4737 = vmatprep.mubr.msk.bf16.mxu0 %vm420_vm0, %v5402_v7  ;;  %v5427_v16 = vcombine.low %v250_v12, %v251_v13  ;;  %v5430_v17 = vld [vmem:[%s5389_s27 + $0x20] sm:$0xf]  ;;  %v252_v18 = vld [vmem:[%s5389_s27 + $0x7c] sm:$0xf]  ;;  %v5436_v20 = vcombine.low %v249_v9, %v250_v12  ;;  %v5448_v23 = vld [vmem:[%s5389_s27 + $0x24] sm:$0xf] }
  0x18   : > { %7486 = vst [vmem:[#allocation2_spill] sm:$0xff] %v5409_v10  ;;  %4761 = vmatprep.mubr.msk.bf16.mxu1 %vm420_vm0, %v5409_v10  ;;  %v253_v21 = vld [vmem:[%s5389_s27 + $0x80] sm:$0xf]  ;;  %4738 = vmatmul.mubr.msk.bf16.vlgmr.msra.gmra.mrb[0].mxu0 %vm420_vm0, %v5425_v15  ;;  %v5445_v22 = vcombine.low %v5419_v14, %v5430_v17  ;;  %v5455_v26 = vcombine.low %v251_v13, %v252_v18  ;;  %v5458_v27 = vld [vmem:[%s5389_s27 + $0x28] sm:$0xf] }
  0x19   : > { %7487 = vst [vmem:[#allocation3_spill] sm:$0xff] %v5427_v16  ;;  %4762 = vmatmul.mubr.msk.bf16.vlgmr.msra.gmra.mrb[0].mxu1 %vm420_vm0, %v5427_v16  ;;  %4838 = vmatpush3.bf16.msra.mxu0 %v5240_v3  ;;  %v5453_v25 = vcombine.low %v252_v18, %v253_v21  ;;  %v254_v28 = vld [vmem:[%s5389_s27 + $0x84] sm:$0xf]  ;;  %v255_v29 = vld [vmem:[%s5389_s27 + $0x88] sm:$0xf]  ;;  %v5488_v37 = vcombine.low %v5448_v23, %v5458_v27 }
  0x1a   : > { %4786 = vmatpush3.bf16.msra.mxu1 %v5239_v2  ;;  %4741 = vmatprep.mubr.msk.bf16.mxu0 %vm420_vm0, %v5445_v22  ;;  %v5465_v30 = vld [vmem:[%s5389_s27 + $0x2c] sm:$0xf]  ;;  %v5468_v31 = vld [vmem:[%s5389_s27 + $0x30] sm:$0xf]  ;;  %v5477_v33 = vcombine.low %v253_v21, %v254_v28  ;;  %v5490_v38 = vcombine.low %v254_v28, %v255_v29  ;;  %v258_v40 = vld [vmem:[%s5389_s27 + $0x94] sm:$0xf] }
  0x1b   : > { %7488 = vst [vmem:[#allocation4_spill] sm:$0xff] %v5453_v25  ;;  %4787 = vmatprep.subr.bf16.mxu1 %v5265_v19  ;;  %4765 = vmatprep.mubr.msk.bf16.mxu1 %vm420_vm0, %v5453_v25  ;;  %v256_v34 = vld [vmem:[%s5389_s27 + $0x8c] sm:$0xf]  ;;  %v257_v35 = vld [vmem:[%s5389_s27 + $0x90] sm:$0xf]  ;;  %7490 = vst [vmem:[#allocation6_spill] sm:$0xff] %v5488_v37  ;;  %v5497_v41 = vcombine.low %v5465_v30, %v5468_v31 }
  0x1c   : > { %7489 = vst [vmem:[#allocation5_spill] sm:$0xff] %v5477_v33  ;;  %7491 = vst [vmem:[#allocation7_spill] sm:$0xff] %v5490_v38  ;;  %v5492_v39 = vcombine.low %v255_v29, %v256_v34  ;;  %4839 = vmatprep.subr.bf16.mxu0 %v5266_v24  ;;  %v5499_v42 = vcombine.low %v256_v34, %v257_v35  ;;  %v259_v43 = vld [vmem:[%s5389_s27 + $0x98] sm:$0xf]  ;;  %v5502_v44 = vcombine.low %v257_v35, %v258_v40  ;;  %v260_v45 = vld [vmem:[%s5389_s27 + $0x9c] sm:$0xf] }
  0x1d   : > { %7493 = vst [vmem:[#allocation9_spill] sm:$0xff] %v5497_v41  ;;  %4840 = vmatpush3.bf16.msra.mxu0 %v5266_v24  ;;  %v5505_v46 = vcombine.low %v259_v43, %v260_v45  ;;  %v223_v47 = vld [vmem:[%s5389_s27 + $0x8] sm:$0xf]  ;;  %v261_v48 = vld [vmem:[%s5389_s27 + $0xa0] sm:$0xf]  ;;  %v5542_v1 = vcombine.low %v258_v40, %v259_v43  ;;  %v1258_v29 = vshll.u32 %v5402_v7, 16  ;;  %v5574_v40 = vcombine.low %v5412_v11, %v5419_v14 }
  0x1e   : > { %7492 = vst [vmem:[#allocation8_spill] sm:$0xff] %v5492_v39  ;;  %7494 = vst [vmem:[#allocation10_spill] sm:$0xff] %v5499_v42  ;;  %4788 = vmatpush3.bf16.msra.mxu1 %v5265_v19  ;;  %v262_v49 = vld [vmem:[%s5389_s27 + $0xa4] sm:$0xf]  ;;  %4941 = vmatprep.subr.bf16.mxu0 %v5484_v36  ;;  %v234_v50 = vld [vmem:[%s5389_s27 + $0x34] sm:$0xf]  ;;  %v4159_v63 = vcombine.low %v223_v47, %v5392_v4  ;;  %v5552_v13 = vcombine.low %v260_v45, %v261_v48 }
  0x1f   : > { %7495 = vst [vmem:[#allocation11_spill] sm:$0xff] %v5502_v44  ;;  %4889 = vmatprep.subr.bf16.mxu1 %v5473_v32  ;;  %v263_v51 = vld [vmem:[%s5389_s27 + $0xa8] sm:$0xf]  ;;  %v5518_v52 = vcombine.low %v261_v48, %v262_v49  ;;  %v264_v53 = vld [vmem:[%s5389_s27 + $0xac] sm:$0xf]  ;;  %7500 = vst [vmem:[#allocation16_spill] sm:$0xff] %v5542_v1  ;;  %v4160_v4 = vcombine.low %v5395_v5, %v5398_v6 }
  0x20   : > { %4742 = vmatmul.mubr.msk.bf16.gmra.mrb[4].mxu0 %vm420_vm0, %v5488_v37  ;;  %v235_v54 = vld [vmem:[%s5389_s27 + $0x38] sm:$0xf]  ;;  %v265_v55 = vld [vmem:[%s5389_s27 + $0xb0] sm:$0xf]  ;;  %v5527_v56 = vcombine.low %v263_v51, %v264_v53  ;;  %v5530_v57 = vld [vmem:[%s5389_s27 + $0xb4] sm:$0xf]  ;;  %v5578_v45 = vcombine.low %v262_v49, %v263_v51 }
  0x21   : > { %4766 = vmatmul.mubr.msk.bf16.gmra.mrb[4].mxu1 %vm420_vm0, %v5490_v38  ;;  %7496 = vst [vmem:[#allocation12_spill] sm:$0xff] %v5518_v52  ;;  %4745 = vmatprep.mubr.msk.bf16.mxu0 %vm420_vm0, %v5497_v41  ;;  %v236_v58 = vld [vmem:[%s5389_s27 + $0x3c] sm:$0xf]  ;;  %v237_v59 = vld [vmem:[%s5389_s27 + $0x40] sm:$0xf]  ;;  %v5535_v60 = vcombine.low %v265_v55, %v5530_v57  ;;  %v5540_v0 = vcombine.low %v234_v50, %v235_v54  ;;  %7503 = vst [vmem:[#allocation19_spill] sm:$0xff] %v5552_v13 }
  0x22   : > { %4769 = vmatprep.mubr.msk.bf16.mxu1 %vm420_vm0, %v5499_v42  ;;  %7497 = vst [vmem:[#allocation13_spill] sm:$0xff] %v5527_v56  ;;  %v267_v61 = vld [vmem:[%s5389_s27 + $0xb8] sm:$0xf]  ;;  %v268_v62 = vld [vmem:[%s5389_s27 + $0xbc] sm:$0xf]  ;;  %v5550_v12 = vcombine.low %v236_v58, %v237_v59  ;;  %v731_v19 = vshrl.u32 %v4159_v63, 16 }
  0x23   : > { %7498 = vst [vmem:[#allocation14_spill] sm:$0xff] %v5535_v60  ;;  %7499 = vst [vmem:[#allocation15_spill] sm:$0xff] %v5540_v0  ;;  %v269_v2 = vld [vmem:[%s5389_s27 + $0xc0] sm:$0xf]  ;;  %v5545_v3 = vcombine.low %v267_v61, %v268_v62  ;;  %v5548_v9 = vld [vmem:[%s5389_s27 + $0xc4] sm:$0xf]  ;;  %v5619_v14 = vcombine.low %v5530_v57, %v267_v61 }
  0x24   : > { %7502 = vst [vmem:[#allocation18_spill] sm:$0xff] %v5550_v12  ;;  %v5555_v18 = vcombine.low %v269_v2, %v5548_v9  ;;  %v238_v21 = vld [vmem:[%s5389_s27 + $0x44] sm:$0xf]  ;;  %v239_v24 = vld [vmem:[%s5389_s27 + $0x48] sm:$0xf]  ;;  %v734_v28 = vshll.u32 %v4159_v63, 16  ;;  %v5583_v63 = vcombine.low %v264_v53, %v265_v55  ;;  %v5599_v55 = vcombine.low %v5458_v27, %v5465_v30 }
  0x25   : > { %7501 = vst [vmem:[#allocation17_spill] sm:$0xff] %v5545_v3  ;;  %v240_v34 = vld [vmem:[%s5389_s27 + $0x4c] sm:$0xf]  ;;  %v241_v5 = vld [vmem:[%s5389_s27 + $0x50] sm:$0xf]  ;;  %v739_v6 = vshrl.u32 %v4160_v4, 16  ;;  %v5576_v43 = vcombine.low %v238_v21, %v239_v24 }
  0x26   : > { %7504 = vst [vmem:[#allocation20_spill] sm:$0xff] %v5555_v18  ;;  %v742_v35 = vshll.u32 %v4160_v4, 16  ;;  %7505 = vst [vmem:[#allocation21_spill] sm:$0xff] %v5574_v40  ;;  %v1256_v47 = vshrl.u32 %v5402_v7, 16  ;;  %v5581_v48 = vcombine.low %v240_v34, %v241_v5  ;;  %v733_v18 = vrot.slane %v731_v19, 3 }
  0x27   : > { %7506 = vst [vmem:[#allocation22_spill] sm:$0xff] %v5576_v43  ;;  %7507 = vst [vmem:[#allocation23_spill] sm:$0xff] %v5578_v45  ;;  %v736_v3 = vrot.slane %v734_v28, 4  ;;  %v741_v4 = vrot.slane %v739_v6, 3  ;;  %v1260_v11 = vrot.slane %v1258_v29, 1  ;;  %v5590_v7 = vcombine.low %v5430_v17, %v5448_v23 }
  0x28   : > { %4746 = vmatmul.mubr.msk.bf16.gmra.mrb[8].mxu0 %vm420_vm0, %v5540_v0  ;;  %7508 = vst [vmem:[#allocation24_spill] sm:$0xff] %v5581_v48  ;;  %7509 = vst [vmem:[#allocation25_spill] sm:$0xff] %v5583_v63  ;;  %v744_v60 = vrot.slane %v742_v35, 4  ;;  %v242_v53 = vld [vmem:[%s5389_s27 + $0x54] sm:$0xf]  ;;  %v5607_v17 = vcombine.low %v5468_v31, %v234_v50  ;;  %v5609_v23 = vcombine.low %v235_v54, %v236_v58  ;;  %v7356_v51 = vshll.u32 %v5425_v15, 16 }
  0x29   : > { %4770 = vmatmul.mubr.msk.bf16.gmra.mrb[8].mxu1 %vm420_vm0, %v5542_v1  ;;  %4749 = vmatprep.mubr.msk.bf16.mxu0 %vm420_vm0, %v5550_v12  ;;  %7510 = vst [vmem:[#allocation26_spill] sm:$0xff] %v5590_v7  ;;  %7511 = vst [vmem:[#allocation27_spill] sm:$0xff] %v5599_v55  ;;  %v243_v19 = vld [vmem:[%s5389_s27 + $0x58] sm:$0xf]  ;;  %v244_v28 = vld [vmem:[%s5389_s27 + $0x5c] sm:$0xf]  ;;  %v737_v6 = vor.u32 %v736_v3, %v733_v18  ;;  %v5613_v35 = vcombine.low %v237_v59, %v238_v21 }
  0x2a   : > { %4773 = vmatprep.mubr.msk.bf16.mxu1 %vm420_vm0, %v5552_v13  ;;  %7512 = vst [vmem:[#allocation28_spill] sm:$0xff] %v5607_v17  ;;  %7513 = vst [vmem:[#allocation29_spill] sm:$0xff] %v5609_v23  ;;  %v245_v29 = vld [vmem:[%s5389_s27 + $0x60] sm:$0xf]  ;;  %v745_v27 = vor.u32 %v744_v60, %v741_v4  ;;  %v1261_v30 = vor.u32 %v1260_v11, %v1256_v47  ;;  %v5616_v49 = vcombine.low %v242_v53, %v243_v19  ;;  %v246_v21 = vld [vmem:[%s5389_s27 + $0x64] sm:$0xf] }
  0x2b   : > { %7514 = vst [vmem:[#allocation30_spill] sm:$0xff] %v5613_v35  ;;  %7516 = vst [vmem:[#allocation32_spill] sm:$0xff] %v5619_v14  ;;  %v7357_v31 = vshrl.u32 %v5590_v7, 16  ;;  %v7358_v50 = vshll.u32 %v5590_v7, 16  ;;  %v5623_v54 = vcombine.low %v244_v28, %v245_v29  ;;  %v5625_v58 = vcombine.low %v268_v62, %v269_v2  ;;  %v247_v47 = vld [vmem:[%s5389_s27 + $0x68] sm:$0xf] }
  0x2c   : > { %7515 = vst [vmem:[#allocation31_spill] sm:$0xff] %v5616_v49  ;;  %v7368_v60 = vshll.u32 %v5599_v55, 16  ;;  %v5629_v3 = vcombine.low %v239_v24, %v240_v34  ;;  %v5631_v18 = vcombine.low %v241_v5, %v242_v53  ;;  %v1276_v61 = vshll.u32 %v5488_v37, 16  ;;  %v5649_v34 = vld [vmem:[%s5389_s27 + $0xc8] sm:$0xf] }
  0x2d   : > { %7517 = vst [vmem:[#allocation33_spill] sm:$0xff] %v5623_v54  ;;  %7518 = vst [vmem:[#allocation34_spill] sm:$0xff] %v5625_v58  ;;  %v1264_v4 = vrot.slane %v7356_v51, 1  ;;  %v7521_v62 = vshrl.u32 %v5574_v40, 16  ;;  %v7522_v11 = vshll.u32 %v5574_v40, 16  ;;  %v759_v5 = vrot.slane %v7357_v31, 3 }
  0x2e   : > { %7519 = vst [vmem:[#allocation35_spill] sm:$0xff] %v5629_v3  ;;  %7520 = vst [vmem:[#allocation36_spill] sm:$0xff] %v5631_v18  ;;  %v762_v53 = vrot.slane %v7358_v50, 4  ;;  %v5659_v51 = vcombine.low %v243_v19, %v244_v28  ;;  %v746_v24 = vsel %vm729_vm1, %v737_v6, %v745_v27  ;;  %v7525_v57 = vshrl.u32 %v5599_v55, 16 }
  0x2f   : > { %v750_v2 = vrot.slane %v7521_v62, 3  ;;  %v753_v59 = vrot.slane %v7522_v11, 4  ;;  %7523 = vst [vmem:[#allocation37_spill] sm:$0xff] %v5649_v34  ;;  %v771_v50 = vrot.slane %v7368_v60, 4  ;;  %v7526_v62 = vshll.u32 %v5445_v22, 16 }
  0x30   : > { %4750 = vmatmul.mubr.msk.bf16.gmra.mrb[12].mxu0 %vm420_vm0, %v5576_v43  ;;  %7524 = vst [vmem:[#allocation38_spill] sm:$0xff] %v5659_v51  ;;  %v768_v31 = vrot.slane %v7525_v57, 3  ;;  %v1278_v11 = vrot.slane %v1276_v61, 1  ;;  %v5672_v28 = vcombine.low %v246_v21, %v247_v47  ;;  %v5676_v56 = vcombine.low %v5548_v9, %v5649_v34 }
  0x31   : > { %4774 = vmatmul.mubr.msk.bf16.gmra.mrb[12].mxu1 %vm420_vm0, %v5578_v45  ;;  %4753 = vmatprep.mubr.msk.bf16.mxu0 %vm420_vm0, %v5581_v48  ;;  %v1271_v7 = vrot.slane %v7526_v62, 1  ;;  %v7529_v6 = vshrl.u32 %v5425_v15, 16  ;;  %v763_v55 = vor.u32 %v762_v53, %v759_v5  ;;  %v7530_v60 = vshrl.u32 %v5445_v22, 16 }
  0x32   : > { %4777 = vmatprep.mubr.msk.bf16.mxu1 %vm420_vm0, %v5583_v63  ;;  %7527 = vst [vmem:[#allocation39_spill] sm:$0xff] %v5672_v28  ;;  %7528 = vst [vmem:[#allocation40_spill] sm:$0xff] %v5676_v56  ;;  %v7531_v62 = vshrl.u32 %v5607_v17, 16  ;;  %v7532_v40 = vshll.u32 %v5607_v17, 16  ;;  %v5686_v45 = vcombine.low %v245_v29, %v246_v21  ;;  %v5689_v52 = vcombine.low %v247_v47, %v5405_v8 }
  0x33   : > { %v1268_v57 = vor.u32 %v7529_v6, %v1264_v4  ;;  %v772_v9 = vor.u32 %v771_v50, %v768_v31  ;;  %v7380_v34 = vshll.u32 %v5540_v0, 16  ;;  %v7381_v6 = vshrl.u32 %v5497_v41, 16 }
  0x34   : > { %v777_v63 = vrot.slane %v7531_v62, 3  ;;  %v780_v19 = vrot.slane %v7532_v40, 4  ;;  %v7378_v8 = vshrl.u32 %v5609_v23, 16  ;;  %v7379_v31 = vshll.u32 %v5609_v23, 16 }
  0x35   : > { %v1272_v29 = vsel %vm1255_vm2, %v1268_v57, %v1271_v7  ;;  %v5708_v21 = vrot.slane %v1276_v61, 4  ;;  %v7384_v61 = vshrl.u32 %v5613_v35, 16  ;;  %v7387_v57 = vshrl.u32 %v5629_v3, 16 }
  0x36   : > { %v5710_v47 = vor.u32 %v780_v19, %v777_v63  ;;  %v7386_v19 = vshll.u32 %v5576_v43, 16 }
  0x38   : > { %4754 = vmatmul.mubr.msk.bf16.gmra.mrb[16].mxu0 %vm420_vm0, %v5616_v49  ;;  %v5736_v62 = vsel %vm729_vm1, %v772_v9, %v5710_v47 }
  0x39   : > { %4778 = vmatmul.mubr.msk.bf16.gmra.mrb[16].mxu1 %vm420_vm0, %v5619_v14  ;;  %4757 = vmatprep.mubr.msk.bf16.mxu0 %vm420_vm0, %v5623_v54  ;;  %v1275_v14 = vor.u32 %v7530_v60, %v1271_v7  ;;  %v7534_v60 = vshll.u32 %v5497_v41, 16  ;;  %v5715_v7 = vsel %vm729_vm1, %v763_v55, %v772_v9  ;;  %7537 = vst [vmem:[#allocation43_spill] sm:$0xff] %v5736_v62  ;;  %v795_v9 = vrot.slane %v7384_v61, 3  ;;  %v5287_v61 = vld [vmem:[%s7350_s1 + $0x38] sm:$0xff]  }
  0x3a   : > { %4781 = vmatprep.mubr.msk.bf16.mxu1 %vm420_vm0, %v5625_v58  ;;  %v754_v58 = vor.u32 %v753_v59, %v750_v2  ;;  %v1265_v59 = vsel %vm1255_vm2, %v1261_v30, %v1264_v4  ;;  %v7533_v2 = vshrl.u32 %v5488_v37, 16  ;;  %7535 = vst [vmem:[#allocation41_spill] sm:$0xff] %v5715_v7  ;;  %v7382_v4 = vshrl.u32 %v5540_v0, 16 }
  0x3b   : > { %v1285_v53 = vrot.slane %v7534_v60, 1  ;;  %v1279_v50 = vsel %vm1255_vm2, %v1275_v14, %v1278_v11 }
  0x3c   : > { %v1282_v5 = vor.u32 %v7533_v2, %v1278_v11  ;;  %v755_v40 = vsel %vm729_vm1, %v745_v27, %v754_v58  ;;  %v764_v30 = vsel %vm729_vm1, %v754_v58, %v763_v55  ;;  %v1292_v27 = vrot.slane %v7380_v34, 1 }
  0x3d   : > { %v7383_v58 = vshll.u32 %v5550_v12, 16  ;;  %v1289_v63 = vor.u32 %v7381_v6, %v1285_v53  ;;  %v786_v55 = vrot.slane %v7378_v8, 3  ;;  %v789_v11 = vrot.slane %v7379_v31, 4 }
  0x3e   : > { %v5722_v14 = vsel %vm1255_vm2, %v1282_v5, %v1285_v53  ;;  %v7393_v2 = vshrl.u32 %v5631_v18, 16  ;;  %v1296_v60 = vor.u32 %v7382_v4, %v1292_v27  ;;  %v1306_v4 = vrot.slane %v7386_v19, 1 }
  0x3f   : > { %7536 = vst [vmem:[#allocation42_spill] sm:$0xff] %v5722_v14  ;;  %v1299_v53 = vrot.slane %v7383_v58, 1  ;;  %v804_v58 = vrot.slane %v7387_v57, 3  ;;  %v7538_v5 = vshll.u32 %v5631_v18, 16  ;;  %v7539_v6 = vshrl.u32 %v5659_v51, 16 }
  0x40   : > { %4758 = vmatmul.mubr.msk.bf16.gmra.mrb[20].mxu0 %vm420_vm0, %v5672_v28  ;;  %v813_v57 = vrot.slane %v7393_v2, 3  ;;  %v7542_v8 = vshrl.u32 %v5550_v12, 16  ;;  %v7547_v18 = vshrl.u32 %v5581_v48, 16 }
  0x41   : > { %4782 = vmatmul.mubr.msk.bf16.gmra.mrb[20].mxu1 %vm420_vm0, %v5676_v56  ;;  %4841 = vmatprep.mubr.msk.bf16.mxu0 %vm420_vm0, %v1265_v59  ;;  %v7390_v59 = vshll.u32 %v5629_v3, 16  ;;  %v816_v31 = vrot.slane %v7538_v5, 4  ;;  %v7541_v5 = vshrl.u32 %v5488_v37, 16 }
  0x42   : > { %4789 = vmatprep.mubr.msk.bf16.mxu1 %vm420_vm0, %v746_v24  ;;  %v7385_v24 = vshll.u32 %v5613_v35, 16 }
  0x43   : > { %v807_v19 = vrot.slane %v7390_v59, 4  ;;  %v5786_v2 = vrot.slane %v7541_v5, 3  ;;  %v7544_v5 = vshll.u32 %v5616_v49, 16  ;;  %v7546_v59 = vshrl.u32 %v5576_v43, 16 }
  0x44   : > { %v798_v34 = vrot.slane %v7385_v24, 4  ;;  %v5288_v24 = vld [vmem:[%s7350_s1 + $0x48] sm:$0xff]  }
  0x45   : > { %v1310_v37 = vor.u32 %v7546_v59, %v1306_v4 }
  0x48   : > { %4842 = vmatmul.mubr.msk.bf16.vlgmr.msra.gmra.mrb[24].mxu0 %vm420_vm0, %v1272_v29  ;;  %v7540_v29 = vshll.u32 %v5659_v51, 16  ;;  %v817_v51 = vor.u32 %v816_v31, %v813_v57  ;;  %v7404_v31 = vshrl.u32 %v5623_v54, 16 }
  0x49   : > { %4790 = vmatmul.mubr.msk.bf16.vlgmr.msra.gmra.mrb[24].mxu1 %vm420_vm0, %v755_v40  ;;  %4942 = vmatpush3.bf16.msra.mxu0 %v5484_v36  ;;  %v822_v40 = vrot.slane %v7539_v6, 3  ;;  %v799_v36 = vor.u32 %v798_v34, %v795_v9  ;;  %v1303_v6 = vor.u32 %v7542_v8, %v1299_v53  ;;  %v808_v9 = vor.u32 %v807_v19, %v804_v58 }
  0x4a   : > { %4890 = vmatpush3.bf16.msra.mxu1 %v5473_v32  ;;  %v825_v35 = vrot.slane %v7540_v29, 4  ;;  %4793 = vmatprep.mubr.msk.bf16.mxu1 %vm420_vm0, %v764_v30  ;;  %v790_v32 = vor.u32 %v789_v11, %v786_v55  ;;  %v5793_v29 = vld [vmem:[%s7350_s1 + $0x50] sm:$0xff]   ;;  %v5798_v30 = vld [vmem:[%s7350_s1 + $0x60] sm:$0xff]   ;;  %v1320_v55 = vrot.slane %v7544_v5, 1  ;;  %v5807_v11 = vsel %vm1255_vm2, %v1289_v63, %v1292_v27 }
  0x4b   : > { %4845 = vmatprep.mubr.msk.bf16.mxu0 %vm420_vm0, %v1279_v50  ;;  %v7543_v50 = vshll.u32 %v5581_v48, 16  ;;  %4891 = vmatprep.subr.bf16.mxu1 %v5287_v61  ;;  %7545 = vst [vmem:[#allocation44_spill] sm:$0xff] %v5807_v11  ;;  %v7548_v5 = vshrl.u32 %v5686_v45, 16  ;;  %v7549_v34 = vshll.u32 %v5686_v45, 16  ;;  %v5822_v58 = vsel %vm1255_vm2, %v1296_v60, %v1299_v53 }
  0x4c   : > { %4943 = vmatprep.subr.bf16.mxu0 %v5288_v24  ;;  %v826_v23 = vor.u32 %v825_v35, %v822_v40  ;;  %v5819_v27 = vsel %vm729_vm1, %v5710_v47, %v790_v32  ;;  %7551 = vst [vmem:[#allocation46_spill] sm:$0xff] %v5822_v58  ;;  %v5829_v35 = vsel %vm729_vm1, %v790_v32, %v799_v36  ;;  %v7554_v47 = vshrl.u32 %v5616_v49, 16 }
  0x4d   : > { %v1313_v3 = vrot.slane %v7543_v50, 1  ;;  %v831_v17 = vrot.slane %v7548_v5, 3  ;;  %v834_v8 = vrot.slane %v7549_v34, 4  ;;  %4944 = vmatpush3.bf16.msra.mxu0 %v5288_v24  ;;  %7550 = vst [vmem:[#allocation45_spill] sm:$0xff] %v5819_v27  ;;  %7552 = vst [vmem:[#allocation47_spill] sm:$0xff] %v5829_v35  ;;  %v5832_v63 = vsel %vm1255_vm2, %v1303_v6, %v1306_v4 }
  0x4e   : > { %4892 = vmatpush3.bf16.msra.mxu1 %v5287_v61  ;;  %5045 = vmatprep.subr.bf16.mxu0 %v5798_v30  ;;  %7553 = vst [vmem:[#allocation48_spill] sm:$0xff] %v5832_v63  ;;  %v1324_v61 = vor.u32 %v7554_v47, %v1320_v55  ;;  %v7555_v24 = vshll.u32 %v5623_v54, 16  ;;  %v5843_v57 = vsel %vm729_vm1, %v799_v36, %v808_v9  ;;  %v7405_v60 = vshrl.u32 %v5689_v52, 16 }
  0x4f   : > { %v1317_v50 = vor.u32 %v7547_v18, %v1313_v3  ;;  %v7403_v18 = vshll.u32 %v5672_v28, 16  ;;  %4993 = vmatprep.subr.bf16.mxu1 %v5793_v29  ;;  %7556 = vst [vmem:[#allocation49_spill] sm:$0xff] %v5843_v57  ;;  %v5846_v59 = vsel %vm1255_vm2, %v1310_v37, %v1313_v3  ;;  %v5849_v4 = vsel %vm729_vm1, %v808_v9, %v817_v51 }
  0x50   : > { %v1327_v19 = vrot.slane %v7555_v24, 1  ;;  %4846 = vmatmul.mubr.msk.bf16.gmra.mrb[28].mxu0 %vm420_vm0, %v5722_v14  ;;  %7557 = vst [vmem:[#allocation50_spill] sm:$0xff] %v5846_v59  ;;  %7558 = vst [vmem:[#allocation51_spill] sm:$0xff] %v5849_v4  ;;  %v5860_v40 = vsel %vm729_vm1, %v817_v51, %v826_v23  ;;  %v835_v32 = vor.u32 %v834_v8, %v831_v17  ;;  %v7406_v37 = vshll.u32 %v5689_v52, 16 }
  0x51   : > { %4794 = vmatmul.mubr.msk.bf16.gmra.mrb[28].mxu1 %vm420_vm0, %v5715_v7  ;;  %4849 = vmatprep.mubr.msk.bf16.mxu0 %vm420_vm0, %v5807_v11  ;;  %v5857_v53 = vsel %vm1255_vm2, %v1317_v50, %v1320_v55  ;;  %v1334_v36 = vrot.slane %v7403_v18, 1  ;;  %v7407_v6 = vshrl.u32 %v5436_v20, 16  ;;  %v7408_v34 = vshll.u32 %v5436_v20, 16 }
  0x52   : > { %4797 = vmatprep.mubr.msk.bf16.mxu1 %vm420_vm0, %v5736_v62  ;;  %7559 = vst [vmem:[#allocation52_spill] sm:$0xff] %v5857_v53  ;;  %v1331_v3 = vor.u32 %v7404_v31, %v1327_v19  ;;  %v5870_v9 = vsel %vm1255_vm2, %v1324_v61, %v1327_v19  ;;  %v7409_v55 = vshll.u32 %v5427_v16, 16  ;;  %v7410_v51 = vshrl.u32 %v5455_v26, 16 }
  0x53   : > { %7560 = vst [vmem:[#allocation53_spill] sm:$0xff] %v5870_v9  ;;  %v7411_v17 = vshll.u32 %v5455_v26, 16  ;;  %v840_v8 = vrot.slane %v7405_v60, 3  ;;  %v7413_v5 = vshrl.u32 %v5477_v33, 16  ;;  %v5881_v24 = vsel %vm729_vm1, %v826_v23, %v835_v32 }
  0x54   : > { %7561 = vst [vmem:[#allocation54_spill] sm:$0xff] %v5881_v24  ;;  %v843_v61 = vrot.slane %v7406_v37, 4  ;;  %v7419_v19 = vshll.u32 %v5409_v10, 16  ;;  %v5888_v31 = vsel %vm1255_vm2, %v1331_v3, %v1334_v36  ;;  %v849_v60 = vrot.slane %v7407_v6, 3 }
  0x55   : > { %7562 = vst [vmem:[#allocation55_spill] sm:$0xff] %v5888_v31  ;;  %v852_v50 = vrot.slane %v7408_v34, 4  ;;  %v1348_v23 = vrot.slane %v7409_v55, 1  ;;  %v858_v37 = vrot.slane %v7410_v51, 3  ;;  %v861_v18 = vrot.slane %v7411_v17, 4 }
  0x56   : > { %v867_v6 = vrot.slane %v7413_v5, 3  ;;  %v7563_v34 = vshll.u32 %v5477_v33, 16  ;;  %v844_v17 = vor.u32 %v843_v61, %v840_v8  ;;  %v1341_v3 = vrot.slane %v7419_v19, 1 }
  0x57   : > { %v7565_v47 = vshll.u32 %v5453_v25, 16  ;;  %v7566_v8 = vshrl.u32 %v5409_v10, 16  ;;  %v7567_v19 = vshrl.u32 %v5427_v16, 16  ;;  %v7568_v5 = vshrl.u32 %v5453_v25, 16 }
  0x58   : > { %4850 = vmatmul.mubr.msk.bf16.gmra.mrb[32].mxu0 %vm420_vm0, %v5822_v58  ;;  %v870_v55 = vrot.slane %v7563_v34, 4  ;;  %v7564_v34 = vshrl.u32 %v5672_v28, 16  ;;  %v7425_v14 = vshll.u32 %v5542_v1, 16  ;;  %v1773_v7 = vor.u32 %v5708_v21, %v5786_v2 }
  0x59   : > { %4798 = vmatmul.mubr.msk.bf16.gmra.mrb[32].mxu1 %vm420_vm0, %v5819_v27  ;;  %4853 = vmatprep.mubr.msk.bf16.mxu0 %vm420_vm0, %v5832_v63  ;;  %v1355_v51 = vrot.slane %v7565_v47, 1  ;;  %v853_v27 = vor.u32 %v852_v50, %v849_v60  ;;  %v1345_v61 = vor.u32 %v7566_v8, %v1341_v3  ;;  %v862_v63 = vor.u32 %v861_v18, %v858_v37 }
  0x5a   : > { %4801 = vmatprep.mubr.msk.bf16.mxu1 %vm420_vm0, %v5829_v35  ;;  %v1338_v11 = vor.u32 %v7564_v34, %v1334_v36  ;;  %v1352_v58 = vor.u32 %v7567_v19, %v1348_v23  ;;  %v5930_v62 = vor.u32 %v870_v55, %v867_v6  ;;  %v7569_v34 = vshll.u32 %v5490_v38, 16 }
  0x5b   : > { %v1359_v36 = vor.u32 %v7568_v5, %v1355_v51  ;;  %v5938_v35 = vsel %vm729_vm1, %v835_v32, %v844_v17  ;;  %v7570_v60 = vshrl.u32 %v5492_v39, 16  ;;  %v7571_v18 = vshll.u32 %v5492_v39, 16 }
  0x5c   : > { %v1362_v47 = vrot.slane %v7569_v34, 1  ;;  %v7572_v55 = vshrl.u32 %v5502_v44, 16  ;;  %v7573_v5 = vshll.u32 %v5502_v44, 16  ;;  %v7422_v34 = vshrl.u32 %v5499_v42, 16  ;;  %v7587_v44 = vld [vmem:[#allocation34_spill] sm:$0xff] }
  0x5d   : > { %v876_v50 = vrot.slane %v7570_v60, 3  ;;  %v879_v37 = vrot.slane %v7571_v18, 4  ;;  %v5952_v32 = vsel %vm1255_vm2, %v1338_v11, %v1341_v3  ;;  %v5955_v60 = vsel %vm729_vm1, %v844_v17, %v853_v27 }
  0x5e   : > { %v885_v19 = vrot.slane %v7572_v55, 3  ;;  %v888_v8 = vrot.slane %v7573_v5, 4  ;;  %7574 = vst [vmem:[#allocation56_spill] sm:$0xff] %v5952_v32  ;;  %v5958_v18 = vsel %vm1255_vm2, %v1345_v61, %v1348_v23  ;;  %v5961_v6 = vsel %vm729_vm1, %v853_v27, %v862_v63 }
  0x5f   : > { %7575 = vst [vmem:[#allocation57_spill] sm:$0xff] %v5958_v18  ;;  %v5968_v55 = vsel %vm1255_vm2, %v1352_v58, %v1355_v51  ;;  %v5972_v11 = vsel %vm729_vm1, %v862_v63, %v5930_v62  ;;  %v5975_v17 = vsel %vm1255_vm2, %v1359_v36, %v1362_v47  ;;  %v7579_v23 = vshll.u32 %v5499_v42, 16 }
  0x60   : > { %4854 = vmatmul.mubr.msk.bf16.gmra.mrb[36].mxu0 %vm420_vm0, %v5846_v59  ;;  %7576 = vst [vmem:[#allocation58_spill] sm:$0xff] %v5968_v55  ;;  %7577 = vst [vmem:[#allocation59_spill] sm:$0xff] %v5972_v11  ;;  %v5985_v3 = vor.u32 %v879_v37, %v876_v50  ;;  %v7580_v58 = vshrl.u32 %v5490_v38, 16  ;;  %v5993_v36 = vor.u32 %v888_v8, %v885_v19  ;;  %v7581_v37 = vld [vmem:[#allocation12_spill] sm:$0xff]  ;;  %v7582_v8 = vld [vmem:[#allocation23_spill] sm:$0xff]  ;;  %v7589_v59 = vshll.u32 %v5445_v22, 16 }
  0x61   : > { %4802 = vmatmul.mubr.msk.bf16.gmra.mrb[36].mxu1 %vm420_vm0, %v5843_v57  ;;  %7578 = vst [vmem:[#allocation60_spill] sm:$0xff] %v5975_v17  ;;  %v5979_v27 = vrot.slane %v7579_v23, 1  ;;  %4857 = vmatprep.mubr.msk.bf16.mxu0 %vm420_vm0, %v5857_v53  ;;  %v6002_v23 = vrot.slane %v7425_v14, 1  ;;  %v7585_v50 = vld [vmem:[#allocation32_spill] sm:$0xff]  ;;  %v7588_v53 = vshrl.u32 %v5445_v22, 16  ;;  %v7591_v22 = vshll.u32 %v5497_v41, 16 }
  0x62   : > { %4805 = vmatprep.mubr.msk.bf16.mxu1 %vm420_vm0, %v5849_v4  ;;  %v5989_v51 = vor.u32 %v7580_v58, %v1362_v47  ;;  %v7584_v4 = vshrl.u32 %v5425_v15, 16  ;;  %v7586_v58 = vshll.u32 %v5425_v15, 16  ;;  %v1768_v33 = vrot.slane %v7589_v59, 4 }
  0x63   : > { %v5998_v5 = vor.u32 %v7422_v34, %v5979_v27  ;;  %v7583_v34 = vld [vmem:[#allocation25_spill] sm:$0xff]  ;;  %v1767_v39 = vrot.slane %v7588_v53, 3  ;;  %v7590_v47 = vshrl.u32 %v5497_v41, 16  ;;  %v1776_v59 = vrot.slane %v7591_v22, 4 }
  0x64   : > { %v1764_v14 = vrot.slane %v7584_v4, 3  ;;  %v1765_v63 = vrot.slane %v7586_v58, 4  ;;  %v7593_v21 = vshll.u32 %v5540_v0, 16  ;;  %v7596_v22 = vshrl.u32 %v5576_v43, 16 }
  0x65   : > { %v1775_v15 = vrot.slane %v7590_v47, 3  ;;  %v1769_v58 = vor.u32 %v1768_v33, %v1767_v39  ;;  %v7594_v47 = vshrl.u32 %v5550_v12, 16  ;;  %v7595_v33 = vshll.u32 %v5550_v12, 16 }
  0x66   : > { %v1766_v57 = vor.u32 %v1765_v63, %v1764_v14  ;;  %v7592_v14 = vshrl.u32 %v5540_v0, 16  ;;  %v1780_v2 = vrot.slane %v7593_v21, 4  ;;  %v1787_v53 = vrot.slane %v7596_v22, 3 }
  0x67   : > { %v1783_v4 = vrot.slane %v7594_v47, 3  ;;  %v1784_v39 = vrot.slane %v7595_v33, 4  ;;  %v6055_v19 = vsel %vm729_vm1, %v1769_v58, %v1773_v7  ;;  %v1777_v61 = vor.u32 %v1776_v59, %v1775_v15 }
  0x68   : > { %4858 = vmatmul.mubr.msk.bf16.gmra.mrb[40].mxu0 %vm420_vm0, %v5870_v9  ;;  %v1779_v63 = vrot.slane %v7592_v14, 3  ;;  %v6052_v14 = vsel %vm729_vm1, %v1766_v57, %v1769_v58  ;;  %v7598_v47 = vshrl.u32 %v5581_v48, 16  ;;  %v7599_v33 = vshll.u32 %v5581_v48, 16 }
  0x69   : > { %4806 = vmatmul.mubr.msk.bf16.gmra.mrb[40].mxu1 %vm420_vm0, %v5860_v40  ;;  %4861 = vmatprep.mubr.msk.bf16.mxu0 %vm420_vm0, %v5888_v31  ;;  %v7597_v31 = vshll.u32 %v5576_v43, 16  ;;  %v1785_v0 = vor.u32 %v1784_v39, %v1783_v4  ;;  %v6064_v22 = vsel %vm729_vm1, %v1773_v7, %v1777_v61  ;;  %v7601_v15 = vshll.u32 %v5616_v49, 16 }
  0x6a   : > { %4809 = vmatprep.mubr.msk.bf16.mxu1 %vm420_vm0, %v5881_v24  ;;  %v1781_v21 = vor.u32 %v1780_v2, %v1779_v63  ;;  %v1791_v41 = vrot.slane %v7598_v47, 3  ;;  %v1792_v12 = vrot.slane %v7599_v33, 4  ;;  %v7600_v24 = vshrl.u32 %v5616_v49, 16 }
  0x6b   : > { %v1788_v9 = vrot.slane %v7597_v31, 4  ;;  %v1796_v59 = vrot.slane %v7601_v15, 4  ;;  %v7602_v2 = vshrl.u32 %v5623_v54, 16  ;;  %v7604_v47 = vshrl.u32 %v5672_v28, 16 }
  0x6c   : > { %v1795_v58 = vrot.slane %v7600_v24, 3  ;;  %v6071_v31 = vsel %vm729_vm1, %v1777_v61, %v1781_v21  ;;  %v6074_v4 = vsel %vm729_vm1, %v1781_v21, %v1785_v0  ;;  %v1793_v63 = vor.u32 %v1792_v12, %v1791_v41 }
  0x6d   : > { %v1789_v57 = vor.u32 %v1788_v9, %v1787_v53  ;;  %v1799_v39 = vrot.slane %v7602_v2, 3  ;;  %v7603_v53 = vshll.u32 %v5623_v54, 16  ;;  %v1803_v33 = vrot.slane %v7604_v47, 3 }
  0x6e   : > { %v1797_v9 = vor.u32 %v1796_v59, %v1795_v58  ;;  %v7605_v21 = vshll.u32 %v5672_v28, 16  ;;  %v7606_v41 = vshrl.u32 %v5409_v10, 16  ;;  %v7607_v2 = vshll.u32 %v5409_v10, 16 }
  0x6f   : > { %v6079_v7 = vsel %vm729_vm1, %v1785_v0, %v1789_v57  ;;  %v1800_v24 = vrot.slane %v7603_v53, 4  ;;  %v6086_v61 = vsel %vm729_vm1, %v1789_v57, %v1793_v63  ;;  %v7608_v59 = vshrl.u32 %v5427_v16, 16 }
  0x70   : > { %v1804_v15 = vrot.slane %v7605_v21, 4  ;;  %v1807_v12 = vrot.slane %v7606_v41, 3  ;;  %v1808_v0 = vrot.slane %v7607_v2, 4  ;;  %4862 = vmatmul.mubr.msk.bf16.gmra.mrb[44].mxu0 %vm420_vm0, %v5952_v32  ;;  %v6099_v58 = vsel %vm729_vm1, %v1793_v63, %v1797_v9 }
  0x71   : > { %4810 = vmatmul.mubr.msk.bf16.gmra.mrb[44].mxu1 %vm420_vm0, %v5938_v35  ;;  %v1801_v57 = vor.u32 %v1800_v24, %v1799_v39  ;;  %v1811_v53 = vrot.slane %v7608_v59, 3  ;;  %v7609_v47 = vshll.u32 %v5427_v16, 16  ;;  %4865 = vmatprep.mubr.msk.bf16.mxu0 %vm420_vm0, %v5958_v18  ;;  %v7610_v10 = vshrl.u32 %v5453_v25, 16 }
  0x72   : > { %4813 = vmatprep.mubr.msk.bf16.mxu1 %vm420_vm0, %v5955_v60  ;;  %v1805_v41 = vor.u32 %v1804_v15, %v1803_v33  ;;  %v1809_v2 = vor.u32 %v1808_v0, %v1807_v12  ;;  %v7611_v63 = vshll.u32 %v5453_v25, 16  ;;  %v7613_v28 = vshll.u32 %v5490_v38, 16 }
  0x73   : > { %v1812_v21 = vrot.slane %v7609_v47, 4  ;;  %v1815_v32 = vrot.slane %v7610_v10, 3  ;;  %v6114_v24 = vsel %vm729_vm1, %v1797_v9, %v1801_v57  ;;  %v7612_v47 = vshrl.u32 %v5490_v38, 16 }
  0x74   : > { %v1816_v39 = vrot.slane %v7611_v63, 4  ;;  %v1820_v54 = vrot.slane %v7613_v28, 4  ;;  %v6121_v18 = vsel %vm729_vm1, %v1801_v57, %v1805_v41  ;;  %v6124_v33 = vsel %vm729_vm1, %v1805_v41, %v1809_v2 }
  0x75   : > { %v1813_v59 = vor.u32 %v1812_v21, %v1811_v53  ;;  %v1819_v16 = vrot.slane %v7612_v47, 3  ;;  %v7614_v15 = vshrl.u32 %v5499_v42, 16  ;;  %v7615_v53 = vshll.u32 %v5499_v42, 16 }
  0x76   : > { %v1817_v10 = vor.u32 %v1816_v39, %v1815_v32  ;;  %v7616_v63 = vshrl.u32 %v5542_v1, 16  ;;  %v7617_v41 = vshll.u32 %v5542_v1, 16  ;;  %v7618_v32 = vshrl.u32 %v5552_v13, 16 }
  0x77   : > { %v1823_v12 = vrot.slane %v7614_v15, 3  ;;  %v6129_v9 = vsel %vm729_vm1, %v1809_v2, %v1813_v59  ;;  %v1821_v0 = vor.u32 %v1820_v54, %v1819_v16  ;;  %v1824_v21 = vrot.slane %v7615_v53, 4 }
  0x78   : > { %v1827_v28 = vrot.slane %v7616_v63, 3  ;;  %v6136_v57 = vsel %vm729_vm1, %v1813_v59, %v1817_v10  ;;  %v1828_v47 = vrot.slane %v7617_v41, 4  ;;  %v1831_v39 = vrot.slane %v7618_v32, 3  ;;  %4866 = vmatmul.mubr.msk.bf16.gmra.mrb[48].mxu0 %vm420_vm0, %v5968_v55 }
  0x79   : > { %v7619_v15 = vshll.u32 %v5552_v13, 16  ;;  %v6145_v16 = vsel %vm729_vm1, %v1817_v10, %v1821_v0  ;;  %v1825_v54 = vor.u32 %v1824_v21, %v1823_v12  ;;  %v7620_v53 = vshrl.u32 %v7582_v8, 16  ;;  %4814 = vmatmul.mubr.msk.bf16.gmra.mrb[48].mxu1 %vm420_vm0, %v5961_v6  ;;  %4869 = vmatprep.mubr.msk.bf16.mxu0 %vm420_vm0, %v5975_v17 }
  0x7a   : > { %v7621_v63 = vshll.u32 %v7582_v8, 16  ;;  %v1829_v38 = vor.u32 %v1828_v47, %v1827_v28  ;;  %v7622_v41 = vshrl.u32 %v7583_v34, 16  ;;  %v7623_v32 = vshll.u32 %v7583_v34, 16  ;;  %4817 = vmatprep.mubr.msk.bf16.mxu1 %vm420_vm0, %v5972_v11 }
  0x7b   : > { %v1832_v2 = vrot.slane %v7619_v15, 4  ;;  %v1835_v42 = vrot.slane %v7620_v53, 3  ;;  %v6160_v10 = vsel %vm729_vm1, %v1821_v0, %v1825_v54  ;;  %v7624_v21 = vshrl.u32 %v7585_v50, 16 }
  0x7c   : > { %v1836_v59 = vrot.slane %v7621_v63, 4  ;;  %v1839_v49 = vrot.slane %v7622_v41, 3  ;;  %v1840_v48 = vrot.slane %v7623_v32, 4  ;;  %v7625_v47 = vshll.u32 %v7585_v50, 16 }
  0x7d   : > { %v1833_v25 = vor.u32 %v1832_v2, %v1831_v39  ;;  %v1843_v28 = vrot.slane %v7624_v21, 3  ;;  %v6171_v15 = vsel %vm729_vm1, %v1825_v54, %v1829_v38  ;;  %v7627_v41 = vshll.u32 %v7587_v44, 16 }
  0x7e   : > { %v1837_v12 = vor.u32 %v1836_v59, %v1835_v42  ;;  %v1844_v39 = vrot.slane %v7625_v47, 4  ;;  %v1841_v0 = vor.u32 %v1840_v48, %v1839_v49  ;;  %v7626_v42 = vshrl.u32 %v7587_v44, 16 }
  0x7f   : > { %v6174_v2 = vsel %vm729_vm1, %v1829_v38, %v1833_v25  ;;  %v1848_v32 = vrot.slane %v7627_v41, 4  ;;  %v7628_v21 = vshrl.u32 %v5676_v56, 16  ;;  %v7629_v38 = vshll.u32 %v5676_v56, 16 }
  0x80   : > { %v1847_v53 = vrot.slane %v7626_v42, 3  ;;  %v6179_v63 = vsel %vm729_vm1, %v1833_v25, %v1837_v12  ;;  %v1845_v59 = vor.u32 %v1844_v39, %v1843_v28  ;;  %v6186_v54 = vsel %vm729_vm1, %v1837_v12, %v1841_v0 }
  0x81   : > { %v1851_v47 = vrot.slane %v7628_v21, 3  ;;  %v1852_v17 = vrot.slane %v7629_v38, 4  ;;  %v7630_v48 = vshrl.u32 %v5505_v46, 16  ;;  %v7631_v42 = vshll.u32 %v5505_v46, 16 }
  0x82   : > { %v6195_v28 = vsel %vm729_vm1, %v1841_v0, %v1845_v59  ;;  %v1849_v39 = vor.u32 %v1848_v32, %v1847_v53  ;;  %v6200_v41 = vsel %vm729_vm1, %v5930_v62, %v5985_v3  ;;  %v6205_v12 = vsel %vm1255_vm2, %v5989_v51, %v5979_v27 }
  0x83   : > { %v894_v49 = vrot.slane %v7630_v48, 3  ;;  %v897_v25 = vrot.slane %v7631_v42, 4  ;;  %7632 = vst [vmem:[#allocation12_spill] sm:$0xff] %v6200_v41  ;;  %7633 = vst [vmem:[#allocation61_spill] sm:$0xff] %v6205_v12  ;;  %v6210_v21 = vsel %vm729_vm1, %v5985_v3, %v5993_v36  ;;  %v6212_v38 = vor.u32 %v1852_v17, %v1851_v47  ;;  %4818 = vmatmul.mubr.msk.bf16.gmra.mrb[52].mxu1 %vm420_vm0, %v6200_v41 }
  0x84   : > { %7634 = vst [vmem:[#allocation62_spill] sm:$0xff] %v6210_v21  ;;  %v6217_v0 = vsel %vm1255_vm2, %v5998_v5, %v6002_v23  ;;  %v7636_v62 = vshrl.u32 %v7581_v37, 16  ;;  %v7637_v32 = vshll.u32 %v7581_v37, 16  ;;  %v6224_v27 = vsel %vm729_vm1, %v1845_v59, %v1849_v39  ;;  %4870 = vmatmul.mubr.msk.bf16.gmra.mrb[52].mxu0 %vm420_vm0, %v6205_v12  ;;  %4821 = vmatprep.mubr.msk.bf16.mxu1 %vm420_vm0, %v6210_v21  ;;  %v7640_v59 = vld [vmem:[#allocation13_spill] sm:$0xff]  ;;  %v7656_v21 = vld [vmem:[#allocation20_spill] sm:$0xff] }
  0x85   : > { %7635 = vst [vmem:[#allocation63_spill] sm:$0xff] %v6217_v0  ;;  %v6228_v3 = vsel %vm729_vm1, %v1849_v39, %v6212_v38  ;;  %v898_v17 = vor.u32 %v897_v25, %v894_v49  ;;  %v7638_v51 = vshrl.u32 %v5542_v1, 16  ;;  %v7639_v47 = vshll.u32 %v5552_v13, 16  ;;  %4873 = vmatprep.mubr.msk.bf16.mxu0 %vm420_vm0, %v6217_v0 }
  0x86   : > { %v903_v53 = vrot.slane %v7636_v62, 3  ;;  %v906_v48 = vrot.slane %v7637_v32, 4  ;;  %v7457_v39 = vshrl.u32 %v7640_v59, 16  ;;  %v7641_v32 = vld [vmem:[#allocation14_spill] sm:$0xff]  ;;  %v7646_v12 = vshll.u32 %v7640_v59, 16 }
  0x87   : > { %v1380_v5 = vor.u32 %v7638_v51, %v6002_v23  ;;  %v1383_v42 = vrot.slane %v7639_v47, 1  ;;  %v7642_v23 = vshrl.u32 %v5552_v13, 16  ;;  %v7643_v47 = vshll.u32 %v7582_v8, 16 }
  0x88   : > { %v907_v25 = vor.u32 %v906_v48, %v903_v53  ;;  %v6253_v55 = vsel %vm729_vm1, %v5993_v36, %v898_v17  ;;  %v912_v62 = vrot.slane %v7457_v39, 3  ;;  %v915_v49 = vrot.slane %v7646_v12, 4 }
  0x89   : > { %v1387_v51 = vor.u32 %v7642_v23, %v1383_v42  ;;  %v1390_v1 = vrot.slane %v7643_v47, 1  ;;  %7644 = vst [vmem:[#allocation13_spill] sm:$0xff] %v6253_v55  ;;  %v6256_v0 = vsel %vm1255_vm2, %v1380_v5, %v1383_v42  ;;  %v7647_v53 = vshrl.u32 %v7641_v32, 16  ;;  %v7652_v42 = vld [vmem:[#allocation17_spill] sm:$0xff] }
  0x8a   : > { %7645 = vst [vmem:[#allocation14_spill] sm:$0xff] %v6256_v0  ;;  %v7648_v23 = vshll.u32 %v7641_v32, 16  ;;  %v6267_v47 = vsel %vm729_vm1, %v898_v17, %v907_v25  ;;  %v7651_v12 = vshll.u32 %v7583_v34, 16  ;;  %v916_v17 = vor.u32 %v915_v49, %v912_v62 }
  0x8b   : > { %v921_v48 = vrot.slane %v7647_v53, 3  ;;  %7649 = vst [vmem:[#allocation64_spill] sm:$0xff] %v6267_v47  ;;  %v6270_v36 = vsel %vm1255_vm2, %v1387_v51, %v1390_v1  ;;  %4822 = vmatmul.mubr.msk.bf16.gmra.mrb[56].mxu1 %vm420_vm0, %v6253_v55  ;;  %v7653_v51 = vshrl.u32 %v7582_v8, 16  ;;  %v7466_v39 = vshrl.u32 %v7656_v21, 16  ;;  %v7659_v8 = vld [vmem:[#allocation37_spill] sm:$0xff] }
  0x8c   : > { %v924_v13 = vrot.slane %v7648_v23, 4  ;;  %7650 = vst [vmem:[#allocation65_spill] sm:$0xff] %v6270_v36  ;;  %4874 = vmatmul.mubr.msk.bf16.gmra.mrb[56].mxu0 %vm420_vm0, %v6256_v0  ;;  %v1397_v5 = vrot.slane %v7651_v12, 1  ;;  %4825 = vmatprep.mubr.msk.bf16.mxu1 %vm420_vm0, %v6267_v47  ;;  %v7654_v0 = vshrl.u32 %v7583_v34, 16  ;;  %v7655_v12 = vshll.u32 %v7585_v50, 16 }
  0x8d   : > { %4877 = vmatprep.mubr.msk.bf16.mxu0 %vm420_vm0, %v6270_v36  ;;  %v1394_v23 = vor.u32 %v7653_v51, %v1390_v1  ;;  %v7467_v41 = vshll.u32 %v7656_v21, 16  ;;  %v7657_v47 = vshrl.u32 %v7652_v42, 16  ;;  %v7658_v62 = vshll.u32 %v7652_v42, 16 }
  0x8e   : > { %v925_v43 = vor.u32 %v924_v13, %v921_v48  ;;  %v1401_v55 = vor.u32 %v7654_v0, %v1397_v5  ;;  %v1404_v53 = vrot.slane %v7655_v12, 1  ;;  %v4183_v1 = vcombine.low %v7659_v8, %v7659_v8 }
  0x8f   : > { %v930_v11 = vrot.slane %v7657_v47, 3  ;;  %v933_v49 = vrot.slane %v7658_v62, 4  ;;  %v6299_v13 = vsel %vm729_vm1, %v907_v25, %v916_v17  ;;  %v6302_v0 = vsel %vm1255_vm2, %v1394_v23, %v1397_v5  ;;  %v6315_v62 = vld [vmem:[%s5389_s27 + $0xcc] sm:$0xf] }
  0x90   : > { %7660 = vst [vmem:[#allocation17_spill] sm:$0xff] %v6302_v0  ;;  %v6305_v48 = vsel %vm729_vm1, %v916_v17, %v925_v43  ;;  %v6308_v51 = vsel %vm1255_vm2, %v1401_v55, %v1404_v53  ;;  %v939_v47 = vrot.slane %v7466_v39, 3  ;;  %v942_v12 = vrot.slane %v7467_v41, 4 }
  0x91   : > { %7661 = vst [vmem:[#allocation20_spill] sm:$0xff] %v6305_v48  ;;  %7662 = vst [vmem:[#allocation37_spill] sm:$0xff] %v6308_v51  ;;  %v934_v25 = vor.u32 %v933_v49, %v930_v11  ;;  %v7663_v5 = vshll.u32 %v7587_v44, 16  ;;  %v7664_v55 = vshrl.u32 %v7585_v50, 16  ;;  %v946_v39 = vshrl.u32 %v4183_v1, 16 }
  0x92   : > { %v949_v41 = vshll.u32 %v4183_v1, 16  ;;  %v4214_v34 = vcombine.low %v6315_v62, %v6315_v62  ;;  %v6331_v36 = vor.u32 %v942_v12, %v939_v47  ;;  %v7665_v11 = vshrl.u32 %v7587_v44, 16 }
  0x93   : > { %4826 = vmatmul.mubr.msk.bf16.gmra.mrb[60].mxu1 %vm420_vm0, %v6299_v13  ;;  %v1411_v17 = vrot.slane %v7663_v5, 1  ;;  %v1408_v23 = vor.u32 %v7664_v55, %v1404_v53  ;;  %v7666_v5 = vshll.u32 %v5676_v56, 16  ;;  %v948_v53 = vrot.slane %v946_v39, 3 }
  0x94   : > { %4878 = vmatmul.mubr.msk.bf16.gmra.mrb[60].mxu0 %vm420_vm0, %v6302_v0  ;;  %4829 = vmatprep.mubr.msk.bf16.mxu1 %vm420_vm0, %v6305_v48  ;;  %v6338_v48 = vsel %vm729_vm1, %v925_v43, %v934_v25  ;;  %v951_v55 = vrot.slane %v949_v41, 4  ;;  %v1424_v1 = vshll.u32 %v4214_v34, 16  ;;  %v6345_v50 = vsel %vm729_vm1, %v934_v25, %v6331_v36 }
  0x95   : > { %4881 = vmatprep.mubr.msk.bf16.mxu0 %vm420_vm0, %v6308_v51  ;;  %v1415_v49 = vor.u32 %v7665_v11, %v1411_v17  ;;  %v1418_v0 = vrot.slane %v7666_v5, 1  ;;  %v6341_v51 = vsel %vm1255_vm2, %v1408_v23, %v1411_v17  ;;  %v7669_v34 = vshrl.u32 %v5676_v56, 16  ;;  %v7671_v17 = vld [vmem:[#allocation21_spill] sm:$0xff]  ;;  %v5294_v23 = vld [vmem:[%s7350_s1 + $0x68] sm:$0xff]   ;;  %v7672_v11 = vld [vmem:[#allocation26_spill] sm:$0xff] }
  0x96   : > { %7667 = vst [vmem:[#allocation66_spill] sm:$0xff] %v6341_v51  ;;  %v952_v43 = vor.u32 %v951_v55, %v948_v53  ;;  %v1426_v39 = vrot.slane %v1424_v1, 1  ;;  %v7679_v5 = vld [vmem:[#allocation38_spill] sm:$0xff] }
  0x97   : > { %v6348_v47 = vsel %vm1255_vm2, %v1415_v49, %v1418_v0  ;;  %v6360_v41 = vor.u32 %v7669_v34, %v1418_v0  ;;  %v5293_v0 = vld [vmem:[%s7350_s1 + $0x58] sm:$0xff]   ;;  %v6391_v49 = vld [vmem:[%s7350_s1 + $0x70] sm:$0xff]  }
  0x98   : > { %7668 = vst [vmem:[#allocation67_spill] sm:$0xff] %v6348_v47  ;;  %v953_v12 = vsel %vm729_vm1, %v6331_v36, %v952_v43 }
  0x99   : > { %7670 = vst [vmem:[#allocation68_spill] sm:$0xff] %v6360_v41  ;;  %v1427_v25 = vsel %vm1255_vm2, %v6360_v41, %v1426_v39 }
  0x9b   : > { %4830 = vmatmul.mubr.msk.bf16.gmra.mrb[64].mxu1 %vm420_vm0, %v6338_v48 }
  0x9c   : > { %4882 = vmatmul.mubr.msk.bf16.gmra.mrb[64].mxu0 %vm420_vm0, %v6341_v51  ;;  %4833 = vmatprep.mubr.msk.bf16.mxu1 %vm420_vm0, %v6345_v50 }
  0x9d   : > { %4885 = vmatprep.mubr.msk.bf16.mxu0 %vm420_vm0, %v6348_v47 }
  0xa3   : > { %4834 = vmatmul.mubr.msk.bf16.gmra.mrb[68].mxu1 %vm420_vm0, %v953_v12  ;;  %v7682_v12 = vld [vmem:[#allocation5_spill] sm:$0xff] }
  0xa4   : > { %4886 = vmatmul.mubr.msk.bf16.gmra.mrb[68].mxu0 %vm420_vm0, %v1427_v25  ;;  %4893 = vmatprep.mubr.msk.bf16.mxu1 %vm420_vm0, %v6052_v14  ;;  %v7673_v14 = vld [vmem:[#allocation27_spill] sm:$0xff]  ;;  %v7683_v25 = vld [vmem:[#allocation8_spill] sm:$0xff] }
  0xa5   : > { %4945 = vmatprep.mubr.msk.bf16.mxu0 %vm420_vm0, %v7671_v17 }
  0xab   : > { %4894 = vmatmul.mubr.msk.bf16.vlgmr.msra.gmra.mrb[72].mxu1 %vm420_vm0, %v6055_v19  ;;  %v6396_v19 = vld [vmem:[%s7350_s1 + $0x80] sm:$0xff]  }
  0xac   : > { %4946 = vmatmul.mubr.msk.bf16.vlgmr.msra.gmra.mrb[72].mxu0 %vm420_vm0, %v7672_v11  ;;  %4994 = vmatpush3.bf16.msra.mxu1 %v5793_v29  ;;  %v7674_v29 = vld [vmem:[#allocation28_spill] sm:$0xff] }
  0xad   : > { %5046 = vmatpush3.bf16.msra.mxu0 %v5798_v30  ;;  %4897 = vmatprep.mubr.msk.bf16.mxu1 %vm420_vm0, %v6064_v22  ;;  %v7675_v30 = vld [vmem:[#allocation29_spill] sm:$0xff]  ;;  %v7676_v22 = vld [vmem:[#allocation30_spill] sm:$0xff] }
  0xae   : > { %4949 = vmatprep.mubr.msk.bf16.mxu0 %vm420_vm0, %v7673_v14  ;;  %4995 = vmatprep.subr.bf16.mxu1 %v5293_v0 }
  0xaf   : > { %5047 = vmatprep.subr.bf16.mxu0 %v5294_v23 }
  0xb0   : > { %4996 = vmatpush3.bf16.msra.mxu1 %v5293_v0 }
  0xb1   : > { %5048 = vmatpush3.bf16.msra.mxu0 %v5294_v23  ;;  %5097 = vmatprep.subr.bf16.mxu1 %v6391_v49 }
  0xb2   : > { %5149 = vmatprep.subr.bf16.mxu0 %v6396_v19 }
  0xb3   : > { %4898 = vmatmul.mubr.msk.bf16.gmra.mrb[76].mxu1 %vm420_vm0, %v6071_v31  ;;  %v7677_v31 = vld [vmem:[#allocation35_spill] sm:$0xff] }
  0xb4   : > { %4950 = vmatmul.mubr.msk.bf16.gmra.mrb[76].mxu0 %vm420_vm0, %v7674_v29  ;;  %4901 = vmatprep.mubr.msk.bf16.mxu1 %vm420_vm0, %v6074_v4  ;;  %v7678_v4 = vld [vmem:[#allocation36_spill] sm:$0xff] }
  0xb5   : > { %4953 = vmatprep.mubr.msk.bf16.mxu0 %vm420_vm0, %v7675_v30 }
  0xbb   : > { %4902 = vmatmul.mubr.msk.bf16.gmra.mrb[80].mxu1 %vm420_vm0, %v6079_v7  ;;  %v273_v7 = vld [vmem:[%s5389_s27 + $0xd0] sm:$0xf] }
  0xbc   : > { %4954 = vmatmul.mubr.msk.bf16.gmra.mrb[80].mxu0 %vm420_vm0, %v7676_v22  ;;  %4905 = vmatprep.mubr.msk.bf16.mxu1 %vm420_vm0, %v6086_v61  ;;  %v6435_v61 = vcombine.low %v7659_v8, %v6315_v62 }
  0xbd   : > { %4957 = vmatprep.mubr.msk.bf16.mxu0 %vm420_vm0, %v7677_v31 }
  0xc3   : > { %4906 = vmatmul.mubr.msk.bf16.gmra.mrb[84].mxu1 %vm420_vm0, %v6099_v58  ;;  %v274_v58 = vld [vmem:[%s5389_s27 + $0xd4] sm:$0xf] }
  0xc4   : > { %4958 = vmatmul.mubr.msk.bf16.gmra.mrb[84].mxu0 %vm420_vm0, %v7678_v4  ;;  %4909 = vmatprep.mubr.msk.bf16.mxu1 %vm420_vm0, %v6114_v24  ;;  %v6438_v24 = vcombine.low %v273_v7, %v274_v58 }
  0xc5   : > { %4961 = vmatprep.mubr.msk.bf16.mxu0 %vm420_vm0, %v7679_v5 }
  0xc6   : > { %v2588_v8 = vshll.u32 %v6438_v24, 16  ;;  %v7474_v53 = vshrl.u32 %v6438_v24, 16 }
  0xc8   : > { %v2941_v43 = vrot.slane %v2588_v8, 4  ;;  %v6473_v23 = vrot.slane %v2588_v8, 1 }
  0xca   : > { %7684 = vst [vmem:[#allocation27_spill] sm:$0xff] %v6473_v23 }
  0xcb   : > { %4910 = vmatmul.mubr.msk.bf16.gmra.mrb[88].mxu1 %vm420_vm0, %v6121_v18  ;;  %v2581_v18 = vshll.u32 %v6435_v61, 16 }
  0xcc   : > { %4962 = vmatmul.mubr.msk.bf16.gmra.mrb[88].mxu0 %vm420_vm0, %v5686_v45  ;;  %4913 = vmatprep.mubr.msk.bf16.mxu1 %vm420_vm0, %v6124_v33  ;;  %v2585_v33 = vshrl.u32 %v6435_v61, 16 }
  0xcd   : > { %4965 = vmatprep.mubr.msk.bf16.mxu0 %vm420_vm0, %v5689_v52  ;;  %v2937_v1 = vrot.slane %v2581_v18, 4  ;;  %v6471_v0 = vrot.slane %v2581_v18, 1 }
  0xce   : > { %v2936_v55 = vrot.slane %v2585_v33, 3 }
  0xd0   : > { %v6454_v34 = vor.u32 %v2937_v1, %v2936_v55  ;;  %v2587_v55 = vor.u32 %v2585_v33, %v6471_v0 }
  0xd2   : > { %v6478_v1 = vsel %vm1255_vm2, %v2587_v55, %v6473_v23 }
  0xd3   : > { %4914 = vmatmul.mubr.msk.bf16.gmra.mrb[92].mxu1 %vm420_vm0, %v6129_v9  ;;  %v2940_v9 = vrot.slane %v7474_v53, 3  ;;  %7685 = vst [vmem:[#allocation28_spill] sm:$0xff] %v6478_v1 }
  0xd4   : > { %4966 = vmatmul.mubr.msk.bf16.gmra.mrb[92].mxu0 %vm420_vm0, %v5436_v20  ;;  %4917 = vmatprep.mubr.msk.bf16.mxu1 %vm420_vm0, %v6136_v57 }
  0xd5   : > { %4969 = vmatprep.mubr.msk.bf16.mxu0 %vm420_vm0, %v5455_v26  ;;  %v6456_v39 = vor.u32 %v2941_v43, %v2940_v9  ;;  %v4246_v9 = vcombine.low %v274_v58, %v274_v58 }
  0xd7   : > { %7680 = vst [vmem:[#allocation21_spill] sm:$0xff] %v6456_v39  ;;  %v6461_v57 = vsel %vm729_vm1, %v6454_v34, %v6456_v39  ;;  %v1865_v58 = vshrl.u32 %v4246_v9, 16 }
  0xd8   : > { %7681 = vst [vmem:[#allocation26_spill] sm:$0xff] %v6461_v57 }
  0xd9   : > { %v1867_v41 = vrot.slane %v1865_v58, 3 }
  0xdb   : > { %4918 = vmatmul.mubr.msk.bf16.gmra.mrb[96].mxu1 %vm420_vm0, %v6145_v16  ;;  %v7686_v16 = vld [vmem:[#allocation11_spill] sm:$0xff] }
  0xdc   : > { %4970 = vmatmul.mubr.msk.bf16.gmra.mrb[96].mxu0 %vm420_vm0, %v7682_v12  ;;  %4921 = vmatprep.mubr.msk.bf16.mxu1 %vm420_vm0, %v6160_v10  ;;  %v6489_v10 = vcombine.low %v6315_v62, %v273_v7 }
  0xdd   : > { %4973 = vmatprep.mubr.msk.bf16.mxu0 %vm420_vm0, %v7683_v25 }
  0xde   : > { %7687 = vst [vmem:[#allocation29_spill] sm:$0xff] %v6489_v10 }
  0xe3   : > { %4922 = vmatmul.mubr.msk.bf16.gmra.mrb[100].mxu1 %vm420_vm0, %v6171_v15  ;;  %v7476_v15 = vshrl.u32 %v6489_v10, 16 }
  0xe4   : > { %4974 = vmatmul.mubr.msk.bf16.gmra.mrb[100].mxu0 %vm420_vm0, %v7686_v16  ;;  %4925 = vmatprep.mubr.msk.bf16.mxu1 %vm420_vm0, %v6174_v2  ;;  %v7477_v2 = vshll.u32 %v6489_v10, 16 }
  0xe5   : > { %4977 = vmatprep.mubr.msk.bf16.mxu0 %vm420_vm0, %v5505_v46  ;;  %v1858_v55 = vrot.slane %v7476_v15, 3 }
  0xeb   : > { %4926 = vmatmul.mubr.msk.bf16.gmra.mrb[104].mxu1 %vm420_vm0, %v6179_v63  ;;  %v4739_v18 = vpop.f32.mrb[0].mxu0 }
  0xec   : > { %4978 = vmatmul.mubr.msk.bf16.gmra.mrb[104].mxu0 %vm420_vm0, %v7581_v37  ;;  %4929 = vmatprep.mubr.msk.bf16.mxu1 %vm420_vm0, %v6186_v54  ;;  %v4763_v33 = vpop.f32.mrb[0].mxu1  ;;  %v6501_v62 = vpop.f32.mrb[1].mxu0  ;;  %v1861_v18 = vrot.slane %v7477_v2, 4 }
  0xed   : > { %4981 = vmatprep.mubr.msk.bf16.mxu0 %vm420_vm0, %v7640_v59  ;;  %v6503_v7 = vpop.f32.mrb[1].mxu1  ;;  %v6505_v63 = vpop.f32.mrb[2].mxu0  ;;  %v1868_v33 = vshll.u32 %v4246_v9, 16 }
  0xee   : > { %v6507_v8 = vpop.f32.mrb[2].mxu1  ;;  %v6509_v43 = vpop.f32.mrb[3].mxu0  ;;  %v1862_v53 = vor.u32 %v1861_v18, %v1858_v55  ;;  %v7689_v55 = vshll.u32 %v7671_v17, 16 }
  0xef   : > { %v6511_v54 = vpop.f32.mrb[3].mxu1 }
  0xf0   : > { %v1863_v9 = vsel %vm729_vm1, %v6212_v38, %v1862_v53  ;;  %v2516_v18 = vrot.slane %v7689_v55, 1  ;;  %v7691_v38 = vshll.u32 %v7672_v11, 16 }
  0xf3   : > { %4930 = vmatmul.mubr.msk.bf16.gmra.mrb[108].mxu1 %vm420_vm0, %v6195_v28  ;;  %v6525_v56 = vpop.f32.mrb[4].mxu0 }
  0xf4   : > { %4982 = vmatmul.mubr.msk.bf16.gmra.mrb[108].mxu0 %vm420_vm0, %v7641_v32  ;;  %4933 = vmatprep.mubr.msk.bf16.mxu1 %vm420_vm0, %v6224_v27  ;;  %v6527_v15 = vpop.f32.mrb[4].mxu1  ;;  %v6529_v2 = vpop.f32.mrb[5].mxu0  ;;  %v1870_v27 = vrot.slane %v1868_v33, 4  ;;  %v2518_v33 = vrot.slane %v7691_v38, 1 }
  0xf5   : > { %4985 = vmatprep.mubr.msk.bf16.mxu0 %vm420_vm0, %v7652_v42  ;;  %v6531_v47 = vpop.f32.mrb[5].mxu1  ;;  %v6533_v28 = vpop.f32.mrb[6].mxu0 }
  0xf6   : > { %v6535_v44 = vpop.f32.mrb[6].mxu1  ;;  %v545_v10 = vpop.f32.mrb[7].mxu0  ;;  %v1871_v58 = vor.u32 %v1870_v27, %v1867_v41 }
  0xf7   : > { %7688 = vst [vmem:[#allocation30_spill] sm:$0xff] %v6535_v44  ;;  %v633_v51 = vpop.f32.mrb[7].mxu1 }
  0xf8   : > { %v7690_v51 = vshrl.u32 %v7671_v17, 16  ;;  %v7693_v17 = vshrl.u32 %v7672_v11, 16 }
  0xfa   : > { %v2517_v10 = vor.u32 %v2516_v18, %v7690_v51  ;;  %v2520_v27 = vor.u32 %v2518_v33, %v7693_v17 }
  0xfb   : > { %4934 = vmatmul.mubr.msk.bf16.gmra.mrb[112].mxu1 %vm420_vm0, %v6228_v3  ;;  %v6552_v23 = vpop.f32.mrb[8].mxu0 }
  0xfc   : > { %4986 = vmatmul.mubr.msk.bf16.gmra.mrb[112].mxu0 %vm420_vm0, %v7656_v21  ;;  %4937 = vmatprep.mubr.msk.bf16.mxu1 %vm420_vm0, %v1863_v9  ;;  %v6554_v55 = vpop.f32.mrb[8].mxu1  ;;  %v557_v3 = vpop.f32.mrb[9].mxu0  ;;  %v1872_v9 = vsel %vm729_vm1, %v1862_v53, %v1871_v58  ;;  %v2519_v41 = vsel %vm1255_vm2, %v2517_v10, %v2518_v33  ;;  %v7695_v53 = vshll.u32 %v7673_v14, 16  ;;  %v7696_v58 = vshrl.u32 %v7673_v14, 16 }
  0xfd   : > { %4989 = vmatprep.mubr.msk.bf16.mxu0 %vm420_vm0, %v6435_v61  ;;  %v645_v1 = vpop.f32.mrb[9].mxu1  ;;  %v4748_v57 = vpop.f32.mrb[10].mxu0  ;;  %v7697_v10 = vshll.u32 %v7674_v29, 16 }
  0xfe   : > { %v4772_v39 = vpop.f32.mrb[10].mxu1  ;;  %v6557_v44 = vpop.f32.mrb[11].mxu0  ;;  %v7694_v57 = vld [vmem:[#allocation41_spill] sm:$0xff] }
  0xff   : > { %v6559_v61 = vpop.f32.mrb[11].mxu1  ;;  %v2521_v39 = vrot.slane %v7695_v53, 1  ;;  %v2524_v38 = vrot.slane %v7697_v10, 1  ;;  %v5300_v53 = vld [vmem:[%s7350_s1 + $0x78] sm:$0xff]  }
 0x100   : > { %7692 = vst [vmem:[#allocation35_spill] sm:$0xff] %v6559_v61  ;;  %v7704_v10 = vld [vmem:[#allocation45_spill] sm:$0xff] }
 0x101   : > { %v2523_v51 = vor.u32 %v2521_v39, %v7696_v58  ;;  %v7703_v58 = vshrl.u32 %v7674_v29, 16 }
 0x103   : > { %4938 = vmatmul.mubr.msk.bf16.gmra.mrb[116].mxu1 %vm420_vm0, %v1872_v9  ;;  %v4751_v1 = vpop.f32.mrb[12].mxu0  ;;  %v2525_v14 = vsel %vm1255_vm2, %v2523_v51, %v2524_v38  ;;  %v2526_v51 = vor.u32 %v2524_v38, %v7703_v58 }
 0x104   : > { %4990 = vmatmul.mubr.msk.bf16.gmra.mrb[116].mxu0 %vm420_vm0, %v6438_v24  ;;  %4997 = vmatprep.mubr.msk.bf16.mxu1 %vm420_vm0, %v2519_v41  ;;  %v4775_v18 = vpop.f32.mrb[12].mxu1  ;;  %v6576_v3 = vpop.f32.mrb[13].mxu0  ;;  %v2522_v41 = vsel %vm1255_vm2, %v2520_v27, %v2521_v39  ;;  %v5301_v1 = vld [vmem:[%s7350_s1 + $0x88] sm:$0xff]   ;;  %v7702_v27 = vshll.u32 %v7675_v30, 16 }
 0x105   : > { %5049 = vmatprep.mubr.msk.bf16.mxu0 %vm420_vm0, %v7694_v57  ;;  %v6578_v11 = vpop.f32.mrb[13].mxu1  ;;  %v6580_v33 = vpop.f32.mrb[14].mxu0  ;;  %v7701_v18 = vld [vmem:[#allocation43_spill] sm:$0xff] }
 0x106   : > { %7698 = vst [vmem:[#allocation36_spill] sm:$0xff] %v6578_v11  ;;  %v6582_v9 = vpop.f32.mrb[14].mxu1  ;;  %v6585_v17 = vpop.f32.mrb[15].mxu0  ;;  %v2527_v39 = vrot.slane %v7702_v27, 1 }
 0x107   : > { %7699 = vst [vmem:[#allocation38_spill] sm:$0xff] %v6582_v9  ;;  %v6587_v57 = vpop.f32.mrb[15].mxu1 }
 0x108   : > { %7700 = vst [vmem:[#allocation5_spill] sm:$0xff] %v6587_v57 }
 0x10b   : > { %4998 = vmatmul.mubr.msk.bf16.vlgmr.msra.gmra.mrb[120].mxu1 %vm420_vm0, %v2522_v41  ;;  %v7705_v41 = vshrl.u32 %v7675_v30, 16  ;;  %v6612_v11 = vpop.f32.mrb[16].mxu0  ;;  %v2528_v30 = vsel %vm1255_vm2, %v2526_v51, %v2527_v39 }
 0x10c   : > { %5050 = vmatmul.mubr.msk.bf16.vlgmr.msra.gmra.mrb[120].mxu0 %vm420_vm0, %v7701_v18  ;;  %5098 = vmatpush3.bf16.msra.mxu1 %v6391_v49  ;;  %v7706_v18 = vshll.u32 %v7676_v22, 16  ;;  %v6614_v27 = vpop.f32.mrb[16].mxu1  ;;  %v6616_v49 = vpop.f32.mrb[17].mxu0 }
 0x10d   : > { %5150 = vmatpush3.bf16.msra.mxu0 %v6396_v19  ;;  %5001 = vmatprep.mubr.msk.bf16.mxu1 %vm420_vm0, %v2525_v14  ;;  %v2529_v57 = vor.u32 %v2527_v39, %v7705_v41  ;;  %7707 = vst [vmem:[#allocation8_spill] sm:$0xff] %v6614_v27  ;;  %v6618_v19 = vpop.f32.mrb[17].mxu1  ;;  %v6620_v29 = vpop.f32.mrb[18].mxu0  ;;  %v7710_v41 = vld [vmem:[#allocation47_spill] sm:$0xff]  ;;  %v7712_v27 = vld [vmem:[#allocation49_spill] sm:$0xff]  ;;  %v7714_v39 = vshrl.u32 %v7677_v31, 16 }
 0x10e   : > { %5053 = vmatprep.mubr.msk.bf16.mxu0 %vm420_vm0, %v7704_v10  ;;  %v2530_v9 = vrot.slane %v7706_v18, 1  ;;  %5099 = vmatprep.subr.bf16.mxu1 %v5300_v53  ;;  %7708 = vst [vmem:[#allocation11_spill] sm:$0xff] %v6618_v19  ;;  %v6622_v38 = vpop.f32.mrb[18].mxu1  ;;  %v589_v14 = vpop.f32.mrb[19].mxu0  ;;  %v7711_v18 = vshll.u32 %v7677_v31, 16 }
 0x10f   : > { %5151 = vmatprep.subr.bf16.mxu0 %v5301_v1  ;;  %7709 = vst [vmem:[#allocation41_spill] sm:$0xff] %v6622_v38  ;;  %v677_v58 = vpop.f32.mrb[19].mxu1 }
 0x110   : > { %5100 = vmatpush3.bf16.msra.mxu1 %v5300_v53  ;;  %v2531_v10 = vsel %vm1255_vm2, %v2529_v57, %v2530_v9  ;;  %v2533_v19 = vrot.slane %v7711_v18, 1  ;;  %v7713_v53 = vshrl.u32 %v7676_v22, 16  ;;  %v7715_v57 = vshll.u32 %v7678_v4, 16 }
 0x111   : > { %5152 = vmatpush3.bf16.msra.mxu0 %v5301_v1 }
 0x112   : > { %v2532_v1 = vor.u32 %v2530_v9, %v7713_v53  ;;  %v2535_v51 = vor.u32 %v2533_v19, %v7714_v39  ;;  %v7718_v9 = vld [vmem:[#allocation51_spill] sm:$0xff]  ;;  %v7719_v53 = vshll.u32 %v7679_v5, 16 }
 0x113   : > { %5002 = vmatmul.mubr.msk.bf16.gmra.mrb[124].mxu1 %vm420_vm0, %v2528_v30  ;;  %v2536_v30 = vrot.slane %v7715_v57, 1  ;;  %v6640_v14 = vpop.f32.mrb[20].mxu0 }
 0x114   : > { %5054 = vmatmul.mubr.msk.bf16.gmra.mrb[124].mxu0 %vm420_vm0, %v7710_v41  ;;  %5005 = vmatprep.mubr.msk.bf16.mxu1 %vm420_vm0, %v2531_v10  ;;  %v6642_v58 = vpop.f32.mrb[20].mxu1  ;;  %v601_v41 = vpop.f32.mrb[21].mxu0  ;;  %v2534_v61 = vsel %vm1255_vm2, %v2532_v1, %v2533_v19  ;;  %v2539_v39 = vrot.slane %v7719_v53, 1  ;;  %v7720_v19 = vshrl.u32 %v7678_v4, 16  ;;  %v7721_v1 = vshrl.u32 %v7679_v5, 16 }
 0x115   : > { %5057 = vmatprep.mubr.msk.bf16.mxu0 %vm420_vm0, %v7712_v27  ;;  %7716 = vst [vmem:[#allocation43_spill] sm:$0xff] %v6642_v58  ;;  %v689_v18 = vpop.f32.mrb[21].mxu1  ;;  %v4760_v38 = vpop.f32.mrb[22].mxu0  ;;  %v2537_v31 = vsel %vm1255_vm2, %v2535_v51, %v2536_v30  ;;  %v7722_v51 = vshll.u32 %v5686_v45, 16 }
 0x116   : > { %v4784_v10 = vpop.f32.mrb[22].mxu1  ;;  %v6645_v27 = vpop.f32.mrb[23].mxu0  ;;  %v2538_v38 = vor.u32 %v2536_v30, %v7720_v19  ;;  %v2541_v57 = vor.u32 %v2539_v39, %v7721_v1 }
 0x117   : > { %v6647_v22 = vpop.f32.mrb[23].mxu1 }
 0x118   : > { %7717 = vst [vmem:[#allocation45_spill] sm:$0xff] %v6647_v22  ;;  %v2540_v58 = vsel %vm1255_vm2, %v2538_v38, %v2539_v39 }
 0x11b   : > { %5006 = vmatmul.mubr.msk.bf16.gmra.mrb[128].mxu1 %vm420_vm0, %v2534_v61  ;;  %v2542_v61 = vrot.slane %v7722_v51, 1  ;;  %v4843_v18 = vpop.f32.mrb[24].mxu0 }
 0x11c   : > { %5058 = vmatmul.mubr.msk.bf16.gmra.mrb[128].mxu0 %vm420_vm0, %v7718_v9  ;;  %5009 = vmatprep.mubr.msk.bf16.mxu1 %vm420_vm0, %v2537_v31  ;;  %v4791_v41 = vpop.f32.mrb[24].mxu1  ;;  %v1546_v9 = vpop.f32.mrb[25].mxu0 }
 0x11d   : > { %5061 = vmatprep.mubr.msk.bf16.mxu0 %vm420_vm0, %v5860_v40  ;;  %v1072_v10 = vpop.f32.mrb[25].mxu1  ;;  %v4844_v31 = vpop.f32.mrb[26].mxu0  ;;  %v2543_v5 = vsel %vm1255_vm2, %v2541_v57, %v2542_v61  ;;  %v7723_v41 = vld [vmem:[#allocation54_spill] sm:$0xff] }
 0x11e   : > { %v1073_v53 = vadd.f32 %v1072_v10, %v6501_v62  ;;  %v4792_v22 = vpop.f32.mrb[26].mxu1  ;;  %v1549_v30 = vpop.f32.mrb[27].mxu0  ;;  %v7724_v62 = vshll.u32 %v5689_v52, 16 }
 0x11f   : > { %v1083_v40 = vadd.f32 %v4792_v22, %v6505_v63  ;;  %v1075_v4 = vpop.f32.mrb[27].mxu1  ;;  %v7725_v63 = vshrl.u32 %v5686_v45, 16  ;;  %v7726_v22 = vshrl.u32 %v5689_v52, 16 }
 0x120   : > { %v6668_v19 = vadd.f32 %v1546_v9, %v1073_v53  ;;  %v1076_v1 = vadd.f32 %v1075_v4, %v6509_v43  ;;  %v2545_v39 = vrot.slane %v7724_v62, 1 }
 0x121   : > { %v6671_v51 = vadd.f32 %v4844_v31, %v1083_v40  ;;  %v2544_v43 = vor.u32 %v2542_v61, %v7725_v63 }
 0x122   : > { %v6678_v38 = vadd.f32 %v1549_v30, %v1076_v1  ;;  %v2547_v57 = vor.u32 %v2545_v39, %v7726_v22 }
 0x123   : > { %5010 = vmatmul.mubr.msk.bf16.gmra.mrb[132].mxu1 %vm420_vm0, %v2540_v58  ;;  %v7727_v58 = vshll.u32 %v5436_v20, 16  ;;  %v4847_v9 = vpop.f32.mrb[28].mxu0 }
 0x124   : > { %5062 = vmatmul.mubr.msk.bf16.gmra.mrb[132].mxu0 %vm420_vm0, %v7723_v41  ;;  %5013 = vmatprep.mubr.msk.bf16.mxu1 %vm420_vm0, %v2543_v5  ;;  %v4795_v10 = vpop.f32.mrb[28].mxu1  ;;  %v1561_v40 = vpop.f32.mrb[29].mxu0 }
 0x125   : > { %5065 = vmatprep.mubr.msk.bf16.mxu0 %vm420_vm0, %v5938_v35  ;;  %v2548_v18 = vrot.slane %v7727_v58, 1  ;;  %v1095_v53 = vadd.f32 %v4795_v10, %v6525_v56  ;;  %v1087_v31 = vpop.f32.mrb[29].mxu1  ;;  %v4848_v5 = vpop.f32.mrb[30].mxu0  ;;  %v2546_v35 = vsel %vm1255_vm2, %v2544_v43, %v2545_v39  ;;  %v7728_v56 = vshll.u32 %v5455_v26, 16 }
 0x126   : > { %v1088_v4 = vadd.f32 %v1087_v31, %v6529_v2  ;;  %v4796_v30 = vpop.f32.mrb[30].mxu1  ;;  %v1564_v1 = vpop.f32.mrb[31].mxu0  ;;  %v7730_v43 = vshrl.u32 %v5455_v26, 16 }
 0x127   : > { %v6692_v45 = vadd.f32 %v4847_v9, %v1095_v53  ;;  %v1098_v52 = vadd.f32 %v4796_v30, %v6533_v28  ;;  %v1090_v61 = vpop.f32.mrb[31].mxu1  ;;  %v2549_v41 = vsel %vm1255_vm2, %v2547_v57, %v2548_v18  ;;  %v2551_v2 = vrot.slane %v7728_v56, 1  ;;  %v7734_v1 = vld [vmem:[#allocation12_spill] sm:$0xff] }
 0x128   : > { %v6696_v62 = vadd.f32 %v1561_v40, %v1088_v4  ;;  %v7729_v28 = vshrl.u32 %v5436_v20, 16  ;;  %v7731_v57 = vshll.u32 %v7682_v12, 16 }
 0x129   : > { %v6698_v63 = vadd.f32 %v4848_v5, %v1098_v52  ;;  %v2553_v22 = vor.u32 %v2551_v2, %v7730_v43 }
 0x12a   : > { %v2550_v39 = vor.u32 %v2548_v18, %v7729_v28  ;;  %v2554_v58 = vrot.slane %v7731_v57, 1  ;;  %v7737_v28 = vshll.u32 %v7686_v16, 16 }
 0x12b   : > { %5014 = vmatmul.mubr.msk.bf16.gmra.mrb[136].mxu1 %vm420_vm0, %v2546_v35  ;;  %v4851_v9 = vpop.f32.mrb[32].mxu0  ;;  %v7732_v35 = vld [vmem:[#allocation59_spill] sm:$0xff] }
 0x12c   : > { %5066 = vmatmul.mubr.msk.bf16.gmra.mrb[136].mxu0 %vm420_vm0, %v5955_v60  ;;  %5017 = vmatprep.mubr.msk.bf16.mxu1 %vm420_vm0, %v2549_v41  ;;  %v4799_v10 = vpop.f32.mrb[32].mxu1  ;;  %v1576_v31 = vpop.f32.mrb[33].mxu0  ;;  %v2552_v30 = vsel %vm1255_vm2, %v2550_v39, %v2551_v2  ;;  %v2555_v26 = vsel %vm1255_vm2, %v2553_v22, %v2554_v58  ;;  %v7735_v41 = vshrl.u32 %v7682_v12, 16  ;;  %v2560_v39 = vrot.slane %v7737_v28, 1 }
 0x12d   : > { %5069 = vmatprep.mubr.msk.bf16.mxu0 %vm420_vm0, %v5961_v6  ;;  %v1110_v60 = vadd.f32 %v4799_v10, %v6552_v23  ;;  %v1102_v53 = vpop.f32.mrb[33].mxu1  ;;  %v4852_v4 = vpop.f32.mrb[34].mxu0  ;;  %v7733_v23 = vshll.u32 %v7683_v25, 16 }
 0x12e   : > { %v4800_v40 = vpop.f32.mrb[34].mxu1  ;;  %v1578_v18 = vpop.f32.mrb[35].mxu0  ;;  %v2556_v56 = vor.u32 %v2554_v58, %v7735_v41 }
 0x12f   : > { %v6716_v6 = vadd.f32 %v4851_v9, %v1110_v60  ;;  %v1104_v20 = vpop.f32.mrb[35].mxu1  ;;  %v2557_v52 = vrot.slane %v7733_v23, 1  ;;  %v7742_v23 = vshrl.u32 %v5505_v46, 16 }
 0x130   : > { %v1105_v5 = vadd.f32 %v1104_v20, %v6557_v44  ;;  %v7736_v44 = vshrl.u32 %v7683_v25, 16 }
 0x131   : > { %v2558_v31 = vsel %vm1255_vm2, %v2556_v56, %v2557_v52 }
 0x132   : > { %v6725_v61 = vadd.f32 %v1578_v18, %v1105_v5  ;;  %v2559_v2 = vor.u32 %v2557_v52, %v7736_v44  ;;  %v7738_v18 = vld [vmem:[#allocation62_spill] sm:$0xff] }
 0x133   : > { %5018 = vmatmul.mubr.msk.bf16.gmra.mrb[140].mxu1 %vm420_vm0, %v2552_v30  ;;  %v4855_v22 = vpop.f32.mrb[36].mxu0 }
 0x134   : > { %5070 = vmatmul.mubr.msk.bf16.gmra.mrb[140].mxu0 %vm420_vm0, %v7732_v35  ;;  %5021 = vmatprep.mubr.msk.bf16.mxu1 %vm420_vm0, %v2555_v26  ;;  %v4803_v43 = vpop.f32.mrb[36].mxu1  ;;  %v1590_v10 = vpop.f32.mrb[37].mxu0  ;;  %v2561_v25 = vsel %vm1255_vm2, %v2559_v2, %v2560_v39  ;;  %v7741_v35 = vshrl.u32 %v7686_v16, 16 }
 0x135   : > { %5073 = vmatprep.mubr.msk.bf16.mxu0 %vm420_vm0, %v7734_v1  ;;  %v1116_v57 = vpop.f32.mrb[37].mxu1  ;;  %v4856_v53 = vpop.f32.mrb[38].mxu0  ;;  %v7743_v1 = vshll.u32 %v7581_v37, 16 }
 0x136   : > { %v1117_v9 = vadd.f32 %v1116_v57, %v6576_v3  ;;  %v4804_v60 = vpop.f32.mrb[38].mxu1  ;;  %v1593_v58 = vpop.f32.mrb[39].mxu0  ;;  %v7739_v3 = vshll.u32 %v5505_v46, 16 }
 0x137   : > { %v1127_v40 = vadd.f32 %v4804_v60, %v6580_v33  ;;  %v1119_v12 = vpop.f32.mrb[39].mxu1  ;;  %v7740_v33 = vld [vmem:[#allocation13_spill] sm:$0xff]  ;;  %v2566_v41 = vrot.slane %v7743_v1, 1 }
 0x138   : > { %v6740_v4 = vadd.f32 %v1590_v10, %v1117_v9  ;;  %v1120_v30 = vadd.f32 %v1119_v12, %v6585_v17  ;;  %v2563_v26 = vrot.slane %v7739_v3, 1  ;;  %v2562_v17 = vor.u32 %v2560_v39, %v7741_v35  ;;  %v6787_v35 = vld [vmem:[%s5389_s27 + $0xd8] sm:$0xf] }
 0x139   : > { %v6743_v20 = vadd.f32 %v4856_v53, %v1127_v40  ;;  %v7745_v40 = vshll.u32 %v7640_v59, 16 }
 0x13a   : > { %v6750_v5 = vadd.f32 %v1593_v58, %v1120_v30  ;;  %v2565_v52 = vor.u32 %v2563_v26, %v7742_v23  ;;  %v2564_v9 = vsel %vm1255_vm2, %v2562_v17, %v2563_v26  ;;  %v6790_v17 = vld [vmem:[%s5389_s27 + $0xdc] sm:$0xf] }
 0x13b   : > { %5022 = vmatmul.mubr.msk.bf16.gmra.mrb[144].mxu1 %vm420_vm0, %v2558_v31  ;;  %v4859_v44 = vpop.f32.mrb[40].mxu0  ;;  %v2569_v12 = vrot.slane %v7745_v40, 1 }
 0x13c   : > { %5074 = vmatmul.mubr.msk.bf16.gmra.mrb[144].mxu0 %vm420_vm0, %v7738_v18  ;;  %5025 = vmatprep.mubr.msk.bf16.mxu1 %vm420_vm0, %v2561_v25  ;;  %v4807_v56 = vpop.f32.mrb[40].mxu1  ;;  %v1605_v43 = vpop.f32.mrb[41].mxu0  ;;  %v2567_v53 = vsel %vm1255_vm2, %v2565_v52, %v2566_v41  ;;  %v7747_v25 = vshrl.u32 %v7640_v59, 16  ;;  %v7748_v18 = vshll.u32 %v7641_v32, 16 }
 0x13d   : > { %5077 = vmatprep.mubr.msk.bf16.mxu0 %vm420_vm0, %v7740_v33  ;;  %v1139_v2 = vadd.f32 %v4807_v56, %v6612_v11  ;;  %v1131_v28 = vpop.f32.mrb[41].mxu1  ;;  %v4860_v10 = vpop.f32.mrb[42].mxu0 }
 0x13e   : > { %v1132_v22 = vadd.f32 %v1131_v28, %v6616_v49  ;;  %v4808_v57 = vpop.f32.mrb[42].mxu1  ;;  %v1608_v60 = vpop.f32.mrb[43].mxu0  ;;  %v7744_v49 = vld [vmem:[#allocation64_spill] sm:$0xff]  ;;  %v2571_v30 = vor.u32 %v2569_v12, %v7747_v25  ;;  %v2572_v3 = vrot.slane %v7748_v18, 1  ;;  %v4340_v28 = vcombine.low %v6787_v35, %v6790_v17 }
 0x13f   : > { %v6764_v16 = vadd.f32 %v4859_v44, %v1139_v2  ;;  %v1142_v46 = vadd.f32 %v4808_v57, %v6620_v29  ;;  %v1134_v39 = vpop.f32.mrb[43].mxu1  ;;  %v7746_v29 = vshrl.u32 %v7581_v37, 16  ;;  %v7750_v57 = vld [vmem:[#allocation20_spill] sm:$0xff]  ;;  %v7753_v60 = vshll.u32 %v7656_v21, 16 }
 0x140   : > { %v6768_v31 = vadd.f32 %v1605_v43, %v1132_v22  ;;  %v2573_v2 = vsel %vm1255_vm2, %v2571_v30, %v2572_v3  ;;  %v2948_v40 = vshll.u32 %v4340_v28, 16 }
 0x141   : > { %v6770_v11 = vadd.f32 %v4860_v10, %v1142_v46  ;;  %v2568_v58 = vor.u32 %v2566_v41, %v7746_v29 }
 0x143   : > { %5026 = vmatmul.mubr.msk.bf16.gmra.mrb[148].mxu1 %vm420_vm0, %v2564_v9  ;;  %v4863_v33 = vpop.f32.mrb[44].mxu0  ;;  %v2570_v37 = vsel %vm1255_vm2, %v2568_v58, %v2569_v12  ;;  %v7751_v9 = vshrl.u32 %v7641_v32, 16  ;;  %v6817_v12 = vld [vmem:[%s5389_s27 + $0xe0] sm:$0xf] }
 0x144   : > { %5078 = vmatmul.mubr.msk.bf16.gmra.mrb[148].mxu0 %vm420_vm0, %v7744_v49  ;;  %5029 = vmatprep.mubr.msk.bf16.mxu1 %vm420_vm0, %v2567_v53  ;;  %v4811_v26 = vpop.f32.mrb[44].mxu1  ;;  %v1620_v1 = vpop.f32.mrb[45].mxu0  ;;  %v2578_v53 = vrot.slane %v7753_v60, 1  ;;  %v2945_v49 = vshrl.u32 %v4340_v28, 16 }
 0x145   : > { %5081 = vmatprep.mubr.msk.bf16.mxu0 %vm420_vm0, %v6299_v13  ;;  %v1154_v23 = vadd.f32 %v4811_v26, %v6640_v14  ;;  %v1146_v52 = vpop.f32.mrb[45].mxu1  ;;  %v4864_v56 = vpop.f32.mrb[46].mxu0  ;;  %v7749_v14 = vshll.u32 %v7652_v42, 16  ;;  %v2574_v46 = vor.u32 %v2572_v3, %v7751_v9  ;;  %v4341_v3 = vcombine.low %v6817_v12, %v6817_v12 }
 0x146   : > { %v4812_v13 = vpop.f32.mrb[46].mxu1  ;;  %v1622_v44 = vpop.f32.mrb[47].mxu0  ;;  %v2939_v1 = vsel %vm729_vm1, %v6331_v36, %v6454_v34  ;;  %v2950_v56 = vrot.slane %v2948_v40, 4  ;;  %v4309_v36 = vcombine.low %v6787_v35, %v6787_v35  ;;  %v7755_v40 = vld [vmem:[#allocation30_spill] sm:$0xff] }
 0x147   : > { %v6794_v41 = vadd.f32 %v4863_v33, %v1154_v23  ;;  %v1148_v59 = vpop.f32.mrb[47].mxu1  ;;  %v2575_v22 = vrot.slane %v7749_v14, 1  ;;  %v2947_v13 = vrot.slane %v2945_v49, 3  ;;  %v2954_v34 = vshrl.u32 %v4341_v3, 16 }
 0x148   : > { %v1149_v43 = vadd.f32 %v1148_v59, %v6645_v27  ;;  %v7752_v27 = vshrl.u32 %v7652_v42, 16 }
 0x149   : > { %v2576_v32 = vsel %vm1255_vm2, %v2574_v46, %v2575_v22  ;;  %v2951_v28 = vor.u32 %v2950_v56, %v2947_v13  ;;  %v2956_v60 = vrot.slane %v2954_v34, 3 }
 0x14a   : > { %v6805_v10 = vadd.f32 %v1622_v44, %v1149_v43  ;;  %v2577_v39 = vor.u32 %v2575_v22, %v7752_v27 }
 0x14b   : > { %5030 = vmatmul.mubr.msk.bf16.gmra.mrb[152].mxu1 %vm420_vm0, %v2570_v37  ;;  %v4867_v58 = vpop.f32.mrb[48].mxu0 }
 0x14c   : > { %5082 = vmatmul.mubr.msk.bf16.gmra.mrb[152].mxu0 %vm420_vm0, %v7750_v57  ;;  %5033 = vmatprep.mubr.msk.bf16.mxu1 %vm420_vm0, %v2573_v2  ;;  %v4815_v29 = vpop.f32.mrb[48].mxu1  ;;  %v1634_v30 = vpop.f32.mrb[49].mxu0  ;;  %v2579_v42 = vsel %vm1255_vm2, %v2577_v39, %v2578_v53  ;;  %v2596_v39 = vshll.u32 %v4309_v36, 16 }
 0x14d   : > { %5085 = vmatprep.mubr.msk.bf16.mxu0 %vm420_vm0, %v6338_v48  ;;  %v1160_v25 = vpop.f32.mrb[49].mxu1  ;;  %v4868_v26 = vpop.f32.mrb[50].mxu0 }
 0x14e   : > { %v1161_v18 = vadd.f32 %v1160_v25, %v6503_v7  ;;  %v4816_v48 = vpop.f32.mrb[50].mxu1  ;;  %v1637_v52 = vpop.f32.mrb[51].mxu0 }
 0x14f   : > { %v1171_v33 = vadd.f32 %v4816_v48, %v6507_v8  ;;  %v1163_v23 = vpop.f32.mrb[51].mxu1  ;;  %v7754_v8 = vshrl.u32 %v7656_v21, 16 }
 0x150   : > { %v6828_v7 = vadd.f32 %v1634_v30, %v1161_v18  ;;  %v1164_v37 = vadd.f32 %v1163_v23, %v6511_v54  ;;  %v2957_v54 = vshll.u32 %v4341_v3, 16  ;;  %v7756_v30 = vld [vmem:[#allocation21_spill] sm:$0xff]  ;;  %v2598_v3 = vrot.slane %v2596_v39, 1 }
 0x151   : > { %v6831_v59 = vadd.f32 %v4868_v26, %v1171_v33  ;;  %v2580_v44 = vor.u32 %v2578_v53, %v7754_v8  ;;  %v7759_v26 = vld [vmem:[#allocation27_spill] sm:$0xff] }
 0x152   : > { %v6838_v2 = vadd.f32 %v1637_v52, %v1164_v37  ;;  %v2959_v53 = vrot.slane %v2957_v54, 4 }
 0x153   : > { %5034 = vmatmul.mubr.msk.bf16.gmra.mrb[156].mxu1 %vm420_vm0, %v2576_v32  ;;  %v2584_v21 = vsel %vm1255_vm2, %v2580_v44, %v6471_v0  ;;  %v7758_v0 = vld [vmem:[#allocation28_spill] sm:$0xff]  ;;  %v7760_v32 = vshrl.u32 %v6438_v24, 16  ;;  %v7761_v24 = vld [vmem:[#allocation35_spill] sm:$0xff] }
 0x154   : > { %5086 = vmatmul.mubr.msk.bf16.gmra.mrb[156].mxu0 %vm420_vm0, %v6345_v50  ;;  %5037 = vmatprep.mubr.msk.bf16.mxu1 %vm420_vm0, %v2579_v42  ;;  %v2960_v33 = vor.u32 %v2959_v53, %v2956_v60  ;;  %v7765_v53 = vld [vmem:[#allocation38_spill] sm:$0xff] }
 0x155   : > { %5089 = vmatprep.mubr.msk.bf16.mxu0 %vm420_vm0, %v2939_v1  ;;  %v2594_v42 = vor.u32 %v7760_v32, %v7759_v26  ;;  %v7768_v26 = vld [vmem:[#allocation44_spill] sm:$0xff] }
 0x156   : > { %v4819_v43 = vpop.f32.mrb[52].mxu1  ;;  %v2961_v36 = vsel %vm729_vm1, %v2951_v28, %v2960_v33 }
 0x157   : > { %v4871_v14 = vpop.f32.mrb[52].mxu0  ;;  %v1183_v22 = vadd.f32 %v4819_v43, %v6527_v15  ;;  %v1175_v50 = vpop.f32.mrb[53].mxu1  ;;  %v2952_v15 = vsel %vm729_vm1, %v7756_v30, %v2951_v28  ;;  %v2599_v44 = vsel %vm1255_vm2, %v2594_v42, %v2598_v3  ;;  %v7766_v30 = vld [vmem:[#allocation5_spill] sm:$0xff]  ;;  %v7769_v42 = vld [vmem:[#allocation15_spill] sm:$0xff]  ;;  %v7770_v3 = vld [vmem:[#allocation46_spill] sm:$0xff] }
 0x158   : > { %v1649_v57 = vpop.f32.mrb[53].mxu0  ;;  %v1176_v9 = vadd.f32 %v1175_v50, %v6531_v47  ;;  %v4820_v46 = vpop.f32.mrb[54].mxu1  ;;  %v7757_v47 = vld [vmem:[#allocation26_spill] sm:$0xff] }
 0x159   : > { %v4872_v27 = vpop.f32.mrb[54].mxu0  ;;  %v6848_v49 = vadd.f32 %v4871_v14, %v1183_v22  ;;  %v1186_v29 = vadd.f32 %v4820_v46, %v7755_v40  ;;  %v1178_v58 = vpop.f32.mrb[55].mxu1  ;;  %v7763_v50 = vld [vmem:[#allocation42_spill] sm:$0xff]  ;;  %v7764_v46 = vld [vmem:[#allocation36_spill] sm:$0xff] }
 0x15a   : > { %v1652_v25 = vpop.f32.mrb[55].mxu0  ;;  %v6853_v18 = vadd.f32 %v1649_v57, %v1176_v9 }
 0x15b   : > { %v6855_v48 = vadd.f32 %v4872_v27, %v1186_v29  ;;  %5038 = vmatmul.mubr.msk.bf16.gmra.mrb[160].mxu1 %vm420_vm0, %v2584_v21 }
 0x15c   : > { %5090 = vmatmul.mubr.msk.bf16.gmra.mrb[160].mxu0 %vm420_vm0, %v7757_v47  ;;  %5041 = vmatprep.mubr.msk.bf16.mxu1 %vm420_vm0, %v7758_v0  ;;  %v7767_v0 = vld [vmem:[#allocation9_spill] sm:$0xff] }
 0x15d   : > { %5093 = vmatprep.mubr.msk.bf16.mxu0 %vm420_vm0, %v2952_v15 }
 0x15e   : > { %v4823_v23 = vpop.f32.mrb[56].mxu1 }
 0x15f   : > { %v4875_v52 = vpop.f32.mrb[56].mxu0  ;;  %v1198_v1 = vadd.f32 %v4823_v23, %v6554_v55  ;;  %v1190_v13 = vpop.f32.mrb[57].mxu1  ;;  %v7762_v55 = vld [vmem:[#allocation6_spill] sm:$0xff] }
 0x160   : > { %v1664_v56 = vpop.f32.mrb[57].mxu0  ;;  %v4824_v37 = vpop.f32.mrb[58].mxu1 }
 0x161   : > { %v4876_v8 = vpop.f32.mrb[58].mxu0  ;;  %v6869_v34 = vadd.f32 %v4875_v52, %v1198_v1  ;;  %v1192_v54 = vpop.f32.mrb[59].mxu1  ;;  %v7771_v52 = vld [vmem:[#allocation8_spill] sm:$0xff]  ;;  %v7772_v37 = vld [vmem:[#allocation11_spill] sm:$0xff] }
 0x162   : > { %v1666_v43 = vpop.f32.mrb[59].mxu0  ;;  %v1193_v14 = vadd.f32 %v1192_v54, %v7761_v24 }
 0x163   : > { %5042 = vmatmul.mubr.msk.bf16.gmra.mrb[164].mxu1 %vm420_vm0, %v2599_v44 }
 0x164   : > { %5094 = vmatmul.mubr.msk.bf16.gmra.mrb[164].mxu0 %vm420_vm0, %v2961_v36  ;;  %v6874_v22 = vadd.f32 %v1666_v43, %v1193_v14  ;;  %5101 = vmatprep.mubr.msk.bf16.mxu1 %vm420_vm0, %v7762_v55  ;;  %v7773_v43 = vld [vmem:[#allocation41_spill] sm:$0xff] }
 0x165   : > { %5153 = vmatprep.mubr.msk.bf16.mxu0 %vm420_vm0, %v7763_v50 }
 0x166   : > { %v4827_v57 = vpop.f32.mrb[60].mxu1 }
 0x167   : > { %v4879_v28 = vpop.f32.mrb[60].mxu0  ;;  %v1204_v21 = vpop.f32.mrb[61].mxu1 }
 0x168   : > { %v1678_v9 = vpop.f32.mrb[61].mxu0  ;;  %v1205_v27 = vadd.f32 %v1204_v21, %v7764_v46  ;;  %v4828_v39 = vpop.f32.mrb[62].mxu1  ;;  %v7774_v28 = vld [vmem:[#allocation18_spill] sm:$0xff]  ;;  %v7775_v21 = vld [vmem:[#allocation48_spill] sm:$0xff] }
 0x169   : > { %v4880_v60 = vpop.f32.mrb[62].mxu0  ;;  %v1215_v40 = vadd.f32 %v4828_v39, %v7765_v53  ;;  %v1207_v29 = vpop.f32.mrb[63].mxu1  ;;  %v7777_v46 = vld [vmem:[#allocation50_spill] sm:$0xff] }
 0x16a   : > { %v1681_v58 = vpop.f32.mrb[63].mxu0  ;;  %v6882_v25 = vadd.f32 %v1678_v9, %v1205_v27  ;;  %v1208_v15 = vadd.f32 %v1207_v29, %v7766_v30  ;;  %v7776_v9 = vld [vmem:[#allocation22_spill] sm:$0xff] }
 0x16b   : > { %v6885_v47 = vadd.f32 %v4880_v60, %v1215_v40  ;;  %5102 = vmatmul.mubr.msk.bf16.vlgmr.msra.gmra.mrb[168].mxu1 %vm420_vm0, %v7767_v0  ;;  %v7778_v60 = vld [vmem:[#allocation43_spill] sm:$0xff] }
 0x16c   : > { %5154 = vmatmul.mubr.msk.bf16.vlgmr.msra.gmra.mrb[168].mxu0 %vm420_vm0, %v7768_v26  ;;  %v6891_v32 = vadd.f32 %v1681_v58, %v1208_v15  ;;  %5105 = vmatprep.mubr.msk.bf16.mxu1 %vm420_vm0, %v7769_v42  ;;  %v7779_v42 = vld [vmem:[#allocation45_spill] sm:$0xff] }
 0x16d   : > { %5157 = vmatprep.mubr.msk.bf16.mxu0 %vm420_vm0, %v7770_v3 }
 0x16e   : > { %v4831_v33 = vpop.f32.mrb[64].mxu1 }
 0x16f   : > { %v4883_v23 = vpop.f32.mrb[64].mxu0  ;;  %v1227_v1 = vadd.f32 %v4831_v33, %v7771_v52  ;;  %v1219_v13 = vpop.f32.mrb[65].mxu1  ;;  %v7780_v33 = vld [vmem:[#allocation24_spill] sm:$0xff] }
 0x170   : > { %v1693_v56 = vpop.f32.mrb[65].mxu0  ;;  %v1220_v8 = vadd.f32 %v1219_v13, %v7772_v37  ;;  %v4832_v44 = vpop.f32.mrb[66].mxu1  ;;  %v7783_v13 = vld [vmem:[#allocation53_spill] sm:$0xff] }
 0x171   : > { %v4884_v36 = vpop.f32.mrb[66].mxu0  ;;  %v6899_v54 = vadd.f32 %v4883_v23, %v1227_v1  ;;  %v1230_v24 = vadd.f32 %v4832_v44, %v7773_v43  ;;  %v1222_v14 = vpop.f32.mrb[67].mxu1  ;;  %v7781_v23 = vld [vmem:[#allocation52_spill] sm:$0xff]  ;;  %v7782_v1 = vld [vmem:[#allocation31_spill] sm:$0xff] }
 0x172   : > { %v1696_v55 = vpop.f32.mrb[67].mxu0  ;;  %v6902_v50 = vadd.f32 %v1693_v56, %v1220_v8 }
 0x173   : > { %v6904_v57 = vadd.f32 %v4884_v36, %v1230_v24  ;;  %5106 = vmatmul.mubr.msk.bf16.gmra.mrb[172].mxu1 %vm420_vm0, %v7774_v28 }
 0x174   : > { %5158 = vmatmul.mubr.msk.bf16.gmra.mrb[172].mxu0 %vm420_vm0, %v7775_v21  ;;  %5109 = vmatprep.mubr.msk.bf16.mxu1 %vm420_vm0, %v7776_v9 }
 0x175   : > { %5161 = vmatprep.mubr.msk.bf16.mxu0 %vm420_vm0, %v7777_v46 }
 0x176   : > { %v4835_v27 = vpop.f32.mrb[68].mxu1 }
 0x177   : > { %v4887_v39 = vpop.f32.mrb[68].mxu0  ;;  %v1242_v53 = vadd.f32 %v4835_v27, %v7778_v60  ;;  %v1234_v40 = vpop.f32.mrb[69].mxu1  ;;  %v7784_v27 = vld [vmem:[#allocation33_spill] sm:$0xff] }
 0x178   : > { %v1708_v29 = vpop.f32.mrb[69].mxu0  ;;  %v4836_v58 = vpop.f32.mrb[70].mxu1 }
 0x179   : > { %v4888_v30 = vpop.f32.mrb[70].mxu0  ;;  %v6915_v15 = vadd.f32 %v4887_v39, %v1242_v53  ;;  %v1236_v0 = vpop.f32.mrb[71].mxu1  ;;  %v7785_v39 = vld [vmem:[#allocation55_spill] sm:$0xff] }
 0x17a   : > { %v1710_v26 = vpop.f32.mrb[71].mxu0  ;;  %v1237_v3 = vadd.f32 %v1236_v0, %v7779_v42 }
 0x17b   : > { %5110 = vmatmul.mubr.msk.bf16.gmra.mrb[176].mxu1 %vm420_vm0, %v7780_v33 }
 0x17c   : > { %5162 = vmatmul.mubr.msk.bf16.gmra.mrb[176].mxu0 %vm420_vm0, %v7781_v23  ;;  %v6922_v52 = vadd.f32 %v1710_v26, %v1237_v3  ;;  %5113 = vmatprep.mubr.msk.bf16.mxu1 %vm420_vm0, %v7782_v1 }
 0x17d   : > { %5165 = vmatprep.mubr.msk.bf16.mxu0 %vm420_vm0, %v7783_v13 }
 0x17e   : > { %v4895_v56 = vpop.f32.mrb[72].mxu1 }
 0x17f   : > { %v4947_v37 = vpop.f32.mrb[72].mxu0  ;;  %v1991_v8 = vpop.f32.mrb[73].mxu1  ;;  %v7788_v56 = vld [vmem:[#allocation2_spill] sm:$0xff] }
 0x180   : > { %v2301_v44 = vpop.f32.mrb[73].mxu0  ;;  %v2166_v36 = vadd.f32 %v1991_v8, %v6668_v19  ;;  %v4896_v43 = vpop.f32.mrb[74].mxu1  ;;  %v7786_v19 = vld [vmem:[#allocation39_spill] sm:$0xff] }
 0x181   : > { %v4948_v24 = vpop.f32.mrb[74].mxu0  ;;  %v2168_v14 = vadd.f32 %v4896_v43, %v6671_v51  ;;  %v1994_v55 = vpop.f32.mrb[75].mxu1  ;;  %v7787_v51 = vld [vmem:[#allocation56_spill] sm:$0xff]  ;;  %v7790_v37 = vld [vmem:[#allocation3_spill] sm:$0xff] }
 0x182   : > { %v2304_v28 = vpop.f32.mrb[75].mxu0  ;;  %v6930_v21 = vadd.f32 %v2301_v44, %v2166_v36  ;;  %v2167_v9 = vadd.f32 %v1994_v55, %v6678_v38 }
 0x183   : > { %v6933_v46 = vadd.f32 %v4948_v24, %v2168_v14  ;;  %5114 = vmatmul.mubr.msk.bf16.gmra.mrb[180].mxu1 %vm420_vm0, %v7784_v27 }
 0x184   : > { %5166 = vmatmul.mubr.msk.bf16.gmra.mrb[180].mxu0 %vm420_vm0, %v7785_v39  ;;  %v6939_v60 = vadd.f32 %v2304_v28, %v2167_v9  ;;  %5117 = vmatprep.mubr.msk.bf16.mxu1 %vm420_vm0, %v7786_v19  ;;  %v7792_v39 = vld [vmem:[#allocation4_spill] sm:$0xff] }
 0x185   : > { %5169 = vmatprep.mubr.msk.bf16.mxu0 %vm420_vm0, %v7787_v51  ;;  %v7793_v19 = vld [vmem:[#allocation60_spill] sm:$0xff] }
 0x186   : > { %v4899_v53 = vpop.f32.mrb[76].mxu1 }
 0x187   : > { %v4951_v40 = vpop.f32.mrb[76].mxu0  ;;  %v2170_v38 = vadd.f32 %v4899_v53, %v6692_v45  ;;  %v2006_v29 = vpop.f32.mrb[77].mxu1  ;;  %v7789_v45 = vld [vmem:[#allocation57_spill] sm:$0xff]  ;;  %v7794_v53 = vld [vmem:[#allocation7_spill] sm:$0xff] }
 0x188   : > { %v2316_v58 = vpop.f32.mrb[77].mxu0  ;;  %v2169_v30 = vadd.f32 %v2006_v29, %v6696_v62  ;;  %v4900_v0 = vpop.f32.mrb[78].mxu1  ;;  %v7791_v62 = vld [vmem:[#allocation58_spill] sm:$0xff] }
 0x189   : > { %v4952_v26 = vpop.f32.mrb[78].mxu0  ;;  %v6947_v42 = vadd.f32 %v4951_v40, %v2170_v38  ;;  %v2171_v3 = vadd.f32 %v4900_v0, %v6698_v63  ;;  %v2009_v33 = vpop.f32.mrb[79].mxu1 }
 0x18a   : > { %v2319_v23 = vpop.f32.mrb[79].mxu0  ;;  %v6950_v1 = vadd.f32 %v2316_v58, %v2169_v30 }
 0x18b   : > { %v6952_v13 = vadd.f32 %v4952_v26, %v2171_v3  ;;  %5118 = vmatmul.mubr.msk.bf16.gmra.mrb[184].mxu1 %vm420_vm0, %v7788_v56 }
 0x18c   : > { %5170 = vmatmul.mubr.msk.bf16.gmra.mrb[184].mxu0 %vm420_vm0, %v7789_v45  ;;  %5121 = vmatprep.mubr.msk.bf16.mxu1 %vm420_vm0, %v7790_v37  ;;  %v7796_v37 = vld [vmem:[#allocation10_spill] sm:$0xff] }
 0x18d   : > { %5173 = vmatprep.mubr.msk.bf16.mxu0 %vm420_vm0, %v7791_v62  ;;  %v7797_v62 = vld [vmem:[#allocation63_spill] sm:$0xff] }
 0x18e   : > { %v4903_v8 = vpop.f32.mrb[80].mxu1 }
 0x18f   : > { %v4955_v63 = vpop.f32.mrb[80].mxu0  ;;  %v2173_v44 = vadd.f32 %v4903_v8, %v6716_v6  ;;  %v2021_v36 = vpop.f32.mrb[81].mxu1  ;;  %v7795_v6 = vld [vmem:[#allocation61_spill] sm:$0xff] }
 0x190   : > { %v2331_v43 = vpop.f32.mrb[81].mxu0  ;;  %v4904_v24 = vpop.f32.mrb[82].mxu1 }
 0x191   : > { %v4956_v14 = vpop.f32.mrb[82].mxu0  ;;  %v6963_v55 = vadd.f32 %v4955_v63, %v2173_v44  ;;  %v2023_v28 = vpop.f32.mrb[83].mxu1 }
 0x192   : > { %v2333_v9 = vpop.f32.mrb[83].mxu0  ;;  %v2172_v27 = vadd.f32 %v2023_v28, %v6725_v61 }
 0x193   : > { %5122 = vmatmul.mubr.msk.bf16.gmra.mrb[188].mxu1 %vm420_vm0, %v7792_v39 }
 0x194   : > { %5174 = vmatmul.mubr.msk.bf16.gmra.mrb[188].mxu0 %vm420_vm0, %v7793_v19  ;;  %v6970_v51 = vadd.f32 %v2333_v9, %v2172_v27  ;;  %5125 = vmatprep.mubr.msk.bf16.mxu1 %vm420_vm0, %v7794_v53 }
 0x195   : > { %5177 = vmatprep.mubr.msk.bf16.mxu0 %vm420_vm0, %v7795_v6 }
 0x196   : > { %v4907_v40 = vpop.f32.mrb[84].mxu1 }
 0x197   : > { %v4959_v38 = vpop.f32.mrb[84].mxu0  ;;  %v2035_v29 = vpop.f32.mrb[85].mxu1  ;;  %v7800_v40 = vld [vmem:[#allocation19_spill] sm:$0xff] }
 0x198   : > { %v2345_v58 = vpop.f32.mrb[85].mxu0  ;;  %v2174_v61 = vadd.f32 %v2035_v29, %v6740_v4  ;;  %v4908_v30 = vpop.f32.mrb[86].mxu1  ;;  %v7798_v4 = vld [vmem:[#allocation16_spill] sm:$0xff]  ;;  %v7802_v38 = vld [vmem:[#allocation23_spill] sm:$0xff] }
 0x199   : > { %v4960_v0 = vpop.f32.mrb[86].mxu0  ;;  %v2176_v26 = vadd.f32 %v4908_v30, %v6743_v20  ;;  %v2038_v3 = vpop.f32.mrb[87].mxu1  ;;  %v7799_v20 = vld [vmem:[#allocation14_spill] sm:$0xff] }
 0x19a   : > { %v2348_v33 = vpop.f32.mrb[87].mxu0  ;;  %v6978_v23 = vadd.f32 %v2345_v58, %v2174_v61  ;;  %v2175_v56 = vadd.f32 %v2038_v3, %v6750_v5 }
 0x19b   : > { %v6981_v45 = vadd.f32 %v4960_v0, %v2176_v26  ;;  %5126 = vmatmul.mubr.msk.bf16.gmra.mrb[192].mxu1 %vm420_vm0, %v7796_v37 }
 0x19c   : > { %5178 = vmatmul.mubr.msk.bf16.gmra.mrb[192].mxu0 %vm420_vm0, %v7797_v62  ;;  %v6987_v8 = vadd.f32 %v2348_v33, %v2175_v56  ;;  %5129 = vmatprep.mubr.msk.bf16.mxu1 %vm420_vm0, %v7798_v4  ;;  %v7804_v62 = vld [vmem:[#allocation25_spill] sm:$0xff] }
 0x19d   : > { %5181 = vmatprep.mubr.msk.bf16.mxu0 %vm420_vm0, %v7799_v20  ;;  %v7805_v4 = vld [vmem:[#allocation37_spill] sm:$0xff]  ;;  %v5308_v20 = vld [vmem:[%s5389_s27 + $0xd4] sm:$0xf] }
 0x19e   : > { %v4911_v63 = vpop.f32.mrb[88].mxu1 }
 0x19f   : > { %v4963_v44 = vpop.f32.mrb[88].mxu0  ;;  %v2178_v5 = vadd.f32 %v4911_v63, %v6764_v16  ;;  %v2050_v36 = vpop.f32.mrb[89].mxu1  ;;  %v7801_v16 = vld [vmem:[#allocation65_spill] sm:$0xff]  ;;  %v4372_v63 = vcombine.low %v5308_v20, %v6787_v35 }
 0x1a0   : > { %v2360_v43 = vpop.f32.mrb[89].mxu0  ;;  %v2177_v24 = vadd.f32 %v2050_v36, %v6768_v31  ;;  %v4912_v14 = vpop.f32.mrb[90].mxu1  ;;  %v7803_v31 = vld [vmem:[#allocation17_spill] sm:$0xff] }
 0x1a1   : > { %v4964_v28 = vpop.f32.mrb[90].mxu0  ;;  %v6995_v9 = vadd.f32 %v4963_v44, %v2178_v5  ;;  %v2179_v27 = vadd.f32 %v4912_v14, %v6770_v11  ;;  %v2053_v39 = vpop.f32.mrb[91].mxu1  ;;  %v7806_v44 = vld [vmem:[#allocation32_spill] sm:$0xff]  ;;  %v7807_v5 = vld [vmem:[#allocation66_spill] sm:$0xff]  ;;  %v7808_v36 = vld [vmem:[#allocation29_spill] sm:$0xff]  ;;  %v3506_v35 = vshll.u32 %v4372_v63, 16 }
 0x1a2   : > { %v2363_v19 = vpop.f32.mrb[91].mxu0  ;;  %v6998_v53 = vadd.f32 %v2360_v43, %v2177_v24  ;;  %v7809_v43 = vshll.u32 %v7808_v36, 16  ;;  %v7030_v24 = vcombine.low %v6790_v17, %v6817_v12 }
 0x1a3   : > { %v7000_v6 = vadd.f32 %v4964_v28, %v2179_v27  ;;  %5130 = vmatmul.mubr.msk.bf16.gmra.mrb[196].mxu1 %vm420_vm0, %v7800_v40 }
 0x1a4   : > { %5182 = vmatmul.mubr.msk.bf16.gmra.mrb[196].mxu0 %vm420_vm0, %v7801_v16  ;;  %5133 = vmatprep.mubr.msk.bf16.mxu1 %vm420_vm0, %v7802_v38  ;;  %v3513_v17 = vshll.u32 %v7030_v24, 16 }
 0x1a5   : > { %5185 = vmatprep.mubr.msk.bf16.mxu0 %vm420_vm0, %v7803_v31 }
 0x1a6   : > { %v4915_v11 = vpop.f32.mrb[92].mxu1  ;;  %v3515_v20 = vrot.slane %v3513_v17, 1 }
 0x1a7   : > { %v4967_v29 = vpop.f32.mrb[92].mxu0  ;;  %v2181_v58 = vadd.f32 %v4915_v11, %v6794_v41  ;;  %v2065_v61 = vpop.f32.mrb[93].mxu1 }
 0x1a8   : > { %v2375_v30 = vpop.f32.mrb[93].mxu0  ;;  %v4916_v0 = vpop.f32.mrb[94].mxu1  ;;  %v3510_v61 = vshrl.u32 %v4372_v63, 16 }
 0x1a9   : > { %v4968_v26 = vpop.f32.mrb[94].mxu0  ;;  %v7011_v3 = vadd.f32 %v4967_v29, %v2181_v58  ;;  %v2067_v33 = vpop.f32.mrb[95].mxu1  ;;  %v7810_v29 = vld [vmem:[#allocation68_spill] sm:$0xff] }
 0x1aa   : > { %v2377_v56 = vpop.f32.mrb[95].mxu0  ;;  %v2180_v37 = vadd.f32 %v2067_v33, %v6805_v10  ;;  %v3503_v10 = vrot.slane %v7809_v43, 1  ;;  %v7812_v26 = vld [vmem:[#allocation67_spill] sm:$0xff] }
 0x1ab   : > { %5134 = vmatmul.mubr.msk.bf16.gmra.mrb[200].mxu1 %vm420_vm0, %v7804_v62 }
 0x1ac   : > { %5186 = vmatmul.mubr.msk.bf16.gmra.mrb[200].mxu0 %vm420_vm0, %v7805_v4  ;;  %v7020_v41 = vadd.f32 %v2377_v56, %v2180_v37  ;;  %5137 = vmatprep.mubr.msk.bf16.mxu1 %vm420_vm0, %v7806_v44  ;;  %v3504_v58 = vsel %vm1255_vm2, %v7810_v29, %v3503_v10  ;;  %v7813_v56 = vld [vmem:[#allocation40_spill] sm:$0xff]  ;;  %v7814_v37 = vshrl.u32 %v7808_v36, 16 }
 0x1ad   : > { %5189 = vmatprep.mubr.msk.bf16.mxu0 %vm420_vm0, %v7807_v5 }
 0x1ae   : > { %v4919_v14 = vpop.f32.mrb[96].mxu1  ;;  %v3505_v62 = vor.u32 %v3503_v10, %v7814_v37 }
 0x1af   : > { %v4971_v28 = vpop.f32.mrb[96].mxu0  ;;  %v2079_v27 = vpop.f32.mrb[97].mxu1 }
 0x1b0   : > { %v2389_v39 = vpop.f32.mrb[97].mxu0  ;;  %v2182_v19 = vadd.f32 %v2079_v27, %v6828_v7  ;;  %v4920_v40 = vpop.f32.mrb[98].mxu1  ;;  %v7811_v7 = vld [vmem:[#allocation34_spill] sm:$0xff] }
 0x1b1   : > { %v4972_v16 = vpop.f32.mrb[98].mxu0  ;;  %v2184_v38 = vadd.f32 %v4920_v40, %v6831_v59  ;;  %v2082_v31 = vpop.f32.mrb[99].mxu1  ;;  %v3508_v59 = vrot.slane %v3506_v35, 1  ;;  %v3517_v40 = vshrl.u32 %v7030_v24, 16 }
 0x1b2   : > { %v2392_v11 = vpop.f32.mrb[99].mxu0  ;;  %v7037_v12 = vadd.f32 %v2389_v39, %v2182_v19  ;;  %v2183_v30 = vadd.f32 %v2082_v31, %v6838_v2  ;;  %v5307_v2 = vld [vmem:[%s5389_s27 + $0xe4] ss:$0 sps:$4 sm:$0xff]  }
 0x1b3   : > { %v7040_v0 = vadd.f32 %v4972_v16, %v2184_v38  ;;  %5138 = vmatmul.mubr.msk.bf16.gmra.mrb[204].mxu1 %vm420_vm0, %v7811_v7  ;;  %v3512_v4 = vor.u32 %v3510_v61, %v3508_v59  ;;  %v3509_v19 = vsel %vm1255_vm2, %v3505_v62, %v3508_v59  ;;  %v3521_v16 = vshll.u32 %v5307_v2, 16 }
 0x1b4   : > { %5190 = vmatmul.mubr.msk.bf16.gmra.mrb[204].mxu0 %vm420_vm0, %v7812_v26  ;;  %v7046_v33 = vadd.f32 %v2392_v11, %v2183_v30  ;;  %5141 = vmatprep.mubr.msk.bf16.mxu1 %vm420_vm0, %v7813_v56 }
 0x1b5   : > { %5193 = vmatprep.mubr.msk.bf16.mxu0 %vm420_vm0, %v3504_v58  ;;  %v3516_v29 = vsel %vm1255_vm2, %v3512_v4, %v3515_v20  ;;  %v3523_v61 = vrot.slane %v3521_v16, 1 }
 0x1b6   : > { %v4923_v44 = vpop.f32.mrb[100].mxu1 }
 0x1b7   : > { %v4975_v5 = vpop.f32.mrb[100].mxu0  ;;  %v2186_v43 = vadd.f32 %v4923_v44, %v6848_v49  ;;  %v2094_v14 = vpop.f32.mrb[101].mxu1 }
 0x1b8   : > { %v2404_v28 = vpop.f32.mrb[101].mxu0  ;;  %v2185_v27 = vadd.f32 %v2094_v14, %v6853_v18  ;;  %v4924_v39 = vpop.f32.mrb[102].mxu1  ;;  %v3519_v18 = vor.u32 %v3517_v40, %v3515_v20 }
 0x1b9   : > { %v4976_v35 = vpop.f32.mrb[102].mxu0  ;;  %v7058_v38 = vadd.f32 %v4975_v5, %v2186_v43  ;;  %v2187_v10 = vadd.f32 %v4924_v39, %v6855_v48  ;;  %v2097_v31 = vpop.f32.mrb[103].mxu1 }
 0x1ba   : > { %v2407_v11 = vpop.f32.mrb[103].mxu0  ;;  %v7062_v49 = vadd.f32 %v2404_v28, %v2185_v27  ;;  %v3524_v37 = vsel %vm1255_vm2, %v3519_v18, %v3523_v61 }
 0x1bb   : > { %v7064_v58 = vadd.f32 %v4976_v35, %v2187_v10  ;;  %5142 = vmatmul.mubr.msk.bf16.gmra.mrb[208].mxu1 %vm420_vm0, %v7808_v36 }
 0x1bc   : > { %5194 = vmatmul.mubr.msk.bf16.gmra.mrb[208].mxu0 %vm420_vm0, %v3509_v19  ;;  %5145 = vmatprep.mubr.msk.bf16.mxu1 %vm420_vm0, %v4372_v63 }
 0x1bd   : > { %5197 = vmatprep.mubr.msk.bf16.mxu0 %vm420_vm0, %v3516_v29 }
 0x1be   : > { %v4927_v48 = vpop.f32.mrb[104].mxu1 }
 0x1bf   : > { %v4979_v17 = vpop.f32.mrb[104].mxu0  ;;  %v2189_v30 = vadd.f32 %v4927_v48, %v6869_v34  ;;  %v2109_v7 = vpop.f32.mrb[105].mxu1 }
 0x1c0   : > { %v2419_v26 = vpop.f32.mrb[105].mxu0  ;;  %v4928_v59 = vpop.f32.mrb[106].mxu1 }
 0x1c1   : > { %v4980_v56 = vpop.f32.mrb[106].mxu0  ;;  %v7073_v62 = vadd.f32 %v4979_v17, %v2189_v30  ;;  %v2111_v36 = vpop.f32.mrb[107].mxu1 }
 0x1c2   : > { %v2421_v2 = vpop.f32.mrb[107].mxu0  ;;  %v2188_v63 = vadd.f32 %v2111_v36, %v6874_v22 }
 0x1c3   : > { %5146 = vmatmul.mubr.msk.bf16.gmra.mrb[212].mxu1 %vm420_vm0, %v7030_v24 }
 0x1c4   : > { %5198 = vmatmul.mubr.msk.bf16.gmra.mrb[212].mxu0 %vm420_vm0, %v3524_v37  ;;  %v7079_v4 = vadd.f32 %v2421_v2, %v2188_v63 }
 0x1c6   : > { %v4931_v34 = vpop.f32.mrb[108].mxu1 }
 0x1c7   : > { %v4983_v20 = vpop.f32.mrb[108].mxu0  ;;  %v2123_v44 = vpop.f32.mrb[109].mxu1 }
 0x1c8   : > { %v2433_v5 = vpop.f32.mrb[109].mxu0  ;;  %v2190_v43 = vadd.f32 %v2123_v44, %v6882_v25  ;;  %v4932_v14 = vpop.f32.mrb[110].mxu1 }
 0x1c9   : > { %v4984_v28 = vpop.f32.mrb[110].mxu0  ;;  %v2192_v27 = vadd.f32 %v4932_v14, %v6885_v47  ;;  %v2126_v39 = vpop.f32.mrb[111].mxu1 }
 0x1ca   : > { %v2436_v35 = vpop.f32.mrb[111].mxu0  ;;  %v7083_v22 = vadd.f32 %v2433_v5, %v2190_v43  ;;  %v2191_v24 = vadd.f32 %v2126_v39, %v6891_v32 }
 0x1cb   : > { %v7086_v19 = vadd.f32 %v4984_v28, %v2192_v27 }
 0x1cc   : > { %v7088_v40 = vadd.f32 %v2436_v35, %v2191_v24 }
 0x1ce   : > { %v4935_v16 = vpop.f32.mrb[112].mxu1 }
 0x1cf   : > { %v4987_v10 = vpop.f32.mrb[112].mxu0  ;;  %v2194_v31 = vadd.f32 %v4935_v16, %v6899_v54  ;;  %v2138_v11 = vpop.f32.mrb[113].mxu1 }
 0x1d0   : > { %v2448_v25 = vpop.f32.mrb[113].mxu0  ;;  %v2193_v29 = vadd.f32 %v2138_v11, %v6902_v50  ;;  %v4936_v18 = vpop.f32.mrb[114].mxu1 }
 0x1d1   : > { %v4988_v47 = vpop.f32.mrb[114].mxu0  ;;  %v7092_v61 = vadd.f32 %v4987_v10, %v2194_v31  ;;  %v2195_v48 = vadd.f32 %v4936_v18, %v6904_v57  ;;  %v2141_v17 = vpop.f32.mrb[115].mxu1 }
 0x1d2   : > { %v2451_v32 = vpop.f32.mrb[115].mxu0  ;;  %v7095_v30 = vadd.f32 %v2448_v25, %v2193_v29 }
 0x1d3   : > { %v7097_v7 = vadd.f32 %v4988_v47, %v2195_v48 }
 0x1d6   : > { %v4939_v26 = vpop.f32.mrb[116].mxu1 }
 0x1d7   : > { %v4991_v59 = vpop.f32.mrb[116].mxu0  ;;  %v2197_v54 = vadd.f32 %v4939_v26, %v6915_v15  ;;  %v2153_v56 = vpop.f32.mrb[117].mxu1 }
 0x1d8   : > { %v2463_v37 = vpop.f32.mrb[117].mxu0  ;;  %v4940_v36 = vpop.f32.mrb[118].mxu1 }
 0x1d9   : > { %v4992_v50 = vpop.f32.mrb[118].mxu0  ;;  %v7100_v2 = vadd.f32 %v4991_v59, %v2197_v54  ;;  %v2155_v63 = vpop.f32.mrb[119].mxu1 }
 0x1da   : > { %v2465_v34 = vpop.f32.mrb[119].mxu0  ;;  %v2196_v57 = vadd.f32 %v2155_v63, %v6922_v52 }
 0x1dc   : > { %v7103_v20 = vadd.f32 %v2465_v34, %v2196_v57 }
 0x1de   : > { %v4999_v44 = vpop.f32.mrb[120].mxu1 }
 0x1df   : > { %v5051_v5 = vpop.f32.mrb[120].mxu0  ;;  %v2718_v43 = vpop.f32.mrb[121].mxu1 }
 0x1e0   : > { %v3020_v14 = vpop.f32.mrb[121].mxu0  ;;  %v2893_v28 = vadd.f32 %v2718_v43, %v6930_v21  ;;  %v5000_v27 = vpop.f32.mrb[122].mxu1 }
 0x1e1   : > { %v5052_v15 = vpop.f32.mrb[122].mxu0  ;;  %v2895_v39 = vadd.f32 %v5000_v27, %v6933_v46  ;;  %v2721_v35 = vpop.f32.mrb[123].mxu1 }
 0x1e2   : > { %v3023_v24 = vpop.f32.mrb[123].mxu0  ;;  %v7107_v16 = vadd.f32 %v3020_v14, %v2893_v28  ;;  %v2894_v10 = vadd.f32 %v2721_v35, %v6939_v60 }
 0x1e3   : > { %v7110_v31 = vadd.f32 %v5052_v15, %v2895_v39 }
 0x1e4   : > { %v7112_v52 = vadd.f32 %v3023_v24, %v2894_v10 }
 0x1e6   : > { %v5003_v11 = vpop.f32.mrb[124].mxu1 }
 0x1e7   : > { %v5055_v25 = vpop.f32.mrb[124].mxu0  ;;  %v2897_v29 = vadd.f32 %v5003_v11, %v6947_v42  ;;  %v2733_v18 = vpop.f32.mrb[125].mxu1 }
 0x1e8   : > { %v3035_v21 = vpop.f32.mrb[125].mxu0  ;;  %v2896_v47 = vadd.f32 %v2733_v18, %v6950_v1  ;;  %v5004_v48 = vpop.f32.mrb[126].mxu1 }
 0x1e9   : > { %v5056_v46 = vpop.f32.mrb[126].mxu0  ;;  %v7116_v17 = vadd.f32 %v5055_v25, %v2897_v29  ;;  %v2898_v32 = vadd.f32 %v5004_v48, %v6952_v13  ;;  %v2736_v26 = vpop.f32.mrb[127].mxu1 }
 0x1ea   : > { %v3038_v60 = vpop.f32.mrb[127].mxu0  ;;  %v7119_v59 = vadd.f32 %v3035_v21, %v2896_v47 }
 0x1eb   : > { %v7121_v54 = vadd.f32 %v5056_v46, %v2898_v32 }
 0x1ee   : > { %v5007_v56 = vpop.f32.mrb[128].mxu1 }
 0x1ef   : > { %v5059_v37 = vpop.f32.mrb[128].mxu0  ;;  %v2900_v42 = vadd.f32 %v5007_v56, %v6963_v55  ;;  %v2748_v36 = vpop.f32.mrb[129].mxu1 }
 0x1f0   : > { %v3050_v50 = vpop.f32.mrb[129].mxu0  ;;  %v5008_v63 = vpop.f32.mrb[130].mxu1 }
 0x1f1   : > { %v5060_v1 = vpop.f32.mrb[130].mxu0  ;;  %v7124_v34 = vadd.f32 %v5059_v37, %v2900_v42  ;;  %v2750_v57 = vpop.f32.mrb[131].mxu1 }
 0x1f2   : > { %v3052_v44 = vpop.f32.mrb[131].mxu0  ;;  %v2899_v13 = vadd.f32 %v2750_v57, %v6970_v51 }
 0x1f4   : > { %v7127_v5 = vadd.f32 %v3052_v44, %v2899_v13 }
 0x1f6   : > { %v5011_v43 = vpop.f32.mrb[132].mxu1 }
 0x1f7   : > { %v5063_v14 = vpop.f32.mrb[132].mxu0  ;;  %v2762_v28 = vpop.f32.mrb[133].mxu1 }
 0x1f8   : > { %v3064_v27 = vpop.f32.mrb[133].mxu0  ;;  %v2901_v15 = vadd.f32 %v2762_v28, %v6978_v23  ;;  %v5012_v39 = vpop.f32.mrb[134].mxu1 }
 0x1f9   : > { %v5064_v55 = vpop.f32.mrb[134].mxu0  ;;  %v2903_v35 = vadd.f32 %v5012_v39, %v6981_v45  ;;  %v2765_v24 = vpop.f32.mrb[135].mxu1 }
 0x1fa   : > { %v3067_v10 = vpop.f32.mrb[135].mxu0  ;;  %v7131_v11 = vadd.f32 %v3064_v27, %v2901_v15  ;;  %v2902_v25 = vadd.f32 %v2765_v24, %v6987_v8 }
 0x1fb   : > { %v7134_v29 = vadd.f32 %v5064_v55, %v2903_v35 }
 0x1fc   : > { %v7136_v51 = vadd.f32 %v3067_v10, %v2902_v25 }
 0x1fe   : > { %v5015_v18 = vpop.f32.mrb[136].mxu1 }
 0x1ff   : > { %v5067_v21 = vpop.f32.mrb[136].mxu0  ;;  %v2905_v47 = vadd.f32 %v5015_v18, %v6995_v9  ;;  %v2777_v48 = vpop.f32.mrb[137].mxu1 }
 0x200   : > { %v3079_v23 = vpop.f32.mrb[137].mxu0  ;;  %v2904_v46 = vadd.f32 %v2777_v48, %v6998_v53  ;;  %v5016_v32 = vpop.f32.mrb[138].mxu1 }
 0x201   : > { %v5068_v45 = vpop.f32.mrb[138].mxu0  ;;  %v7140_v26 = vadd.f32 %v5067_v21, %v2905_v47  ;;  %v2906_v60 = vadd.f32 %v5016_v32, %v7000_v6  ;;  %v2780_v56 = vpop.f32.mrb[139].mxu1 }
 0x202   : > { %v3082_v8 = vpop.f32.mrb[139].mxu0  ;;  %v7143_v37 = vadd.f32 %v3079_v23, %v2904_v46 }
 0x203   : > { %v7145_v42 = vadd.f32 %v5068_v45, %v2906_v60 }
 0x206   : > { %v5019_v36 = vpop.f32.mrb[140].mxu1 }
 0x207   : > { %v5071_v50 = vpop.f32.mrb[140].mxu0  ;;  %v2908_v9 = vadd.f32 %v5019_v36, %v7011_v3  ;;  %v2792_v63 = vpop.f32.mrb[141].mxu1 }
 0x208   : > { %v3094_v1 = vpop.f32.mrb[141].mxu0  ;;  %v5020_v57 = vpop.f32.mrb[142].mxu1 }
 0x209   : > { %v5072_v53 = vpop.f32.mrb[142].mxu0  ;;  %v7148_v44 = vadd.f32 %v5071_v50, %v2908_v9  ;;  %v2794_v13 = vpop.f32.mrb[143].mxu1 }
 0x20a   : > { %v3096_v43 = vpop.f32.mrb[143].mxu0  ;;  %v2907_v6 = vadd.f32 %v2794_v13, %v7020_v41 }
 0x20c   : > { %v7151_v14 = vadd.f32 %v3096_v43, %v2907_v6 }
 0x20e   : > { %v5023_v28 = vpop.f32.mrb[144].mxu1 }
 0x20f   : > { %v5075_v27 = vpop.f32.mrb[144].mxu0  ;;  %v2806_v15 = vpop.f32.mrb[145].mxu1 }
 0x210   : > { %v3108_v39 = vpop.f32.mrb[145].mxu0  ;;  %v2909_v55 = vadd.f32 %v2806_v15, %v7037_v12  ;;  %v5024_v35 = vpop.f32.mrb[146].mxu1 }
 0x211   : > { %v5076_v3 = vpop.f32.mrb[146].mxu0  ;;  %v2911_v24 = vadd.f32 %v5024_v35, %v7040_v0  ;;  %v2809_v10 = vpop.f32.mrb[147].mxu1 }
 0x212   : > { %v3111_v25 = vpop.f32.mrb[147].mxu0  ;;  %v7155_v18 = vadd.f32 %v3108_v39, %v2909_v55  ;;  %v2910_v21 = vadd.f32 %v2809_v10, %v7046_v33 }
 0x213   : > { %v7158_v47 = vadd.f32 %v5076_v3, %v2911_v24 }
 0x214   : > { %v7160_v41 = vadd.f32 %v3111_v25, %v2910_v21 }
 0x216   : > { %v5027_v48 = vpop.f32.mrb[148].mxu1 }
 0x217   : > { %v5079_v23 = vpop.f32.mrb[148].mxu0  ;;  %v2913_v46 = vadd.f32 %v5027_v48, %v7058_v38  ;;  %v2821_v32 = vpop.f32.mrb[149].mxu1 }
 0x218   : > { %v3123_v12 = vpop.f32.mrb[149].mxu0  ;;  %v2912_v45 = vadd.f32 %v2821_v32, %v7062_v49  ;;  %v5028_v60 = vpop.f32.mrb[150].mxu1 }
 0x219   : > { %v5080_v0 = vpop.f32.mrb[150].mxu0  ;;  %v7164_v56 = vadd.f32 %v5079_v23, %v2913_v46  ;;  %v2914_v8 = vadd.f32 %v5028_v60, %v7064_v58  ;;  %v2824_v36 = vpop.f32.mrb[151].mxu1 }
 0x21a   : > { %v3126_v33 = vpop.f32.mrb[151].mxu0  ;;  %v7167_v50 = vadd.f32 %v3123_v12, %v2912_v45 }
 0x21b   : > { %v7169_v9 = vadd.f32 %v5080_v0, %v2914_v8 }
 0x21e   : > { %v5031_v63 = vpop.f32.mrb[152].mxu1 }
 0x21f   : > { %v5083_v1 = vpop.f32.mrb[152].mxu0  ;;  %v2916_v38 = vadd.f32 %v5031_v63, %v7073_v62  ;;  %v2836_v57 = vpop.f32.mrb[153].mxu1 }
 0x220   : > { %v3138_v53 = vpop.f32.mrb[153].mxu0  ;;  %v5032_v13 = vpop.f32.mrb[154].mxu1 }
 0x221   : > { %v5084_v49 = vpop.f32.mrb[154].mxu0  ;;  %v7172_v43 = vadd.f32 %v5083_v1, %v2916_v38  ;;  %v2838_v6 = vpop.f32.mrb[155].mxu1 }
 0x222   : > { %v3140_v28 = vpop.f32.mrb[155].mxu0  ;;  %v2915_v58 = vadd.f32 %v2838_v6, %v7079_v4 }
 0x224   : > { %v7175_v27 = vadd.f32 %v3140_v28, %v2915_v58 }
 0x226   : > { %v5035_v15 = vpop.f32.mrb[156].mxu1 }
 0x227   : > { %v5087_v39 = vpop.f32.mrb[156].mxu0  ;;  %v2850_v55 = vpop.f32.mrb[157].mxu1 }
 0x228   : > { %v3152_v35 = vpop.f32.mrb[157].mxu0  ;;  %v2917_v3 = vadd.f32 %v2850_v55, %v7083_v22  ;;  %v5036_v24 = vpop.f32.mrb[158].mxu1 }
 0x229   : > { %v5088_v62 = vpop.f32.mrb[158].mxu0  ;;  %v2919_v10 = vadd.f32 %v5036_v24, %v7086_v19  ;;  %v2853_v25 = vpop.f32.mrb[159].mxu1 }
 0x22a   : > { %v3155_v21 = vpop.f32.mrb[159].mxu0  ;;  %v7179_v48 = vadd.f32 %v3152_v35, %v2917_v3  ;;  %v2918_v23 = vadd.f32 %v2853_v25, %v7088_v40  ;;  %v7205_v25 = vld [vmem:[%s7351_s2] ss:$0 sm:$0xff] }
 0x22b   : > { %v7182_v46 = vadd.f32 %v5088_v62, %v2919_v10 }
 0x22c   : > { %v7184_v4 = vadd.f32 %v3155_v21, %v2918_v23 }
 0x22e   : > { %v5039_v32 = vpop.f32.mrb[160].mxu1 }
 0x22f   : > { %v5091_v12 = vpop.f32.mrb[160].mxu0  ;;  %v2921_v45 = vadd.f32 %v5039_v32, %v7092_v61  ;;  %v2865_v60 = vpop.f32.mrb[161].mxu1 }
 0x230   : > { %v3167_v22 = vpop.f32.mrb[161].mxu0  ;;  %v2920_v0 = vadd.f32 %v2865_v60, %v7095_v30  ;;  %v5040_v8 = vpop.f32.mrb[162].mxu1 }
 0x231   : > { %v5092_v19 = vpop.f32.mrb[162].mxu0  ;;  %v7188_v36 = vadd.f32 %v5091_v12, %v2921_v45  ;;  %v2922_v33 = vadd.f32 %v5040_v8, %v7097_v7  ;;  %v2868_v63 = vpop.f32.mrb[163].mxu1 }
 0x232   : > { %v3170_v40 = vpop.f32.mrb[163].mxu0  ;;  %v7191_v1 = vadd.f32 %v3167_v22, %v2920_v0 }
 0x233   : > { %v7193_v38 = vadd.f32 %v5092_v19, %v2922_v33 }
 0x236   : > { %v5043_v57 = vpop.f32.mrb[164].mxu1 }
 0x237   : > { %v5095_v53 = vpop.f32.mrb[164].mxu0  ;;  %v2924_v61 = vadd.f32 %v5043_v57, %v7100_v2  ;;  %v2880_v13 = vpop.f32.mrb[165].mxu1 }
 0x238   : > { %v3182_v49 = vpop.f32.mrb[165].mxu0  ;;  %v5044_v6 = vpop.f32.mrb[166].mxu1 }
 0x239   : > { %v5096_v30 = vpop.f32.mrb[166].mxu0  ;;  %v7196_v28 = vadd.f32 %v5095_v53, %v2924_v61  ;;  %v2882_v58 = vpop.f32.mrb[167].mxu1 }
 0x23a   : > { %v3184_v15 = vpop.f32.mrb[167].mxu0  ;;  %v2923_v7 = vadd.f32 %v2882_v58, %v7103_v20 }
 0x23c   : > { %v7199_v39 = vadd.f32 %v3184_v15, %v2923_v7 }
 0x23e   : > { %v5103_v55 = vpop.f32.mrb[168].mxu1 }
 0x23f   : > { %v5155_v35 = vpop.f32.mrb[168].mxu0  ;;  %v3288_v3 = vpop.f32.mrb[169].mxu1 }
 0x240   : > { %v3583_v24 = vpop.f32.mrb[169].mxu0  ;;  %v3463_v62 = vadd.f32 %v3288_v3, %v7107_v16  ;;  %v5104_v2 = vpop.f32.mrb[170].mxu1 }
 0x241   : > { %v5156_v10 = vpop.f32.mrb[170].mxu0  ;;  %v3465_v21 = vadd.f32 %v5104_v2, %v7110_v31  ;;  %v3291_v23 = vpop.f32.mrb[171].mxu1 }
 0x242   : > { %v3586_v32 = vpop.f32.mrb[171].mxu0  ;;  %v3758_v20 = vadd.f32 %v3583_v24, %v3463_v62  ;;  %v3464_v12 = vadd.f32 %v3291_v23, %v7112_v52 }
 0x243   : > { %v3760_v45 = vadd.f32 %v5156_v10, %v3465_v21 }
 0x244   : > { %v3797_v60 = vadd.f32 %v7205_v25, %v3758_v20  ;;  %v3759_v22 = vadd.f32 %v3586_v32, %v3464_v12 }
 0x245   : > { %v3799_v16 = vadd.f32 %v7205_v25, %v3760_v45 }
 0x246   : > { %v4467_v31 = vpack.c.bf16 %v3797_v60, %v3797_v60  ;;  %v3798_v0 = vadd.f32 %v7205_v25, %v3759_v22  ;;  %v5107_v8 = vpop.f32.mrb[172].mxu1 }
 0x247   : > { %v5159_v52 = vpop.f32.mrb[172].mxu0  ;;  %v4469_v19 = vpack.c.bf16 %v3799_v16, %v3799_v16  ;;  %v3467_v33 = vadd.f32 %v5107_v8, %v7116_v17  ;;  %v3303_v63 = vpop.f32.mrb[173].mxu1 }
 0x248   : > { %v3598_v40 = vpop.f32.mrb[173].mxu0  ;;  %3958 = vst.msk [vmem:[%s7214_s11] sm:$0xf] %vm3957_vm3, %v4467_v31  ;;  %v4468_v57 = vpack.c.bf16 %v3798_v0, %v3798_v0  ;;  %v3466_v53 = vadd.f32 %v3303_v63, %v7119_v59  ;;  %v5108_v61 = vpop.f32.mrb[174].mxu1 }
 0x249   : > { %v5160_v13 = vpop.f32.mrb[174].mxu0  ;;  %3960 = vst.msk [vmem:[%s7214_s11 + $0x8] sm:$0xf] %vm3957_vm3, %v4469_v19  ;;  %v3762_v49 = vadd.f32 %v5159_v52, %v3467_v33  ;;  %v3468_v6 = vadd.f32 %v5108_v61, %v7121_v54  ;;  %v3306_v30 = vpop.f32.mrb[175].mxu1 }
 0x24a   : > { %v3601_v58 = vpop.f32.mrb[175].mxu0  ;;  %3959 = vst.msk [vmem:[%s7214_s11 + $0x4] sm:$0xf] %vm3957_vm3, %v4468_v57  ;;  %v3761_v17 = vadd.f32 %v3598_v40, %v3466_v53 }
 0x24b   : > { %v3801_v15 = vadd.f32 %v7205_v25, %v3762_v49  ;;  %v3763_v7 = vadd.f32 %v5160_v13, %v3468_v6 }
 0x24c   : > { %v3800_v59 = vadd.f32 %v7205_v25, %v3761_v17 }
 0x24d   : > { %v4471_v55 = vpack.c.bf16 %v3801_v15, %v3801_v15  ;;  %v3802_v35 = vadd.f32 %v7205_v25, %v3763_v7 }
 0x24e   : > { %v4470_v3 = vpack.c.bf16 %v3800_v59, %v3800_v59  ;;  %v5111_v24 = vpop.f32.mrb[176].mxu1 }
 0x24f   : > { %v5163_v62 = vpop.f32.mrb[176].mxu0  ;;  %3962 = vst.msk [vmem:[%s7214_s11 + $0x10] sm:$0xf] %vm3957_vm3, %v4471_v55  ;;  %v4472_v54 = vpack.c.bf16 %v3802_v35, %v3802_v35  ;;  %v3470_v2 = vadd.f32 %v5111_v24, %v7124_v34  ;;  %v3318_v10 = vpop.f32.mrb[177].mxu1 }
 0x250   : > { %v3613_v21 = vpop.f32.mrb[177].mxu0  ;;  %3961 = vst.msk [vmem:[%s7214_s11 + $0xc] sm:$0xf] %vm3957_vm3, %v4470_v3  ;;  %v5112_v23 = vpop.f32.mrb[178].mxu1 }
 0x251   : > { %v5164_v32 = vpop.f32.mrb[178].mxu0  ;;  %3963 = vst.msk [vmem:[%s7214_s11 + $0x14] sm:$0xf] %vm3957_vm3, %v4472_v54  ;;  %v3765_v20 = vadd.f32 %v5163_v62, %v3470_v2  ;;  %v3320_v12 = vpop.f32.mrb[179].mxu1 }
 0x252   : > { %v3615_v45 = vpop.f32.mrb[179].mxu0  ;;  %v3469_v60 = vadd.f32 %v3320_v12, %v7127_v5 }
 0x253   : > { %v3804_v22 = vadd.f32 %v7205_v25, %v3765_v20 }
 0x254   : > { %v3764_v16 = vadd.f32 %v3615_v45, %v3469_v60 }
 0x255   : > { %v4474_v31 = vpack.c.bf16 %v3804_v22, %v3804_v22 }
 0x256   : > { %v3803_v34 = vadd.f32 %v7205_v25, %v3764_v16  ;;  %v5115_v0 = vpop.f32.mrb[180].mxu1 }
 0x257   : > { %v5167_v8 = vpop.f32.mrb[180].mxu0  ;;  %3965 = vst.msk [vmem:[%s7214_s11 + $0x1c] sm:$0xf] %vm3957_vm3, %v4474_v31  ;;  %v3332_v52 = vpop.f32.mrb[181].mxu1 }
 0x258   : > { %v3627_v19 = vpop.f32.mrb[181].mxu0  ;;  %v4473_v33 = vpack.c.bf16 %v3803_v34, %v3803_v34  ;;  %v3471_v63 = vadd.f32 %v3332_v52, %v7131_v11  ;;  %v5116_v40 = vpop.f32.mrb[182].mxu1 }
 0x259   : > { %v5168_v57 = vpop.f32.mrb[182].mxu0  ;;  %v3473_v5 = vadd.f32 %v5116_v40, %v7134_v29  ;;  %v3335_v53 = vpop.f32.mrb[183].mxu1 }
 0x25a   : > { %v3630_v61 = vpop.f32.mrb[183].mxu0  ;;  %3964 = vst.msk [vmem:[%s7214_s11 + $0x18] sm:$0xf] %vm3957_vm3, %v4473_v33  ;;  %v3766_v13 = vadd.f32 %v3627_v19, %v3471_v63  ;;  %v3472_v49 = vadd.f32 %v3335_v53, %v7136_v51 }
 0x25b   : > { %v3768_v6 = vadd.f32 %v5168_v57, %v3473_v5 }
 0x25c   : > { %v3805_v30 = vadd.f32 %v7205_v25, %v3766_v13  ;;  %v3767_v58 = vadd.f32 %v3630_v61, %v3472_v49 }
 0x25d   : > { %v3807_v17 = vadd.f32 %v7205_v25, %v3768_v6 }
 0x25e   : > { %v4475_v11 = vpack.c.bf16 %v3805_v30, %v3805_v30  ;;  %v3806_v15 = vadd.f32 %v7205_v25, %v3767_v58  ;;  %v5119_v7 = vpop.f32.mrb[184].mxu1 }
 0x25f   : > { %v5171_v29 = vpop.f32.mrb[184].mxu0  ;;  %v4477_v59 = vpack.c.bf16 %v3807_v17, %v3807_v17  ;;  %v3475_v55 = vadd.f32 %v5119_v7, %v7140_v26  ;;  %v3347_v35 = vpop.f32.mrb[185].mxu1 }
 0x260   : > { %v3642_v3 = vpop.f32.mrb[185].mxu0  ;;  %3966 = vst.msk [vmem:[%s7214_s11 + $0x20] sm:$0xf] %vm3957_vm3, %v4475_v11  ;;  %v4476_v51 = vpack.c.bf16 %v3806_v15, %v3806_v15  ;;  %v3474_v24 = vadd.f32 %v3347_v35, %v7143_v37  ;;  %v5120_v62 = vpop.f32.mrb[186].mxu1 }
 0x261   : > { %v5172_v54 = vpop.f32.mrb[186].mxu0  ;;  %3968 = vst.msk [vmem:[%s7214_s11 + $0x28] sm:$0xf] %vm3957_vm3, %v4477_v59  ;;  %v3770_v2 = vadd.f32 %v5171_v29, %v3475_v55  ;;  %v3476_v10 = vadd.f32 %v5120_v62, %v7145_v42  ;;  %v3350_v21 = vpop.f32.mrb[187].mxu1 }
 0x262   : > { %v3645_v23 = vpop.f32.mrb[187].mxu0  ;;  %3967 = vst.msk [vmem:[%s7214_s11 + $0x24] sm:$0xf] %vm3957_vm3, %v4476_v51  ;;  %v3769_v26 = vadd.f32 %v3642_v3, %v3474_v24 }
 0x263   : > { %v3809_v32 = vadd.f32 %v7205_v25, %v3770_v2  ;;  %v3771_v20 = vadd.f32 %v5172_v54, %v3476_v10 }
 0x264   : > { %v3808_v37 = vadd.f32 %v7205_v25, %v3769_v26 }
 0x265   : > { %v4479_v12 = vpack.c.bf16 %v3809_v32, %v3809_v32  ;;  %v3810_v45 = vadd.f32 %v7205_v25, %v3771_v20 }
 0x266   : > { %v4478_v60 = vpack.c.bf16 %v3808_v37, %v3808_v37  ;;  %v5123_v22 = vpop.f32.mrb[188].mxu1 }
 0x267   : > { %v5175_v16 = vpop.f32.mrb[188].mxu0  ;;  %3970 = vst.msk [vmem:[%s7214_s11 + $0x30] sm:$0xf] %vm3957_vm3, %v4479_v12  ;;  %v4480_v42 = vpack.c.bf16 %v3810_v45, %v3810_v45  ;;  %v3478_v31 = vadd.f32 %v5123_v22, %v7148_v44  ;;  %v3362_v34 = vpop.f32.mrb[189].mxu1 }
 0x268   : > { %v3657_v0 = vpop.f32.mrb[189].mxu0  ;;  %3969 = vst.msk [vmem:[%s7214_s11 + $0x2c] sm:$0xf] %vm3957_vm3, %v4478_v60  ;;  %v5124_v8 = vpop.f32.mrb[190].mxu1 }
 0x269   : > { %v5176_v52 = vpop.f32.mrb[190].mxu0  ;;  %3971 = vst.msk [vmem:[%s7214_s11 + $0x34] sm:$0xf] %vm3957_vm3, %v4480_v42  ;;  %v3773_v19 = vadd.f32 %v5175_v16, %v3478_v31  ;;  %v3364_v33 = vpop.f32.mrb[191].mxu1 }
 0x26a   : > { %v3659_v63 = vpop.f32.mrb[191].mxu0  ;;  %v3477_v40 = vadd.f32 %v3364_v33, %v7151_v14 }
 0x26b   : > { %v3812_v57 = vadd.f32 %v7205_v25, %v3773_v19 }
 0x26c   : > { %v3772_v5 = vadd.f32 %v3659_v63, %v3477_v40 }
 0x26d   : > { %v4482_v53 = vpack.c.bf16 %v3812_v57, %v3812_v57 }
 0x26e   : > { %v3811_v44 = vadd.f32 %v7205_v25, %v3772_v5  ;;  %v5127_v61 = vpop.f32.mrb[192].mxu1 }
 0x26f   : > { %v5179_v13 = vpop.f32.mrb[192].mxu0  ;;  %3973 = vst.msk [vmem:[%s7214_s11 + $0x3c] sm:$0xf] %vm3957_vm3, %v4482_v53  ;;  %v3376_v49 = vpop.f32.mrb[193].mxu1 }
 0x270   : > { %v3671_v6 = vpop.f32.mrb[193].mxu0  ;;  %v4481_v30 = vpack.c.bf16 %v3811_v44, %v3811_v44  ;;  %v3479_v58 = vadd.f32 %v3376_v49, %v7155_v18  ;;  %v5128_v17 = vpop.f32.mrb[194].mxu1 }
 0x271   : > { %v5180_v11 = vpop.f32.mrb[194].mxu0  ;;  %v3481_v14 = vadd.f32 %v5128_v17, %v7158_v47  ;;  %v3379_v15 = vpop.f32.mrb[195].mxu1 }
 0x272   : > { %v3674_v7 = vpop.f32.mrb[195].mxu0  ;;  %3972 = vst.msk [vmem:[%s7214_s11 + $0x38] sm:$0xf] %vm3957_vm3, %v4481_v30  ;;  %v3774_v29 = vadd.f32 %v3671_v6, %v3479_v58  ;;  %v3480_v59 = vadd.f32 %v3379_v15, %v7160_v41 }
 0x273   : > { %v3776_v55 = vadd.f32 %v5180_v11, %v3481_v14 }
 0x274   : > { %v3813_v35 = vadd.f32 %v7205_v25, %v3774_v29  ;;  %v3775_v3 = vadd.f32 %v3674_v7, %v3480_v59 }
 0x275   : > { %v3815_v51 = vadd.f32 %v7205_v25, %v3776_v55 }
 0x276   : > { %v4483_v18 = vpack.c.bf16 %v3813_v35, %v3813_v35  ;;  %v3814_v24 = vadd.f32 %v7205_v25, %v3775_v3  ;;  %v5131_v62 = vpop.f32.mrb[196].mxu1 }
 0x277   : > { %v5183_v47 = vpop.f32.mrb[196].mxu0  ;;  %v4485_v54 = vpack.c.bf16 %v3815_v51, %v3815_v51  ;;  %v3483_v2 = vadd.f32 %v5131_v62, %v7164_v56  ;;  %v3391_v10 = vpop.f32.mrb[197].mxu1 }
 0x278   : > { %v3686_v21 = vpop.f32.mrb[197].mxu0  ;;  %3974 = vst.msk [vmem:[%s7214_s11 + $0x40] sm:$0xf] %vm3957_vm3, %v4483_v18  ;;  %v4484_v41 = vpack.c.bf16 %v3814_v24, %v3814_v24  ;;  %v3482_v23 = vadd.f32 %v3391_v10, %v7167_v50  ;;  %v5132_v26 = vpop.f32.mrb[198].mxu1 }
 0x279   : > { %v5184_v32 = vpop.f32.mrb[198].mxu0  ;;  %3976 = vst.msk [vmem:[%s7214_s11 + $0x48] sm:$0xf] %vm3957_vm3, %v4485_v54  ;;  %v3778_v20 = vadd.f32 %v5183_v47, %v3483_v2  ;;  %v3484_v37 = vadd.f32 %v5132_v26, %v7169_v9  ;;  %v3394_v12 = vpop.f32.mrb[199].mxu1 }
 0x27a   : > { %v3689_v45 = vpop.f32.mrb[199].mxu0  ;;  %3975 = vst.msk [vmem:[%s7214_s11 + $0x44] sm:$0xf] %vm3957_vm3, %v4484_v41  ;;  %v3777_v56 = vadd.f32 %v3686_v21, %v3482_v23 }
 0x27b   : > { %v3817_v60 = vadd.f32 %v7205_v25, %v3778_v20  ;;  %v3779_v22 = vadd.f32 %v5184_v32, %v3484_v37 }
 0x27c   : > { %v3816_v50 = vadd.f32 %v7205_v25, %v3777_v56 }
 0x27d   : > { %v4487_v16 = vpack.c.bf16 %v3817_v60, %v3817_v60  ;;  %v3818_v42 = vadd.f32 %v7205_v25, %v3779_v22 }
 0x27e   : > { %v4486_v31 = vpack.c.bf16 %v3816_v50, %v3816_v50  ;;  %v5135_v34 = vpop.f32.mrb[200].mxu1 }
 0x27f   : > { %v5187_v0 = vpop.f32.mrb[200].mxu0  ;;  %3978 = vst.msk [vmem:[%s7214_s11 + $0x50] sm:$0xf] %vm3957_vm3, %v4487_v16  ;;  %v4488_v9 = vpack.c.bf16 %v3818_v42, %v3818_v42  ;;  %v3486_v8 = vadd.f32 %v5135_v34, %v7172_v43  ;;  %v3406_v52 = vpop.f32.mrb[201].mxu1 }
 0x280   : > { %v3701_v19 = vpop.f32.mrb[201].mxu0  ;;  %3977 = vst.msk [vmem:[%s7214_s11 + $0x4c] sm:$0xf] %vm3957_vm3, %v4486_v31  ;;  %v5136_v33 = vpop.f32.mrb[202].mxu1 }
 0x281   : > { %v5188_v63 = vpop.f32.mrb[202].mxu0  ;;  %3979 = vst.msk [vmem:[%s7214_s11 + $0x54] sm:$0xf] %vm3957_vm3, %v4488_v9  ;;  %v3781_v40 = vadd.f32 %v5187_v0, %v3486_v8  ;;  %v3408_v57 = vpop.f32.mrb[203].mxu1 }
 0x282   : > { %v3703_v5 = vpop.f32.mrb[203].mxu0  ;;  %v3485_v53 = vadd.f32 %v3408_v57, %v7175_v27 }
 0x283   : > { %v3820_v44 = vadd.f32 %v7205_v25, %v3781_v40 }
 0x284   : > { %v3780_v61 = vadd.f32 %v3703_v5, %v3485_v53 }
 0x285   : > { %v4490_v13 = vpack.c.bf16 %v3820_v44, %v3820_v44 }
 0x286   : > { %v3819_v43 = vadd.f32 %v7205_v25, %v3780_v61  ;;  %v5139_v49 = vpop.f32.mrb[204].mxu1 }
 0x287   : > { %v5191_v6 = vpop.f32.mrb[204].mxu0  ;;  %3981 = vst.msk [vmem:[%s7214_s11 + $0x5c] sm:$0xf] %vm3957_vm3, %v4490_v13  ;;  %v3420_v30 = vpop.f32.mrb[205].mxu1 }
 0x288   : > { %v3715_v58 = vpop.f32.mrb[205].mxu0  ;;  %v4489_v17 = vpack.c.bf16 %v3819_v43, %v3819_v43  ;;  %v3487_v11 = vadd.f32 %v3420_v30, %v7179_v48  ;;  %v5140_v14 = vpop.f32.mrb[206].mxu1 }
 0x289   : > { %v5192_v15 = vpop.f32.mrb[206].mxu0  ;;  %v3489_v27 = vadd.f32 %v5140_v14, %v7182_v46  ;;  %v3423_v7 = vpop.f32.mrb[207].mxu1 }
 0x28a   : > { %v3718_v29 = vpop.f32.mrb[207].mxu0  ;;  %3980 = vst.msk [vmem:[%s7214_s11 + $0x58] sm:$0xf] %vm3957_vm3, %v4489_v17  ;;  %v3782_v59 = vadd.f32 %v3715_v58, %v3487_v11  ;;  %v3488_v55 = vadd.f32 %v3423_v7, %v7184_v4 }
 0x28b   : > { %v3784_v35 = vadd.f32 %v5192_v15, %v3489_v27 }
 0x28c   : > { %v3821_v3 = vadd.f32 %v7205_v25, %v3782_v59  ;;  %v3783_v51 = vadd.f32 %v3718_v29, %v3488_v55 }
 0x28d   : > { %v3823_v18 = vadd.f32 %v7205_v25, %v3784_v35 }
 0x28e   : > { %v4491_v48 = vpack.c.bf16 %v3821_v3, %v3821_v3  ;;  %v3822_v24 = vadd.f32 %v7205_v25, %v3783_v51  ;;  %v5143_v62 = vpop.f32.mrb[208].mxu1 }
 0x28f   : > { %v5195_v46 = vpop.f32.mrb[208].mxu0  ;;  %v4493_v47 = vpack.c.bf16 %v3823_v18, %v3823_v18  ;;  %v3491_v54 = vadd.f32 %v5143_v62, %v7188_v36  ;;  %v3435_v2 = vpop.f32.mrb[209].mxu1 }
 0x290   : > { %v3730_v10 = vpop.f32.mrb[209].mxu0  ;;  %3982 = vst.msk [vmem:[%s7214_s11 + $0x60] sm:$0xf] %vm3957_vm3, %v4491_v48  ;;  %v4492_v4 = vpack.c.bf16 %v3822_v24, %v3822_v24  ;;  %v3490_v21 = vadd.f32 %v3435_v2, %v7191_v1  ;;  %v5144_v41 = vpop.f32.mrb[210].mxu1 }
 0x291   : > { %v5196_v23 = vpop.f32.mrb[210].mxu0  ;;  %3984 = vst.msk [vmem:[%s7214_s11 + $0x68] sm:$0xf] %vm3957_vm3, %v4493_v47  ;;  %v3786_v26 = vadd.f32 %v5195_v46, %v3491_v54  ;;  %v3492_v32 = vadd.f32 %v5144_v41, %v7193_v38  ;;  %v3438_v20 = vpop.f32.mrb[211].mxu1 }
 0x292   : > { %v3733_v37 = vpop.f32.mrb[211].mxu0  ;;  %3983 = vst.msk [vmem:[%s7214_s11 + $0x64] sm:$0xf] %vm3957_vm3, %v4492_v4  ;;  %v3785_v36 = vadd.f32 %v3730_v10, %v3490_v21 }
 0x293   : > { %v3825_v12 = vadd.f32 %v7205_v25, %v3786_v26  ;;  %v3787_v45 = vadd.f32 %v5196_v23, %v3492_v32 }
 0x294   : > { %v3824_v1 = vadd.f32 %v7205_v25, %v3785_v36 }
 0x295   : > { %v4495_v56 = vpack.c.bf16 %v3825_v12, %v3825_v12  ;;  %v3826_v60 = vadd.f32 %v7205_v25, %v3787_v45 }
 0x296   : > { %v4494_v22 = vpack.c.bf16 %v3824_v1, %v3824_v1  ;;  %v5147_v50 = vpop.f32.mrb[212].mxu1 }
 0x297   : > { %v5199_v16 = vpop.f32.mrb[212].mxu0  ;;  %3986 = vst.msk [vmem:[%s7214_s11 + $0x70] sm:$0xf] %vm3957_vm3, %v4495_v56  ;;  %v4496_v38 = vpack.c.bf16 %v3826_v60, %v3826_v60  ;;  %v3494_v42 = vadd.f32 %v5147_v50, %v7196_v28  ;;  %v3450_v31 = vpop.f32.mrb[213].mxu1 }
 0x298   : > { %v3745_v34 = vpop.f32.mrb[213].mxu0  ;;  %3985 = vst.msk [vmem:[%s7214_s11 + $0x6c] sm:$0xf] %vm3957_vm3, %v4494_v22  ;;  %v5148_v0 = vpop.f32.mrb[214].mxu1 }
 0x299   : > { %v5200_v9 = vpop.f32.mrb[214].mxu0  ;;  %3987 = vst.msk [vmem:[%s7214_s11 + $0x74] sm:$0xf] %vm3957_vm3, %v4496_v38  ;;  %v3789_v8 = vadd.f32 %v5199_v16, %v3494_v42  ;;  %v3452_v52 = vpop.f32.mrb[215].mxu1 }
 0x29a   : > { %v3747_v19 = vpop.f32.mrb[215].mxu0  ;;  %v3493_v33 = vadd.f32 %v3452_v52, %v7199_v39 }
 0x29b   : > { %v3828_v63 = vadd.f32 %v7205_v25, %v3789_v8 }
 0x29c   : > { %v3788_v40 = vadd.f32 %v3747_v19, %v3493_v33 }
 0x29d   : > { %v4498_v57 = vpack.c.bf16 %v3828_v63, %v3828_v63 }
 0x29e   : > { %v3827_v28 = vadd.f32 %v7205_v25, %v3788_v40 }
 0x29f   : > { %3989 = vst.msk [vmem:[%s7214_s11 + $0x7c] sm:$0xf] %vm3957_vm3, %v4498_v57 }
 0x2a0   : > { %v4497_v5 = vpack.c.bf16 %v3827_v28, %v3827_v28 }
 0x2a2   : > { %3988 = vst.msk [vmem:[%s7214_s11 + $0x78] sm:$0xf] %vm3957_vm3, %v4497_v5 }
 0x2a3 PF: > { %s13_s14 = sadd.s32 1, %s5331_s14   ;;  %s7815_s12 = smov %s5327_s13 }
 0x2a4   : > { %p10_p5 = scmp.ge.s32.totalorder %s13_s14, 4   ;;  %s7816_s13 = smov %s7818_s15 }
 0x2a6   :  { %12 = sbr.rel (!%p10_p5) target bundleno = 2 (0x2), region = 76 }

// kernel: residual_block_forward.7
= control target key start
LH: loop header
LB: loop body
LE: loop exit
PB: predicated region body
PF: predicated region fallthrough
CT: control target
= control target key end

     0   :  { %11 = vsyncpa [#allocation3], 0  ;;  %s8442_s0 = inlined_call_operand.vmem [shape: bf16[2,20,24,64], index: 0, kind: input, shape index: {}]   ;;  %s8443_s1 = inlined_call_operand.vmem [shape: bf16[9,64,64], index: 1, kind: input, shape index: {}]   ;;  %s8444_s2 = inlined_call_operand.vmem [shape: f32[1,64], index: 2, kind: input, shape index: {}]   ;;  %s8445_s3 = inlined_call_operand.vmem [shape: f32[2,16,16,32], index: 3, kind: input, shape index: {}]   ;;  %s8446_s4 = inlined_call_operand.vmem [shape: bf16[32,64], index: 4, kind: input, shape index: {}]   ;;  %s8447_s5 = inlined_call_operand.vmem [shape: f32[1,64], index: 5, kind: input, shape index: {}]   ;;  %s8448_s6 = inlined_call_operand.hbm [shape: f32[2,16,16,64], index: 6, kind: output, shape index: {}]  }
   0x1   :  { %13 = vsyncpa [#allocation3 + $0x1], 0  ;;  %s6137_s21 = smov 0   ;;  %s6139_s22 = smov 0  }
   0x2   :  { %s6141_s23 = smov 0   ;;  %s6143_s24 = smov 0  }
   0x3   :  { %s6145_s25 = smov 0   ;;  %s6147_s26 = smov 0  }
   0x4 LB: > { %s4627_s27 = sadd.s32 4294967295, %s6097_s26   ;;  %s4628_s28 = sadd.s32 4294967294, %s6097_s26   ;;  %s6097_s26 = sphi %s6147_s26, %s19_s26   ;;  %s6093_s25 = sphi %s6145_s25, %s8829_s25   ;;  %s6089_s24 = sphi %s6143_s24, %s8828_s24   ;;  %s6085_s23 = sphi %s6141_s23, %s8827_s23   ;;  %s6081_s22 = sphi %s6139_s22, %s8826_s22   ;;  %s6077_s21 = sphi %s6137_s21, %s8825_s21  }
   0x5   : > { %s31_s29 = sadd.s32 1, %s6093_s25  ;;  %s196_s30 = sadd.s32 1, %s6085_s23 }
   0x6   : > { %p33_p0 = scmp.ge.s32.totalorder %s31_s29, 2  ;;  %p206_p1 = scmp.ne.s32.totalorder %s6085_s23, %s6081_s22 }
   0x7   : > { %p207_p2 = scmp.eq.s32.totalorder %s4627_s27, 1  ;;  %p212_p3 = scmp.ne.s32.totalorder %s6081_s22, %s6077_s21 }
   0x8   : > { %s8831_s29 = smov (%p33_p0, %s31_s29), 0  ;;  %p213_p5 = scmp.eq.s32.totalorder %s4628_s28, 1 }
   0x9   : > { %p6177_p4 = por %p207_p2, %p206_p1  ;;  %s191_s8 = ssub.s32 %s6093_s25, %s8831_s29 }
   0xa   : > { %p4635_p6 = scmp.ge.s32.totalorder %s6097_s26, 1  ;;  %p194_p7 = scmp.eq.s32.totalorder %s191_s8, 0 }
   0xb   : > { %p6184_p8 = por %p213_p5, %p212_p3  ;;  %p273_p9 = scmp.lt.s32.totalorder %s6097_s26, 3 }
   0xc   : > { %s6190_s10 = scalar_select %p194_p7, %s6085_s23, %s196_s30  }
   0xd   : > { %p274_p10 = pnand %p4635_p6, %p273_p9 }
   0xf   : > { %277 = sbr.rel (%p274_p10) target bundleno = 733 (0x2dd), region = 44 }
  0x16   : > { %v5919_v0 = vld [vmem:[%s8443_s1 + $0x20] sm:$0xff]   ;;  %p322_p11 = scmp.lt.s32.totalorder %s6089_s24, 1  ;;  %v5920_v1 = vld [vmem:[%s8443_s1 + $0x28] sm:$0xff]   ;;  %v5921_v2 = vld [vmem:[%s8443_s1 + $0x30] sm:$0xff]   ;;  %vm564_vm0 = vcmask 523264   ;;  %vm4161_vm3 = vcmask 261120  }
  0x17   : > { %5313 = vmatprep.subr.bf16.mxu0 %v5919_v0  ;;  %5853 = vmatprep.subr.bf16.mxu1 %v5919_v0  ;;  %v5922_v3 = vld [vmem:[%s8443_s1 + $0x38] sm:$0xff]   ;;  %v5930_v20 = vld [vmem:[%s8443_s1] sm:$0xff]   ;;  %v5932_v29 = vld [vmem:[%s8443_s1 + $0x8] sm:$0xff]   ;;  %vm873_vm1 = vsmask.f32 4352  ;;  %s5042_s16 = sshll.u32 %s6089_s24, 12 }
  0x18   : > { %s6200_s15 = scalar_select %p322_p11, %s6089_s24, 1  ;;  %5314 = vmatpush3.bf16.msra.mxu0 %v5919_v0  ;;  %5857 = vmatpush3.bf16.msra.mxu1 %v5919_v0  ;;  %v5931_v21 = vld [vmem:[%s8443_s1 + $0x40] sm:$0xff]   ;;  %v5942_v46 = vld [vmem:[%s8443_s1 + $0x10] sm:$0xff]   ;;  %v5948_v48 = vld [vmem:[%s8443_s1 + $0x48] sm:$0xff]   ;;  %vm1415_vm2 = vsmask.f32 7424 }
  0x19   : > { %5315 = vmatprep.subr.bf16.mxu0 %v5920_v1  ;;  %5854 = vmatprep.subr.bf16.mxu1 %v5920_v1  ;;  %v5962_v58 = vld [vmem:[%s8443_s1 + $0x50] sm:$0xff]   ;;  %v5943_v63 = vld [vmem:[%s8443_s1 + $0x18] sm:$0xff]   ;;  %s8387_s20 = scalar_lea.hbm %s8448_s6, %s5042_s16 }
  0x1a   : > { %s5861_s18 = smul.u32 240, %s6200_s15  ;;  %s5041_s19 = sshll.u32 %s6200_s15, 8 }
  0x1b   : > { %s7793_s15 = scalar_lea.vmem %s8445_s3, %s5041_s19 }
  0x1c   : > { %s6212_s30 = scalar_lea.vmem %s8442_s0, %s5861_s18  ;;  %5316 = vmatpush3.bf16.msra.mxu0 %v5920_v1  ;;  %5858 = vmatpush3.bf16.msra.mxu1 %v5920_v1 }
  0x1d   : > { %v347_v4 = vld [vmem:[%s6212_s30 + $0x8] sm:$0xf]  ;;  %v348_v5 = vld [vmem:[%s6212_s30 + $0xc] sm:$0xf]  ;;  %v349_v6 = vld [vmem:[%s6212_s30 + $0x10] sm:$0xf]  ;;  %5317 = vmatprep.subr.bf16.mxu0 %v5921_v2  ;;  %5855 = vmatprep.subr.bf16.mxu1 %v5921_v2 }
  0x1e   : > { %v350_v7 = vld [vmem:[%s6212_s30 + $0x14] sm:$0xf]  ;;  %v6218_v8 = vcombine.low %v348_v5, %v349_v6  ;;  %v4700_v9 = vcombine.low %v347_v4, %v348_v5  ;;  %v6221_v10 = vld [vmem:[%s6212_s30 + $0xac] sm:$0xf]  ;;  %v389_v11 = vld [vmem:[%s6212_s30 + $0xb0] sm:$0xf] }
  0x1f   : > { %v4701_v12 = vcombine.low %v349_v6, %v350_v7  ;;  %v6225_v13 = vcombine.low %v6221_v10, %v389_v11  ;;  %v351_v14 = vld [vmem:[%s6212_s30 + $0x18] sm:$0xf]  ;;  %v390_v17 = vld [vmem:[%s6212_s30 + $0xb4] sm:$0xf]  ;;  %v352_v22 = vld [vmem:[%s6212_s30 + $0x1c] sm:$0xf] }
  0x20   : > { %5321 = vmatprep.mubr.msk.bf16.mxu0 %vm564_vm0, %v6218_v8  ;;  %5318 = vmatpush3.bf16.msra.mxu0 %v5921_v2  ;;  %v875_v15 = vshrl.u32 %v4700_v9, 16  ;;  %v878_v16 = vshll.u32 %v4700_v9, 16  ;;  %v391_v18 = vld [vmem:[%s6212_s30 + $0xb8] sm:$0xf]  ;;  %v6232_v19 = vcombine.low %v389_v11, %v390_v17  ;;  %v353_v25 = vld [vmem:[%s6212_s30 + $0x20] sm:$0xf]  ;;  %v6245_v27 = vcombine.low %v350_v7, %v351_v14 }
  0x21   : > { %8591 = vst [vmem:[#allocation5_spill] sm:$0xff] %v6225_v13  ;;  %5859 = vmatpush3.bf16.msra.mxu1 %v5921_v2  ;;  %5319 = vmatprep.subr.bf16.mxu0 %v5922_v3  ;;  %v883_v23 = vshrl.u32 %v4701_v12, 16  ;;  %v886_v24 = vshll.u32 %v4701_v12, 16  ;;  %v392_v26 = vld [vmem:[%s6212_s30 + $0xbc] sm:$0xf]  ;;  %v6247_v28 = vcombine.low %v390_v17, %v391_v18  ;;  %v6252_v30 = vcombine.low %v351_v14, %v352_v22  ;;  %v5949_v5 = vld [vmem:[%s8443_s1 + $0x60] sm:$0xff]  }
  0x22   : > { %5856 = vmatprep.subr.bf16.mxu1 %v5922_v3  ;;  %5361 = vmatprep.mubr.msk.bf16.mxu1 %vm564_vm0, %v6225_v13  ;;  %v393_v31 = vld [vmem:[%s6212_s30 + $0xc0] sm:$0xf]  ;;  %v6255_v32 = vcombine.low %v391_v18, %v392_v26  ;;  %v877_v33 = vrot.slane %v875_v15, 3  ;;  %v880_v34 = vrot.slane %v878_v16, 4  ;;  %v394_v35 = vld [vmem:[%s6212_s30 + $0xc4] sm:$0xf]  ;;  %v6258_v36 = vcombine.low %v352_v22, %v353_v25 }
  0x23   : > { %8592 = vst [vmem:[#allocation6_spill] sm:$0xff] %v6247_v28  ;;  %v354_v37 = vld [vmem:[%s6212_s30 + $0x24] sm:$0xf]  ;;  %v6261_v38 = vcombine.low %v393_v31, %v394_v35  ;;  %v885_v39 = vrot.slane %v883_v23, 3  ;;  %v888_v40 = vrot.slane %v886_v24, 4  ;;  %v6263_v41 = vcombine.low %v392_v26, %v393_v31  ;;  %v5972_v12 = vld [vmem:[%s8443_s1 + $0x58] sm:$0xff]  }
  0x24   : > { %5320 = vmatpush3.bf16.msra.mxu0 %v5922_v3  ;;  %v355_v42 = vld [vmem:[%s6212_s30 + $0x28] sm:$0xf]  ;;  %v6266_v43 = vcombine.low %v353_v25, %v354_v37  ;;  %v8467_v44 = vshrl.u32 %v6252_v30, 16  ;;  %v8468_v47 = vshll.u32 %v6252_v30, 16  ;;  %v356_v49 = vld [vmem:[%s6212_s30 + $0x2c] sm:$0xf]  ;;  %v881_v51 = vor.u32 %v880_v34, %v877_v33 }
  0x25   : > { %5860 = vmatpush3.bf16.msra.mxu1 %v5922_v3  ;;  %5425 = vmatprep.subr.bf16.mxu0 %v5931_v21  ;;  %8593 = vst [vmem:[#allocation7_spill] sm:$0xff] %v6263_v41  ;;  %v6274_v45 = vld [vmem:[%s6212_s30 + $0xc8] sm:$0xf]  ;;  %v357_v50 = vld [vmem:[%s6212_s30 + $0x30] sm:$0xf]  ;;  %v889_v52 = vor.u32 %v888_v40, %v885_v39  ;;  %v6291_v55 = vcombine.low %v354_v37, %v355_v42 }
  0x26   : > { %5369 = vmatprep.subr.bf16.mxu1 %v5930_v20  ;;  %v8461_v53 = vshrl.u32 %v6266_v43, 16  ;;  %v8466_v54 = vshll.u32 %v6266_v43, 16  ;;  %v6294_v56 = vcombine.low %v394_v35, %v6274_v45  ;;  %v6296_v57 = vcombine.low %v355_v42, %v356_v49  ;;  %v358_v60 = vld [vmem:[%s6212_s30 + $0x34] sm:$0xf]  ;;  %v359_v4 = vld [vmem:[%s6212_s30 + $0x38] sm:$0xf] }
  0x27   : > { %5322 = vmatmul.mubr.msk.bf16.vlgmr.msra.gmra.mrb[0].mxu0 %vm564_vm0, %v6245_v27  ;;  %v6301_v59 = vcombine.low %v356_v49, %v357_v50  ;;  %v894_v61 = vrot.slane %v8467_v44, 3  ;;  %v897_v62 = vrot.slane %v8468_v47, 4  ;;  %v6311_v0 = vcombine.low %v357_v50, %v358_v60  ;;  %v360_v6 = vld [vmem:[%s6212_s30 + $0x3c] sm:$0xf]  ;;  %v361_v14 = vld [vmem:[%s6212_s30 + $0x40] sm:$0xf] }
  0x28   : > { %5362 = vmatmul.mubr.msk.bf16.vlgmr.msra.gmra.mrb[0].mxu1 %vm564_vm0, %v6247_v28  ;;  %5426 = vmatpush3.bf16.msra.mxu0 %v5931_v21  ;;  %8594 = vst [vmem:[#allocation8_spill] sm:$0xff] %v6294_v56  ;;  %v890_v1 = vsel %vm873_vm1, %v881_v51, %v889_v52  ;;  %v903_v2 = vrot.slane %v8461_v53, 3  ;;  %v906_v3 = vrot.slane %v8466_v54, 4  ;;  %v8459_v7 = vshrl.u32 %v6296_v57, 16  ;;  %v362_v23 = vld [vmem:[%s6212_s30 + $0x44] sm:$0xf] }
  0x29   : > { %5370 = vmatpush3.bf16.msra.mxu1 %v5930_v20  ;;  %5325 = vmatprep.mubr.msk.bf16.mxu0 %vm564_vm0, %v6258_v36  ;;  %v898_v9 = vor.u32 %v897_v62, %v894_v61  ;;  %v8460_v11 = vshll.u32 %v6296_v57, 16  ;;  %v8456_v15 = vshrl.u32 %v6311_v0, 16  ;;  %v8458_v16 = vshll.u32 %v6311_v0, 16  ;;  %v5963_v33 = vld [vmem:[%s8443_s1 + $0x68] sm:$0xff]   ;;  %v6363_v35 = vld [vmem:[%s8443_s1 + $0x80] sm:$0xff]  }
  0x2a   : > { %5371 = vmatprep.subr.bf16.mxu1 %v5932_v29  ;;  %5365 = vmatprep.mubr.msk.bf16.mxu1 %vm564_vm0, %v6263_v41  ;;  %v907_v17 = vor.u32 %v906_v3, %v903_v2  ;;  %v6338_v18 = vcombine.low %v358_v60, %v359_v4  ;;  %v6340_v20 = vcombine.low %v359_v4, %v360_v6  ;;  %v912_v24 = vrot.slane %v8459_v7, 3  ;;  %v363_v37 = vld [vmem:[%s6212_s30 + $0x48] sm:$0xf]  ;;  %v364_v40 = vld [vmem:[%s6212_s30 + $0x4c] sm:$0xf] }
  0x2b   : > { %5427 = vmatprep.subr.bf16.mxu0 %v5948_v48  ;;  %v899_v21 = vsel %vm873_vm1, %v889_v52, %v898_v9  ;;  %v6343_v22 = vcombine.low %v360_v6, %v361_v14  ;;  %v915_v25 = vrot.slane %v8460_v11, 4  ;;  %v6350_v26 = vcombine.low %v361_v14, %v362_v23  ;;  %v365_v42 = vld [vmem:[%s6212_s30 + $0x50] sm:$0xf]  ;;  %v366_v62 = vld [vmem:[%s6212_s30 + $0x54] sm:$0xf] }
  0x2c   : > { %5428 = vmatpush3.bf16.msra.mxu0 %v5948_v48  ;;  %v924_v31 = vrot.slane %v8458_v16, 4  ;;  %v908_v34 = vsel %vm873_vm1, %v898_v9, %v907_v17  ;;  %v8457_v48 = vshll.u32 %v6340_v20, 16  ;;  %v5977_v52 = vld [vmem:[%s8443_s1 + $0x70] sm:$0xff]   ;;  %v6384_v60 = vcombine.low %v364_v40, %v365_v42  ;;  %v368_v14 = vld [vmem:[%s6212_s30 + $0x5c] sm:$0xf] }
  0x2d   : > { %5372 = vmatpush3.bf16.msra.mxu1 %v5932_v29  ;;  %5429 = vmatprep.subr.bf16.mxu0 %v5962_v58  ;;  %v921_v29 = vrot.slane %v8456_v15, 3  ;;  %v916_v39 = vor.u32 %v915_v25, %v912_v24  ;;  %v8449_v50 = vshrl.u32 %v6350_v26, 16  ;;  %v8454_v51 = vshll.u32 %v6350_v26, 16  ;;  %v374_v16 = vld [vmem:[%s6212_s30 + $0x74] sm:$0xf] }
  0x2e   : > { %5373 = vmatprep.subr.bf16.mxu1 %v5942_v46  ;;  %v6386_v61 = vcombine.low %v363_v37, %v364_v40  ;;  %v933_v3 = vrot.slane %v8457_v48, 4  ;;  %v1418_v4 = vshll.u32 %v6218_v8, 16  ;;  %v6429_v40 = vld [vmem:[%s8443_s1 + $0xa0] sm:$0xff]  }
  0x2f   : > { %5326 = vmatmul.mubr.msk.bf16.gmra.mrb[4].mxu0 %vm564_vm0, %v6291_v55  ;;  %v925_v49 = vor.u32 %v924_v31, %v921_v29  ;;  %v939_v6 = vrot.slane %v8449_v50, 3  ;;  %v942_v9 = vrot.slane %v8454_v51, 4  ;;  %v378_v47 = vld [vmem:[%s6212_s30 + $0x84] sm:$0xf] }
  0x30   : > { %5366 = vmatmul.mubr.msk.bf16.gmra.mrb[4].mxu1 %vm564_vm0, %v6294_v56  ;;  %5329 = vmatprep.mubr.msk.bf16.mxu0 %vm564_vm0, %v6301_v59  ;;  %v8453_v24 = vshll.u32 %v6386_v61, 16 }
  0x31   : > { %5374 = vmatpush3.bf16.msra.mxu1 %v5942_v46  ;;  %5377 = vmatprep.mubr.msk.bf16.mxu1 %vm564_vm0, %v890_v1  ;;  %v8455_v46 = vshrl.u32 %v6340_v20, 16  ;;  %v6392_v1 = vcombine.low %v365_v42, %v366_v62  ;;  %v370_v42 = vld [vmem:[%s6212_s30 + $0x64] sm:$0xf] }
  0x32   : > { %5375 = vmatprep.subr.bf16.mxu1 %v5943_v63  ;;  %5430 = vmatpush3.bf16.msra.mxu0 %v5962_v58  ;;  %v6382_v58 = vcombine.low %v362_v23, %v363_v37  ;;  %v8450_v23 = vshrl.u32 %v6386_v61, 16  ;;  %v8469_v37 = vshll.u32 %v6258_v36, 16 }
  0x33   : > { %5431 = vmatprep.subr.bf16.mxu0 %v5972_v12  ;;  %v930_v2 = vrot.slane %v8455_v46, 3  ;;  %v8451_v29 = vshrl.u32 %v6392_v1, 16  ;;  %v8452_v31 = vshll.u32 %v6392_v1, 16 }
  0x34   : > { %v6474_v51 = vrot.slane %v8469_v37, 1 }
  0x35   : > { %5376 = vmatpush3.bf16.msra.mxu1 %v5943_v63  ;;  %v6390_v63 = vsel %vm873_vm1, %v907_v17, %v916_v39  ;;  %v5984_v17 = vld [vmem:[%s8443_s1 + $0x78] sm:$0xff]   ;;  %v934_v25 = vor.u32 %v933_v3, %v930_v2 }
  0x36   : > { %5481 = vmatprep.subr.bf16.mxu1 %v5949_v5  ;;  %5432 = vmatpush3.bf16.msra.mxu0 %v5972_v12  ;;  %8595 = vst [vmem:[#allocation9_spill] sm:$0xff] %v6390_v63  ;;  %v367_v12 = vld [vmem:[%s6212_s30 + $0x58] sm:$0xf] }
  0x37   : > { %5330 = vmatmul.mubr.msk.bf16.gmra.mrb[8].mxu0 %vm564_vm0, %v6338_v18  ;;  %5537 = vmatprep.subr.bf16.mxu0 %v6363_v35  ;;  %v6432_v2 = vcombine.low %v366_v62, %v367_v12  ;;  %v6436_v50 = vcombine.low %v367_v12, %v368_v14  ;;  %v960_v62 = vrot.slane %v8452_v31, 4 }
  0x38   : > { %5378 = vmatmul.mubr.msk.bf16.vlgmr.msra.gmra.mrb[8].mxu1 %vm564_vm0, %v899_v21  ;;  %5333 = vmatprep.mubr.msk.bf16.mxu0 %vm564_vm0, %v6343_v22  ;;  %v369_v21 = vld [vmem:[%s6212_s30 + $0x60] sm:$0xf] }
  0x39   : > { %5482 = vmatpush3.bf16.msra.mxu1 %v5949_v5  ;;  %5381 = vmatprep.mubr.msk.bf16.mxu1 %vm564_vm0, %v908_v34  ;;  %v6400_v5 = vsel %vm873_vm1, %v916_v39, %v925_v49  ;;  %v1420_v34 = vrot.slane %v1418_v4, 1  ;;  %v943_v39 = vor.u32 %v942_v9, %v939_v6  ;;  %v6434_v3 = vcombine.low %v368_v14, %v369_v21 }
  0x3a   : > { %5483 = vmatprep.subr.bf16.mxu1 %v5963_v33  ;;  %8596 = vst [vmem:[#allocation10_spill] sm:$0xff] %v6400_v5  ;;  %v6441_v4 = vsel %vm873_vm1, %v925_v49, %v934_v25  ;;  %v957_v6 = vrot.slane %v8451_v29, 3  ;;  %v6452_v12 = vcombine.low %v369_v21, %v370_v42  ;;  %v8470_v49 = vshll.u32 %v6245_v27, 16  ;;  %v373_v29 = vld [vmem:[%s6212_s30 + $0x70] sm:$0xf] }
  0x3b   : > { %8597 = vst [vmem:[#allocation11_spill] sm:$0xff] %v6441_v4  ;;  %v6450_v9 = vsel %vm873_vm1, %v934_v25, %v943_v39  ;;  %v8462_v25 = vshrl.u32 %v6436_v50, 16 }
  0x3c   : > { %8598 = vst [vmem:[#allocation12_spill] sm:$0xff] %v6450_v9  ;;  %v1424_v21 = vrot.slane %v8470_v49, 1  ;;  %v961_v31 = vor.u32 %v960_v62, %v957_v6  ;;  %v8463_v46 = vshrl.u32 %v6452_v12, 16  ;;  %v8464_v15 = vshll.u32 %v6452_v12, 16 }
  0x3d   : > { %5484 = vmatpush3.bf16.msra.mxu1 %v5963_v33  ;;  %v1416_v33 = vshrl.u32 %v6218_v8, 16  ;;  %v948_v8 = vrot.slane %v8450_v23, 3  ;;  %v371_v23 = vld [vmem:[%s6212_s30 + $0x68] sm:$0xf]  ;;  %v966_v53 = vrot.slane %v8462_v25, 3 }
  0x3e   : > { %5485 = vmatprep.subr.bf16.mxu1 %v5977_v52 }
  0x3f   : > { %5334 = vmatmul.mubr.msk.bf16.gmra.mrb[12].mxu0 %vm564_vm0, %v6382_v58  ;;  %v1421_v14 = vor.u32 %v1420_v34, %v1416_v33  ;;  %v8471_v33 = vshrl.u32 %v6245_v27, 16  ;;  %v372_v34 = vld [vmem:[%s6212_s30 + $0x6c] sm:$0xf] }
  0x40   : > { %5382 = vmatmul.mubr.msk.bf16.gmra.mrb[12].mxu1 %vm564_vm0, %v6390_v63  ;;  %5337 = vmatprep.mubr.msk.bf16.mxu0 %vm564_vm0, %v6384_v60  ;;  %v6485_v6 = vcombine.low %v372_v34, %v373_v29  ;;  %v6487_v62 = vcombine.low %v371_v23, %v372_v34  ;;  %v978_v34 = vrot.slane %v8464_v15, 4  ;;  %v8617_v63 = vshll.u32 %v6258_v36, 16 }
  0x41   : > { %5385 = vmatprep.mubr.msk.bf16.mxu1 %vm564_vm0, %v6400_v5  ;;  %5486 = vmatpush3.bf16.msra.mxu1 %v5977_v52  ;;  %v951_v52 = vrot.slane %v8453_v24, 4  ;;  %v8465_v24 = vshll.u32 %v6436_v50, 16  ;;  %v6479_v48 = vsel %vm1415_vm2, %v1421_v14, %v1424_v21  ;;  %v6497_v14 = vcombine.low %v373_v29, %v374_v16  ;;  %v377_v29 = vld [vmem:[%s6212_s30 + $0x80] sm:$0xf] }
  0x42   : > { %5487 = vmatprep.subr.bf16.mxu1 %v5984_v17  ;;  %8599 = vst [vmem:[#allocation13_spill] sm:$0xff] %v6485_v6  ;;  %v8472_v25 = vshrl.u32 %v6487_v62, 16 }
  0x43   : > { %8601 = vst [vmem:[#allocation15_spill] sm:$0xff] %v6497_v14  ;;  %v8473_v15 = vshrl.u32 %v6497_v14, 16 }
  0x45   : > { %5488 = vmatpush3.bf16.msra.mxu1 %v5984_v17  ;;  %v952_v17 = vor.u32 %v951_v52, %v948_v8  ;;  %v1428_v8 = vor.u32 %v8471_v33, %v1424_v21  ;;  %v6483_v52 = vcombine.low %v370_v42, %v371_v23  ;;  %v969_v42 = vrot.slane %v8465_v24, 4 }
  0x46   : > { %5593 = vmatprep.subr.bf16.mxu1 %v6429_v40  ;;  %v975_v23 = vrot.slane %v8463_v46, 3  ;;  %v8474_v24 = vshll.u32 %v6497_v14, 16  ;;  %v984_v33 = vrot.slane %v8472_v25, 3  ;;  %v380_v25 = vld [vmem:[%s6212_s30 + $0x8c] sm:$0xf] }
  0x47   : > { %5338 = vmatmul.mubr.msk.bf16.gmra.mrb[16].mxu0 %vm564_vm0, %v6432_v2  ;;  %v6492_v7 = vsel %vm1415_vm2, %v1428_v8, %v6474_v51  ;;  %v6495_v11 = vsel %vm873_vm1, %v943_v39, %v952_v17  ;;  %v6504_v21 = vsel %vm873_vm1, %v952_v17, %v961_v31  ;;  %v375_v39 = vld [vmem:[%s6212_s30 + $0x78] sm:$0xf]  ;;  %v376_v8 = vld [vmem:[%s6212_s30 + $0x7c] sm:$0xf]  ;;  %v8475_v17 = vshll.u32 %v6487_v62, 16 }
  0x48   : > { %5386 = vmatmul.mubr.msk.bf16.gmra.mrb[16].mxu1 %vm564_vm0, %v6441_v4  ;;  %5341 = vmatprep.mubr.msk.bf16.mxu0 %vm564_vm0, %v6434_v3  ;;  %8600 = vst [vmem:[#allocation14_spill] sm:$0xff] %v6495_v11  ;;  %8602 = vst [vmem:[#allocation16_spill] sm:$0xff] %v6504_v21  ;;  %v970_v46 = vor.u32 %v969_v42, %v966_v53  ;;  %v979_v54 = vor.u32 %v978_v34, %v975_v23  ;;  %v993_v23 = vrot.slane %v8473_v15, 3  ;;  %v381_v15 = vld [vmem:[%s6212_s30 + $0x90] sm:$0xf] }
  0x49   : > { %5389 = vmatprep.mubr.msk.bf16.mxu1 %vm564_vm0, %v6450_v9  ;;  %v6525_v44 = vcombine.low %v375_v39, %v376_v8  ;;  %v6528_v37 = vcombine.low %v374_v16, %v375_v39  ;;  %v6530_v49 = vcombine.low %v376_v8, %v377_v29  ;;  %v987_v42 = vrot.slane %v8475_v17, 4 }
  0x4a   : > { %v6535_v53 = vsel %vm873_vm1, %v961_v31, %v970_v46  ;;  %v996_v34 = vrot.slane %v8474_v24, 4  ;;  %v6544_v16 = vsel %vm873_vm1, %v970_v46, %v979_v54  ;;  %v6546_v39 = vcombine.low %v377_v29, %v378_v47  ;;  %v379_v31 = vld [vmem:[%s6212_s30 + $0x88] sm:$0xf] }
  0x4b   : > { %8603 = vst [vmem:[#allocation17_spill] sm:$0xff] %v6525_v44  ;;  %8604 = vst [vmem:[#allocation18_spill] sm:$0xff] %v6528_v37  ;;  %v988_v46 = vor.u32 %v987_v42, %v984_v33  ;;  %v8488_v24 = vshll.u32 %v6525_v44, 16  ;;  %v8611_v9 = vshrl.u32 %v6525_v44, 16  ;;  %v6570_v5 = vcombine.low %v379_v31, %v380_v25 }
  0x4c   : > { %8605 = vst [vmem:[#allocation19_spill] sm:$0xff] %v6530_v49  ;;  %8606 = vst [vmem:[#allocation20_spill] sm:$0xff] %v6535_v53  ;;  %v997_v29 = vor.u32 %v996_v34, %v993_v23  ;;  %v8486_v17 = vshrl.u32 %v6546_v39, 16  ;;  %v8487_v8 = vshll.u32 %v6546_v39, 16  ;;  %v8489_v33 = vshrl.u32 %v6258_v36, 16 }
  0x4d   : > { %8607 = vst [vmem:[#allocation21_spill] sm:$0xff] %v6544_v16  ;;  %8608 = vst [vmem:[#allocation22_spill] sm:$0xff] %v6546_v39  ;;  %v1002_v4 = vrot.slane %v8611_v9, 3  ;;  %v8613_v42 = vshrl.u32 %v6245_v27, 16  ;;  %v6578_v34 = vsel %vm873_vm1, %v979_v54, %v988_v46  ;;  %v1005_v9 = vrot.slane %v8488_v24, 4 }
  0x4e   : > { %8614 = vst [vmem:[#allocation26_spill] sm:$0xff] %v6578_v34  ;;  %v1943_v54 = vrot.slane %v8489_v33, 3 }
  0x4f   : > { %5342 = vmatmul.mubr.msk.bf16.gmra.mrb[20].mxu0 %vm564_vm0, %v6483_v52  ;;  %v1940_v23 = vrot.slane %v8613_v42, 3  ;;  %v1014_v42 = vrot.slane %v8487_v8, 4  ;;  %v384_v8 = vld [vmem:[%s6212_s30 + $0x9c] sm:$0xf] }
  0x50   : > { %5390 = vmatmul.mubr.msk.bf16.gmra.mrb[20].mxu1 %vm564_vm0, %v6495_v11  ;;  %5345 = vmatprep.mubr.msk.bf16.mxu0 %vm564_vm0, %v6485_v6  ;;  %v382_v11 = vld [vmem:[%s6212_s30 + $0x94] sm:$0xf] }
  0x51   : > { %5393 = vmatprep.mubr.msk.bf16.mxu1 %vm564_vm0, %v6504_v21  ;;  %v6563_v21 = vcombine.low %v378_v47, %v379_v31  ;;  %v6581_v47 = vsel %vm873_vm1, %v988_v46, %v997_v29  ;;  %v1011_v31 = vrot.slane %v8486_v17, 3  ;;  %v1944_v46 = vrot.slane %v8617_v63, 4  ;;  %v385_v63 = vld [vmem:[%s6212_s30 + $0xa0] sm:$0xf] }
  0x52   : > { %8615 = vst [vmem:[#allocation27_spill] sm:$0xff] %v6581_v47  ;;  %v1006_v17 = vor.u32 %v1005_v9, %v1002_v4 }
  0x53   : > { %8609 = vst [vmem:[#allocation23_spill] sm:$0xff] %v6563_v21  ;;  %v1015_v24 = vor.u32 %v1014_v42, %v1011_v31  ;;  %v8621_v42 = vshll.u32 %v6570_v5, 16 }
  0x54   : > { %v6621_v4 = vsel %vm873_vm1, %v997_v29, %v1006_v17 }
  0x55   : > { %8620 = vst [vmem:[#allocation30_spill] sm:$0xff] %v6621_v4 }
  0x57   : > { %5346 = vmatmul.mubr.msk.bf16.gmra.mrb[24].mxu0 %vm564_vm0, %v6528_v37 }
  0x58   : > { %5394 = vmatmul.mubr.msk.bf16.gmra.mrb[24].mxu1 %vm564_vm0, %v6535_v53  ;;  %5349 = vmatprep.mubr.msk.bf16.mxu0 %vm564_vm0, %v6530_v49  ;;  %v6565_v53 = vcombine.low %v380_v25, %v381_v15  ;;  %v8616_v25 = vshll.u32 %v6245_v27, 16  ;;  %v383_v27 = vld [vmem:[%s6212_s30 + $0x98] sm:$0xf] }
  0x59   : > { %5397 = vmatprep.mubr.msk.bf16.mxu1 %vm564_vm0, %v6544_v16  ;;  %v6572_v16 = vcombine.low %v381_v15, %v382_v11  ;;  %v6623_v9 = vcombine.low %v383_v27, %v384_v8 }
  0x5a   : > { %8610 = vst [vmem:[#allocation24_spill] sm:$0xff] %v6565_v53  ;;  %v1941_v15 = vrot.slane %v8616_v25, 4  ;;  %v6600_v25 = vor.u32 %v1944_v46, %v1943_v54  ;;  %v1023_v54 = vrot.slane %v8621_v42, 4 }
  0x5b   : > { %8612 = vst [vmem:[#allocation25_spill] sm:$0xff] %v6572_v16  ;;  %v8624_v29 = vshll.u32 %v6572_v16, 16 }
  0x5c   : > { %v1942_v14 = vor.u32 %v1941_v15, %v1940_v23  ;;  %v8496_v23 = vshrl.u32 %v6570_v5, 16  ;;  %v386_v15 = vld [vmem:[%s6212_s30 + $0xa4] sm:$0xf] }
  0x5d   : > { %v6633_v33 = vcombine.low %v385_v63, %v386_v15  ;;  %v1032_v44 = vrot.slane %v8624_v29, 4 }
  0x5e   : > { %v6614_v46 = vsel %vm873_vm1, %v1942_v14, %v6600_v25  ;;  %v1020_v31 = vrot.slane %v8496_v23, 3  ;;  %v6631_v14 = vsel %vm873_vm1, %v1006_v17, %v1015_v24  ;;  %v387_v17 = vld [vmem:[%s6212_s30 + $0xa8] sm:$0xf] }
  0x5f   : > { %5350 = vmatmul.mubr.msk.bf16.gmra.mrb[28].mxu0 %vm564_vm0, %v6563_v21  ;;  %8622 = vst [vmem:[#allocation31_spill] sm:$0xff] %v6631_v14  ;;  %v8501_v29 = vshll.u32 %v6633_v33, 16  ;;  %v6652_v23 = vcombine.low %v386_v15, %v387_v17 }
  0x60   : > { %5398 = vmatmul.mubr.msk.bf16.gmra.mrb[28].mxu1 %vm564_vm0, %v6578_v34  ;;  %5353 = vmatprep.mubr.msk.bf16.mxu0 %vm564_vm0, %v6565_v53  ;;  %v6616_v34 = vcombine.low %v382_v11, %v383_v27  ;;  %v8623_v11 = vshrl.u32 %v6572_v16, 16  ;;  %v8502_v27 = vshrl.u32 %v6623_v9, 16 }
  0x61   : > { %5401 = vmatprep.mubr.msk.bf16.mxu1 %vm564_vm0, %v6581_v47  ;;  %v6618_v47 = vcombine.low %v384_v8, %v385_v63  ;;  %v1024_v8 = vor.u32 %v1023_v54, %v1020_v31  ;;  %v8503_v63 = vshll.u32 %v6623_v9, 16  ;;  %8625 = vst [vmem:[#allocation32_spill] sm:$0xff] %v6652_v23  ;;  %v1050_v15 = vrot.slane %v8501_v29, 4 }
  0x62   : > { %8618 = vst [vmem:[#allocation28_spill] sm:$0xff] %v6616_v34  ;;  %v1029_v39 = vrot.slane %v8623_v11, 3  ;;  %v8500_v11 = vshrl.u32 %v6633_v33, 16  ;;  %v1038_v54 = vrot.slane %v8502_v27, 3  ;;  %v8507_v29 = vshrl.u32 %v6232_v19, 16 }
  0x63   : > { %8619 = vst [vmem:[#allocation29_spill] sm:$0xff] %v6618_v47  ;;  %v6658_v16 = vsel %vm873_vm1, %v1015_v24, %v1024_v8  ;;  %v1041_v31 = vrot.slane %v8503_v63, 4  ;;  %v8508_v27 = vshll.u32 %v6232_v19, 16  ;;  %v8628_v63 = vshrl.u32 %v6258_v36, 16 }
  0x64   : > { %v1033_v42 = vor.u32 %v1032_v44, %v1029_v39  ;;  %8626 = vst [vmem:[#allocation33_spill] sm:$0xff] %v6658_v16  ;;  %v1047_v39 = vrot.slane %v8500_v11, 3  ;;  %v8629_v24 = vshll.u32 %v6291_v55, 16  ;;  %v8512_v36 = vshll.u32 %v6338_v18, 16 }
  0x66   : > { %v6665_v44 = vsel %vm873_vm1, %v1024_v8, %v1033_v42  ;;  %v1042_v8 = vor.u32 %v1041_v31, %v1038_v54  ;;  %v1051_v11 = vor.u32 %v1050_v15, %v1047_v39  ;;  %v8513_v39 = vshrl.u32 %v6291_v55, 16 }
  0x67   : > { %5354 = vmatmul.mubr.msk.bf16.gmra.mrb[32].mxu0 %vm564_vm0, %v6616_v34  ;;  %8627 = vst [vmem:[#allocation34_spill] sm:$0xff] %v6665_v44  ;;  %v8511_v15 = vshrl.u32 %v6301_v59, 16 }
  0x68   : > { %5402 = vmatmul.mubr.msk.bf16.gmra.mrb[32].mxu1 %vm564_vm0, %v6621_v4  ;;  %5357 = vmatprep.mubr.msk.bf16.mxu0 %vm564_vm0, %v6618_v47  ;;  %v6655_v4 = vcombine.low %v387_v17, %v6221_v10  ;;  %v1435_v10 = vor.u32 %v8628_v63, %v6474_v51  ;;  %v8509_v17 = vshll.u32 %v6301_v59, 16  ;;  %v6695_v31 = vsel %vm873_vm1, %v1033_v42, %v1042_v8  ;;  %v5985_v42 = vld [vmem:[%s8443_s1 + $0x88] sm:$0xff]  }
  0x69   : > { %5405 = vmatprep.mubr.msk.bf16.mxu1 %vm564_vm0, %v6631_v14  ;;  %8632 = vst [vmem:[#allocation35_spill] sm:$0xff] %v6695_v31  ;;  %v6701_v51 = vsel %vm873_vm1, %v1042_v8, %v1051_v11  ;;  %v1065_v63 = vrot.slane %v8507_v29, 3  ;;  %v8514_v29 = vshrl.u32 %v6255_v32, 16 }
  0x6f   : > { %5358 = vmatmul.mubr.msk.bf16.gmra.mrb[36].mxu0 %vm564_vm0, %v6652_v23 }
  0x70   : > { %5406 = vmatmul.mubr.msk.bf16.gmra.mrb[36].mxu1 %vm564_vm0, %v6658_v16  ;;  %5433 = vmatprep.mubr.msk.bf16.mxu0 %vm564_vm0, %v6479_v48  ;;  %v1438_v16 = vrot.slane %v8629_v24, 1  ;;  %v8631_v48 = vshll.u32 %v6655_v4, 16 }
  0x71   : > { %5409 = vmatprep.mubr.msk.bf16.mxu1 %vm564_vm0, %v6665_v44  ;;  %v8630_v44 = vshrl.u32 %v6655_v4, 16 }
  0x72   : > { %v1059_v54 = vrot.slane %v8631_v48, 4  ;;  %v1439_v24 = vsel %vm1415_vm2, %v1435_v10, %v1438_v16  ;;  %v1445_v48 = vrot.slane %v8509_v17, 1  ;;  %v1442_v10 = vor.u32 %v8513_v39, %v1438_v16 }
  0x73   : > { %v1056_v14 = vrot.slane %v8630_v44, 3  ;;  %v1068_v44 = vrot.slane %v8508_v27, 4  ;;  %v8515_v27 = vshll.u32 %v6255_v32, 16  ;;  %v4724_v16 = vcombine.low %v6274_v45, %v6274_v45 }
  0x74   : > { %v1449_v17 = vor.u32 %v8511_v15, %v1445_v48 }
  0x75   : > { %v1060_v8 = vor.u32 %v1059_v54, %v1056_v14  ;;  %v8516_v14 = vshrl.u32 %v6261_v38, 16  ;;  %v8520_v54 = vshrl.u32 %v6338_v18, 16 }
  0x77   : > { %5434 = vmatmul.mubr.msk.bf16.vlgmr.msra.gmra.mrb[40].mxu0 %vm564_vm0, %v6492_v7  ;;  %v1069_v7 = vor.u32 %v1068_v44, %v1065_v63  ;;  %v6737_v15 = vsel %vm873_vm1, %v1051_v11, %v1060_v8  ;;  %v1077_v63 = vrot.slane %v8515_v27, 4  ;;  %v8636_v27 = vshll.u32 %v6261_v38, 16 }
  0x78   : > { %5410 = vmatmul.mubr.msk.bf16.gmra.mrb[40].mxu1 %vm564_vm0, %v6695_v31  ;;  %5538 = vmatpush3.bf16.msra.mxu0 %v6363_v35  ;;  %v1452_v31 = vrot.slane %v8512_v36, 1  ;;  %v5987_v35 = vld [vmem:[%s8443_s1 + $0x90] sm:$0xff]   ;;  %8633 = vst [vmem:[#allocation36_spill] sm:$0xff] %v6737_v15  ;;  %v1074_v36 = vrot.slane %v8514_v29, 3  ;;  %v1083_v29 = vrot.slane %v8516_v14, 3  ;;  %v1090_v14 = vshrl.u32 %v4724_v16, 16 }
  0x79   : > { %5413 = vmatprep.mubr.msk.bf16.mxu1 %vm564_vm0, %v6701_v51  ;;  %5437 = vmatprep.mubr.msk.bf16.mxu0 %vm564_vm0, %v1439_v24  ;;  %v6745_v24 = vsel %vm1415_vm2, %v1442_v10, %v1445_v48  ;;  %v6753_v11 = vsel %vm873_vm1, %v1060_v8, %v1069_v7  ;;  %v1086_v44 = vrot.slane %v8636_v27, 4  ;;  %v8637_v8 = vshll.u32 %v6343_v22, 16 }
  0x7a   : > { %5539 = vmatprep.subr.bf16.mxu0 %v5985_v42  ;;  %8634 = vst [vmem:[#allocation37_spill] sm:$0xff] %v6745_v24  ;;  %v6748_v39 = vsel %vm1415_vm2, %v1449_v17, %v1452_v31  ;;  %v5989_v17 = vld [vmem:[%s8443_s1 + $0x98] sm:$0xff]   ;;  %v1456_v27 = vor.u32 %v8520_v54, %v1452_v31  ;;  %v1093_v48 = vshll.u32 %v4724_v16, 16  ;;  %v8521_v31 = vshll.u32 %v6384_v60, 16 }
  0x7b   : > { %8635 = vst [vmem:[#allocation38_spill] sm:$0xff] %v6748_v39  ;;  %v1459_v10 = vrot.slane %v8637_v8, 1  ;;  %v6775_v45 = vor.u32 %v1086_v44, %v1083_v29  ;;  %v6784_v8 = vld [vmem:[%s8443_s1 + $0xc0] sm:$0xff]   ;;  %v1092_v16 = vrot.slane %v1090_v14, 3  ;;  %v8526_v44 = vshrl.u32 %v6382_v58, 16 }
  0x7c   : > { %5540 = vmatpush3.bf16.msra.mxu0 %v5985_v42  ;;  %v1078_v42 = vor.u32 %v1077_v63, %v1074_v36  ;;  %v8640_v36 = vshll.u32 %v6382_v58, 16  ;;  %v8524_v54 = vshrl.u32 %v6384_v60, 16  ;;  %v1473_v14 = vrot.slane %v8521_v31, 1 }
  0x7d   : > { %5541 = vmatprep.subr.bf16.mxu0 %v5987_v35  ;;  %8638 = vst [vmem:[#allocation39_spill] sm:$0xff] %v6775_v45  ;;  %v6791_v29 = vsel %vm1415_vm2, %v1456_v27, %v1459_v10 }
  0x7e   : > { %v1466_v63 = vrot.slane %v8640_v36, 1  ;;  %8642 = vst [vmem:[#allocation41_spill] sm:$0xff] %v6791_v29 }
  0x7f   : > { %5438 = vmatmul.mubr.msk.bf16.gmra.mrb[44].mxu0 %vm564_vm0, %v6745_v24 }
  0x80   : > { %5414 = vmatmul.mubr.msk.bf16.gmra.mrb[44].mxu1 %vm564_vm0, %v6737_v15  ;;  %5441 = vmatprep.mubr.msk.bf16.mxu0 %vm564_vm0, %v6748_v39  ;;  %v8639_v15 = vshrl.u32 %v6343_v22, 16  ;;  %v6787_v39 = vsel %vm873_vm1, %v1069_v7, %v1078_v42  ;;  %v8525_v7 = vshll.u32 %v6432_v2, 16 }
  0x81   : > { %5417 = vmatprep.mubr.msk.bf16.mxu1 %vm564_vm0, %v6753_v11  ;;  %5542 = vmatpush3.bf16.msra.mxu0 %v5987_v35  ;;  %8641 = vst [vmem:[#allocation40_spill] sm:$0xff] %v6787_v39  ;;  %v6796_v35 = vsel %vm873_vm1, %v1078_v42, %v6775_v45 }
  0x82   : > { %v1463_v24 = vor.u32 %v8639_v15, %v1459_v10  ;;  %5543 = vmatprep.subr.bf16.mxu0 %v5989_v17  ;;  %v1095_v15 = vrot.slane %v1093_v48, 4  ;;  %8643 = vst [vmem:[#allocation42_spill] sm:$0xff] %v6796_v35  ;;  %v1470_v48 = vor.u32 %v8526_v44, %v1466_v63  ;;  %v1480_v42 = vrot.slane %v8525_v7, 1 }
  0x83   : > { %v8645_v10 = vshll.u32 %v6291_v55, 16  ;;  %v8533_v7 = vshrl.u32 %v6434_v3, 16  ;;  %v8649_v44 = vshrl.u32 %v6301_v59, 16 }
  0x84   : > { %v6799_v36 = vsel %vm1415_vm2, %v1463_v24, %v1466_v63  ;;  %v1096_v24 = vor.u32 %v1095_v15, %v1092_v16  ;;  %v6828_v15 = vsel %vm1415_vm2, %v1470_v48, %v1473_v14  ;;  %v8534_v63 = vshrl.u32 %v6432_v2, 16 }
  0x85   : > { %8644 = vst [vmem:[#allocation43_spill] sm:$0xff] %v6799_v36  ;;  %5544 = vmatpush3.bf16.msra.mxu0 %v5989_v17  ;;  %v1477_v17 = vor.u32 %v8524_v54, %v1473_v14  ;;  %v1948_v27 = vrot.slane %v8645_v10, 4  ;;  %8647 = vst [vmem:[#allocation44_spill] sm:$0xff] %v6828_v15  ;;  %v8532_v10 = vshll.u32 %v6483_v52, 16  ;;  %v1951_v31 = vrot.slane %v8649_v44, 3 }
  0x86   : > { %5649 = vmatprep.subr.bf16.mxu0 %v6784_v8  ;;  %v1097_v16 = vsel %vm873_vm1, %v6775_v45, %v1096_v24  ;;  %v8651_v14 = vshll.u32 %v6434_v3, 16  ;;  %v1484_v44 = vor.u32 %v8534_v63, %v1480_v42 }
  0x87   : > { %5442 = vmatmul.mubr.msk.bf16.gmra.mrb[48].mxu0 %vm564_vm0, %v6791_v29  ;;  %v8646_v29 = vshrl.u32 %v6291_v55, 16  ;;  %v6832_v54 = vsel %vm1415_vm2, %v1477_v17, %v1480_v42 }
  0x88   : > { %5418 = vmatmul.mubr.msk.bf16.gmra.mrb[48].mxu1 %vm564_vm0, %v6787_v39  ;;  %5445 = vmatprep.mubr.msk.bf16.mxu0 %vm564_vm0, %v6799_v36  ;;  %8648 = vst [vmem:[#allocation45_spill] sm:$0xff] %v6832_v54  ;;  %v1487_v24 = vrot.slane %v8651_v14, 1  ;;  %v8535_v14 = vshll.u32 %v6485_v6, 16 }
  0x89   : > { %5421 = vmatprep.mubr.msk.bf16.mxu1 %vm564_vm0, %v6796_v35  ;;  %v1947_v35 = vrot.slane %v8646_v29, 3  ;;  %v8650_v29 = vshll.u32 %v6301_v59, 16 }
  0x8a   : > { %v1491_v17 = vor.u32 %v8533_v7, %v1487_v24  ;;  %v6862_v42 = vsel %vm1415_vm2, %v1484_v44, %v1487_v24  ;;  %v5988_v24 = vld [vmem:[%s8443_s1 + $0xa8] sm:$0xff]  }
  0x8b   : > { %v1952_v36 = vrot.slane %v8650_v29, 4  ;;  %v1949_v48 = vor.u32 %v1948_v27, %v1947_v35  ;;  %8654 = vst [vmem:[#allocation46_spill] sm:$0xff] %v6862_v42  ;;  %v8537_v27 = vshrl.u32 %v6485_v6, 16 }
  0x8d   : > { %v1953_v29 = vor.u32 %v1952_v36, %v1951_v31  ;;  %v1950_v35 = vsel %vm873_vm1, %v6600_v25, %v1949_v48  ;;  %v8536_v36 = vshll.u32 %v6528_v37, 16 }
  0x8f   : > { %5446 = vmatmul.mubr.msk.bf16.gmra.mrb[52].mxu0 %vm564_vm0, %v6828_v15  ;;  %v8538_v15 = vshrl.u32 %v6483_v52, 16  ;;  %v1954_v44 = vsel %vm873_vm1, %v1949_v48, %v1953_v29 }
  0x90   : > { %5422 = vmatmul.mubr.msk.bf16.gmra.mrb[52].mxu1 %vm564_vm0, %v1097_v16  ;;  %5449 = vmatprep.mubr.msk.bf16.mxu0 %vm564_vm0, %v6832_v54  ;;  %v1494_v16 = vrot.slane %v8532_v10, 1  ;;  %v8652_v54 = vshrl.u32 %v6338_v18, 16  ;;  %v8656_v10 = vshrl.u32 %v6343_v22, 16 }
  0x91   : > { %5489 = vmatprep.mubr.msk.bf16.mxu1 %vm564_vm0, %v6614_v46  ;;  %v8653_v46 = vshll.u32 %v6338_v18, 16 }
  0x92   : > { %v1955_v45 = vrot.slane %v8652_v54, 3  ;;  %v6868_v31 = vsel %vm1415_vm2, %v1491_v17, %v1494_v16  ;;  %v1959_v7 = vrot.slane %v8656_v10, 3  ;;  %v8657_v54 = vshll.u32 %v6343_v22, 16 }
  0x93   : > { %v1956_v39 = vrot.slane %v8653_v46, 4  ;;  %8655 = vst [vmem:[#allocation47_spill] sm:$0xff] %v6868_v31  ;;  %v1498_v25 = vor.u32 %v8538_v15, %v1494_v16  ;;  %v1501_v10 = vrot.slane %v8535_v14, 1  ;;  %v1508_v46 = vrot.slane %v8536_v36, 1  ;;  %v5990_v16 = vld [vmem:[%s8443_s1 + $0xb0] sm:$0xff]  }
  0x94   : > { %v1960_v63 = vrot.slane %v8657_v54, 4  ;;  %v8660_v36 = vshll.u32 %v6382_v58, 16  ;;  %v8663_v54 = vshll.u32 %v6384_v60, 16 }
  0x95   : > { %v1957_v17 = vor.u32 %v1956_v39, %v1955_v45  ;;  %v1505_v48 = vor.u32 %v8537_v27, %v1501_v10  ;;  %v5994_v27 = vld [vmem:[%s8443_s1 + $0xb8] sm:$0xff]  }
  0x96   : > { %v1968_v39 = vrot.slane %v8663_v54, 4 }
  0x97   : > { %5450 = vmatmul.mubr.msk.bf16.gmra.mrb[56].mxu0 %vm564_vm0, %v6862_v42  ;;  %v1958_v45 = vsel %vm873_vm1, %v1953_v29, %v1957_v17  ;;  %v6910_v15 = vsel %vm1415_vm2, %v1505_v48, %v1508_v46  ;;  %v8662_v29 = vshrl.u32 %v6384_v60, 16 }
  0x98   : > { %5490 = vmatmul.mubr.msk.bf16.vlgmr.msra.gmra.mrb[56].mxu1 %vm564_vm0, %v1950_v35  ;;  %5453 = vmatprep.mubr.msk.bf16.mxu0 %vm564_vm0, %v6868_v31  ;;  %v1961_v35 = vor.u32 %v1960_v63, %v1959_v7  ;;  %v1964_v7 = vrot.slane %v8660_v36, 4  ;;  %v8541_v63 = vshrl.u32 %v6530_v49, 16  ;;  %8661 = vst [vmem:[#allocation49_spill] sm:$0xff] %v6910_v15 }
  0x99   : > { %5594 = vmatpush3.bf16.msra.mxu1 %v6429_v40  ;;  %5493 = vmatprep.mubr.msk.bf16.mxu1 %vm564_vm0, %v1954_v44  ;;  %v6899_v40 = vsel %vm1415_vm2, %v1498_v25, %v1501_v10  ;;  %v8659_v44 = vshrl.u32 %v6382_v58, 16  ;;  %v1967_v10 = vrot.slane %v8662_v29, 3  ;;  %v8666_v29 = vshll.u32 %v6563_v21, 16 }
  0x9a   : > { %5595 = vmatprep.subr.bf16.mxu1 %v5988_v24  ;;  %8658 = vst [vmem:[#allocation48_spill] sm:$0xff] %v6899_v40  ;;  %v1962_v25 = vsel %vm873_vm1, %v1957_v17, %v1961_v35 }
  0x9b   : > { %v1963_v14 = vrot.slane %v8659_v44, 3  ;;  %v8664_v44 = vshll.u32 %v6530_v49, 16  ;;  %v1969_v31 = vor.u32 %v1968_v39, %v1967_v10  ;;  %v8544_v10 = vshrl.u32 %v6565_v53, 16 }
  0x9d   : > { %5596 = vmatpush3.bf16.msra.mxu1 %v5988_v24  ;;  %v1515_v36 = vrot.slane %v8664_v44, 1  ;;  %v8665_v24 = vshrl.u32 %v6528_v37, 16  ;;  %v1965_v48 = vor.u32 %v1964_v7, %v1963_v14  ;;  %v1522_v44 = vrot.slane %v8666_v29, 1 }
  0x9e   : > { %5597 = vmatprep.subr.bf16.mxu1 %v5990_v16  ;;  %v8667_v14 = vshrl.u32 %v6432_v2, 16  ;;  %v8668_v7 = vshll.u32 %v6432_v2, 16 }
  0x9f   : > { %5454 = vmatmul.mubr.msk.bf16.gmra.mrb[60].mxu0 %vm564_vm0, %v6899_v40  ;;  %v1512_v17 = vor.u32 %v8665_v24, %v1508_v46  ;;  %v1519_v54 = vor.u32 %v8541_v63, %v1515_v36  ;;  %v1970_v63 = vsel %vm873_vm1, %v1965_v48, %v1969_v31  ;;  %v8672_v40 = vshll.u32 %v6434_v3, 16 }
  0xa0   : > { %5494 = vmatmul.mubr.msk.bf16.gmra.mrb[60].mxu1 %vm564_vm0, %v1958_v45  ;;  %5457 = vmatprep.mubr.msk.bf16.mxu0 %vm564_vm0, %v6910_v15  ;;  %v6937_v45 = vld [vmem:[%s8443_s1 + $0xe0] sm:$0xff]   ;;  %v1971_v46 = vrot.slane %v8667_v14, 3  ;;  %v1972_v24 = vrot.slane %v8668_v7, 4  ;;  %v8545_v15 = vshll.u32 %v6616_v34, 16 }
  0xa1   : > { %5497 = vmatprep.mubr.msk.bf16.mxu1 %vm564_vm0, %v1962_v25  ;;  %5598 = vmatpush3.bf16.msra.mxu1 %v5990_v16  ;;  %v6946_v29 = vsel %vm1415_vm2, %v1512_v17, %v1515_v36  ;;  %v1966_v16 = vsel %vm873_vm1, %v1961_v35, %v1965_v48  ;;  %v6950_v39 = vsel %vm1415_vm2, %v1519_v54, %v1522_v44  ;;  %v8671_v25 = vshrl.u32 %v6434_v3, 16 }
  0xa2   : > { %5599 = vmatprep.subr.bf16.mxu1 %v5994_v27  ;;  %8669 = vst [vmem:[#allocation50_spill] sm:$0xff] %v6946_v29  ;;  %8670 = vst [vmem:[#allocation51_spill] sm:$0xff] %v6950_v39  ;;  %v1976_v7 = vrot.slane %v8672_v40, 4  ;;  %v8673_v35 = vshrl.u32 %v6563_v21, 16  ;;  %v8674_v17 = vshll.u32 %v6565_v53, 16  ;;  %v1973_v54 = vor.u32 %v1972_v24, %v1971_v46 }
  0xa3   : > { %v1975_v14 = vrot.slane %v8671_v25, 3  ;;  %v1536_v40 = vrot.slane %v8545_v15, 1  ;;  %v8676_v24 = vshrl.u32 %v6483_v52, 16  ;;  %v8550_v15 = vshll.u32 %v6652_v23, 16 }
  0xa4   : > { %v1526_v36 = vor.u32 %v8673_v35, %v1522_v44  ;;  %v1529_v48 = vrot.slane %v8674_v17, 1  ;;  %v1974_v35 = vsel %vm873_vm1, %v1969_v31, %v1973_v54 }
  0xa5   : > { %5600 = vmatpush3.bf16.msra.mxu1 %v5994_v27  ;;  %v1977_v25 = vor.u32 %v1976_v7, %v1975_v14  ;;  %v1979_v17 = vrot.slane %v8676_v24, 3 }
  0xa6   : > { %5705 = vmatprep.subr.bf16.mxu1 %v6937_v45  ;;  %v1533_v27 = vor.u32 %v8544_v10, %v1529_v48  ;;  %v6976_v44 = vsel %vm1415_vm2, %v1526_v36, %v1529_v48  ;;  %v8549_v10 = vshrl.u32 %v6618_v47, 16  ;;  %v8679_v36 = vshrl.u32 %v6485_v6, 16 }
  0xa7   : > { %5458 = vmatmul.mubr.msk.bf16.gmra.mrb[64].mxu0 %vm564_vm0, %v6946_v29  ;;  %8675 = vst [vmem:[#allocation52_spill] sm:$0xff] %v6976_v44  ;;  %v1978_v7 = vsel %vm873_vm1, %v1973_v54, %v1977_v25  ;;  %v8680_v48 = vshll.u32 %v6485_v6, 16 }
  0xa8   : > { %5498 = vmatmul.mubr.msk.bf16.gmra.mrb[64].mxu1 %vm564_vm0, %v1966_v16  ;;  %5461 = vmatprep.mubr.msk.bf16.mxu0 %vm564_vm0, %v6950_v39  ;;  %v8546_v16 = vshll.u32 %v6618_v47, 16  ;;  %v6987_v14 = vsel %vm1415_vm2, %v1533_v27, %v1536_v40  ;;  %v1983_v31 = vrot.slane %v8679_v36, 3 }
  0xa9   : > { %5501 = vmatprep.mubr.msk.bf16.mxu1 %vm564_vm0, %v1970_v63  ;;  %v8677_v63 = vshll.u32 %v6483_v52, 16  ;;  %8678 = vst [vmem:[#allocation53_spill] sm:$0xff] %v6987_v14  ;;  %v1984_v46 = vrot.slane %v8680_v48, 4  ;;  %v1550_v48 = vrot.slane %v8550_v15, 1 }
  0xaa   : > { %v1543_v24 = vrot.slane %v8546_v16, 1 }
  0xab   : > { %v1980_v39 = vrot.slane %v8677_v63, 4  ;;  %v8681_v63 = vshrl.u32 %v6616_v34, 16  ;;  %v1985_v16 = vor.u32 %v1984_v46, %v1983_v31  ;;  %v8557_v46 = vshrl.u32 %v6225_v13, 16 }
  0xac   : > { %v1547_v36 = vor.u32 %v8549_v10, %v1543_v24 }
  0xad   : > { %v1540_v27 = vor.u32 %v8681_v63, %v1536_v40  ;;  %v1981_v54 = vor.u32 %v1980_v39, %v1979_v17  ;;  %v8552_v40 = vshll.u32 %v6225_v13, 16  ;;  %v8683_v63 = vshrl.u32 %v6528_v37, 16 }
  0xae   : > { %v7017_v39 = vsel %vm1415_vm2, %v1547_v36, %v1550_v48  ;;  %v8685_v17 = vshll.u32 %v6528_v37, 16 }
  0xaf   : > { %5462 = vmatmul.mubr.msk.bf16.gmra.mrb[68].mxu0 %vm564_vm0, %v6976_v44  ;;  %v7009_v44 = vsel %vm1415_vm2, %v1540_v27, %v1543_v24  ;;  %8684 = vst [vmem:[#allocation55_spill] sm:$0xff] %v7017_v39  ;;  %v1986_v31 = vsel %vm873_vm1, %v1981_v54, %v1985_v16  ;;  %v8556_v24 = vshll.u32 %v6247_v28, 16  ;;  %v8686_v27 = vshrl.u32 %v6530_v49, 16 }
  0xb0   : > { %5502 = vmatmul.mubr.msk.bf16.gmra.mrb[68].mxu1 %vm564_vm0, %v1974_v35  ;;  %5465 = vmatprep.mubr.msk.bf16.mxu0 %vm564_vm0, %v6987_v14  ;;  %8682 = vst [vmem:[#allocation54_spill] sm:$0xff] %v7009_v44  ;;  %v1987_v14 = vrot.slane %v8683_v63, 3  ;;  %v1988_v10 = vrot.slane %v8685_v17, 4  ;;  %v8687_v35 = vshll.u32 %v6530_v49, 16 }
  0xb1   : > { %5505 = vmatprep.mubr.msk.bf16.mxu1 %vm564_vm0, %v1978_v7  ;;  %v1982_v7 = vsel %vm873_vm1, %v1977_v25, %v1981_v54  ;;  %v1991_v15 = vrot.slane %v8686_v27, 3  ;;  %v1557_v25 = vrot.slane %v8552_v40, 1  ;;  %v8688_v54 = vshrl.u32 %v6652_v23, 16 }
  0xb2   : > { %v1992_v63 = vrot.slane %v8687_v35, 4  ;;  %v1989_v17 = vor.u32 %v1988_v10, %v1987_v14  ;;  %v1564_v27 = vrot.slane %v8556_v24, 1  ;;  %v8559_v40 = vshrl.u32 %v6247_v28, 16 }
  0xb3   : > { %v1554_v36 = vor.u32 %v8688_v54, %v1550_v48  ;;  %v1561_v35 = vor.u32 %v8557_v46, %v1557_v25  ;;  %v8560_v48 = vshrl.u32 %v6263_v41, 16  ;;  %v8562_v54 = vshll.u32 %v6294_v56, 16 }
  0xb4   : > { %v1990_v14 = vsel %vm873_vm1, %v1985_v16, %v1989_v17  ;;  %v8693_v24 = vshrl.u32 %v6565_v53, 16  ;;  %v8694_v46 = vshll.u32 %v6565_v53, 16  ;;  %v8700_v53 = vshll.u32 %v6618_v47, 16 }
  0xb5   : > { %v7049_v10 = vsel %vm1415_vm2, %v1554_v36, %v1557_v25  ;;  %v396_v25 = vld [vmem:[%s6212_s30 + $0xcc] sm:$0xf]  ;;  %v1568_v36 = vor.u32 %v8559_v40, %v1564_v27 }
  0xb6   : > { %8691 = vst [vmem:[#allocation56_spill] sm:$0xff] %v7049_v10 }
  0xb7   : > { %5466 = vmatmul.mubr.msk.bf16.gmra.mrb[72].mxu0 %vm564_vm0, %v7009_v44  ;;  %v8558_v44 = vshll.u32 %v6263_v41, 16 }
  0xb8   : > { %5506 = vmatmul.mubr.msk.bf16.gmra.mrb[72].mxu1 %vm564_vm0, %v1982_v7  ;;  %5469 = vmatprep.mubr.msk.bf16.mxu0 %vm564_vm0, %v7017_v39  ;;  %v1993_v7 = vor.u32 %v1992_v63, %v1991_v15  ;;  %v8689_v39 = vshrl.u32 %v6563_v21, 16  ;;  %v7055_v15 = vsel %vm1415_vm2, %v1561_v35, %v1564_v27  ;;  %v4761_v35 = vcombine.low %v396_v25, %v396_v25 }
  0xb9   : > { %5509 = vmatprep.mubr.msk.bf16.mxu1 %vm564_vm0, %v1986_v31  ;;  %v8690_v31 = vshll.u32 %v6563_v21, 16  ;;  %8692 = vst [vmem:[#allocation57_spill] sm:$0xff] %v7055_v15  ;;  %v1571_v16 = vrot.slane %v8558_v44, 1  ;;  %v398_v21 = vld [vmem:[%s6212_s30 + $0xd4] sm:$0xf] }
  0xba   : > { %v1995_v29 = vrot.slane %v8689_v39, 3  ;;  %v1994_v63 = vsel %vm873_vm1, %v1989_v17, %v1993_v7  ;;  %v1999_v39 = vrot.slane %v8693_v24, 3  ;;  %v1578_v24 = vrot.slane %v8562_v54, 1 }
  0xbb   : > { %v1996_v42 = vrot.slane %v8690_v31, 4  ;;  %v2000_v31 = vrot.slane %v8694_v46, 4  ;;  %v1575_v46 = vor.u32 %v8560_v48, %v1571_v16  ;;  %v397_v48 = vld [vmem:[%s6212_s30 + $0xd0] sm:$0xf]  ;;  %v8697_v54 = vshrl.u32 %v6616_v34, 16 }
  0xbc   : > { %v7100_v49 = vcombine.low %v397_v48, %v398_v21 }
  0xbd   : > { %v1997_v17 = vor.u32 %v1996_v42, %v1995_v29  ;;  %v2001_v44 = vor.u32 %v2000_v31, %v1999_v39  ;;  %v1580_v42 = vshrl.u32 %v6294_v56, 16  ;;  %v6017_v29 = vld [vmem:[%s6212_s30 + $0xc8] sm:$0xf]  ;;  %v8698_v39 = vshll.u32 %v6616_v34, 16 }
  0xbe   : > { %v7083_v40 = vcombine.low %v6017_v29, %v396_v25  ;;  %v2008_v29 = vrot.slane %v8700_v53, 4  ;;  %v8569_v53 = vshll.u32 %v7100_v49, 16 }
  0xbf   : > { %5470 = vmatmul.mubr.msk.bf16.gmra.mrb[76].mxu0 %vm564_vm0, %v7049_v10  ;;  %v1998_v27 = vsel %vm873_vm1, %v1993_v7, %v1997_v17  ;;  %v2003_v10 = vrot.slane %v8697_v54, 3  ;;  %v2004_v31 = vrot.slane %v8698_v39, 4  ;;  %v8699_v7 = vshrl.u32 %v6618_v47, 16 }
  0xc0   : > { %5510 = vmatmul.mubr.msk.bf16.gmra.mrb[76].mxu1 %vm564_vm0, %v1990_v14  ;;  %5473 = vmatprep.mubr.msk.bf16.mxu0 %vm564_vm0, %v7055_v15  ;;  %v7078_v14 = vsel %vm1415_vm2, %v1568_v36, %v1571_v16  ;;  %v1584_v15 = vshll.u32 %v4761_v35, 16  ;;  %v2002_v16 = vsel %vm873_vm1, %v1997_v17, %v2001_v44  ;;  %v7108_v54 = vor.u32 %v1580_v42, %v1578_v24 }
  0xc1   : > { %5513 = vmatprep.mubr.msk.bf16.mxu1 %vm564_vm0, %v1994_v63  ;;  %8695 = vst [vmem:[#allocation58_spill] sm:$0xff] %v7078_v14  ;;  %v7086_v63 = vsel %vm1415_vm2, %v1575_v46, %v1578_v24  ;;  %v2007_v36 = vrot.slane %v8699_v7, 3  ;;  %v8568_v46 = vshll.u32 %v7083_v40, 16  ;;  %v2005_v35 = vor.u32 %v2004_v31, %v2003_v10 }
  0xc2   : > { %8696 = vst [vmem:[#allocation59_spill] sm:$0xff] %v7086_v63  ;;  %8701 = vst [vmem:[#allocation60_spill] sm:$0xff] %v7108_v54  ;;  %v1586_v17 = vrot.slane %v1584_v15, 1  ;;  %v8702_v31 = vshrl.u32 %v6652_v23, 16  ;;  %v8705_v47 = vshll.u32 %v6225_v13, 16 }
  0xc3   : > { %v2009_v39 = vor.u32 %v2008_v29, %v2007_v36  ;;  %v7113_v7 = vrot.slane %v8568_v46, 1  ;;  %v2006_v15 = vsel %vm873_vm1, %v2001_v44, %v2005_v35  ;;  %v8703_v36 = vshll.u32 %v6652_v23, 16 }
  0xc4   : > { %v1587_v10 = vsel %vm1415_vm2, %v7108_v54, %v1586_v17  ;;  %v2016_v34 = vrot.slane %v8705_v47, 4  ;;  %v8710_v54 = vshll.u32 %v6263_v41, 16 }
  0xc5   : > { %v2012_v29 = vrot.slane %v8703_v36, 4  ;;  %v2010_v46 = vsel %vm873_vm1, %v2005_v35, %v2009_v39  ;;  %v7149_v36 = vcombine.low %v396_v25, %v397_v48 }
  0xc7   : > { %5474 = vmatmul.mubr.msk.bf16.gmra.mrb[80].mxu0 %vm564_vm0, %v7078_v14  ;;  %v8573_v14 = vshrl.u32 %v7083_v40, 16  ;;  %8708 = vst [vmem:[#allocation61_spill] sm:$0xff] %v7149_v36 }
  0xc8   : > { %5514 = vmatmul.mubr.msk.bf16.gmra.mrb[80].mxu1 %vm564_vm0, %v1998_v27  ;;  %5477 = vmatprep.mubr.msk.bf16.mxu0 %vm564_vm0, %v7086_v63  ;;  %v7118_v27 = vrot.slane %v8569_v53, 1  ;;  %v8704_v53 = vshrl.u32 %v6225_v13, 16  ;;  %v2024_v13 = vrot.slane %v8710_v54, 4  ;;  %v8577_v54 = vshll.u32 %v7149_v36, 16 }
  0xc9   : > { %5517 = vmatprep.mubr.msk.bf16.mxu1 %vm564_vm0, %v2002_v16  ;;  %v2795_v24 = vor.u32 %v8573_v14, %v7113_v7  ;;  %v2011_v16 = vrot.slane %v8702_v31, 3  ;;  %v8707_v31 = vshll.u32 %v6247_v28, 16 }
  0xca   : > { %v2015_v63 = vrot.slane %v8704_v53, 3  ;;  %v8706_v53 = vshrl.u32 %v6247_v28, 16 }
  0xcb   : > { %v7137_v14 = vsel %vm1415_vm2, %v2795_v24, %v7118_v27  ;;  %v2013_v44 = vor.u32 %v2012_v29, %v2011_v16  ;;  %v2020_v24 = vrot.slane %v8707_v31, 4  ;;  %v2027_v29 = vrot.slane %v1580_v42, 3  ;;  %v6000_v31 = vld [vmem:[%s8443_s1 + $0xd8] sm:$0xff]  }
  0xcc   : > { %v2017_v17 = vor.u32 %v2016_v34, %v2015_v63  ;;  %v2019_v47 = vrot.slane %v8706_v53, 3  ;;  %v5996_v34 = vld [vmem:[%s8443_s1 + $0xc8] sm:$0xff]   ;;  %v8576_v63 = vshrl.u32 %v7149_v36, 16 }
  0xcd   : > { %v2014_v35 = vsel %vm873_vm1, %v2009_v39, %v2013_v44  ;;  %v5998_v39 = vld [vmem:[%s8443_s1 + $0xd0] sm:$0xff]  }
  0xce   : > { %v2021_v48 = vor.u32 %v2020_v24, %v2019_v47  ;;  %v2037_v47 = vrot.slane %v8577_v54, 4 }
  0xcf   : > { %5478 = vmatmul.mubr.msk.bf16.gmra.mrb[84].mxu0 %vm564_vm0, %v1587_v10  ;;  %v2018_v10 = vsel %vm873_vm1, %v2013_v44, %v2017_v17 }
  0xd0   : > { %5518 = vmatmul.mubr.msk.bf16.gmra.mrb[84].mxu1 %vm564_vm0, %v2006_v15  ;;  %5545 = vmatprep.mubr.msk.bf16.mxu0 %vm564_vm0, %v6252_v30  ;;  %v8709_v15 = vshrl.u32 %v6263_v41, 16  ;;  %v2022_v16 = vsel %vm873_vm1, %v2017_v17, %v2021_v48 }
  0xd1   : > { %5521 = vmatprep.mubr.msk.bf16.mxu1 %vm564_vm0, %v2010_v46 }
  0xd2   : > { %v2023_v46 = vrot.slane %v8709_v15, 3 }
  0xd4   : > { %v2025_v25 = vor.u32 %v2024_v13, %v2023_v46  ;;  %v2034_v13 = vrot.slane %v8576_v63, 3 }
  0xd6   : > { %v2026_v53 = vsel %vm873_vm1, %v2021_v48, %v2025_v25  ;;  %v2038_v24 = vor.u32 %v2037_v47, %v2034_v13  ;;  %v8715_v47 = vshrl.u32 %v6266_v43, 16 }
  0xd7   : > { %5546 = vmatmul.mubr.msk.bf16.vlgmr.msra.gmra.mrb[88].mxu0 %vm564_vm0, %v6266_v43 }
  0xd8   : > { %5522 = vmatmul.mubr.msk.bf16.gmra.mrb[88].mxu1 %vm564_vm0, %v2014_v35  ;;  %5650 = vmatpush3.bf16.msra.mxu0 %v6784_v8  ;;  %v8711_v8 = vshll.u32 %v6294_v56, 16  ;;  %v4799_v35 = vcombine.low %v398_v21, %v398_v21 }
  0xd9   : > { %5525 = vmatprep.mubr.msk.bf16.mxu1 %vm564_vm0, %v2018_v10  ;;  %5549 = vmatprep.mubr.msk.bf16.mxu0 %vm564_vm0, %v6296_v57  ;;  %v7191_v10 = vld [vmem:[%s8443_s1 + $0x100] sm:$0xff]  }
  0xda   : > { %5651 = vmatprep.subr.bf16.mxu0 %v5996_v34  ;;  %v2028_v44 = vrot.slane %v8711_v8, 4  ;;  %v2041_v42 = vshrl.u32 %v4799_v35, 16  ;;  %v2044_v17 = vshll.u32 %v4799_v35, 16 }
  0xdc   : > { %5652 = vmatpush3.bf16.msra.mxu0 %v5996_v34  ;;  %v2029_v21 = vor.u32 %v2028_v44, %v2027_v29  ;;  %v2043_v46 = vrot.slane %v2041_v42, 3  ;;  %v2046_v34 = vrot.slane %v2044_v17, 4  ;;  %v8714_v44 = vshll.u32 %v6266_v43, 16 }
  0xdd   : > { %5653 = vmatprep.subr.bf16.mxu0 %v5998_v39  ;;  %v8717_v42 = vshrl.u32 %v6296_v57, 16 }
  0xde   : > { %v2030_v15 = vsel %vm873_vm1, %v2025_v25, %v2029_v21  ;;  %v2039_v48 = vsel %vm873_vm1, %v2029_v21, %v2038_v24  ;;  %v2047_v25 = vor.u32 %v2046_v34, %v2043_v46  ;;  %v2726_v35 = vrot.slane %v8714_v44, 1  ;;  %v5999_v34 = vld [vmem:[%s8443_s1 + $0xe8] sm:$0xff]  }
  0xdf   : > { %5550 = vmatmul.mubr.msk.bf16.gmra.mrb[92].mxu0 %vm564_vm0, %v6311_v0 }
  0xe0   : > { %5526 = vmatmul.mubr.msk.bf16.gmra.mrb[92].mxu1 %vm564_vm0, %v2022_v16  ;;  %5553 = vmatprep.mubr.msk.bf16.mxu0 %vm564_vm0, %v6340_v20  ;;  %v8712_v16 = vshll.u32 %v6252_v30, 16 }
  0xe1   : > { %5529 = vmatprep.mubr.msk.bf16.mxu1 %vm564_vm0, %v2026_v53  ;;  %5654 = vmatpush3.bf16.msra.mxu0 %v5998_v39  ;;  %v8713_v39 = vshrl.u32 %v6252_v30, 16  ;;  %v2048_v53 = vsel %vm873_vm1, %v2038_v24, %v2047_v25  ;;  %v8716_v30 = vshll.u32 %v6296_v57, 16  ;;  %v8718_v24 = vshll.u32 %v6311_v0, 16 }
  0xe2   : > { %5655 = vmatprep.subr.bf16.mxu0 %v6000_v31  ;;  %v2724_v8 = vrot.slane %v8712_v16, 1  ;;  %v8720_v16 = vshrl.u32 %v6311_v0, 16  ;;  %v8721_v25 = vshrl.u32 %v6340_v20, 16 }
  0xe3   : > { %v2729_v21 = vrot.slane %v8716_v30, 1 }
  0xe4   : > { %v2725_v29 = vor.u32 %v2724_v8, %v8713_v39 }
  0xe5   : > { %5656 = vmatpush3.bf16.msra.mxu0 %v6000_v31  ;;  %v2728_v31 = vor.u32 %v2726_v35, %v8715_v47  ;;  %v2731_v17 = vor.u32 %v2729_v21, %v8717_v42 }
  0xe6   : > { %5761 = vmatprep.subr.bf16.mxu0 %v7191_v10  ;;  %v2727_v13 = vsel %vm1415_vm2, %v2725_v29, %v2726_v35  ;;  %v8722_v29 = vshll.u32 %v6350_v26, 16  ;;  %v6001_v35 = vld [vmem:[%s8443_s1 + $0xf0] sm:$0xff]  }
  0xe7   : > { %5554 = vmatmul.mubr.msk.bf16.gmra.mrb[96].mxu0 %vm564_vm0, %v6350_v26  ;;  %v2730_v46 = vsel %vm1415_vm2, %v2728_v31, %v2729_v21 }
  0xe8   : > { %5530 = vmatmul.mubr.msk.bf16.gmra.mrb[96].mxu1 %vm564_vm0, %v2030_v15  ;;  %5557 = vmatprep.mubr.msk.bf16.mxu0 %vm564_vm0, %v6386_v61  ;;  %v2732_v15 = vrot.slane %v8718_v24, 1  ;;  %v2738_v44 = vrot.slane %v8722_v29, 1  ;;  %v8723_v24 = vld [vmem:[#allocation15_spill] sm:$0xff]  ;;  %v8729_v29 = vshrl.u32 %v7083_v40, 16 }
  0xe9   : > { %5533 = vmatprep.mubr.msk.bf16.mxu1 %vm564_vm0, %v2039_v48  ;;  %v8719_v48 = vshll.u32 %v6340_v20, 16 }
  0xea   : > { %v2733_v43 = vsel %vm1415_vm2, %v2731_v17, %v2732_v15  ;;  %v2734_v8 = vor.u32 %v2732_v15, %v8720_v16  ;;  %v6005_v17 = vld [vmem:[%s8443_s1 + $0xf8] sm:$0xff]   ;;  %v8724_v15 = vshll.u32 %v6386_v61, 16  ;;  %v8727_v16 = vshrl.u32 %v6386_v61, 16 }
  0xeb   : > { %v2735_v57 = vrot.slane %v8719_v48, 1 }
  0xed   : > { %v2737_v39 = vor.u32 %v2735_v57, %v8721_v25  ;;  %v2736_v20 = vsel %vm1415_vm2, %v2734_v8, %v2735_v57  ;;  %v8582_v57 = vshrl.u32 %v7100_v49, 16  ;;  %v8728_v25 = vshll.u32 %v6392_v1, 16 }
  0xef   : > { %5558 = vmatmul.mubr.msk.bf16.gmra.mrb[100].mxu0 %vm564_vm0, %v6392_v1  ;;  %v2739_v42 = vsel %vm1415_vm2, %v2737_v39, %v2738_v44  ;;  %v2744_v39 = vrot.slane %v8728_v25, 1  ;;  %v3164_v61 = vrot.slane %v8582_v57, 3 }
  0xf0   : > { %5534 = vmatmul.mubr.msk.bf16.gmra.mrb[100].mxu1 %vm564_vm0, %v2048_v53  ;;  %5561 = vmatprep.mubr.msk.bf16.mxu0 %vm564_vm0, %v6436_v50 }
  0xf1   : > { %5601 = vmatprep.mubr.msk.bf16.mxu1 %vm564_vm0, %v2727_v13 }
  0xf7   : > { %5562 = vmatmul.mubr.msk.bf16.gmra.mrb[104].mxu0 %vm564_vm0, %v6452_v12 }
  0xf8   : > { %5602 = vmatmul.mubr.msk.bf16.vlgmr.msra.gmra.mrb[104].mxu1 %vm564_vm0, %v2730_v46  ;;  %5565 = vmatprep.mubr.msk.bf16.mxu0 %vm564_vm0, %v6487_v62  ;;  %v2741_v46 = vrot.slane %v8724_v15, 1 }
  0xf9   : > { %5706 = vmatpush3.bf16.msra.mxu1 %v6937_v45  ;;  %5605 = vmatprep.mubr.msk.bf16.mxu1 %vm564_vm0, %v2733_v43  ;;  %v8725_v43 = vld [vmem:[#allocation17_spill] sm:$0xff] }
  0xfa   : > { %5707 = vmatprep.subr.bf16.mxu1 %v5999_v34  ;;  %v5323_v45 = vpop.f32.mrb[0].mxu0  ;;  %v2743_v8 = vor.u32 %v2741_v46, %v8727_v16 }
  0xfb   : > { %v7247_v53 = vpop.f32.mrb[0].mxu1  ;;  %v671_v13 = vpop.f32.mrb[1].mxu0  ;;  %v3160_v45 = vrot.slane %v8729_v29, 3 }
  0xfc   : > { %v7249_v47 = vpop.f32.mrb[1].mxu1  ;;  %v5324_v0 = vpop.f32.mrb[2].mxu0  ;;  %v2745_v41 = vsel %vm1415_vm2, %v2743_v8, %v2744_v39  ;;  %v8738_v8 = vshrl.u32 %v6436_v50, 16 }
  0xfd   : > { %v7251_v31 = vpop.f32.mrb[2].mxu1  ;;  %5708 = vmatpush3.bf16.msra.mxu1 %v5999_v34  ;;  %v674_v30 = vpop.f32.mrb[3].mxu0  ;;  %v8726_v34 = vshrl.u32 %v6350_v26, 16  ;;  %v7282_v26 = vld [vmem:[%s8446_s4] sm:$0xff]  }
  0xfe   : > { %v821_v21 = vpop.f32.mrb[3].mxu1  ;;  %5709 = vmatprep.subr.bf16.mxu1 %v6001_v35 }
  0xff   : > { %5566 = vmatmul.mubr.msk.bf16.gmra.mrb[108].mxu0 %vm564_vm0, %v8723_v24  ;;  %v2740_v48 = vor.u32 %v2738_v44, %v8726_v34  ;;  %v8731_v44 = vshll.u32 %v7100_v49, 16 }
 0x100   : > { %5606 = vmatmul.mubr.msk.bf16.gmra.mrb[108].mxu1 %vm564_vm0, %v2736_v20  ;;  %5569 = vmatprep.mubr.msk.bf16.mxu0 %vm564_vm0, %v8725_v43  ;;  %v8730_v20 = vshll.u32 %v7083_v40, 16 }
 0x101   : > { %5609 = vmatprep.mubr.msk.bf16.mxu1 %vm564_vm0, %v2739_v42  ;;  %5710 = vmatpush3.bf16.msra.mxu1 %v6001_v35  ;;  %v3165_v35 = vrot.slane %v8731_v44, 4  ;;  %v2742_v63 = vsel %vm1415_vm2, %v2740_v48, %v2741_v46  ;;  %v8736_v46 = vshll.u32 %v6436_v50, 16 }
 0x102   : > { %v3161_v21 = vrot.slane %v8730_v20, 4  ;;  %v5327_v15 = vpop.f32.mrb[4].mxu0  ;;  %5711 = vmatprep.subr.bf16.mxu1 %v6005_v17 }
 0x103   : > { %v7277_v42 = vpop.f32.mrb[4].mxu1  ;;  %v686_v34 = vpop.f32.mrb[5].mxu0  ;;  %v7291_v54 = vor.u32 %v3165_v35, %v3164_v61  ;;  %v8739_v61 = vshll.u32 %v6452_v12, 16 }
 0x104   : > { %v833_v16 = vpop.f32.mrb[5].mxu1  ;;  %v7288_v25 = vor.u32 %v3161_v21, %v3160_v45  ;;  %v5328_v29 = vpop.f32.mrb[6].mxu0  ;;  %v8735_v45 = vld [vmem:[#allocation22_spill] sm:$0xff] }
 0x105   : > { %v5368_v20 = vpop.f32.mrb[6].mxu1  ;;  %8733 = vst [vmem:[#allocation17_spill] sm:$0xff] %v7291_v54  ;;  %v689_v36 = vpop.f32.mrb[7].mxu0  ;;  %5712 = vmatpush3.bf16.msra.mxu1 %v6005_v17  ;;  %v8737_v17 = vshrl.u32 %v6392_v1, 16  ;;  %v2750_v35 = vrot.slane %v8739_v61, 1 }
 0x106   : > { %8732 = vst [vmem:[#allocation15_spill] sm:$0xff] %v7288_v25  ;;  %v7293_v56 = vpop.f32.mrb[7].mxu1  ;;  %5817 = vmatprep.subr.bf16.mxu1 %v7282_v26  ;;  %v7300_v44 = vsel %vm873_vm1, %v7288_v25, %v7291_v54  ;;  %v2747_v36 = vrot.slane %v8736_v46, 1 }
 0x107   : > { %8734 = vst [vmem:[#allocation62_spill] sm:$0xff] %v7300_v44  ;;  %5570 = vmatmul.mubr.msk.bf16.gmra.mrb[112].mxu0 %vm564_vm0, %v8735_v45  ;;  %v2746_v48 = vor.u32 %v2744_v39, %v8737_v17 }
 0x108   : > { %5610 = vmatmul.mubr.msk.bf16.gmra.mrb[112].mxu1 %vm564_vm0, %v2742_v63  ;;  %5573 = vmatprep.mubr.msk.bf16.mxu0 %vm564_vm0, %v6570_v5  ;;  %v2749_v21 = vor.u32 %v2747_v36, %v8738_v8  ;;  %v8740_v8 = vld [vmem:[#allocation25_spill] sm:$0xff] }
 0x109   : > { %5613 = vmatprep.mubr.msk.bf16.mxu1 %vm564_vm0, %v2745_v41  ;;  %v2748_v44 = vsel %vm1415_vm2, %v2746_v48, %v2747_v36  ;;  %v8743_v36 = vshrl.u32 %v6487_v62, 16  ;;  %v8744_v48 = vshll.u32 %v8723_v24, 16 }
 0x10a   : > { %v5331_v16 = vpop.f32.mrb[8].mxu0  ;;  %v2751_v50 = vsel %vm1415_vm2, %v2749_v21, %v2750_v35 }
 0x10b   : > { %v5379_v20 = vpop.f32.mrb[8].mxu1  ;;  %v701_v63 = vpop.f32.mrb[9].mxu0  ;;  %v2756_v21 = vrot.slane %v8744_v48, 1 }
 0x10c   : > { %v1228_v57 = vpop.f32.mrb[9].mxu1  ;;  %v5332_v46 = vpop.f32.mrb[10].mxu0 }
 0x10d   : > { %v7316_v28 = vadd.f32 %v1228_v57, %v671_v13  ;;  %v5380_v23 = vpop.f32.mrb[10].mxu1  ;;  %v703_v1 = vpop.f32.mrb[11].mxu0  ;;  %v8741_v13 = vshll.u32 %v6487_v62, 16 }
 0x10e   : > { %v7319_v41 = vadd.f32 %v5380_v23, %v5324_v0  ;;  %v1231_v39 = vpop.f32.mrb[11].mxu1  ;;  %v8742_v23 = vshrl.u32 %v6452_v12, 16 }
 0x10f   : > { %v7322_v17 = vadd.f32 %v1231_v39, %v674_v30  ;;  %5574 = vmatmul.mubr.msk.bf16.gmra.mrb[116].mxu0 %vm564_vm0, %v8740_v8  ;;  %v2753_v57 = vrot.slane %v8741_v13, 1 }
 0x110   : > { %5614 = vmatmul.mubr.msk.bf16.gmra.mrb[116].mxu1 %vm564_vm0, %v2748_v44  ;;  %5577 = vmatprep.mubr.msk.bf16.mxu0 %vm564_vm0, %v6623_v9  ;;  %v2752_v0 = vor.u32 %v2750_v35, %v8742_v23 }
 0x111   : > { %5617 = vmatprep.mubr.msk.bf16.mxu1 %vm564_vm0, %v2751_v50  ;;  %v2755_v30 = vor.u32 %v2753_v57, %v8743_v36 }
 0x112   : > { %v5335_v61 = vpop.f32.mrb[12].mxu0  ;;  %v2754_v50 = vsel %vm1415_vm2, %v2752_v0, %v2753_v57  ;;  %v8748_v0 = vshll.u32 %v8735_v45, 16 }
 0x113   : > { %v5383_v20 = vpop.f32.mrb[12].mxu1  ;;  %v715_v63 = vpop.f32.mrb[13].mxu0  ;;  %v2757_v23 = vsel %vm1415_vm2, %v2755_v30, %v2756_v21 }
 0x114   : > { %v7338_v44 = vadd.f32 %v5383_v20, %v5327_v15  ;;  %v1243_v46 = vpop.f32.mrb[13].mxu1  ;;  %v5336_v13 = vpop.f32.mrb[14].mxu0  ;;  %v8745_v15 = vshll.u32 %v8725_v43, 16  ;;  %v2762_v30 = vrot.slane %v8748_v0, 1 }
 0x115   : > { %v7340_v39 = vadd.f32 %v1243_v46, %v686_v34  ;;  %v5384_v54 = vpop.f32.mrb[14].mxu1  ;;  %v718_v35 = vpop.f32.mrb[15].mxu0 }
 0x116   : > { %v7343_v12 = vadd.f32 %v5384_v54, %v5328_v29  ;;  %v1246_v62 = vpop.f32.mrb[15].mxu1  ;;  %v2759_v36 = vrot.slane %v8745_v15, 1  ;;  %v8746_v54 = vshrl.u32 %v8723_v24, 16  ;;  %v8747_v29 = vshrl.u32 %v8725_v43, 16 }
 0x117   : > { %5578 = vmatmul.mubr.msk.bf16.gmra.mrb[120].mxu0 %vm564_vm0, %v6633_v33  ;;  %v8749_v43 = vshll.u32 %v6570_v5, 16 }
 0x118   : > { %5618 = vmatmul.mubr.msk.bf16.gmra.mrb[120].mxu1 %vm564_vm0, %v2754_v50  ;;  %5581 = vmatprep.mubr.msk.bf16.mxu0 %vm564_vm0, %v6655_v4  ;;  %v2758_v34 = vor.u32 %v2756_v21, %v8746_v54  ;;  %v2761_v57 = vor.u32 %v2759_v36, %v8747_v29 }
 0x119   : > { %5621 = vmatprep.mubr.msk.bf16.mxu1 %vm564_vm0, %v2757_v23 }
 0x11a   : > { %v5339_v48 = vpop.f32.mrb[16].mxu0  ;;  %v2760_v25 = vsel %vm1415_vm2, %v2758_v34, %v2759_v36  ;;  %v2763_v24 = vsel %vm1415_vm2, %v2761_v57, %v2762_v30  ;;  %v8750_v36 = vshrl.u32 %v8735_v45, 16  ;;  %v8751_v34 = vshrl.u32 %v6570_v5, 16 }
 0x11b   : > { %v5387_v61 = vpop.f32.mrb[16].mxu1  ;;  %v730_v46 = vpop.f32.mrb[17].mxu0 }
 0x11c   : > { %v7360_v20 = vadd.f32 %v5387_v61, %v5331_v16  ;;  %v1258_v50 = vpop.f32.mrb[17].mxu1  ;;  %v5340_v62 = vpop.f32.mrb[18].mxu0  ;;  %v2765_v16 = vrot.slane %v8749_v43, 1  ;;  %v2764_v54 = vor.u32 %v2762_v30, %v8750_v36 }
 0x11d   : > { %v5388_v15 = vpop.f32.mrb[18].mxu1  ;;  %v733_v23 = vpop.f32.mrb[19].mxu0 }
 0x11e   : > { %v1260_v37 = vpop.f32.mrb[19].mxu1  ;;  %v2766_v43 = vsel %vm1415_vm2, %v2764_v54, %v2765_v16  ;;  %v8755_v54 = vshrl.u32 %v6623_v9, 16 }
 0x11f   : > { %v7364_v21 = vadd.f32 %v1260_v37, %v703_v1  ;;  %5582 = vmatmul.mubr.msk.bf16.gmra.mrb[124].mxu0 %vm564_vm0, %v6232_v19  ;;  %v2767_v37 = vor.u32 %v2765_v16, %v8751_v34  ;;  %v8752_v1 = vshll.u32 %v8740_v8, 16 }
 0x120   : > { %5622 = vmatmul.mubr.msk.bf16.gmra.mrb[124].mxu1 %vm564_vm0, %v2760_v25  ;;  %5585 = vmatprep.mubr.msk.bf16.mxu0 %vm564_vm0, %v6255_v32 }
 0x121   : > { %5625 = vmatprep.mubr.msk.bf16.mxu1 %vm564_vm0, %v2763_v24  ;;  %v2768_v29 = vrot.slane %v8752_v1, 1 }
 0x122   : > { %v5343_v57 = vpop.f32.mrb[20].mxu0 }
 0x123   : > { %v5391_v0 = vpop.f32.mrb[20].mxu1  ;;  %v745_v25 = vpop.f32.mrb[21].mxu0  ;;  %v2769_v5 = vsel %vm1415_vm2, %v2767_v37, %v2768_v29  ;;  %v8756_v37 = vshll.u32 %v6633_v33, 16 }
 0x124   : > { %v1272_v61 = vpop.f32.mrb[21].mxu1  ;;  %v5344_v15 = vpop.f32.mrb[22].mxu0 }
 0x125   : > { %v7380_v50 = vadd.f32 %v1272_v61, %v715_v63  ;;  %v5392_v23 = vpop.f32.mrb[22].mxu1  ;;  %v747_v45 = vpop.f32.mrb[23].mxu0  ;;  %v8753_v63 = vshll.u32 %v6623_v9, 16  ;;  %v2774_v1 = vrot.slane %v8756_v37, 1 }
 0x126   : > { %v7383_v24 = vadd.f32 %v5392_v23, %v5336_v13  ;;  %v1275_v30 = vpop.f32.mrb[23].mxu1  ;;  %v8754_v13 = vshrl.u32 %v8740_v8, 16 }
 0x127   : > { %v7386_v36 = vadd.f32 %v1275_v30, %v718_v35  ;;  %5586 = vmatmul.mubr.msk.bf16.gmra.mrb[128].mxu0 %vm564_vm0, %v6261_v38  ;;  %v2771_v34 = vrot.slane %v8753_v63, 1 }
 0x128   : > { %5626 = vmatmul.mubr.msk.bf16.gmra.mrb[128].mxu1 %vm564_vm0, %v2766_v43  ;;  %5589 = vmatprep.mubr.msk.bf16.mxu0 %vm564_vm0, %v7083_v40  ;;  %v2770_v16 = vor.u32 %v2768_v29, %v8754_v13 }
 0x129   : > { %5629 = vmatprep.mubr.msk.bf16.mxu1 %vm564_vm0, %v2769_v5  ;;  %v2773_v35 = vor.u32 %v2771_v34, %v8755_v54 }
 0x12a   : > { %v5347_v0 = vpop.f32.mrb[24].mxu0  ;;  %v2772_v5 = vsel %vm1415_vm2, %v2770_v16, %v2771_v34  ;;  %v8760_v16 = vshrl.u32 %v6655_v4, 16 }
 0x12b   : > { %v5395_v25 = vpop.f32.mrb[24].mxu1  ;;  %v759_v15 = vpop.f32.mrb[25].mxu0  ;;  %v2775_v63 = vsel %vm1415_vm2, %v2773_v35, %v2774_v1  ;;  %v8761_v35 = vshll.u32 %v6232_v19, 16 }
 0x12c   : > { %v7402_v61 = vadd.f32 %v5395_v25, %v5339_v48  ;;  %v1287_v23 = vpop.f32.mrb[25].mxu1  ;;  %v5348_v40 = vpop.f32.mrb[26].mxu0  ;;  %v8757_v48 = vshll.u32 %v6655_v4, 16  ;;  %v6007_v4 = vld [vmem:[%s8443_s1 + $0x108] sm:$0xff]  }
 0x12d   : > { %v7404_v43 = vadd.f32 %v1287_v23, %v730_v46  ;;  %v5396_v30 = vpop.f32.mrb[26].mxu1  ;;  %v762_v29 = vpop.f32.mrb[27].mxu0  ;;  %v8758_v46 = vld [vmem:[#allocation9_spill] sm:$0xff]  ;;  %v2780_v37 = vrot.slane %v8761_v35, 1  ;;  %v8767_v35 = vshll.u32 %v6261_v38, 16 }
 0x12e   : > { %v7407_v8 = vadd.f32 %v5396_v30, %v5340_v62  ;;  %v1290_v9 = vpop.f32.mrb[27].mxu1  ;;  %v2777_v13 = vrot.slane %v8757_v48, 1  ;;  %v8759_v62 = vshrl.u32 %v6633_v33, 16 }
 0x12f   : > { %5590 = vmatmul.mubr.msk.bf16.gmra.mrb[132].mxu0 %vm564_vm0, %v7100_v49 }
 0x130   : > { %5630 = vmatmul.mubr.msk.bf16.gmra.mrb[132].mxu1 %vm564_vm0, %v2772_v5  ;;  %5657 = vmatprep.mubr.msk.bf16.mxu0 %vm564_vm0, %v8758_v46  ;;  %v2776_v34 = vor.u32 %v2774_v1, %v8759_v62  ;;  %v2779_v54 = vor.u32 %v2777_v13, %v8760_v16  ;;  %v8763_v62 = vshll.u32 %v6255_v32, 16 }
 0x131   : > { %5633 = vmatprep.mubr.msk.bf16.mxu1 %vm564_vm0, %v2775_v63 }
 0x132   : > { %v5351_v0 = vpop.f32.mrb[28].mxu0  ;;  %v2778_v48 = vsel %vm1415_vm2, %v2776_v34, %v2777_v13  ;;  %v2781_v33 = vsel %vm1415_vm2, %v2779_v54, %v2780_v37  ;;  %v2783_v16 = vrot.slane %v8763_v62, 1  ;;  %v8764_v13 = vshrl.u32 %v6232_v19, 16  ;;  %v8765_v54 = vld [vmem:[#allocation11_spill] sm:$0xff] }
 0x133   : > { %v5399_v25 = vpop.f32.mrb[28].mxu1  ;;  %v774_v30 = vpop.f32.mrb[29].mxu0 }
 0x134   : > { %v7424_v23 = vadd.f32 %v5399_v25, %v5343_v57  ;;  %v1302_v5 = vpop.f32.mrb[29].mxu1  ;;  %v5352_v9 = vpop.f32.mrb[30].mxu0  ;;  %v8762_v57 = vld [vmem:[#allocation10_spill] sm:$0xff]  ;;  %v2782_v34 = vor.u32 %v2780_v37, %v8764_v13  ;;  %v2786_v25 = vrot.slane %v8767_v35, 1 }
 0x135   : > { %v5400_v63 = vpop.f32.mrb[30].mxu1  ;;  %v777_v46 = vpop.f32.mrb[31].mxu0 }
 0x136   : > { %v1304_v6 = vpop.f32.mrb[31].mxu1 }
 0x137   : > { %v7431_v1 = vadd.f32 %v1304_v6, %v747_v45  ;;  %5658 = vmatmul.mubr.msk.bf16.vlgmr.msra.gmra.mrb[136].mxu0 %vm564_vm0, %v8762_v57  ;;  %v8766_v6 = vshrl.u32 %v6255_v32, 16  ;;  %v2784_v32 = vsel %vm1415_vm2, %v2782_v34, %v2783_v16 }
 0x138   : > { %5634 = vmatmul.mubr.msk.bf16.gmra.mrb[136].mxu1 %vm564_vm0, %v2778_v48  ;;  %5762 = vmatpush3.bf16.msra.mxu0 %v7191_v10  ;;  %v6009_v10 = vld [vmem:[%s8443_s1 + $0x110] sm:$0xff]  }
 0x139   : > { %5637 = vmatprep.mubr.msk.bf16.mxu1 %vm564_vm0, %v2781_v33  ;;  %5661 = vmatprep.mubr.msk.bf16.mxu0 %vm564_vm0, %v8765_v54  ;;  %v2785_v45 = vor.u32 %v2783_v16, %v8766_v6  ;;  %v7458_v6 = vld [vmem:[%s6212_s30 + $0xd8] sm:$0xf] }
 0x13a   : > { %5763 = vmatprep.subr.bf16.mxu0 %v6007_v4  ;;  %v5355_v5 = vpop.f32.mrb[32].mxu0 }
 0x13b   : > { %v5403_v63 = vpop.f32.mrb[32].mxu1  ;;  %v789_v48 = vpop.f32.mrb[33].mxu0  ;;  %v2787_v54 = vsel %vm1415_vm2, %v2785_v45, %v2786_v25 }
 0x13c   : > { %v1316_v19 = vpop.f32.mrb[33].mxu1  ;;  %v5356_v46 = vpop.f32.mrb[34].mxu0  ;;  %5764 = vmatpush3.bf16.msra.mxu0 %v6007_v4  ;;  %v8768_v63 = vld [vmem:[#allocation12_spill] sm:$0xff]  ;;  %v8770_v4 = vshrl.u32 %v6261_v38, 16 }
 0x13d   : > { %v7451_v37 = vadd.f32 %v1316_v19, %v759_v15  ;;  %v5404_v33 = vpop.f32.mrb[34].mxu1  ;;  %v791_v62 = vpop.f32.mrb[35].mxu0  ;;  %5765 = vmatprep.subr.bf16.mxu0 %v6009_v10  ;;  %v6010_v15 = vld [vmem:[%s8443_s1 + $0x118] sm:$0xff]  }
 0x13e   : > { %v7454_v57 = vadd.f32 %v5404_v33, %v5348_v40  ;;  %v1319_v13 = vpop.f32.mrb[35].mxu1  ;;  %v8769_v40 = vld [vmem:[#allocation14_spill] sm:$0xff]  ;;  %v2788_v16 = vor.u32 %v2786_v25, %v8770_v4 }
 0x13f   : > { %v7460_v35 = vadd.f32 %v1319_v13, %v762_v29  ;;  %5662 = vmatmul.mubr.msk.bf16.gmra.mrb[140].mxu0 %vm564_vm0, %v8768_v63  ;;  %v4874_v29 = vcombine.low %v7458_v6, %v7458_v6 }
 0x140   : > { %5638 = vmatmul.mubr.msk.bf16.gmra.mrb[140].mxu1 %vm564_vm0, %v2784_v32  ;;  %5665 = vmatprep.mubr.msk.bf16.mxu0 %vm564_vm0, %v8769_v40 }
 0x141   : > { %5641 = vmatprep.mubr.msk.bf16.mxu1 %vm564_vm0, %v2787_v54  ;;  %5766 = vmatpush3.bf16.msra.mxu0 %v6009_v10  ;;  %v2792_v54 = vsel %vm1415_vm2, %v2788_v16, %v7113_v7  ;;  %v2804_v38 = vshll.u32 %v4874_v29, 16  ;;  %v8771_v10 = vld [vmem:[#allocation16_spill] sm:$0xff]  ;;  %v8773_v7 = vshrl.u32 %v7100_v49, 16 }
 0x142   : > { %v5359_v34 = vpop.f32.mrb[36].mxu0  ;;  %5767 = vmatprep.subr.bf16.mxu0 %v6010_v15 }
 0x143   : > { %v5407_v45 = vpop.f32.mrb[36].mxu1  ;;  %v803_v19 = vpop.f32.mrb[37].mxu0 }
 0x144   : > { %v7475_v48 = vadd.f32 %v5407_v45, %v5351_v0  ;;  %v1331_v46 = vpop.f32.mrb[37].mxu1  ;;  %v5360_v32 = vpop.f32.mrb[38].mxu0  ;;  %v8772_v0 = vld [vmem:[#allocation20_spill] sm:$0xff] }
 0x145   : > { %v7477_v33 = vadd.f32 %v1331_v46, %v774_v30  ;;  %v5408_v13 = vpop.f32.mrb[38].mxu1  ;;  %v806_v63 = vpop.f32.mrb[39].mxu0  ;;  %5768 = vmatpush3.bf16.msra.mxu0 %v6010_v15  ;;  %v2802_v30 = vor.u32 %v8773_v7, %v7118_v27 }
 0x146   : > { %v7481_v25 = vadd.f32 %v5408_v13, %v5352_v9  ;;  %v1334_v40 = vpop.f32.mrb[39].mxu1  ;;  %v2806_v9 = vrot.slane %v2804_v38, 1 }
 0x147   : > { %5666 = vmatmul.mubr.msk.bf16.gmra.mrb[144].mxu0 %vm564_vm0, %v8771_v10 }
 0x148   : > { %5642 = vmatmul.mubr.msk.bf16.gmra.mrb[144].mxu1 %vm564_vm0, %v2792_v54  ;;  %5669 = vmatprep.mubr.msk.bf16.mxu0 %vm564_vm0, %v8772_v0 }
 0x149   : > { %5645 = vmatprep.mubr.msk.bf16.mxu1 %vm564_vm0, %v7137_v14  ;;  %v2807_v14 = vsel %vm1415_vm2, %v2802_v30, %v2806_v9 }
 0x14a   : > { %v5435_v16 = vpop.f32.mrb[40].mxu0 }
 0x14b   : > { %v5411_v4 = vpop.f32.mrb[40].mxu1  ;;  %v1718_v34 = vpop.f32.mrb[41].mxu0 }
 0x14c   : > { %v7493_v29 = vadd.f32 %v5411_v4, %v5355_v5  ;;  %v1346_v15 = vpop.f32.mrb[41].mxu1  ;;  %v7496_v45 = vadd.f32 %v1718_v34, %v7316_v28  ;;  %v5436_v13 = vpop.f32.mrb[42].mxu0  ;;  %v8774_v5 = vld [vmem:[#allocation21_spill] sm:$0xff]  ;;  %v8775_v28 = vld [vmem:[#allocation26_spill] sm:$0xff] }
 0x14d   : > { %v5412_v46 = vpop.f32.mrb[42].mxu1  ;;  %v7500_v54 = vadd.f32 %v5436_v13, %v7319_v41  ;;  %v1721_v49 = vpop.f32.mrb[43].mxu0 }
 0x14e   : > { %v1348_v40 = vpop.f32.mrb[43].mxu1  ;;  %v7505_v38 = vadd.f32 %v1721_v49, %v7322_v17 }
 0x14f   : > { %v7502_v27 = vadd.f32 %v1348_v40, %v791_v62  ;;  %5670 = vmatmul.mubr.msk.bf16.gmra.mrb[148].mxu0 %vm564_vm0, %v8774_v5 }
 0x150   : > { %5646 = vmatmul.mubr.msk.bf16.gmra.mrb[148].mxu1 %vm564_vm0, %v2807_v14  ;;  %5673 = vmatprep.mubr.msk.bf16.mxu0 %vm564_vm0, %v8775_v28 }
 0x151   : > { %5713 = vmatprep.mubr.msk.bf16.mxu1 %vm564_vm0, %v6291_v55 }
 0x152   : > { %v5439_v10 = vpop.f32.mrb[44].mxu0 }
 0x153   : > { %v5415_v41 = vpop.f32.mrb[44].mxu1  ;;  %v7515_v0 = vadd.f32 %v5439_v10, %v7338_v44  ;;  %v1733_v7 = vpop.f32.mrb[45].mxu0  ;;  %v6011_v44 = vld [vmem:[%s8446_s4 + $0x8] sm:$0xff]  }
 0x154   : > { %v1360_v62 = vpop.f32.mrb[45].mxu1  ;;  %v7520_v30 = vadd.f32 %v1733_v7, %v7340_v39  ;;  %v5440_v4 = vpop.f32.mrb[46].mxu0  ;;  %v8777_v39 = vld [vmem:[#allocation30_spill] sm:$0xff] }
 0x155   : > { %v7517_v17 = vadd.f32 %v1360_v62, %v803_v19  ;;  %v5416_v9 = vpop.f32.mrb[46].mxu1  ;;  %v7525_v15 = vadd.f32 %v5440_v4, %v7343_v12  ;;  %v1736_v34 = vpop.f32.mrb[47].mxu0  ;;  %v8776_v19 = vld [vmem:[#allocation27_spill] sm:$0xff] }
 0x156   : > { %v7522_v16 = vadd.f32 %v5416_v9, %v5360_v32  ;;  %v1363_v55 = vpop.f32.mrb[47].mxu1 }
 0x157   : > { %v7530_v46 = vadd.f32 %v1363_v55, %v806_v63  ;;  %5674 = vmatmul.mubr.msk.bf16.gmra.mrb[152].mxu0 %vm564_vm0, %v8776_v19 }
 0x158   : > { %5714 = vmatmul.mubr.msk.bf16.vlgmr.msra.gmra.mrb[152].mxu1 %vm564_vm0, %v6301_v59  ;;  %5677 = vmatprep.mubr.msk.bf16.mxu0 %vm564_vm0, %v8777_v39 }
 0x159   : > { %5818 = vmatpush3.bf16.msra.mxu1 %v7282_v26  ;;  %5717 = vmatprep.mubr.msk.bf16.mxu1 %vm564_vm0, %v6338_v18 }
 0x15a   : > { %5819 = vmatprep.subr.bf16.mxu1 %v6011_v44  ;;  %v5443_v32 = vpop.f32.mrb[48].mxu0 }
 0x15b   : > { %v5419_v12 = vpop.f32.mrb[48].mxu1  ;;  %v7545_v13 = vadd.f32 %v5443_v32, %v7360_v20  ;;  %v1748_v40 = vpop.f32.mrb[49].mxu0  ;;  %v8779_v20 = vld [vmem:[#allocation33_spill] sm:$0xff] }
 0x15c   : > { %v7542_v63 = vadd.f32 %v5419_v12, %v7247_v53  ;;  %v1375_v14 = vpop.f32.mrb[49].mxu1  ;;  %v5444_v49 = vpop.f32.mrb[50].mxu0  ;;  %v8778_v53 = vld [vmem:[#allocation31_spill] sm:$0xff] }
 0x15d   : > { %v7548_v59 = vadd.f32 %v1375_v14, %v7249_v47  ;;  %v5420_v26 = vpop.f32.mrb[50].mxu1  ;;  %5820 = vmatpush3.bf16.msra.mxu1 %v6011_v44  ;;  %v1750_v18 = vpop.f32.mrb[51].mxu0 }
 0x15e   : > { %v7551_v5 = vadd.f32 %v5420_v26, %v7251_v31  ;;  %v1378_v28 = vpop.f32.mrb[51].mxu1  ;;  %v7554_v41 = vadd.f32 %v1750_v18, %v7364_v21 }
 0x15f   : > { %5678 = vmatmul.mubr.msk.bf16.gmra.mrb[156].mxu0 %vm564_vm0, %v8778_v53 }
 0x160   : > { %5718 = vmatmul.mubr.msk.bf16.gmra.mrb[156].mxu1 %vm564_vm0, %v6343_v22  ;;  %5681 = vmatprep.mubr.msk.bf16.mxu0 %vm564_vm0, %v8779_v20 }
 0x161   : > { %5721 = vmatprep.mubr.msk.bf16.mxu1 %vm564_vm0, %v6382_v58 }
 0x162   : > { %v5447_v31 = vpop.f32.mrb[52].mxu0 }
 0x163   : > { %v5423_v47 = vpop.f32.mrb[52].mxu1  ;;  %v1762_v21 = vpop.f32.mrb[53].mxu0 }
 0x164   : > { %v7565_v10 = vadd.f32 %v5423_v47, %v7277_v42  ;;  %v1390_v62 = vpop.f32.mrb[53].mxu1  ;;  %v7568_v7 = vadd.f32 %v1762_v21, %v7380_v50  ;;  %v5448_v4 = vpop.f32.mrb[54].mxu0  ;;  %v8780_v42 = vld [vmem:[#allocation34_spill] sm:$0xff]  ;;  %v8781_v50 = vld [vmem:[#allocation35_spill] sm:$0xff] }
 0x165   : > { %v5424_v9 = vpop.f32.mrb[54].mxu1  ;;  %v7571_v22 = vadd.f32 %v5448_v4, %v7383_v24  ;;  %v1765_v34 = vpop.f32.mrb[55].mxu0  ;;  %v8785_v21 = vld [vmem:[#allocation18_spill] sm:$0xff]  ;;  %v7642_v4 = vld [vmem:[%s6212_s30 + $0xe0] sm:$0xf] }
 0x166   : > { %v1392_v55 = vpop.f32.mrb[55].mxu1  ;;  %v7577_v58 = vadd.f32 %v1765_v34, %v7386_v36 }
 0x167   : > { %v7574_v44 = vadd.f32 %v1392_v55, %v7293_v56  ;;  %5682 = vmatmul.mubr.msk.bf16.gmra.mrb[160].mxu0 %vm564_vm0, %v8780_v42 }
 0x168   : > { %5722 = vmatmul.mubr.msk.bf16.gmra.mrb[160].mxu1 %vm564_vm0, %v6384_v60  ;;  %5685 = vmatprep.mubr.msk.bf16.mxu0 %vm564_vm0, %v8781_v50 }
 0x169   : > { %5725 = vmatprep.mubr.msk.bf16.mxu1 %vm564_vm0, %v6432_v2 }
 0x16a   : > { %v5451_v24 = vpop.f32.mrb[56].mxu0 }
 0x16b   : > { %v5491_v19 = vpop.f32.mrb[56].mxu1  ;;  %v7588_v56 = vadd.f32 %v5451_v24, %v7402_v61  ;;  %v1777_v39 = vpop.f32.mrb[57].mxu0 }
 0x16c   : > { %v2179_v36 = vpop.f32.mrb[57].mxu1  ;;  %v7591_v12 = vadd.f32 %v1777_v39, %v7404_v43  ;;  %v5452_v60 = vpop.f32.mrb[58].mxu0  ;;  %v8782_v43 = vld [vmem:[#allocation36_spill] sm:$0xff]  ;;  %v4912_v39 = vcombine.low %v7642_v4, %v7642_v4 }
 0x16d   : > { %v7594_v32 = vadd.f32 %v2179_v36, %v7496_v45  ;;  %v5492_v14 = vpop.f32.mrb[58].mxu1  ;;  %v7597_v40 = vadd.f32 %v5452_v60, %v7407_v8  ;;  %v1780_v26 = vpop.f32.mrb[59].mxu0 }
 0x16e   : > { %v7600_v2 = vadd.f32 %v5492_v14, %v7500_v54  ;;  %v2182_v61 = vpop.f32.mrb[59].mxu1  ;;  %v7614_v54 = vld [vmem:[%s6212_s30 + $0xdc] sm:$0xf]  ;;  %v8786_v26 = vld [vmem:[#allocation15_spill] sm:$0xff] }
 0x16f   : > { %v7603_v49 = vadd.f32 %v2182_v61, %v7505_v38  ;;  %5686 = vmatmul.mubr.msk.bf16.gmra.mrb[164].mxu0 %vm564_vm0, %v6701_v51  ;;  %v8787_v61 = vld [vmem:[#allocation39_spill] sm:$0xff] }
 0x170   : > { %5726 = vmatmul.mubr.msk.bf16.gmra.mrb[164].mxu1 %vm564_vm0, %v6434_v3  ;;  %5689 = vmatprep.mubr.msk.bf16.mxu0 %vm564_vm0, %v8782_v43 }
 0x171   : > { %5729 = vmatprep.mubr.msk.bf16.mxu1 %vm564_vm0, %v6483_v52 }
 0x172   : > { %v5455_v8 = vpop.f32.mrb[60].mxu0 }
 0x173   : > { %v5495_v45 = vpop.f32.mrb[60].mxu1  ;;  %v7617_v18 = vadd.f32 %v5455_v8, %v7424_v23  ;;  %v1792_v51 = vpop.f32.mrb[61].mxu0  ;;  %v4911_v23 = vcombine.low %v7458_v6, %v7614_v54 }
 0x174   : > { %v7620_v38 = vadd.f32 %v5495_v45, %v7515_v0  ;;  %v2194_v28 = vpop.f32.mrb[61].mxu1  ;;  %v5456_v53 = vpop.f32.mrb[62].mxu0  ;;  %v8783_v0 = vld [vmem:[#allocation13_spill] sm:$0xff]  ;;  %v8788_v51 = vld [vmem:[#allocation42_spill] sm:$0xff] }
 0x175   : > { %v7623_v3 = vadd.f32 %v2194_v28, %v7520_v30  ;;  %v5496_v20 = vpop.f32.mrb[62].mxu1  ;;  %v1794_v47 = vpop.f32.mrb[63].mxu0  ;;  %v8784_v30 = vld [vmem:[#allocation40_spill] sm:$0xff]  ;;  %v3172_v9 = vshll.u32 %v4911_v23, 16  ;;  %v8789_v28 = vld [vmem:[#allocation19_spill] sm:$0xff]  ;;  %v3178_v53 = vshrl.u32 %v4912_v39, 16 }
 0x176   : > { %v7626_v52 = vadd.f32 %v5496_v20, %v7525_v15  ;;  %v2197_v31 = vpop.f32.mrb[63].mxu1  ;;  %v7631_v62 = vadd.f32 %v1794_v47, %v7431_v1  ;;  %v3169_v15 = vshrl.u32 %v4911_v23, 16  ;;  %v3181_v20 = vshll.u32 %v4912_v39, 16 }
 0x177   : > { %5690 = vmatmul.mubr.msk.bf16.gmra.mrb[168].mxu0 %vm564_vm0, %v6753_v11  ;;  %v3174_v8 = vrot.slane %v3172_v9, 4 }
 0x178   : > { %5730 = vmatmul.mubr.msk.bf16.gmra.mrb[168].mxu1 %vm564_vm0, %v8783_v0  ;;  %5693 = vmatprep.mubr.msk.bf16.mxu0 %vm564_vm0, %v8784_v30  ;;  %v3171_v43 = vrot.slane %v3169_v15, 3 }
 0x179   : > { %5733 = vmatprep.mubr.msk.bf16.mxu1 %vm564_vm0, %v8785_v21 }
 0x17a   : > { %v5459_v55 = vpop.f32.mrb[64].mxu0  ;;  %v3175_v47 = vor.u32 %v3174_v8, %v3171_v43 }
 0x17b   : > { %v5499_v34 = vpop.f32.mrb[64].mxu1  ;;  %v1806_v42 = vpop.f32.mrb[65].mxu0  ;;  %v3180_v55 = vrot.slane %v3178_v53, 3 }
 0x17c   : > { %v7645_v1 = vadd.f32 %v5499_v34, %v7545_v13  ;;  %v2209_v11 = vpop.f32.mrb[65].mxu1  ;;  %v7648_v50 = vadd.f32 %v1806_v42, %v7451_v37  ;;  %v5460_v24 = vpop.f32.mrb[66].mxu0  ;;  %v3163_v13 = vsel %vm873_vm1, %v8787_v61, %v8786_v26  ;;  %v3183_v34 = vrot.slane %v3181_v20, 4 }
 0x17d   : > { %v5500_v19 = vpop.f32.mrb[66].mxu1  ;;  %v7653_v36 = vadd.f32 %v5460_v24, %v7454_v57  ;;  %v1809_v60 = vpop.f32.mrb[67].mxu0  ;;  %v8790_v57 = vld [vmem:[#allocation23_spill] sm:$0xff] }
 0x17e   : > { %v2211_v14 = vpop.f32.mrb[67].mxu1  ;;  %v7659_v45 = vadd.f32 %v1809_v60, %v7460_v35  ;;  %v8791_v19 = vld [vmem:[#allocation17_spill] sm:$0xff]  ;;  %v8793_v60 = vld [vmem:[#allocation24_spill] sm:$0xff] }
 0x17f   : > { %v7662_v37 = vadd.f32 %v2211_v14, %v7554_v41  ;;  %5694 = vmatmul.mubr.msk.bf16.gmra.mrb[172].mxu0 %vm564_vm0, %v8788_v51  ;;  %v3176_v39 = vsel %vm873_vm1, %v8791_v19, %v3175_v47 }
 0x180   : > { %5734 = vmatmul.mubr.msk.bf16.gmra.mrb[172].mxu1 %vm564_vm0, %v8789_v28  ;;  %5697 = vmatprep.mubr.msk.bf16.mxu0 %vm564_vm0, %v3163_v13 }
 0x181   : > { %5737 = vmatprep.mubr.msk.bf16.mxu1 %vm564_vm0, %v8790_v57 }
 0x182   : > { %v5463_v31 = vpop.f32.mrb[68].mxu0 }
 0x183   : > { %v5503_v35 = vpop.f32.mrb[68].mxu1  ;;  %v7672_v23 = vadd.f32 %v5463_v31, %v7475_v48  ;;  %v1821_v41 = vpop.f32.mrb[69].mxu0 }
 0x184   : > { %v2223_v0 = vpop.f32.mrb[69].mxu1  ;;  %v7675_v30 = vadd.f32 %v1821_v41, %v7477_v33  ;;  %v5464_v15 = vpop.f32.mrb[70].mxu0  ;;  %v8796_v35 = vld [vmem:[#allocation32_spill] sm:$0xff] }
 0x185   : > { %v7678_v21 = vadd.f32 %v2223_v0, %v7568_v7  ;;  %v5504_v9 = vpop.f32.mrb[70].mxu1  ;;  %v7681_v42 = vadd.f32 %v5464_v15, %v7481_v25  ;;  %v1824_v48 = vpop.f32.mrb[71].mxu0  ;;  %v8792_v7 = vld [vmem:[#allocation62_spill] sm:$0xff]  ;;  %v8794_v25 = vld [vmem:[#allocation28_spill] sm:$0xff] }
 0x186   : > { %v7684_v11 = vadd.f32 %v5504_v9, %v7571_v22  ;;  %v2226_v24 = vpop.f32.mrb[71].mxu1  ;;  %v3184_v22 = vor.u32 %v3183_v34, %v3180_v55 }
 0x187   : > { %v7689_v33 = vadd.f32 %v2226_v24, %v7577_v58  ;;  %5698 = vmatmul.mubr.msk.bf16.gmra.mrb[176].mxu0 %vm564_vm0, %v8792_v7  ;;  %v8799_v7 = vld [vmem:[#allocation38_spill] sm:$0xff] }
 0x188   : > { %5738 = vmatmul.mubr.msk.bf16.gmra.mrb[176].mxu1 %vm564_vm0, %v8793_v60  ;;  %5701 = vmatprep.mubr.msk.bf16.mxu0 %vm564_vm0, %v3176_v39  ;;  %v3185_v57 = vsel %vm873_vm1, %v3175_v47, %v3184_v22  ;;  %v8801_v60 = vld [vmem:[#allocation41_spill] sm:$0xff] }
 0x189   : > { %5741 = vmatprep.mubr.msk.bf16.mxu1 %vm564_vm0, %v8794_v25 }
 0x18a   : > { %v5467_v14 = vpop.f32.mrb[72].mxu0 }
 0x18b   : > { %v5507_v26 = vpop.f32.mrb[72].mxu1  ;;  %v7699_v61 = vadd.f32 %v5467_v14, %v7493_v29  ;;  %v1836_v13 = vpop.f32.mrb[73].mxu0 }
 0x18c   : > { %v7702_v58 = vadd.f32 %v5507_v26, %v7588_v56  ;;  %v2238_v43 = vpop.f32.mrb[73].mxu1  ;;  %v5468_v51 = vpop.f32.mrb[74].mxu0  ;;  %v8795_v56 = vld [vmem:[#allocation29_spill] sm:$0xff] }
 0x18d   : > { %v7705_v8 = vadd.f32 %v2238_v43, %v7591_v12  ;;  %v5508_v28 = vpop.f32.mrb[74].mxu1  ;;  %v1838_v20 = vpop.f32.mrb[75].mxu0  ;;  %v8797_v12 = vld [vmem:[#allocation37_spill] sm:$0xff] }
 0x18e   : > { %v7709_v53 = vadd.f32 %v5508_v28, %v7597_v40  ;;  %v2241_v31 = vpop.f32.mrb[75].mxu1  ;;  %v7712_v29 = vadd.f32 %v1838_v20, %v7502_v27 }
 0x18f   : > { %5702 = vmatmul.mubr.msk.bf16.gmra.mrb[180].mxu0 %vm564_vm0, %v3185_v57  ;;  %v8804_v31 = vld [vmem:[#allocation8_spill] sm:$0xff] }
 0x190   : > { %5742 = vmatmul.mubr.msk.bf16.gmra.mrb[180].mxu1 %vm564_vm0, %v8795_v56  ;;  %5769 = vmatprep.mubr.msk.bf16.mxu0 %vm564_vm0, %v8797_v12 }
 0x191   : > { %5745 = vmatprep.mubr.msk.bf16.mxu1 %vm564_vm0, %v8796_v35 }
 0x192   : > { %v5471_v47 = vpop.f32.mrb[76].mxu0 }
 0x193   : > { %v5511_v41 = vpop.f32.mrb[76].mxu1  ;;  %v1850_v0 = vpop.f32.mrb[77].mxu0 }
 0x194   : > { %v7722_v40 = vadd.f32 %v5511_v41, %v7617_v18  ;;  %v2253_v15 = vpop.f32.mrb[77].mxu1  ;;  %v7725_v27 = vadd.f32 %v1850_v0, %v7517_v17  ;;  %v5472_v9 = vpop.f32.mrb[78].mxu0  ;;  %v8798_v18 = vld [vmem:[#allocation5_spill] sm:$0xff]  ;;  %v8800_v17 = vld [vmem:[#allocation6_spill] sm:$0xff] }
 0x195   : > { %v5512_v55 = vpop.f32.mrb[78].mxu1  ;;  %v7728_v34 = vadd.f32 %v5472_v9, %v7522_v16  ;;  %v1853_v48 = vpop.f32.mrb[79].mxu0  ;;  %v6018_v9 = vld [vmem:[%s6212_s30 + $0xd4] sm:$0xf] }
 0x196   : > { %v2255_v24 = vpop.f32.mrb[79].mxu1  ;;  %v7731_v19 = vadd.f32 %v1853_v48, %v7530_v46  ;;  %v7782_v55 = vcombine.low %v6018_v9, %v7458_v6  ;;  %v8807_v6 = vld [vmem:[#allocation45_spill] sm:$0xff] }
 0x197   : > { %v7734_v39 = vadd.f32 %v2255_v24, %v7631_v62  ;;  %5770 = vmatmul.mubr.msk.bf16.vlgmr.msra.gmra.mrb[184].mxu0 %vm564_vm0, %v8799_v7 }
 0x198   : > { %5746 = vmatmul.mubr.msk.bf16.gmra.mrb[184].mxu1 %vm564_vm0, %v8798_v18  ;;  %5773 = vmatprep.mubr.msk.bf16.mxu0 %vm564_vm0, %v8801_v60  ;;  %v4098_v18 = vld [vmem:[%s7793_s15 + $0x8] sm:$0xff] }
 0x199   : > { %5749 = vmatprep.mubr.msk.bf16.mxu1 %vm564_vm0, %v8800_v17 }
 0x19a   : > { %v5475_v16 = vpop.f32.mrb[80].mxu0 }
 0x19b   : > { %v5515_v25 = vpop.f32.mrb[80].mxu1  ;;  %v7745_v46 = vadd.f32 %v5475_v16, %v7542_v63  ;;  %v1865_v22 = vpop.f32.mrb[81].mxu0 }
 0x19c   : > { %v2267_v62 = vpop.f32.mrb[81].mxu1  ;;  %v7748_v14 = vadd.f32 %v1865_v22, %v7548_v59  ;;  %v5476_v13 = vpop.f32.mrb[82].mxu0  ;;  %v8802_v59 = vld [vmem:[#allocation7_spill] sm:$0xff]  ;;  %v7810_v22 = vcombine.low %v7614_v54, %v7642_v4  ;;  %v8810_v4 = vld [vmem:[#allocation48_spill] sm:$0xff] }
 0x19d   : > { %v7751_v26 = vadd.f32 %v2267_v62, %v7648_v50  ;;  %v5516_v43 = vpop.f32.mrb[82].mxu1  ;;  %v7754_v51 = vadd.f32 %v5476_v13, %v7551_v5  ;;  %v1868_v57 = vpop.f32.mrb[83].mxu0  ;;  %v8803_v50 = vld [vmem:[#allocation43_spill] sm:$0xff]  ;;  %v8805_v5 = vld [vmem:[#allocation44_spill] sm:$0xff] }
 0x19e   : > { %v7757_v28 = vadd.f32 %v5516_v43, %v7653_v36  ;;  %v2270_v63 = vpop.f32.mrb[83].mxu1 }
 0x19f   : > { %v7760_v20 = vadd.f32 %v2270_v63, %v7659_v45  ;;  %5774 = vmatmul.mubr.msk.bf16.gmra.mrb[188].mxu0 %vm564_vm0, %v8803_v50 }
 0x1a0   : > { %5750 = vmatmul.mubr.msk.bf16.gmra.mrb[188].mxu1 %vm564_vm0, %v8802_v59  ;;  %5777 = vmatprep.mubr.msk.bf16.mxu0 %vm564_vm0, %v8805_v5  ;;  %v4101_v5 = vld [vmem:[%s7793_s15 + $0x20] sm:$0xff] }
 0x1a1   : > { %5753 = vmatprep.mubr.msk.bf16.mxu1 %vm564_vm0, %v8804_v31  ;;  %v4100_v31 = vld [vmem:[%s7793_s15 + $0x18] sm:$0xff] }
 0x1a2   : > { %v5479_v36 = vpop.f32.mrb[84].mxu0 }
 0x1a3   : > { %v5519_v56 = vpop.f32.mrb[84].mxu1  ;;  %v7771_v35 = vadd.f32 %v5479_v36, %v7565_v10  ;;  %v1880_v12 = vpop.f32.mrb[85].mxu0  ;;  %v4102_v36 = vld [vmem:[%s7793_s15 + $0x28] sm:$0xff] }
 0x1a4   : > { %v7774_v45 = vadd.f32 %v5519_v56, %v7672_v23  ;;  %v2282_v47 = vpop.f32.mrb[85].mxu1  ;;  %v5480_v0 = vpop.f32.mrb[86].mxu0 }
 0x1a5   : > { %v7778_v41 = vadd.f32 %v2282_v47, %v7675_v30  ;;  %v5520_v15 = vpop.f32.mrb[86].mxu1  ;;  %v1882_v10 = vpop.f32.mrb[87].mxu0  ;;  %v8806_v30 = vld [vmem:[#allocation61_spill] sm:$0xff] }
 0x1a6   : > { %v7785_v48 = vadd.f32 %v5520_v15, %v7681_v42  ;;  %v2285_v24 = vpop.f32.mrb[87].mxu1  ;;  %v7788_v23 = vadd.f32 %v1882_v10, %v7574_v44  ;;  %v8808_v42 = vld [vmem:[#allocation46_spill] sm:$0xff]  ;;  %v4097_v44 = vld [vmem:[%s7793_s15] sm:$0xff] }
 0x1a7   : > { %5778 = vmatmul.mubr.msk.bf16.gmra.mrb[192].mxu0 %vm564_vm0, %v8807_v6  ;;  %v4129_v57 = vpack.c.bf16 %v4098_v18, %v4097_v44  ;;  %v4131_v6 = vpack.c.bf16 %v4102_v36, %v4101_v5 }
 0x1a8   : > { %5754 = vmatmul.mubr.msk.bf16.gmra.mrb[192].mxu1 %vm564_vm0, %v8806_v30  ;;  %5781 = vmatprep.mubr.msk.bf16.mxu0 %vm564_vm0, %v8808_v42 }
 0x1a9   : > { %5757 = vmatprep.mubr.msk.bf16.mxu1 %vm564_vm0, %v7782_v55 }
 0x1aa   : > { %v5547_v17 = vpop.f32.mrb[88].mxu0 }
 0x1ab   : > { %v5523_v7 = vpop.f32.mrb[88].mxu1  ;;  %v2505_v25 = vpop.f32.mrb[89].mxu0  ;;  %v4104_v17 = vld [vmem:[%s7793_s15 + $0x38] sm:$0xff] }
 0x1ac   : > { %v7806_v60 = vadd.f32 %v5523_v7, %v7699_v61  ;;  %v2297_v16 = vpop.f32.mrb[89].mxu1  ;;  %v7813_v62 = vadd.f32 %v2505_v25, %v7594_v32  ;;  %v5548_v43 = vpop.f32.mrb[90].mxu0  ;;  %v8809_v32 = vld [vmem:[#allocation47_spill] sm:$0xff] }
 0x1ad   : > { %v5524_v13 = vpop.f32.mrb[90].mxu1  ;;  %v7816_v63 = vadd.f32 %v5548_v43, %v7600_v2  ;;  %v2508_v59 = vpop.f32.mrb[91].mxu0  ;;  %v4099_v2 = vld [vmem:[%s7793_s15 + $0x10] sm:$0xff]  ;;  %v4105_v16 = vld [vmem:[%s7793_s15 + $0x40] sm:$0xff] }
 0x1ae   : > { %v2299_v61 = vpop.f32.mrb[91].mxu1  ;;  %v7822_v54 = vadd.f32 %v2508_v59, %v7603_v49  ;;  %v4130_v0 = vpack.c.bf16 %v4100_v31, %v4099_v2 }
 0x1af   : > { %v7819_v50 = vadd.f32 %v2299_v61, %v7712_v29  ;;  %5782 = vmatmul.mubr.msk.bf16.gmra.mrb[196].mxu0 %vm564_vm0, %v8809_v32 }
 0x1b0   : > { %5758 = vmatmul.mubr.msk.bf16.gmra.mrb[196].mxu1 %vm564_vm0, %v7810_v22  ;;  %5785 = vmatprep.mubr.msk.bf16.mxu0 %vm564_vm0, %v8810_v4 }
 0x1b1   : > { %5821 = vmatprep.mubr.msk.bf16.mxu1 %vm4161_vm3, %v4129_v57 }
 0x1b2   : > { %v5551_v56 = vpop.f32.mrb[92].mxu0 }
 0x1b3   : > { %v5527_v29 = vpop.f32.mrb[92].mxu1  ;;  %v7836_v49 = vadd.f32 %v5551_v56, %v7620_v38  ;;  %v2520_v47 = vpop.f32.mrb[93].mxu0  ;;  %v8814_v56 = vld [vmem:[#allocation52_spill] sm:$0xff] }
 0x1b4   : > { %v2311_v12 = vpop.f32.mrb[93].mxu1  ;;  %v7842_v9 = vadd.f32 %v2520_v47, %v7623_v3  ;;  %v5552_v24 = vpop.f32.mrb[94].mxu0  ;;  %v8812_v3 = vld [vmem:[#allocation50_spill] sm:$0xff]  ;;  %v8813_v29 = vld [vmem:[#allocation51_spill] sm:$0xff]  ;;  %v4109_v47 = vld [vmem:[%s7793_s15 + $0x60] sm:$0xff] }
 0x1b5   : > { %v7839_v15 = vadd.f32 %v2311_v12, %v7725_v27  ;;  %v5528_v10 = vpop.f32.mrb[94].mxu1  ;;  %v7848_v38 = vadd.f32 %v5552_v24, %v7626_v52  ;;  %v2523_v18 = vpop.f32.mrb[95].mxu0  ;;  %v8811_v27 = vld [vmem:[#allocation49_spill] sm:$0xff]  ;;  %v4106_v52 = vld [vmem:[%s7793_s15 + $0x48] sm:$0xff]  ;;  %v4108_v12 = vld [vmem:[%s7793_s15 + $0x58] sm:$0xff] }
 0x1b6   : > { %v7845_v42 = vadd.f32 %v5528_v10, %v7728_v34  ;;  %v2314_v44 = vpop.f32.mrb[95].mxu1  ;;  %v4103_v34 = vld [vmem:[%s7793_s15 + $0x30] sm:$0xff]  ;;  %v4133_v31 = vpack.c.bf16 %v4106_v52, %v4105_v16 }
 0x1b7   : > { %v7851_v7 = vadd.f32 %v2314_v44, %v7731_v19  ;;  %5786 = vmatmul.mubr.msk.bf16.gmra.mrb[200].mxu0 %vm564_vm0, %v8811_v27  ;;  %v4132_v59 = vpack.c.bf16 %v4104_v17, %v4103_v34 }
 0x1b8   : > { %5822 = vmatmul.mubr.msk.bf16.vlgmr.msra.gmra.mrb[200].mxu1 %vm4161_vm3, %v4130_v0  ;;  %5789 = vmatprep.mubr.msk.bf16.mxu0 %vm564_vm0, %v8812_v3 }
 0x1b9   : > { %5825 = vmatprep.mubr.msk.bf16.mxu1 %vm4161_vm3, %v4131_v6 }
 0x1ba   : > { %v5555_v13 = vpop.f32.mrb[96].mxu0 }
 0x1bb   : > { %v5531_v25 = vpop.f32.mrb[96].mxu1  ;;  %v7867_v19 = vadd.f32 %v5555_v13, %v7645_v1  ;;  %v2535_v61 = vpop.f32.mrb[97].mxu0  ;;  %v8815_v13 = vld [vmem:[#allocation53_spill] sm:$0xff] }
 0x1bc   : > { %v7864_v43 = vadd.f32 %v5531_v25, %v7745_v46  ;;  %v2326_v57 = vpop.f32.mrb[97].mxu1  ;;  %v5556_v2 = vpop.f32.mrb[98].mxu0  ;;  %v4113_v61 = vld [vmem:[%s7793_s15 + $0x80] sm:$0xff] }
 0x1bd   : > { %v7870_v32 = vadd.f32 %v2326_v57, %v7748_v14  ;;  %v5532_v4 = vpop.f32.mrb[98].mxu1  ;;  %v2537_v46 = vpop.f32.mrb[99].mxu0  ;;  %v4107_v14 = vld [vmem:[%s7793_s15 + $0x50] sm:$0xff]  ;;  %v4112_v57 = vld [vmem:[%s7793_s15 + $0x78] sm:$0xff] }
 0x1be   : > { %v7873_v5 = vadd.f32 %v5532_v4, %v7754_v51  ;;  %v2329_v36 = vpop.f32.mrb[99].mxu1  ;;  %v7876_v1 = vadd.f32 %v2537_v46, %v7662_v37  ;;  %v4110_v51 = vld [vmem:[%s7793_s15 + $0x68] sm:$0xff]  ;;  %v4134_v44 = vpack.c.bf16 %v4108_v12, %v4107_v14 }
 0x1bf   : > { %5790 = vmatmul.mubr.msk.bf16.gmra.mrb[204].mxu0 %vm564_vm0, %v8813_v29  ;;  %v4135_v34 = vpack.c.bf16 %v4110_v51, %v4109_v47 }
 0x1c0   : > { %5826 = vmatmul.mubr.msk.bf16.gmra.mrb[204].mxu1 %vm4161_vm3, %v4132_v59  ;;  %5793 = vmatprep.mubr.msk.bf16.mxu0 %vm564_vm0, %v8814_v56  ;;  %v4114_v59 = vld [vmem:[%s7793_s15 + $0x88] sm:$0xff] }
 0x1c1   : > { %5829 = vmatprep.mubr.msk.bf16.mxu1 %vm4161_vm3, %v4133_v31  ;;  %v4137_v12 = vpack.c.bf16 %v4114_v59, %v4113_v61 }
 0x1c2   : > { %v5559_v10 = vpop.f32.mrb[100].mxu0 }
 0x1c3   : > { %v5535_v0 = vpop.f32.mrb[100].mxu1  ;;  %v2549_v6 = vpop.f32.mrb[101].mxu0 }
 0x1c4   : > { %v7889_v24 = vadd.f32 %v5535_v0, %v7771_v35  ;;  %v2341_v37 = vpop.f32.mrb[101].mxu1  ;;  %v7892_v18 = vadd.f32 %v2549_v6, %v7678_v21  ;;  %v5560_v3 = vpop.f32.mrb[102].mxu0  ;;  %v8816_v21 = vld [vmem:[#allocation54_spill] sm:$0xff]  ;;  %v4117_v6 = vld [vmem:[%s7793_s15 + $0xa0] sm:$0xff] }
 0x1c5   : > { %v5536_v27 = vpop.f32.mrb[102].mxu1  ;;  %v7895_v17 = vadd.f32 %v5560_v3, %v7684_v11  ;;  %v2552_v52 = vpop.f32.mrb[103].mxu0  ;;  %v4111_v11 = vld [vmem:[%s7793_s15 + $0x70] sm:$0xff]  ;;  %v4116_v37 = vld [vmem:[%s7793_s15 + $0x98] sm:$0xff] }
 0x1c6   : > { %v2343_v16 = vpop.f32.mrb[103].mxu1  ;;  %v7901_v25 = vadd.f32 %v2552_v52, %v7689_v33  ;;  %v4136_v46 = vpack.c.bf16 %v4112_v57, %v4111_v11 }
 0x1c7   : > { %v7898_v35 = vadd.f32 %v2343_v16, %v7788_v23  ;;  %5794 = vmatmul.mubr.msk.bf16.gmra.mrb[208].mxu0 %vm564_vm0, %v8815_v13 }
 0x1c8   : > { %5830 = vmatmul.mubr.msk.bf16.gmra.mrb[208].mxu1 %vm4161_vm3, %v4134_v44  ;;  %5797 = vmatprep.mubr.msk.bf16.mxu0 %vm564_vm0, %v8816_v21 }
 0x1c9   : > { %5833 = vmatprep.mubr.msk.bf16.mxu1 %vm4161_vm3, %v4135_v34 }
 0x1ca   : > { %v5563_v4 = vpop.f32.mrb[104].mxu0 }
 0x1cb   : > { %v5603_v23 = vpop.f32.mrb[104].mxu1  ;;  %v7914_v2 = vadd.f32 %v5563_v4, %v7702_v58  ;;  %v2564_v33 = vpop.f32.mrb[105].mxu0  ;;  %v8819_v4 = vld [vmem:[#allocation57_spill] sm:$0xff] }
 0x1cc   : > { %v2938_v31 = vpop.f32.mrb[105].mxu1  ;;  %v7917_v36 = vadd.f32 %v2564_v33, %v7705_v8  ;;  %v5564_v56 = vpop.f32.mrb[106].mxu0  ;;  %v8817_v8 = vld [vmem:[#allocation55_spill] sm:$0xff]  ;;  %v8820_v23 = vld [vmem:[#allocation58_spill] sm:$0xff]  ;;  %v4120_v33 = vld [vmem:[%s7793_s15 + $0xb8] sm:$0xff] }
 0x1cd   : > { %v7920_v29 = vadd.f32 %v2938_v31, %v7813_v62  ;;  %v5604_v14 = vpop.f32.mrb[106].mxu1  ;;  %v7923_v47 = vadd.f32 %v5564_v56, %v7709_v53  ;;  %v2567_v51 = vpop.f32.mrb[107].mxu0  ;;  %v8818_v62 = vld [vmem:[#allocation56_spill] sm:$0xff]  ;;  %v4115_v53 = vld [vmem:[%s7793_s15 + $0x90] sm:$0xff]  ;;  %v4122_v56 = vld [vmem:[%s7793_s15 + $0xc8] sm:$0xff] }
 0x1ce   : > { %v7926_v58 = vadd.f32 %v5604_v14, %v7816_v63  ;;  %v2941_v0 = vpop.f32.mrb[107].mxu1  ;;  %v4118_v63 = vld [vmem:[%s7793_s15 + $0xa8] sm:$0xff]  ;;  %v4138_v52 = vpack.c.bf16 %v4116_v37, %v4115_v53 }
 0x1cf   : > { %v7929_v10 = vadd.f32 %v2941_v0, %v7822_v54  ;;  %5798 = vmatmul.mubr.msk.bf16.gmra.mrb[212].mxu0 %vm564_vm0, %v8817_v8  ;;  %v4139_v57 = vpack.c.bf16 %v4118_v63, %v4117_v6 }
 0x1d0   : > { %5834 = vmatmul.mubr.msk.bf16.gmra.mrb[212].mxu1 %vm4161_vm3, %v4136_v46  ;;  %5801 = vmatprep.mubr.msk.bf16.mxu0 %vm564_vm0, %v8818_v62  ;;  %v4121_v46 = vld [vmem:[%s7793_s15 + $0xc0] sm:$0xff]  ;;  %v3762_v62 = vshll.u32 %v7782_v55, 16 }
 0x1d1   : > { %5837 = vmatprep.mubr.msk.bf16.mxu1 %vm4161_vm3, %v4137_v12  ;;  %v4141_v63 = vpack.c.bf16 %v4122_v56, %v4121_v46 }
 0x1d2   : > { %v5567_v44 = vpop.f32.mrb[108].mxu0 }
 0x1d3   : > { %v5607_v27 = vpop.f32.mrb[108].mxu1  ;;  %v7942_v3 = vadd.f32 %v5567_v44, %v7722_v40  ;;  %v2579_v34 = vpop.f32.mrb[109].mxu0 }
 0x1d4   : > { %v7945_v54 = vadd.f32 %v5607_v27, %v7836_v49  ;;  %v2953_v16 = vpop.f32.mrb[109].mxu1  ;;  %v5568_v21 = vpop.f32.mrb[110].mxu0  ;;  %v8822_v34 = vld [vmem:[#allocation60_spill] sm:$0xff] }
 0x1d5   : > { %v7948_v13 = vadd.f32 %v2953_v16, %v7842_v9  ;;  %v5608_v11 = vpop.f32.mrb[110].mxu1  ;;  %v2581_v40 = vpop.f32.mrb[111].mxu0  ;;  %v4119_v9 = vld [vmem:[%s7793_s15 + $0xb0] sm:$0xff] }
 0x1d6   : > { %v7951_v61 = vadd.f32 %v5608_v11, %v7848_v38  ;;  %v2956_v59 = vpop.f32.mrb[111].mxu1  ;;  %v7954_v49 = vadd.f32 %v2581_v40, %v7734_v39  ;;  %v8821_v38 = vshll.u32 %v8806_v30, 16  ;;  %v4140_v8 = vpack.c.bf16 %v4120_v33, %v4119_v9  ;;  %v4126_v33 = vld [vmem:[%s7793_s15 + $0xe8] sm:$0xff] }
 0x1d7   : > { %5802 = vmatmul.mubr.msk.bf16.gmra.mrb[216].mxu0 %vm564_vm0, %v8819_v4  ;;  %v3764_v59 = vrot.slane %v3762_v62, 1  ;;  %v4124_v4 = vld [vmem:[%s7793_s15 + $0xd8] sm:$0xff] }
 0x1d8   : > { %5838 = vmatmul.mubr.msk.bf16.gmra.mrb[216].mxu1 %vm4161_vm3, %v4138_v52  ;;  %5805 = vmatprep.mubr.msk.bf16.mxu0 %vm564_vm0, %v8820_v23  ;;  %v3759_v31 = vrot.slane %v8821_v38, 1  ;;  %v3766_v52 = vshrl.u32 %v7782_v55, 16  ;;  %v4123_v55 = vld [vmem:[%s7793_s15 + $0xd0] sm:$0xff] }
 0x1d9   : > { %5841 = vmatprep.mubr.msk.bf16.mxu1 %vm4161_vm3, %v4139_v57  ;;  %v8824_v57 = vshrl.u32 %v8806_v30, 16 }
 0x1da   : > { %v5571_v14 = vpop.f32.mrb[112].mxu0  ;;  %v3760_v16 = vsel %vm1415_vm2, %v8822_v34, %v3759_v31  ;;  %v3768_v23 = vor.u32 %v3766_v52, %v3764_v59 }
 0x1db   : > { %v5611_v39 = vpop.f32.mrb[112].mxu1  ;;  %v2593_v51 = vpop.f32.mrb[113].mxu0  ;;  %v3761_v40 = vor.u32 %v3759_v31, %v8824_v57 }
 0x1dc   : > { %v7969_v12 = vadd.f32 %v5611_v39, %v7867_v19  ;;  %v2968_v0 = vpop.f32.mrb[113].mxu1  ;;  %v7973_v53 = vadd.f32 %v2593_v51, %v7751_v26  ;;  %v5572_v37 = vpop.f32.mrb[114].mxu0  ;;  %v3769_v26 = vshll.u32 %v7810_v22, 16  ;;  %v4142_v39 = vpack.c.bf16 %v4124_v4, %v4123_v55 }
 0x1dd   : > { %v5612_v6 = vpop.f32.mrb[114].mxu1  ;;  %v7976_v44 = vadd.f32 %v5572_v37, %v7757_v28  ;;  %v2596_v27 = vpop.f32.mrb[115].mxu0  ;;  %v8823_v28 = vld [vmem:[#allocation59_spill] sm:$0xff]  ;;  %v3765_v31 = vsel %vm1415_vm2, %v3761_v40, %v3764_v59  ;;  %v3773_v51 = vshrl.u32 %v7810_v22, 16 }
 0x1de   : > { %v2970_v19 = vpop.f32.mrb[115].mxu1  ;;  %v7983_v21 = vadd.f32 %v2596_v27, %v7760_v20  ;;  %v6016_v20 = vld [vmem:[%s6212_s30 + $0xe4] ss:$0 sps:$4 sm:$0xff]   ;;  %v3771_v9 = vrot.slane %v3769_v26, 1  ;;  %s319_s30 = sand.u32 1, %s6081_s22  }
 0x1df   : > { %v7986_v11 = vadd.f32 %v2970_v19, %v7876_v1  ;;  %5806 = vmatmul.mubr.msk.bf16.gmra.mrb[220].mxu0 %vm564_vm0, %v8823_v28  ;;  %v4125_v1 = vld [vmem:[%s7793_s15 + $0xe0] sm:$0xff]  ;;  %s4636_s11 = sshll.u32 %s319_s30, 8  ;;  %s8396_s24 = scalar_lea.sflag [#allocation3], %s319_s30 }
 0x1e0   : > { %5842 = vmatmul.mubr.msk.bf16.gmra.mrb[220].mxu1 %vm4161_vm3, %v4140_v8  ;;  %5809 = vmatprep.mubr.msk.bf16.mxu0 %vm564_vm0, %v3760_v16  ;;  %v4143_v6 = vpack.c.bf16 %v4126_v33, %v4125_v1  ;;  %v4127_v16 = vld [vmem:[%s7793_s15 + $0xf0] sm:$0xff]  ;;  %s8236_s14 = scalar_lea.vmem [#allocation2], %s4636_s11 }
 0x1e1   : > { %5845 = vmatprep.mubr.msk.bf16.mxu1 %vm4161_vm3, %v4141_v63  ;;  %s4489_s17 = sshll.u32 %s8236_s14, 4  ;;  %s8389_s17 = int_to_ptr.vmem [resolvable:$true] %s4489_s17 }
 0x1e2   : > { %v5575_v38 = vpop.f32.mrb[116].mxu0  ;;  %s6019_s27 = scalar_lea.vmem %s8389_s17, 4096 }
 0x1e3   : > { %v5615_v46 = vpop.f32.mrb[116].mxu1  ;;  %v8001_v56 = vadd.f32 %v5575_v38, %v7774_v45  ;;  %v2608_v14 = vpop.f32.mrb[117].mxu0  ;;  %v3777_v45 = vshll.u32 %v6016_v20, 16  ;;  %p6020_p12 = scmp.ne.s32.totalorder %s8389_s17, %s6019_s27 }
 0x1e4   : > { %v2982_v30 = vpop.f32.mrb[117].mxu1  ;;  %v8006_v0 = vadd.f32 %v2608_v14, %v7778_v41  ;;  %v5576_v62 = vpop.f32.mrb[118].mxu0  ;;  %v3772_v41 = vsel %vm1415_vm2, %v3768_v23, %v3771_v9 }
 0x1e5   : > { %v8009_v8 = vadd.f32 %v2982_v30, %v7892_v18  ;;  %v5616_v37 = vpop.f32.mrb[118].mxu1  ;;  %v8012_v63 = vadd.f32 %v5576_v62, %v7785_v48  ;;  %v2611_v19 = vpop.f32.mrb[119].mxu0  ;;  %v3775_v48 = vor.u32 %v3773_v51, %v3771_v9  ;;  %v3779_v18 = vrot.slane %v3777_v45, 1  ;;  %p6021_p13 = pnand %p6020_p12, %p6177_p4 }
 0x1e6   : > { %v8015_v27 = vadd.f32 %v5616_v37, %v7895_v17  ;;  %v2985_v22 = vpop.f32.mrb[119].mxu1  ;;  %v4128_v17 = vld [vmem:[%s7793_s15 + $0xf8] sm:$0xff]  ;;  %s6099_s15 = smov [#allocation2]  }
 0x1e7   : > { %v8019_v34 = vadd.f32 %v2985_v22, %v7901_v25  ;;  %5810 = vmatmul.mubr.msk.bf16.gmra.mrb[224].mxu0 %vm564_vm0, %v3765_v31  ;;  %v4144_v59 = vpack.c.bf16 %v4128_v17, %v4127_v16  ;;  %v3780_v23 = vsel %vm1415_vm2, %v3775_v48, %v3779_v18  ;;  %p6022_p0 = pneg %p6021_p13  ;;  %s6023_s28 = sshll.u32 %s6099_s15, 4  ;;  %s6024_s28 = int_to_ptr.vmem [resolvable:$false] %s6023_s28 }
 0x1e8   : > { %5846 = vmatmul.mubr.msk.bf16.gmra.mrb[224].mxu1 %vm4161_vm3, %v4142_v39  ;;  %5813 = vmatprep.mubr.msk.bf16.mxu0 %vm564_vm0, %v3772_v41  ;;  %s6025_s8 = scalar_lea.vmem %s6024_s28, 8192  ;;  %p6026_p1 = scmp.lt.s32.totalorder %s8389_s17, %s6024_s28 }
 0x1e9   : > { %5849 = vmatprep.mubr.msk.bf16.mxu1 %vm4161_vm3, %v4143_v6  ;;  %p6027_p2 = scmp.lt.s32.totalorder %s6025_s8, %s6019_s27 }
 0x1ea   : > { %v5579_v52 = vpop.f32.mrb[120].mxu0 }
 0x1eb   : > { %v5619_v26 = vpop.f32.mrb[120].mxu1  ;;  %v2703_v28 = vadd.f32 %v5579_v52, %v7806_v60  ;;  %v2623_v25 = vpop.f32.mrb[121].mxu0  ;;  %p6028_p3 = por %p6027_p2, %p6026_p1 }
 0x1ec   : > { %v8029_v57 = vadd.f32 %v5619_v26, %v7914_v2  ;;  %v2997_v40 = vpop.f32.mrb[121].mxu1  ;;  %v5580_v4 = vpop.f32.mrb[122].mxu0 }
 0x1ed   : > { %v8032_v55 = vadd.f32 %v2997_v40, %v7917_v36  ;;  %v5620_v20 = vpop.f32.mrb[122].mxu1  ;;  %v2625_v1 = vpop.f32.mrb[123].mxu0  ;;  %p6029_p5 = pnand %p6028_p3, %p6022_p0 }
 0x1ee   : > { %v8036_v9 = vadd.f32 %v5620_v20, %v7923_v47  ;;  %v3000_v33 = vpop.f32.mrb[123].mxu1  ;;  %v2702_v60 = vadd.f32 %v2625_v1, %v7819_v50 }
 0x1ef   : > { %5814 = vmatmul.mubr.msk.bf16.gmra.mrb[228].mxu0 %vm564_vm0, %v3780_v23 }
 0x1f0   : > { %5850 = vmatmul.mubr.msk.bf16.gmra.mrb[228].mxu1 %vm4161_vm3, %v4144_v59 }
 0x1f2   : > { %v5583_v2 = vpop.f32.mrb[124].mxu0 }
 0x1f3   : > { %v5623_v38 = vpop.f32.mrb[124].mxu1  ;;  %v2637_v46 = vpop.f32.mrb[125].mxu0 }
 0x1f4   : > { %v8042_v36 = vadd.f32 %v5623_v38, %v7942_v3  ;;  %v3012_v14 = vpop.f32.mrb[125].mxu1  ;;  %v2704_v30 = vadd.f32 %v2637_v46, %v7839_v15  ;;  %v5584_v31 = vpop.f32.mrb[126].mxu0 }
 0x1f5   : > { %v5624_v47 = vpop.f32.mrb[126].mxu1  ;;  %v2706_v39 = vadd.f32 %v5584_v31, %v7845_v42  ;;  %v2640_v51 = vpop.f32.mrb[127].mxu0 }
 0x1f6   : > { %v3014_v62 = vpop.f32.mrb[127].mxu1  ;;  %v2705_v50 = vadd.f32 %v2640_v51, %v7851_v7 }
 0x1f7   : > { %v8048_v37 = vadd.f32 %v3014_v62, %v7954_v49 }
 0x1fa   : > { %v5587_v6 = vpop.f32.mrb[128].mxu0 }
 0x1fb   : > { %v5627_v45 = vpop.f32.mrb[128].mxu1  ;;  %v2708_v3 = vadd.f32 %v5587_v6, %v7864_v43  ;;  %v2652_v19 = vpop.f32.mrb[129].mxu0 }
 0x1fc   : > { %v3026_v22 = vpop.f32.mrb[129].mxu1  ;;  %v2707_v41 = vadd.f32 %v2652_v19, %v7870_v32  ;;  %v5588_v48 = vpop.f32.mrb[130].mxu0 }
 0x1fd   : > { %v8053_v15 = vadd.f32 %v3026_v22, %v7973_v53  ;;  %v5628_v42 = vpop.f32.mrb[130].mxu1  ;;  %v2709_v18 = vadd.f32 %v5588_v48, %v7873_v5  ;;  %v2655_v49 = vpop.f32.mrb[131].mxu0 }
 0x1fe   : > { %v8057_v7 = vadd.f32 %v5628_v42, %v7976_v44  ;;  %v3029_v16 = vpop.f32.mrb[131].mxu1 }
 0x1ff   : > { %v8060_v17 = vadd.f32 %v3029_v16, %v7983_v21 }
 0x202   : > { %v5591_v43 = vpop.f32.mrb[132].mxu0 }
 0x203   : > { %v5631_v52 = vpop.f32.mrb[132].mxu1  ;;  %v2711_v26 = vadd.f32 %v5591_v43, %v7889_v24  ;;  %v2667_v53 = vpop.f32.mrb[133].mxu0 }
 0x204   : > { %v8064_v32 = vadd.f32 %v5631_v52, %v8001_v56  ;;  %v3041_v25 = vpop.f32.mrb[133].mxu1  ;;  %v5592_v5 = vpop.f32.mrb[134].mxu0 }
 0x205   : > { %v8067_v40 = vadd.f32 %v3041_v25, %v8006_v0  ;;  %v5632_v44 = vpop.f32.mrb[134].mxu1  ;;  %v2669_v4 = vpop.f32.mrb[135].mxu0 }
 0x206   : > { %v8070_v59 = vadd.f32 %v5632_v44, %v8012_v63  ;;  %v3044_v21 = vpop.f32.mrb[135].mxu1  ;;  %v2710_v20 = vadd.f32 %v2669_v4, %v7898_v35 }
 0x20a   : > { %v5659_v1 = vpop.f32.mrb[136].mxu0 }
 0x20b   : > { %v5635_v23 = vpop.f32.mrb[136].mxu1  ;;  %v3256_v33 = vpop.f32.mrb[137].mxu0 }
 0x20c   : > { %v8073_v24 = vadd.f32 %v5635_v23, %v2703_v28  ;;  %v3056_v56 = vpop.f32.mrb[137].mxu1  ;;  %v3431_v2 = vadd.f32 %v3256_v33, %v7920_v29  ;;  %v5660_v0 = vpop.f32.mrb[138].mxu0 }
 0x20d   : > { %v5636_v38 = vpop.f32.mrb[138].mxu1  ;;  %v3433_v46 = vadd.f32 %v5660_v0, %v7926_v58  ;;  %v3259_v31 = vpop.f32.mrb[139].mxu0 }
 0x20e   : > { %v3058_v14 = vpop.f32.mrb[139].mxu1  ;;  %v3432_v47 = vadd.f32 %v3259_v31, %v7929_v10 }
 0x20f   : > { %v8077_v63 = vadd.f32 %v3058_v14, %v2702_v60 }
 0x212   : > { %v5663_v35 = vpop.f32.mrb[140].mxu0 }
 0x213   : > { %v5639_v51 = vpop.f32.mrb[140].mxu1  ;;  %v3435_v62 = vadd.f32 %v5663_v35, %v7945_v54  ;;  %v3271_v6 = vpop.f32.mrb[141].mxu0 }
 0x214   : > { %v3070_v28 = vpop.f32.mrb[141].mxu1  ;;  %v3434_v29 = vadd.f32 %v3271_v6, %v7948_v13  ;;  %v5664_v22 = vpop.f32.mrb[142].mxu0 }
 0x215   : > { %v8081_v45 = vadd.f32 %v3070_v28, %v2704_v30  ;;  %v5640_v19 = vpop.f32.mrb[142].mxu1  ;;  %v3436_v58 = vadd.f32 %v5664_v22, %v7951_v61  ;;  %v3274_v42 = vpop.f32.mrb[143].mxu0 }
 0x216   : > { %v8084_v48 = vadd.f32 %v5640_v19, %v2706_v39  ;;  %v3073_v60 = vpop.f32.mrb[143].mxu1 }
 0x217   : > { %v8087_v49 = vadd.f32 %v3073_v60, %v2705_v50 }
 0x21a   : > { %v5667_v16 = vpop.f32.mrb[144].mxu0 }
 0x21b   : > { %v5643_v10 = vpop.f32.mrb[144].mxu1  ;;  %v3438_v54 = vadd.f32 %v5667_v16, %v7969_v12  ;;  %v3286_v52 = vpop.f32.mrb[145].mxu0 }
 0x21c   : > { %v8089_v43 = vadd.f32 %v5643_v10, %v2708_v3  ;;  %v3085_v30 = vpop.f32.mrb[145].mxu1  ;;  %v5668_v25 = vpop.f32.mrb[146].mxu0 }
 0x21d   : > { %v8092_v53 = vadd.f32 %v3085_v30, %v2707_v41  ;;  %v5644_v13 = vpop.f32.mrb[146].mxu1  ;;  %v3288_v5 = vpop.f32.mrb[147].mxu0 }
 0x21e   : > { %v8094_v39 = vadd.f32 %v5644_v13, %v2709_v18  ;;  %v3088_v61 = vpop.f32.mrb[147].mxu1  ;;  %v3437_v44 = vadd.f32 %v3288_v5, %v7986_v11 }
 0x222   : > { %v5671_v4 = vpop.f32.mrb[148].mxu0 }
 0x223   : > { %v5647_v50 = vpop.f32.mrb[148].mxu1  ;;  %v3300_v23 = vpop.f32.mrb[149].mxu0 }
 0x224   : > { %v8097_v21 = vadd.f32 %v5647_v50, %v2711_v26  ;;  %v3100_v3 = vpop.f32.mrb[149].mxu1  ;;  %v3439_v12 = vadd.f32 %v3300_v23, %v8009_v8  ;;  %v5672_v56 = vpop.f32.mrb[150].mxu0 }
 0x225   : > { %v5648_v1 = vpop.f32.mrb[150].mxu1  ;;  %v3441_v41 = vadd.f32 %v5672_v56, %v8015_v27  ;;  %v3303_v38 = vpop.f32.mrb[151].mxu0 }
 0x226   : > { %v3102_v33 = vpop.f32.mrb[151].mxu1  ;;  %v3440_v0 = vadd.f32 %v3303_v38, %v8019_v34 }
 0x227   : > { %v8101_v18 = vadd.f32 %v3102_v33, %v2710_v20 }
 0x22a   : > { %v5675_v14 = vpop.f32.mrb[152].mxu0 }
 0x22b   : > { %v5715_v11 = vpop.f32.mrb[152].mxu1  ;;  %v3443_v31 = vadd.f32 %v5675_v14, %v8029_v57  ;;  %v3315_v26 = vpop.f32.mrb[153].mxu0 }
 0x22c   : > { %v3540_v51 = vpop.f32.mrb[153].mxu1  ;;  %v3442_v35 = vadd.f32 %v3315_v26, %v8032_v55  ;;  %v5676_v8 = vpop.f32.mrb[154].mxu0 }
 0x22d   : > { %v8106_v28 = vadd.f32 %v3540_v51, %v3431_v2  ;;  %v5716_v6 = vpop.f32.mrb[154].mxu1  ;;  %v3444_v27 = vadd.f32 %v5676_v8, %v8036_v9  ;;  %v3318_v20 = vpop.f32.mrb[155].mxu0 }
 0x22e   : > { %v8109_v19 = vadd.f32 %v5716_v6, %v3433_v46  ;;  %v3543_v22 = vpop.f32.mrb[155].mxu1 }
 0x22f   : > { %v8111_v60 = vadd.f32 %v3543_v22, %v3432_v47 }
 0x232   : > { %v5679_v34 = vpop.f32.mrb[156].mxu0 }
 0x233   : > { %v5719_v42 = vpop.f32.mrb[156].mxu1  ;;  %v3446_v57 = vadd.f32 %v5679_v34, %v8042_v36  ;;  %v3330_v16 = vpop.f32.mrb[157].mxu0 }
 0x234   : > { %v8114_v10 = vadd.f32 %v5719_v42, %v3435_v62  ;;  %v3555_v55 = vpop.f32.mrb[157].mxu1  ;;  %v5680_v30 = vpop.f32.mrb[158].mxu0 }
 0x235   : > { %v8116_v2 = vadd.f32 %v3555_v55, %v3434_v29  ;;  %v5720_v52 = vpop.f32.mrb[158].mxu1  ;;  %v3332_v9 = vpop.f32.mrb[159].mxu0 }
 0x236   : > { %v8118_v13 = vadd.f32 %v5720_v52, %v3436_v58  ;;  %v3558_v46 = vpop.f32.mrb[159].mxu1  ;;  %v3445_v25 = vadd.f32 %v3332_v9, %v8048_v37 }
 0x23a   : > { %v5683_v47 = vpop.f32.mrb[160].mxu0 }
 0x23b   : > { %v5723_v5 = vpop.f32.mrb[160].mxu1  ;;  %v3344_v50 = vpop.f32.mrb[161].mxu0 }
 0x23c   : > { %v8121_v61 = vadd.f32 %v5723_v5, %v3438_v54  ;;  %v3570_v36 = vpop.f32.mrb[161].mxu1  ;;  %v3447_v62 = vadd.f32 %v3344_v50, %v8053_v15  ;;  %v5684_v4 = vpop.f32.mrb[162].mxu0 }
 0x23d   : > { %v5724_v3 = vpop.f32.mrb[162].mxu1  ;;  %v3449_v29 = vadd.f32 %v5684_v4, %v8057_v7  ;;  %v3347_v23 = vpop.f32.mrb[163].mxu0 }
 0x23e   : > { %v3572_v1 = vpop.f32.mrb[163].mxu1  ;;  %v3448_v58 = vadd.f32 %v3347_v23, %v8060_v17 }
 0x23f   : > { %v8126_v56 = vadd.f32 %v3572_v1, %v3437_v44 }
 0x242   : > { %v5687_v33 = vpop.f32.mrb[164].mxu0 }
 0x243   : > { %v5727_v37 = vpop.f32.mrb[164].mxu1  ;;  %v3451_v38 = vadd.f32 %v5687_v33, %v8064_v32  ;;  %v3359_v54 = vpop.f32.mrb[165].mxu0 }
 0x244   : > { %v3584_v14 = vpop.f32.mrb[165].mxu1  ;;  %v3450_v11 = vadd.f32 %v3359_v54, %v8067_v40  ;;  %v5688_v15 = vpop.f32.mrb[166].mxu0 }
 0x245   : > { %v8130_v26 = vadd.f32 %v3584_v14, %v3439_v12  ;;  %v5728_v51 = vpop.f32.mrb[166].mxu1  ;;  %v3452_v7 = vadd.f32 %v5688_v15, %v8070_v59  ;;  %v3362_v6 = vpop.f32.mrb[167].mxu0 }
 0x246   : > { %v8133_v8 = vadd.f32 %v5728_v51, %v3441_v41  ;;  %v3587_v17 = vpop.f32.mrb[167].mxu1 }
 0x247   : > { %v8135_v44 = vadd.f32 %v3587_v17, %v3440_v0 }
 0x24a   : > { %v5691_v20 = vpop.f32.mrb[168].mxu0 }
 0x24b   : > { %v5731_v22 = vpop.f32.mrb[168].mxu1  ;;  %v3454_v32 = vadd.f32 %v5691_v20, %v8073_v24  ;;  %v3374_v42 = vpop.f32.mrb[169].mxu0 }
 0x24c   : > { %v8138_v34 = vadd.f32 %v5731_v22, %v3443_v31  ;;  %v3599_v40 = vpop.f32.mrb[169].mxu1  ;;  %v5692_v16 = vpop.f32.mrb[170].mxu0 }
 0x24d   : > { %v8140_v12 = vadd.f32 %v3599_v40, %v3442_v35  ;;  %v5732_v55 = vpop.f32.mrb[170].mxu1  ;;  %v3376_v59 = vpop.f32.mrb[171].mxu0 }
 0x24e   : > { %v8142_v30 = vadd.f32 %v5732_v55, %v3444_v27  ;;  %v3602_v41 = vpop.f32.mrb[171].mxu1  ;;  %v3453_v52 = vadd.f32 %v3376_v59, %v8077_v63 }
 0x252   : > { %v5695_v0 = vpop.f32.mrb[172].mxu0 }
 0x253   : > { %v5735_v9 = vpop.f32.mrb[172].mxu1  ;;  %v3388_v47 = vpop.f32.mrb[173].mxu0 }
 0x254   : > { %v8145_v46 = vadd.f32 %v5735_v9, %v3446_v57  ;;  %v3614_v24 = vpop.f32.mrb[173].mxu1  ;;  %v3455_v31 = vadd.f32 %v3388_v47, %v8081_v45  ;;  %v5696_v5 = vpop.f32.mrb[174].mxu0 }
 0x255   : > { %v5736_v50 = vpop.f32.mrb[174].mxu1  ;;  %v3457_v35 = vadd.f32 %v5696_v5, %v8084_v48  ;;  %v3391_v36 = vpop.f32.mrb[175].mxu0 }
 0x256   : > { %v3616_v4 = vpop.f32.mrb[175].mxu1  ;;  %v3456_v27 = vadd.f32 %v3391_v36, %v8087_v49 }
 0x257   : > { %v8150_v3 = vadd.f32 %v3616_v4, %v3445_v25 }
 0x25a   : > { %v5699_v23 = vpop.f32.mrb[176].mxu0 }
 0x25b   : > { %v5739_v63 = vpop.f32.mrb[176].mxu1  ;;  %v3459_v1 = vadd.f32 %v5699_v23, %v8089_v43  ;;  %v3403_v57 = vpop.f32.mrb[177].mxu0 }
 0x25c   : > { %v3628_v33 = vpop.f32.mrb[177].mxu1  ;;  %v3458_v37 = vadd.f32 %v3403_v57, %v8092_v53  ;;  %v5700_v45 = vpop.f32.mrb[178].mxu0 }
 0x25d   : > { %v8154_v54 = vadd.f32 %v3628_v33, %v3447_v62  ;;  %v5740_v14 = vpop.f32.mrb[178].mxu1  ;;  %v3460_v48 = vadd.f32 %v5700_v45, %v8094_v39  ;;  %v3406_v51 = vpop.f32.mrb[179].mxu0 }
 0x25e   : > { %v8157_v15 = vadd.f32 %v5740_v14, %v3449_v29  ;;  %v3631_v49 = vpop.f32.mrb[179].mxu1 }
 0x25f   : > { %v8159_v25 = vadd.f32 %v3631_v49, %v3448_v58 }
 0x262   : > { %v5703_v6 = vpop.f32.mrb[180].mxu0 }
 0x263   : > { %v5743_v17 = vpop.f32.mrb[180].mxu1  ;;  %v3462_v43 = vadd.f32 %v5703_v6, %v8097_v21  ;;  %v3418_v22 = vpop.f32.mrb[181].mxu0 }
 0x264   : > { %v8162_v20 = vadd.f32 %v5743_v17, %v3451_v38  ;;  %v3643_v53 = vpop.f32.mrb[181].mxu1  ;;  %v5704_v42 = vpop.f32.mrb[182].mxu0 }
 0x265   : > { %v8164_v62 = vadd.f32 %v3643_v53, %v3450_v11  ;;  %v5744_v40 = vpop.f32.mrb[182].mxu1  ;;  %v3420_v39 = vpop.f32.mrb[183].mxu0 }
 0x266   : > { %v8166_v16 = vadd.f32 %v5744_v40, %v3452_v7  ;;  %v3646_v29 = vpop.f32.mrb[183].mxu1  ;;  %v3461_v55 = vadd.f32 %v3420_v39, %v8101_v18 }
 0x26a   : > { %v5771_v59 = vpop.f32.mrb[184].mxu0 }
 0x26b   : > { %v5747_v58 = vpop.f32.mrb[184].mxu1  ;;  %v3851_v21 = vpop.f32.mrb[185].mxu0 }
 0x26c   : > { %v8169_v41 = vadd.f32 %v5747_v58, %v3454_v32  ;;  %v3658_v0 = vpop.f32.mrb[185].mxu1  ;;  %v4026_v38 = vadd.f32 %v3851_v21, %v8106_v28  ;;  %v5772_v47 = vpop.f32.mrb[186].mxu0 }
 0x26d   : > { %v5748_v9 = vpop.f32.mrb[186].mxu1  ;;  %v4028_v11 = vadd.f32 %v5772_v47, %v8109_v19  ;;  %v3854_v5 = vpop.f32.mrb[187].mxu0 }
 0x26e   : > { %v3660_v24 = vpop.f32.mrb[187].mxu1  ;;  %v4027_v50 = vadd.f32 %v3854_v5, %v8111_v60 }
 0x26f   : > { %v8173_v7 = vadd.f32 %v3660_v24, %v3453_v52 }
 0x272   : > { %v5775_v18 = vpop.f32.mrb[188].mxu0 }
 0x273   : > { %v5751_v36 = vpop.f32.mrb[188].mxu1  ;;  %v8177_v4 = vadd.f32 %v5775_v18, %v8114_v10  ;;  %v3866_v23 = vpop.f32.mrb[189].mxu0 }
 0x274   : > { %v3672_v32 = vpop.f32.mrb[189].mxu1  ;;  %v4029_v28 = vadd.f32 %v3866_v23, %v8116_v2  ;;  %v5776_v33 = vpop.f32.mrb[190].mxu0 }
 0x275   : > { %v8179_v63 = vadd.f32 %v3672_v32, %v3455_v31  ;;  %v5752_v57 = vpop.f32.mrb[190].mxu1  ;;  %v8185_v52 = vadd.f32 %v5776_v33, %v8118_v13  ;;  %v3869_v60 = vpop.f32.mrb[191].mxu0 }
 0x276   : > { %v8182_v19 = vadd.f32 %v5752_v57, %v3457_v35  ;;  %v3675_v45 = vpop.f32.mrb[191].mxu1 }
 0x277   : > { %v8187_v14 = vadd.f32 %v3675_v45, %v3456_v27 }
 0x27a   : > { %v5779_v10 = vpop.f32.mrb[192].mxu0 }
 0x27b   : > { %v5755_v51 = vpop.f32.mrb[192].mxu1  ;;  %v8192_v31 = vadd.f32 %v5779_v10, %v8121_v61  ;;  %v3881_v2 = vpop.f32.mrb[193].mxu0 }
 0x27c   : > { %v8189_v49 = vadd.f32 %v5755_v51, %v3459_v1  ;;  %v3687_v6 = vpop.f32.mrb[193].mxu1  ;;  %v5780_v22 = vpop.f32.mrb[194].mxu0 }
 0x27d   : > { %v8194_v17 = vadd.f32 %v3687_v6, %v3458_v37  ;;  %v5756_v35 = vpop.f32.mrb[194].mxu1  ;;  %v3883_v13 = vpop.f32.mrb[195].mxu0 }
 0x27e   : > { %v8196_v53 = vadd.f32 %v5756_v35, %v3460_v48  ;;  %v3690_v42 = vpop.f32.mrb[195].mxu1  ;;  %v4032_v27 = vadd.f32 %v3883_v13, %v8126_v56 }
 0x282   : > { %v5783_v1 = vpop.f32.mrb[196].mxu0 }
 0x283   : > { %v5759_v40 = vpop.f32.mrb[196].mxu1  ;;  %v3895_v29 = vpop.f32.mrb[197].mxu0 }
 0x284   : > { %v8199_v39 = vadd.f32 %v5759_v40, %v3462_v43  ;;  %v3702_v61 = vpop.f32.mrb[197].mxu1  ;;  %v8202_v58 = vadd.f32 %v3895_v29, %v8130_v26  ;;  %v5784_v59 = vpop.f32.mrb[198].mxu0  ;;  %v8214_v43 = vld [vmem:[%s8444_s2] ss:$0 sm:$0xff] }
 0x285   : > { %v5760_v37 = vpop.f32.mrb[198].mxu1  ;;  %v4036_v48 = vadd.f32 %v5784_v59, %v8133_v8  ;;  %v3898_v21 = vpop.f32.mrb[199].mxu0  ;;  %v4067_v26 = vadd.f32 %v8214_v43, %v4028_v11  ;;  %v8222_v8 = vld [vmem:[%s8447_s5] ss:$0 sm:$0xff]  ;;  %v4068_v32 = vadd.f32 %v8214_v43, %v4029_v28  ;;  %v4066_v45 = vadd.f32 %v8214_v43, %v4027_v50 }
 0x286   : > { %v3704_v0 = vpop.f32.mrb[199].mxu1  ;;  %v8208_v56 = vadd.f32 %v3898_v21, %v8135_v44  ;;  %v4065_v44 = vadd.f32 %v8214_v43, %v4026_v38  ;;  %v4071_v50 = vadd.f32 %v8214_v43, %v4032_v27  ;;  %v4069_v22 = vadd.f32 %v8214_v43, %v8177_v4 }
 0x287   : > { %v8205_v9 = vadd.f32 %v3704_v0, %v3461_v55  ;;  %v4072_v61 = vadd.f32 %v8214_v43, %v8192_v31  ;;  %v4070_v59 = vadd.f32 %v8214_v43, %v8185_v52  ;;  %v4075_v52 = vadd.f32 %v8214_v43, %v4036_v48 }
 0x28a   : > { %v5787_v47 = vpop.f32.mrb[200].mxu0 }
 0x28b   : > { %v5823_v24 = vpop.f32.mrb[200].mxu1  ;;  %v8226_v55 = vadd.f32 %v5787_v47, %v8138_v34  ;;  %v3910_v36 = vpop.f32.mrb[201].mxu0 }
 0x28c   : > { %v4373_v5 = vadd.f32 %v5823_v24, %v4067_v26  ;;  %v4244_v18 = vpop.f32.mrb[201].mxu1  ;;  %v4037_v23 = vadd.f32 %v3910_v36, %v8140_v12  ;;  %v5788_v57 = vpop.f32.mrb[202].mxu0 }
 0x28d   : > { %v4371_v11 = vadd.f32 %v4244_v18, %v4065_v44  ;;  %v5824_v33 = vpop.f32.mrb[202].mxu1  ;;  %v8233_v51 = vadd.f32 %v5788_v57, %v8142_v30  ;;  %v3913_v34 = vpop.f32.mrb[203].mxu0 }
 0x28e   : > { %v4412_v60 = vadd.f32 %v8222_v8, %v4373_v5  ;;  %v4374_v38 = vadd.f32 %v5824_v33, %v4068_v32  ;;  %v4247_v10 = vpop.f32.mrb[203].mxu1  ;;  %v4076_v57 = vadd.f32 %v8214_v43, %v4037_v23 }
 0x28f   : > { %v4410_v6 = vadd.f32 %v8222_v8, %v4371_v11  ;;  %v4372_v2 = vadd.f32 %v4247_v10, %v4066_v45 }
 0x290   : > { %4444 = vst.msk [vmem:[%s8236_s14 + $0x10] sm:$0xff] %vm564_vm0, %v4412_v60  ;;  %v4413_v12 = vadd.f32 %v8222_v8, %v4374_v38  ;;  %v4074_v38 = vadd.f32 %v8214_v43, %v8208_v56 }
 0x291   : > { %4442 = vst.msk [vmem:[%s8236_s14] sm:$0xff] %vm564_vm0, %v4410_v6  ;;  %v4411_v30 = vadd.f32 %v8222_v8, %v4372_v2 }
 0x292   : > { %4445 = vst.msk [vmem:[%s8236_s14 + $0x18] sm:$0xff] %vm564_vm0, %v4413_v12  ;;  %v5791_v28 = vpop.f32.mrb[204].mxu0 }
 0x293   : > { %4443 = vst.msk [vmem:[%s8236_s14 + $0x8] sm:$0xff] %vm564_vm0, %v4411_v30  ;;  %v5827_v35 = vpop.f32.mrb[204].mxu1  ;;  %v4041_v13 = vadd.f32 %v5791_v28, %v8145_v46  ;;  %v3925_v40 = vpop.f32.mrb[205].mxu0 }
 0x294   : > { %v4377_v42 = vadd.f32 %v5827_v35, %v4071_v50  ;;  %v4260_v1 = vpop.f32.mrb[205].mxu1  ;;  %v5792_v27 = vpop.f32.mrb[206].mxu0 }
 0x295   : > { %v4375_v29 = vadd.f32 %v4260_v1, %v4069_v22  ;;  %v5828_v37 = vpop.f32.mrb[206].mxu1  ;;  %v3927_v46 = vpop.f32.mrb[207].mxu0  ;;  %v4080_v1 = vadd.f32 %v8214_v43, %v4041_v13 }
 0x296   : > { %v4416_v4 = vadd.f32 %v8222_v8, %v4377_v42  ;;  %v4378_v0 = vadd.f32 %v5828_v37, %v4072_v61  ;;  %v4263_v21 = vpop.f32.mrb[207].mxu1  ;;  %v4040_v47 = vadd.f32 %v3927_v46, %v8150_v3  ;;  %v4073_v3 = vadd.f32 %v8214_v43, %v8202_v58 }
 0x297   : > { %v4414_v26 = vadd.f32 %v8222_v8, %v4375_v29  ;;  %v4376_v24 = vadd.f32 %v4263_v21, %v4070_v59  ;;  %v4078_v59 = vadd.f32 %v8214_v43, %v8233_v51 }
 0x298   : > { %4448 = vst.msk [vmem:[%s8236_s14 + $0x30] sm:$0xff] %vm564_vm0, %v4416_v4  ;;  %v4417_v31 = vadd.f32 %v8222_v8, %v4378_v0 }
 0x299   : > { %4446 = vst.msk [vmem:[%s8236_s14 + $0x20] sm:$0xff] %vm564_vm0, %v4414_v26  ;;  %v4415_v44 = vadd.f32 %v8222_v8, %v4376_v24 }
 0x29a   : > { %4449 = vst.msk [vmem:[%s8236_s14 + $0x38] sm:$0xff] %vm564_vm0, %v4417_v31  ;;  %v5795_v5 = vpop.f32.mrb[208].mxu0 }
 0x29b   : > { %4447 = vst.msk [vmem:[%s8236_s14 + $0x28] sm:$0xff] %vm564_vm0, %v4415_v44  ;;  %v5831_v36 = vpop.f32.mrb[208].mxu1  ;;  %v3939_v32 = vpop.f32.mrb[209].mxu0 }
 0x29c   : > { %v4381_v18 = vadd.f32 %v5831_v36, %v4075_v52  ;;  %v4276_v11 = vpop.f32.mrb[209].mxu1  ;;  %v4042_v33 = vadd.f32 %v3939_v32, %v8154_v54  ;;  %v5796_v60 = vpop.f32.mrb[210].mxu0 }
 0x29d   : > { %v4379_v45 = vadd.f32 %v4276_v11, %v4073_v3  ;;  %v5832_v48 = vpop.f32.mrb[210].mxu1  ;;  %v4044_v58 = vadd.f32 %v5796_v60, %v8157_v15  ;;  %v3942_v6 = vpop.f32.mrb[211].mxu0  ;;  %v4079_v15 = vadd.f32 %v8214_v43, %v4040_v47 }
 0x29e   : > { %v4420_v34 = vadd.f32 %v8222_v8, %v4381_v18  ;;  %v4382_v10 = vadd.f32 %v5832_v48, %v4076_v57  ;;  %v4279_v2 = vpop.f32.mrb[211].mxu1  ;;  %v4043_v12 = vadd.f32 %v3942_v6, %v8159_v25  ;;  %v4077_v25 = vadd.f32 %v8214_v43, %v8226_v55 }
 0x29f   : > { %v4418_v23 = vadd.f32 %v8222_v8, %v4379_v45  ;;  %v4380_v54 = vadd.f32 %v4279_v2, %v4074_v38  ;;  %v4083_v51 = vadd.f32 %v8214_v43, %v4044_v58  ;;  %v4081_v24 = vadd.f32 %v8214_v43, %v4042_v33 }
 0x2a0   : > { %4452 = vst.msk [vmem:[%s8236_s14 + $0x50] sm:$0xff] %vm564_vm0, %v4420_v34  ;;  %v4421_v30 = vadd.f32 %v8222_v8, %v4382_v10  ;;  %v4082_v11 = vadd.f32 %v8214_v43, %v4043_v12 }
 0x2a1   : > { %4450 = vst.msk [vmem:[%s8236_s14 + $0x40] sm:$0xff] %vm564_vm0, %v4418_v23  ;;  %v4419_v56 = vadd.f32 %v8222_v8, %v4380_v54 }
 0x2a2   : > { %4453 = vst.msk [vmem:[%s8236_s14 + $0x58] sm:$0xff] %vm564_vm0, %v4421_v30  ;;  %v5799_v50 = vpop.f32.mrb[212].mxu0 }
 0x2a3   : > { %4451 = vst.msk [vmem:[%s8236_s14 + $0x48] sm:$0xff] %vm564_vm0, %v4419_v56  ;;  %v5835_v28 = vpop.f32.mrb[212].mxu1  ;;  %v4046_v35 = vadd.f32 %v5799_v50, %v8162_v20  ;;  %v3954_v42 = vpop.f32.mrb[213].mxu0 }
 0x2a4   : > { %v4385_v22 = vadd.f32 %v5835_v28, %v4079_v15  ;;  %v4292_v40 = vpop.f32.mrb[213].mxu1  ;;  %v4045_v61 = vadd.f32 %v3954_v42, %v8164_v62  ;;  %v5800_v27 = vpop.f32.mrb[214].mxu0 }
 0x2a5   : > { %v4383_v29 = vadd.f32 %v4292_v40, %v4077_v25  ;;  %v5836_v37 = vpop.f32.mrb[214].mxu1  ;;  %v4047_v20 = vadd.f32 %v5800_v27, %v8166_v16  ;;  %v3957_v0 = vpop.f32.mrb[215].mxu0  ;;  %v4085_v23 = vadd.f32 %v8214_v43, %v4046_v35 }
 0x2a6   : > { %v4424_v55 = vadd.f32 %v8222_v8, %v4385_v22  ;;  %v4386_v4 = vadd.f32 %v5836_v37, %v4080_v1  ;;  %v4295_v46 = vpop.f32.mrb[215].mxu1  ;;  %v4084_v36 = vadd.f32 %v8214_v43, %v4045_v61 }
 0x2a7   : > { %v4422_v21 = vadd.f32 %v8222_v8, %v4383_v29  ;;  %v4384_v13 = vadd.f32 %v4295_v46, %v4078_v59  ;;  %v4086_v25 = vadd.f32 %v8214_v43, %v4047_v20 }
 0x2a8   : > { %4456 = vst.msk [vmem:[%s8236_s14 + $0x70] sm:$0xff] %vm564_vm0, %v4424_v55  ;;  %v4425_v62 = vadd.f32 %v8222_v8, %v4386_v4 }
 0x2a9   : > { %4454 = vst.msk [vmem:[%s8236_s14 + $0x60] sm:$0xff] %vm564_vm0, %v4422_v21  ;;  %v4423_v26 = vadd.f32 %v8222_v8, %v4384_v13 }
 0x2aa   : > { %4457 = vst.msk [vmem:[%s8236_s14 + $0x78] sm:$0xff] %vm564_vm0, %v4425_v62  ;;  %v5803_v16 = vpop.f32.mrb[216].mxu0 }
 0x2ab   : > { %4455 = vst.msk [vmem:[%s8236_s14 + $0x68] sm:$0xff] %vm564_vm0, %v4423_v26  ;;  %v5839_v47 = vpop.f32.mrb[216].mxu1  ;;  %v4049_v31 = vadd.f32 %v5803_v16, %v8169_v41  ;;  %v3969_v52 = vpop.f32.mrb[217].mxu0 }
 0x2ac   : > { %v4389_v44 = vadd.f32 %v5839_v47, %v4083_v51  ;;  %v4308_v5 = vpop.f32.mrb[217].mxu1  ;;  %v5804_v18 = vpop.f32.mrb[218].mxu0 }
 0x2ad   : > { %v4387_v3 = vadd.f32 %v4308_v5, %v4081_v24  ;;  %v5840_v32 = vpop.f32.mrb[218].mxu1  ;;  %v3971_v33 = vpop.f32.mrb[219].mxu0  ;;  %v4088_v30 = vadd.f32 %v8214_v43, %v4049_v31 }
 0x2ae   : > { %v4428_v57 = vadd.f32 %v8222_v8, %v4389_v44  ;;  %v4390_v45 = vadd.f32 %v5840_v32, %v4084_v36  ;;  %v4311_v60 = vpop.f32.mrb[219].mxu1  ;;  %v4048_v48 = vadd.f32 %v3971_v33, %v8173_v7 }
 0x2af   : > { %v4426_v41 = vadd.f32 %v8222_v8, %v4387_v3  ;;  %v4388_v38 = vadd.f32 %v4311_v60, %v4082_v11 }
 0x2b0   : > { %4460 = vst.msk [vmem:[%s8236_s14 + $0x90] sm:$0xff] %vm564_vm0, %v4428_v57  ;;  %v4429_v34 = vadd.f32 %v8222_v8, %v4390_v45  ;;  %v4087_v10 = vadd.f32 %v8214_v43, %v4048_v48 }
 0x2b1   : > { %4458 = vst.msk [vmem:[%s8236_s14 + $0x80] sm:$0xff] %vm564_vm0, %v4426_v41  ;;  %v4427_v58 = vadd.f32 %v8222_v8, %v4388_v38 }
 0x2b2   : > { %4461 = vst.msk [vmem:[%s8236_s14 + $0x98] sm:$0xff] %vm564_vm0, %v4429_v34  ;;  %v5807_v6 = vpop.f32.mrb[220].mxu0 }
 0x2b3   : > { %4459 = vst.msk [vmem:[%s8236_s14 + $0x88] sm:$0xff] %vm564_vm0, %v4427_v58  ;;  %v5843_v2 = vpop.f32.mrb[220].mxu1  ;;  %v3983_v12 = vpop.f32.mrb[221].mxu0 }
 0x2b4   : > { %v4393_v7 = vadd.f32 %v5843_v2, %v4087_v10  ;;  %v4324_v54 = vpop.f32.mrb[221].mxu1  ;;  %v4050_v56 = vadd.f32 %v3983_v12, %v8179_v63  ;;  %v5808_v50 = vpop.f32.mrb[222].mxu0 }
 0x2b5   : > { %v4391_v15 = vadd.f32 %v4324_v54, %v4085_v23  ;;  %v5844_v28 = vpop.f32.mrb[222].mxu1  ;;  %v4052_v35 = vadd.f32 %v5808_v50, %v8182_v19  ;;  %v3986_v40 = vpop.f32.mrb[223].mxu0 }
 0x2b6   : > { %v4432_v22 = vadd.f32 %v8222_v8, %v4393_v7  ;;  %v4394_v42 = vadd.f32 %v5844_v28, %v4088_v30  ;;  %v4327_v1 = vpop.f32.mrb[223].mxu1  ;;  %v4051_v29 = vadd.f32 %v3986_v40, %v8187_v14  ;;  %v4089_v20 = vadd.f32 %v8214_v43, %v4050_v56 }
 0x2b7   : > { %v4430_v61 = vadd.f32 %v8222_v8, %v4391_v15  ;;  %v4392_v27 = vadd.f32 %v4327_v1, %v4086_v25  ;;  %v4091_v19 = vadd.f32 %v8214_v43, %v4052_v35 }
 0x2b8   : > { %4464 = vst.msk [vmem:[%s8236_s14 + $0xb0] sm:$0xff] %vm564_vm0, %v4432_v22  ;;  %v4433_v63 = vadd.f32 %v8222_v8, %v4394_v42  ;;  %v4090_v51 = vadd.f32 %v8214_v43, %v4051_v29 }
 0x2b9   : > { %4462 = vst.msk [vmem:[%s8236_s14 + $0xa0] sm:$0xff] %vm564_vm0, %v4430_v61  ;;  %v4431_v37 = vadd.f32 %v8222_v8, %v4392_v27 }
 0x2ba   : > { %4465 = vst.msk [vmem:[%s8236_s14 + $0xb8] sm:$0xff] %vm564_vm0, %v4433_v63  ;;  %v5811_v59 = vpop.f32.mrb[224].mxu0 }
 0x2bb   : > { %4463 = vst.msk [vmem:[%s8236_s14 + $0xa8] sm:$0xff] %vm564_vm0, %v4431_v37  ;;  %v5847_v55 = vpop.f32.mrb[224].mxu1  ;;  %v4054_v14 = vadd.f32 %v5811_v59, %v8189_v49  ;;  %v3998_v0 = vpop.f32.mrb[225].mxu0 }
 0x2bc   : > { %v4397_v4 = vadd.f32 %v5847_v55, %v4091_v19  ;;  %v4340_v46 = vpop.f32.mrb[225].mxu1  ;;  %v4053_v21 = vadd.f32 %v3998_v0, %v8194_v17  ;;  %v5812_v62 = vpop.f32.mrb[226].mxu0 }
 0x2bd   : > { %v4395_v13 = vadd.f32 %v4340_v46, %v4089_v20  ;;  %v5848_v26 = vpop.f32.mrb[226].mxu1  ;;  %v4055_v47 = vadd.f32 %v5812_v62, %v8196_v53  ;;  %v4001_v24 = vpop.f32.mrb[227].mxu0  ;;  %v4093_v18 = vadd.f32 %v8214_v43, %v4054_v14 }
 0x2be   : > { %v4436_v16 = vadd.f32 %v8222_v8, %v4397_v4  ;;  %v4343_v31 = vpop.f32.mrb[227].mxu1  ;;  %v4092_v44 = vadd.f32 %v8214_v43, %v4053_v21 }
 0x2bf   : > { %v4434_v49 = vadd.f32 %v8222_v8, %v4395_v13  ;;  %v4396_v52 = vadd.f32 %v4343_v31, %v4090_v51  ;;  %v4094_v41 = vadd.f32 %v8214_v43, %v4055_v47 }
 0x2c0   : > { %4468 = vst.msk [vmem:[%s8236_s14 + $0xd0] sm:$0xff] %vm564_vm0, %v4436_v16  ;;  %v4398_v17 = vadd.f32 %v5848_v26, %v4092_v44 }
 0x2c1   : > { %4466 = vst.msk [vmem:[%s8236_s14 + $0xc0] sm:$0xff] %vm564_vm0, %v4434_v49  ;;  %v4435_v5 = vadd.f32 %v8222_v8, %v4396_v52 }
 0x2c2   : > { %v4437_v36 = vadd.f32 %v8222_v8, %v4398_v17  ;;  %v5815_v53 = vpop.f32.mrb[228].mxu0 }
 0x2c3   : > { %4467 = vst.msk [vmem:[%s8236_s14 + $0xc8] sm:$0xff] %vm564_vm0, %v4435_v5  ;;  %v5851_v3 = vpop.f32.mrb[228].mxu1  ;;  %v4057_v32 = vadd.f32 %v5815_v53, %v8199_v39  ;;  %v4013_v11 = vpop.f32.mrb[229].mxu0 }
 0x2c4   : > { %v4356_v57 = vpop.f32.mrb[229].mxu1  ;;  %4469 = vst.msk [vmem:[%s8236_s14 + $0xd8] sm:$0xff] %vm564_vm0, %v4437_v36  ;;  %v5816_v33 = vpop.f32.mrb[230].mxu0 }
 0x2c5   : > { %v4399_v45 = vadd.f32 %v4356_v57, %v4093_v18  ;;  %v5852_v60 = vpop.f32.mrb[230].mxu1  ;;  %v4096_v48 = vadd.f32 %v8214_v43, %v4057_v32  ;;  %v4015_v38 = vpop.f32.mrb[231].mxu0 }
 0x2c6   : > { %v4359_v34 = vpop.f32.mrb[231].mxu1  ;;  %v4056_v39 = vadd.f32 %v4015_v38, %v8205_v9 }
 0x2c7   : > { %v4438_v58 = vadd.f32 %v8222_v8, %v4399_v45  ;;  %v4400_v10 = vadd.f32 %v4359_v34, %v4094_v41  ;;  %v4402_v6 = vadd.f32 %v5852_v60, %v4096_v48 }
 0x2c8   : > { %v4095_v2 = vadd.f32 %v8214_v43, %v4056_v39 }
 0x2c9   : > { %4470 = vst.msk [vmem:[%s8236_s14 + $0xe0] sm:$0xff] %vm564_vm0, %v4438_v58  ;;  %v4439_v23 = vadd.f32 %v8222_v8, %v4400_v10  ;;  %v4441_v7 = vadd.f32 %v8222_v8, %v4402_v6 }
 0x2ca   : > { %v4401_v12 = vadd.f32 %v5851_v3, %v4095_v2 }
 0x2cb   : > { %4471 = vst.msk [vmem:[%s8236_s14 + $0xe8] sm:$0xff] %vm564_vm0, %v4439_v23  ;;  %4473 = vst.msk [vmem:[%s8236_s14 + $0xf8] sm:$0xff] %vm564_vm0, %v4441_v7 }
 0x2cc   : > { %v4440_v9 = vadd.f32 %v8222_v8, %v4401_v12 }
 0x2ce   : > { %4472 = vst.msk [vmem:[%s8236_s14 + $0xf0] sm:$0xff] %vm564_vm0, %v4440_v9 }
 0x2cf   : > { %6032 = shalt.err (!%p6029_p5)
}
 0x2d0   : > { %s6033_s30 = scalar_lea.hbm %s8387_s20, 4096  ;;  %s6037_s13 = scalar_lea.hbm %s8448_s6, 8192 }
 0x2d1   : > { %p6034_p6 = scmp.ne.s32.totalorder %s8387_s20, %s6033_s30  ;;  %p6038_p10 = scmp.lt.u32.totalorder %s8387_s20, %s8448_s6 }
 0x2d2   : > { %p6039_p11 = scmp.lt.u32.totalorder %s6037_s13, %s6033_s30  ;;  %p6041_p13 = scmp.lt.u32.totalorder %s6033_s30, %s8387_s20 }
 0x2d3   : > { %p6035_p7 = pnand %p6034_p6, %p6177_p4 }
 0x2d4   : > { %p6040_p12 = por %p6039_p11, %p6038_p10 }
 0x2d5   : > { %p6036_p9 = pneg %p6035_p7 }
 0x2d6   : > { %p6042_p0 = por %p6041_p13, %p6040_p12 }
 0x2d8   : > { %p6043_p1 = pnand %p6042_p0, %p6036_p9 }
 0x2da   : > { %6046 = shalt.err (!%p6043_p1)
}
 0x2db   : > { %s6100_s18 = smov 128   ;;  %s6101_s19 = smov 8  }
 0x2dc   : > { %5862 = dma.vmem_to_hbm [thread:$0]  (%p6177_p4), %s8389_s17, 4096, %s8387_s20, %s8396_s24, %s6100_s18, %s6100_s18, %s6101_s19  }
 0x2dd PF: > { %p5868_p2 = scmp.ge.s32.totalorder %s6097_s26, 2  ;;  %s4504_s27 = sand.u32 1, %s6077_s21  }
 0x2de   : > { %s4505_s15 = scalar_lea.sflag [#allocation3], %s4504_s27 }
 0x2df   : > { %p5865_p3 = pnand %p5868_p2, %p6184_p8 }
 0x2e1   : > { %6072 = dma.done.wait (!%p5865_p3), %s4505_s15, 4096  }
 0x2e2   : > { %6074 = vsyncadd (!%p5865_p3), %s4505_s15, 4294963200  ;;  %s19_s26 = sadd.s32 1, %s6097_s26   ;;  %s8825_s21 = smov %s6081_s22 }
 0x2e3   : > { %p16_p5 = scmp.ge.s32.totalorder %s19_s26, 4   ;;  %s8826_s22 = smov %s6085_s23 }
 0x2e4   : > { %s8827_s23 = smov %s6190_s10  ;;  %s8828_s24 = smov %s6093_s25 }
 0x2e5   : > { %s8829_s25 = smov %s8831_s29  ;;  %18 = sbr.rel (!%p16_p5) target bundleno = 4 (0x4), region = 102 }
 0x2ec   :  { %4510 = vsyncpa [#allocation3], 1 }
 0x2ed   :  { %4512 = vsyncpa [#allocation3 + $0x1], 1 }

</bundles_post_ra>
